<compile_context>
chip_gen: v7x
topology: tpu7x:2x2x1
jax: 0.10.0
libtpu: 0.0.40
codegen_flags: <defaults>
</compile_context>

<pallas_src>
import math

import jax
import jax.numpy as jnp
from jax import lax
from jax.experimental import pallas as pl
from jax.experimental.pallas import tpu as pltpu

EPS = 1e-5


def _round_up(x, m):
    return ((x + m - 1) // m) * m


def _cdiv(a, b):
    return -(-a // b)


# ----------------------------------------------------------------------------
# Kernel 1: fused matmul (1x1 convs, conv1-stem im2col)
#   out = post_act((pre_act(a) @ b) * post_scale + post_shift)
# ----------------------------------------------------------------------------
def _make_mm_kernel(has_pre, pre_relu, has_post, post_relu):
    def kernel(*refs):
        i = 0
        a_ref = refs[i]; i += 1
        b_ref = refs[i]; i += 1
        if has_pre:
            ps_ref, pb_ref = refs[i], refs[i + 1]; i += 2
        if has_post:
            qs_ref, qb_ref = refs[i], refs[i + 1]; i += 2
        o_ref = refs[i]

        a = a_ref[...]
        if has_pre:
            a = a.astype(jnp.float32) * ps_ref[...] + pb_ref[...]
            if pre_relu:
                a = jnp.maximum(a, 0.0)
        a = a.astype(jnp.bfloat16)
        y = jnp.dot(a, b_ref[...], preferred_element_type=jnp.float32)
        if has_post:
            y = y * qs_ref[...] + qb_ref[...]
        if post_relu:
            y = jnp.maximum(y, 0.0)
        o_ref[...] = y.astype(o_ref.dtype)
    return kernel


def matmul_fused(a, b, pre=None, pre_relu=False, post=None, post_relu=False,
                 out_dtype=jnp.bfloat16, bm_target=512):
    """a: (M, K), b: (K, N) bf16. Whole K and N live in one block (<=640 here)."""
    M, K = a.shape
    K2, N = b.shape
    assert K == K2
    bm = min(bm_target, _round_up(M, 8))
    Mp = _round_up(M, bm)
    if Mp != M:
        a = jnp.pad(a, ((0, Mp - M), (0, 0)))

    inputs = [a, b]
    in_specs = [pl.BlockSpec((bm, K), lambda i: (i, 0)),
                pl.BlockSpec((K, N), lambda i: (0, 0))]
    if pre is not None:
        s, t = pre
        inputs += [s.reshape(1, K).astype(jnp.float32),
                   t.reshape(1, K).astype(jnp.float32)]
        in_specs += [pl.BlockSpec((1, K), lambda i: (0, 0)),
                     pl.BlockSpec((1, K), lambda i: (0, 0))]
    if post is not None:
        s, t = post
        inputs += [s.reshape(1, N).astype(jnp.float32),
                   t.reshape(1, N).astype(jnp.float32)]
        in_specs += [pl.BlockSpec((1, N), lambda i: (0, 0)),
                     pl.BlockSpec((1, N), lambda i: (0, 0))]

    out = pl.pallas_call(
        _make_mm_kernel(pre is not None, pre_relu, post is not None, post_relu),
        out_shape=jax.ShapeDtypeStruct((Mp, N), out_dtype),
        grid=(Mp // bm,),
        in_specs=in_specs,
        out_specs=pl.BlockSpec((bm, N), lambda i: (i, 0)),
        compiler_params=pltpu.CompilerParams(
            dimension_semantics=("parallel",)),
    )(*inputs)
    return out[:M] if Mp != M else out


# ----------------------------------------------------------------------------
# Kernel 2: shifted-tap conv matmul (kxk convs, no im2col).
#   For each output flat row q:  out[q] = sum_g a[q + roff_g, coff_g:coff_g+w_g] @ W_g
#   The grid is 1-D over output row tiles; each tile reads its own block plus a
#   small "halo" block of the flattened padded activation.
# ----------------------------------------------------------------------------
def _make_tap_conv_kernel(groups, bm, has_post, post_relu):
    """groups: tuple of (row_off, col_off, width, weight_row_off)."""
    def kernel(*refs):
        a_ref, h_ref, w_ref = refs[0], refs[1], refs[2]
        i = 3
        if has_post:
            qs_ref, qb_ref = refs[i], refs[i + 1]; i += 2
        o_ref = refs[i]
        acc_ref = refs[i + 1]

        start = 0
        if groups and groups[0][0] == 0:
            # First group has zero row offset -> write accumulator directly.
            _, coff, width, woff = groups[0]
            acc_ref[...] = jnp.dot(a_ref[:, coff:coff + width],
                                   w_ref[woff:woff + width, :],
                                   preferred_element_type=jnp.float32)
            start = 1
        else:
            acc_ref[...] = jnp.zeros_like(acc_ref)

        for (roff, coff, width, woff) in groups[start:]:
            wt = w_ref[woff:woff + width, :]
            if roff < bm:                       # rows served by the main block
                acc_ref[0:bm - roff, :] += jnp.dot(
                    a_ref[roff:bm, coff:coff + width], wt,
                    preferred_element_type=jnp.float32)
            if roff > 0:                        # rows served by the halo block
                acc_ref[bm - roff:bm, :] += jnp.dot(
                    h_ref[0:roff, coff:coff + width], wt,
                    preferred_element_type=jnp.float32)

        y = acc_ref[...]
        if has_post:
            y = y * qs_ref[...] + qb_ref[...]
        if post_relu:
            y = jnp.maximum(y, 0.0)
        o_ref[...] = y.astype(o_ref.dtype)
    return kernel


def _tap_conv_matmul(a_flat, w_hwio, tap_list, c_tap, post, post_relu):
    """a_flat: (M, Ctot) bf16 flattened padded activation.
       w_hwio: (kh, kw, C, Cout) bf16 weights.
       tap_list: [(row_off, col_off, (dy, dx))]."""
    M, Ctot = a_flat.shape
    kh, kw, _, Cout = w_hwio.shape

    # --- group taps sharing a row offset with contiguous channel runs --------
    items = sorted(tap_list, key=lambda t: (t[0], t[1]))
    raw_groups = []                                   # [row_off, col_off, [(dy,dx)...]]
    for roff, coff, dd in items:
        if (raw_groups and raw_groups[-1][0] == roff and
                raw_groups[-1][1] + len(raw_groups[-1][2]) * c_tap == coff):
            raw_groups[-1][2].append(dd)
        else:
            raw_groups.append([roff, coff, [dd]])
    w_blocks, groups, woff = [], [], 0
    for roff, coff, dds in raw_groups:
        for dy, dx in dds:
            w_blocks.append(w_hwio[dy, dx])           # (C, Cout)
        width = len(dds) * c_tap
        groups.append((roff, coff, width, woff))
        woff += width
    w_stack = jnp.concatenate(w_blocks, axis=0)       # (kh*kw*C, Cout)
    KW = w_stack.shape[0]

    # --- tiling ---------------------------------------------------------------
    off_max = max(r for r, _, _ in tap_list)
    hb = max(8, _round_up(max(off_max, 1), 8))        # halo block rows (mult of 8)
    # Adaptive row-tile: ~512 KiB bf16 input tile, clamped to [256, 2048].
    bm_target = max(256, min(2048, (512 * 1024) // max(2 * Ctot, 1)))
    bm_cap = max(hb, (bm_target // hb) * hb)          # hb | bm
    bm = max(hb, min(bm_cap, _round_up(M, hb)))
    nt = _cdiv(M, bm)
    Ma = (nt + 1) * bm                                # +1 block so the halo of the
    a_flat = jnp.pad(a_flat, ((0, Ma - M), (0, 0)))   # last tile stays in range
    rfac = bm // hb

    inputs = [a_flat, a_flat, w_stack]
    in_specs = [pl.BlockSpec((bm, Ctot), lambda i: (i, 0)),
                pl.BlockSpec((hb, Ctot), lambda i: ((i + 1) * rfac, 0)),
                pl.BlockSpec((KW, Cout), lambda i: (0, 0))]
    if post is not None:
        s, t = post
        inputs += [s.reshape(1, Cout).astype(jnp.float32),
                   t.reshape(1, Cout).astype(jnp.float32)]
        in_specs += [pl.BlockSpec((1, Cout), lambda i: (0, 0)),
                     pl.BlockSpec((1, Cout), lambda i: (0, 0))]

    out = pl.pallas_call(
        _make_tap_conv_kernel(tuple(groups), bm, post is not None, post_relu),
        out_shape=jax.ShapeDtypeStruct((nt * bm, Cout), jnp.bfloat16),
        grid=(nt,),
        in_specs=in_specs,
        out_specs=pl.BlockSpec((bm, Cout), lambda i: (i, 0)),
        scratch_shapes=[pltpu.VMEM((bm, Cout), jnp.float32)],
        compiler_params=pltpu.CompilerParams(
            dimension_semantics=("parallel",)),
    )(*inputs)
    return out[:M]


def conv_bn(x, w, stride=1, post=None, post_relu=False):
    """'same'-style conv (padding = k//2) with optional fused BN(+ReLU) epilogue.
       x: (N,H,W,C) bf16, w: (kh,kw,C,Cout) bf16 -> (N,Ho,Wo,Cout) bf16."""
    N, H, W, C = x.shape
    kh, kw, _, Cout = w.shape
    ph, pw = kh // 2, kw // 2

    if stride == 1:
        Hp, Wp = H + 2 * ph, W + 2 * pw
        xp = jnp.pad(x, ((0, 0), (ph, ph), (pw, pw), (0, 0)))
        a = xp.reshape(N * Hp * Wp, C)
        taps = [(dy * Wp + dx, 0, (dy, dx))
                for dy in range(kh) for dx in range(kw)]
        out = _tap_conv_matmul(a, w, taps, C, post, post_relu)
        return out.reshape(N, Hp, Wp, Cout)[:, :H, :W, :]

    if stride == 2:
        Hp, Wp = H + 2 * ph, W + 2 * pw
        pad_h, pad_w = Hp % 2, Wp % 2
        xp = jnp.pad(x, ((0, 0), (ph, ph + pad_h), (pw, pw + pad_w), (0, 0)))
        Hp += pad_h
        Wp += pad_w
        H2, W2 = Hp // 2, Wp // 2
        # space-to-depth: channel index = phase*C + c, phase = (dy%2)*2 + dx%2
        xc = xp.reshape(N, H2, 2, W2, 2, C).transpose(0, 1, 3, 2, 4, 5)
        a = xc.reshape(N * H2 * W2, 4 * C)
        taps = [((dy // 2) * W2 + (dx // 2), ((dy % 2) * 2 + (dx % 2)) * C, (dy, dx))
                for dy in range(kh) for dx in range(kw)]
        Ho = (H + 2 * ph - kh) // 2 + 1
        Wo = (W + 2 * pw - kw) // 2 + 1
        out = _tap_conv_matmul(a, w, taps, C, post, post_relu)
        return out.reshape(N, H2, W2, Cout)[:, :Ho, :Wo, :]

    raise NotImplementedError("stride must be 1 or 2")


# ----------------------------------------------------------------------------
# Glue ops (small tensors, kept in XLA)
# ----------------------------------------------------------------------------
def bn_scale_shift(bn):
    s = bn["gamma"] / jnp.sqrt(bn["var"] + EPS)
    t = bn["beta"] - bn["mean"] * s
    return s, t


def maxpool_3x3_s2(x):
    init = jnp.array(-jnp.inf, dtype=x.dtype)
    return lax.reduce_window(x, init, lax.max, (1, 3, 3, 1), (1, 2, 2, 1),
                             ((0, 0), (1, 1), (1, 1), (0, 0)))


def _interp_matrix(n_in, n_out):
    """Bilinear (align_corners=False) mixing matrix (n_out, n_in)."""
    scale = n_in / n_out
    dst = jnp.arange(n_out, dtype=jnp.float32)
    src = jnp.maximum((dst + 0.5) * scale - 0.5, 0.0)
    i0 = jnp.clip(jnp.floor(src).astype(jnp.int32), 0, n_in - 1)
    i1 = jnp.minimum(i0 + 1, n_in - 1)
    frac = src - i0.astype(jnp.float32)
    return (jax.nn.one_hot(i0, n_in, dtype=jnp.float32) * (1.0 - frac)[:, None]
            + jax.nn.one_hot(i1, n_in, dtype=jnp.float32) * frac[:, None])


def bilinear(x, oh, ow):
    """F.interpolate(mode='bilinear', align_corners=False), via dense matmuls."""
    n, h, w, c = x.shape
    if (h, w) == (oh, ow):
        return x
    xf = x.astype(jnp.float32)
    rh = _interp_matrix(h, oh)
    rw = _interp_matrix(w, ow)
    y = jnp.einsum("oh,nhwc->nowc", rh, xf)
    y = jnp.einsum("pw,nowc->nopc", rw, y)
    return y.astype(x.dtype)


def adaptive_avg_pool(x, oh, ow):
    """F.adaptive_avg_pool2d on NHWC (PyTorch floor/ceil binning)."""
    n, h, w, c = x.shape
    rows = []
    for i in range(oh):
        hs, he = (i * h) // oh, -(-((i + 1) * h) // oh)
        cols = []
        for j in range(ow):
            ws, we = (j * w) // ow, -(-((j + 1) * w) // ow)
            cols.append(jnp.mean(x[:, hs:he, ws:we, :].astype(jnp.float32),
                                 axis=(1, 2)))
        rows.append(jnp.stack(cols, axis=1))
    return jnp.stack(rows, axis=1).astype(x.dtype)


# ----------------------------------------------------------------------------
# Network modules
# ----------------------------------------------------------------------------
def stem_conv(x_f32, w, bn):
    """conv1 7x7/s2/p3 + BN + ReLU (im2col is acceptable here: cin=3)."""
    N, H, W, C = x_f32.shape
    kh = kw = 7
    xp = jnp.pad(x_f32, ((0, 0), (3, 3), (3, 3), (0, 0)))
    Ho = (H + 6 - 7) // 2 + 1
    Wo = (W + 6 - 7) // 2 + 1
    cols = []
    for dy in range(kh):
        for dx in range(kw):
            cols.append(xp[:, dy:dy + 2 * (Ho - 1) + 1:2,
                           dx:dx + 2 * (Wo - 1) + 1:2, :])
    a = jnp.concatenate(cols, axis=-1).reshape(N * Ho * Wo, kh * kw * C)
    a = a.astype(jnp.bfloat16)
    s, t = bn_scale_shift(bn)
    y = matmul_fused(a, w.reshape(kh * kw * C, -1), post=(s, t), post_relu=True)
    return y.reshape(N, Ho, Wo, -1)


def bnreluconv_fwd(p, x):
    """BNReluConv: bn -> relu -> conv(k, pad=k//2)."""
    s, t = bn_scale_shift(p["bn"])
    k = p["k"]
    if k == 1:
        N, H, W, C = x.shape
        cout = p["conv"].shape[-1]
        y = matmul_fused(x.reshape(-1, C), p["conv"].reshape(C, cout),
                         pre=(s, t), pre_relu=True)
        return y.reshape(N, H, W, cout)
    # k > 1: bn+relu+cast ride along with the conv's mandatory pad copy (XLA fuses).
    xa = jnp.maximum(x.astype(jnp.float32) * s + t, 0.0).astype(jnp.bfloat16)
    return conv_bn(xa, p["conv"], stride=1)


def basic_block_fwd(p, x):
    s1, t1 = bn_scale_shift(p["bn1"])
    s2, t2 = bn_scale_shift(p["bn2"])
    out = conv_bn(x, p["conv1"], stride=p["stride"], post=(s1, t1), post_relu=True)
    out = conv_bn(out, p["conv2"], stride=1, post=(s2, t2), post_relu=False)
    if "ds_conv" in p:
        xs = x[:, ::p["stride"], ::p["stride"], :] if p["stride"] > 1 else x
        N, H, W, C = xs.shape
        sd, td = bn_scale_shift(p["ds_bn"])
        cout = p["ds_conv"].shape[-1]
        res = matmul_fused(xs.reshape(-1, C), p["ds_conv"].reshape(C, cout),
                           post=(sd, td))
        res = res.reshape(N, H, W, cout)
    else:
        res = x
    skip = out.astype(jnp.float32) + res.astype(jnp.float32)
    x_next = jnp.maximum(skip, 0.0).astype(jnp.bfloat16)
    return x_next, skip.astype(jnp.bfloat16)          # (relu(out), pre-relu skip)


def upsample_fwd(p, x, skip):
    skip = bnreluconv_fwd(p["bottleneck"], skip)
    x = bilinear(x, skip.shape[1], skip.shape[2])
    x = (x.astype(jnp.float32) + skip.astype(jnp.float32)).astype(jnp.bfloat16)
    return bnreluconv_fwd(p["blend"], x)


def spp_fwd(p, x):
    layers, grids = p["layers"], p["grids"]
    n, h, w, c = x.shape
    ar = w / h
    x = bnreluconv_fwd(layers[0], x)
    levels = [x]
    num = len(layers) - 1
    for i in range(1, num):
        gh = grids[i - 1]
        gw = max(1, round(ar * grids[i - 1]))
        xp_ = adaptive_avg_pool(x, gh, gw)
        lv = bnreluconv_fwd(layers[i], xp_)
        lv = bilinear(lv, h, w)
        levels.append(lv)
    xc = jnp.concatenate(levels, axis=-1)
    return bnreluconv_fwd(layers[-1], xc)


# ----------------------------------------------------------------------------
# Parameter construction (deterministic, matching the module's init scheme)
# ----------------------------------------------------------------------------
def bn_params(c):
    return dict(gamma=jnp.ones((c,), jnp.float32),
                beta=jnp.zeros((c,), jnp.float32),
                mean=jnp.zeros((c,), jnp.float32),
                var=jnp.ones((c,), jnp.float32))


def make_conv(key, cin, cout, k):
    std = math.sqrt(2.0 / (cout * k * k))          # kaiming_normal, fan_out, relu
    w = jax.random.normal(key, (k, k, cin, cout), jnp.float32) * std
    return w.astype(jnp.bfloat16)


def make_bnreluconv(key, cin, cout, k=3):
    return dict(bn=bn_params(cin), conv=make_conv(key, cin, cout, k), k=k)


def make_basic_block(key, inplanes, planes, stride=1, downsample=False):
    k1, k2, k3 = jax.random.split(key, 3)
    p = dict(conv1=make_conv(k1, inplanes, planes, 3), bn1=bn_params(planes),
             conv2=make_conv(k2, planes, planes, 3), bn2=bn_params(planes),
             stride=stride)
    if downsample:
        p["ds_conv"] = make_conv(k3, inplanes, planes, 1)
        p["ds_bn"] = bn_params(planes)
    return p


def make_layer(key, inplanes, planes, blocks, stride=1):
    keys = jax.random.split(key, max(blocks, 2))
    ds = (stride != 1) or (inplanes != planes)
    layer = [make_basic_block(keys[0], inplanes, planes, stride, ds)]
    for i in range(1, blocks):
        layer.append(make_basic_block(keys[i], planes, planes, 1, False))
    return layer


def make_upsample(key, num_in, skip_in, num_out, k=3):
    k1, k2 = jax.random.split(key)
    return dict(bottleneck=make_bnreluconv(k1, skip_in, num_in, 1),
                blend=make_bnreluconv(k2, num_in, num_out, k))


def make_spp(key, cin, num_levels, bt_size, level_size, out_size, grids):
    keys = jax.random.split(key, num_levels + 2)
    layers = [make_bnreluconv(keys[0], cin, bt_size, 1)]
    nf, final = bt_size, bt_size
    for i in range(num_levels):
        final += level_size
        layers.append(make_bnreluconv(keys[1 + i], nf, level_size, 1))
    layers.append(make_bnreluconv(keys[-1], final, out_size, 1))
    return dict(layers=layers, grids=grids)


def make_resnet(key, layers=(1, 1, 1, 1), num_features=128, k_up=3,
                spp_grids=(8, 4, 2, 1)):
    ks = jax.random.split(key, 10)
    params = dict(conv1=make_conv(ks[0], 3, 64, 7), bn1=bn_params(64))
    planes_list, strides = (64, 128, 256, 512), (1, 2, 2, 2)
    inplanes = 64
    params["layers"] = []
    upsamples = []
    for i in range(4):
        params["layers"].append(
            make_layer(ks[1 + i], inplanes, planes_list[i], layers[i], strides[i]))
        inplanes = planes_list[i]
        if i < 3:
            upsamples.append(
                make_upsample(ks[5 + i], num_features, inplanes, num_features, k_up))
    num_levels = 3
    params["spp"] = make_spp(ks[9], inplanes, num_levels, num_features,
                             num_features // num_levels, num_features, spp_grids)
    params["upsample"] = list(reversed(upsamples))
    return params


# ----------------------------------------------------------------------------
# Full forward
# ----------------------------------------------------------------------------
def resnet_forward(params, image_nchw):
    x = jnp.transpose(image_nchw, (0, 2, 3, 1)).astype(jnp.float32)   # NHWC
    # forward_down
    x = stem_conv(x, params["conv1"], params["bn1"])
    x = maxpool_3x3_s2(x)
    features = []
    for li, layer in enumerate(params["layers"]):
        skip = None
        for blk in layer:
            x, skip = basic_block_fwd(blk, x)
        if li < 3:
            features.append(skip)
        else:
            features.append(spp_fwd(params["spp"], skip))
    # forward_up
    feats = features[::-1]
    x = feats[0]
    upsamples = []
    for skip, up in zip(feats[1:], params["upsample"]):
        x = upsample_fwd(up, x, skip)
        upsamples.append(x)
    x_nchw = jnp.transpose(x, (0, 3, 1, 2)).astype(jnp.float32)
    aux = {"features": [jnp.transpose(f, (0, 3, 1, 2)) for f in feats],
           "upsamples": [jnp.transpose(u, (0, 3, 1, 2)) for u in upsamples]}
    return x_nchw, aux


if __name__ == "__main__":
    root = jax.random.PRNGKey(0)
    pkey, dkey, ck1, ck2 = jax.random.split(root, 4)

    # Self-check: tap-conv kernel vs XLA conv (stride 1 and 2), generous tol.
    xs = jax.random.normal(ck1, (2, 16, 16, 64), jnp.float32).astype(jnp.bfloat16)
    ws = (jax.random.normal(ck2, (3, 3, 64, 128), jnp.float32) * 0.05
          ).astype(jnp.bfloat16)
    for s_ in (1, 2):
        got = conv_bn(xs, ws, stride=s_).astype(jnp.float32)
        ref = lax.conv_general_dilated(
            xs.astype(jnp.float32), ws.astype(jnp.float32),
            window_strides=(s_, s_), padding=((1, 1), (1, 1)),
            dimension_numbers=("NHWC", "HWIO", "NHWC"))
        err = float(jnp.max(jnp.abs(got - ref)))
        assert err < 0.1, f"conv self-check failed (stride={s_}, err={err})"

    params = make_resnet(pkey, layers=(1, 1, 1, 1), num_features=128)
    image = jax.random.normal(dkey, (2, 3, 64, 64), jnp.float32)      # NCHW

    fwd = jax.jit(lambda im: resnet_forward(params, im))
    out, aux = fwd(image)
    out = jax.block_until_ready(out)
    assert out.shape == (2, 128, 16, 16), out.shape
    assert bool(jnp.all(jnp.isfinite(out)))
    print("KERNEL_OK")
</pallas_src>

<mosaic_0001>
module attributes {stable_mosaic.version = 11 : i64} {
  func.func @kernel(%arg0: i32, %arg1: memref<680x64xbf16, #tpu.memory_space<vmem>>, %arg2: memref<40x64xbf16, #tpu.memory_space<vmem>>, %arg3: memref<576x128xbf16, #tpu.memory_space<vmem>>, %arg4: memref<680x128xbf16, #tpu.memory_space<vmem>>, %arg5: memref<680x128xf32, #tpu.memory_space<vmem>>) attributes {dimension_semantics = [#tpu.dimension_semantics<parallel>], iteration_bounds = array<i64: 1>, scalar_prefetch = 0 : i64, scratch_operands = 1 : i64, tpu.core_type = #tpu.core_type<tc>, window_params = [{transform_indices = @transform_0, window_bounds = array<i64: 680, 64>}, {transform_indices = @transform_1, window_bounds = array<i64: 40, 64>}, {pipeline_mode = #tpu.pipeline_mode<synchronous>, transform_indices = @transform_2, window_bounds = array<i64: 576, 128>}, {transform_indices = @transform_3, window_bounds = array<i64: 680, 128>}]} {
    %c0 = arith.constant 0 : index
    %c0_0 = arith.constant 0 : index
    %0 = vector.load %arg1[%c0, %c0_0] : memref<680x64xbf16, #tpu.memory_space<vmem>>, vector<680x64xbf16>
    %c0_1 = arith.constant 0 : index
    %c0_2 = arith.constant 0 : index
    %1 = vector.load %arg3[%c0_1, %c0_2] : memref<576x128xbf16, #tpu.memory_space<vmem>>, vector<64x128xbf16>
    %cst = arith.constant dense<0.000000e+00> : vector<680x128xf32>
    %2 = tpu.matmul %0, %1, %cst {dimension_numbers = #tpu.dot_dimension_numbers<[1], [0], [0], [1], [0, 0, 1, 1], [], []>} : vector<680x64xbf16>, vector<64x128xbf16>, vector<680x128xf32> -> vector<680x128xf32>
    %c0_3 = arith.constant 0 : index
    %c0_4 = arith.constant 0 : index
    %3 = vector.load %arg5[%c0_3, %c0_4] : memref<680x128xf32, #tpu.memory_space<vmem>>, vector<680x128xf32>
    tpu.vector_store %arg5[%c0_3, %c0_4], %2 {strides = array<i32>} : memref<680x128xf32, #tpu.memory_space<vmem>>, vector<680x128xf32>,
    %c64 = arith.constant 64 : index
    %c0_5 = arith.constant 0 : index
    %4 = vector.load %arg3[%c64, %c0_5] : memref<576x128xbf16, #tpu.memory_space<vmem>>, vector<64x128xbf16>
    %c0_6 = arith.constant 0 : index
    %c0_7 = arith.constant 0 : index
    %5 = vector.load %arg5[%c0_6, %c0_7] : memref<680x128xf32, #tpu.memory_space<vmem>>, vector<679x128xf32>
    %c1 = arith.constant 1 : index
    %c0_8 = arith.constant 0 : index
    %6 = vector.load %arg1[%c1, %c0_8] : memref<680x64xbf16, #tpu.memory_space<vmem>>, vector<679x64xbf16>
    %cst_9 = arith.constant dense<0.000000e+00> : vector<679x128xf32>
    %7 = tpu.matmul %6, %4, %cst_9 {dimension_numbers = #tpu.dot_dimension_numbers<[1], [0], [0], [1], [0, 0, 1, 1], [], []>} : vector<679x64xbf16>, vector<64x128xbf16>, vector<679x128xf32> -> vector<679x128xf32>
    %8 = arith.addf %5, %7 : vector<679x128xf32>
    %c0_10 = arith.constant 0 : index
    %c0_11 = arith.constant 0 : index
    %9 = vector.load %arg5[%c0_10, %c0_11] : memref<680x128xf32, #tpu.memory_space<vmem>>, vector<679x128xf32>
    tpu.vector_store %arg5[%c0_10, %c0_11], %8 {strides = array<i32>} : memref<680x128xf32, #tpu.memory_space<vmem>>, vector<679x128xf32>,
    %c679 = arith.constant 679 : index
    %c0_12 = arith.constant 0 : index
    %10 = vector.load %arg5[%c679, %c0_12] : memref<680x128xf32, #tpu.memory_space<vmem>>, vector<1x128xf32>
    %c0_13 = arith.constant 0 : index
    %c0_14 = arith.constant 0 : index
    %11 = vector.load %arg2[%c0_13, %c0_14] : memref<40x64xbf16, #tpu.memory_space<vmem>>, vector<1x64xbf16>
    %cst_15 = arith.constant dense<0.000000e+00> : vector<1x128xf32>
    %12 = tpu.matmul %11, %4, %cst_15 {dimension_numbers = #tpu.dot_dimension_numbers<[1], [0], [0], [1], [0, 0, 1, 1], [], []>} : vector<1x64xbf16>, vector<64x128xbf16>, vector<1x128xf32> -> vector<1x128xf32>
    %13 = arith.addf %10, %12 : vector<1x128xf32>
    %c679_16 = arith.constant 679 : index
    %c0_17 = arith.constant 0 : index
    %14 = vector.load %arg5[%c679_16, %c0_17] : memref<680x128xf32, #tpu.memory_space<vmem>>, vector<1x128xf32>
    tpu.vector_store %arg5[%c679_16, %c0_17], %13 {strides = array<i32>} : memref<680x128xf32, #tpu.memory_space<vmem>>, vector<1x128xf32>,
    %c128 = arith.constant 128 : index
    %c0_18 = arith.constant 0 : index
    %15 = vector.load %arg3[%c128, %c0_18] : memref<576x128xbf16, #tpu.memory_space<vmem>>, vector<64x128xbf16>
    %c0_19 = arith.constant 0 : index
    %c0_20 = arith.constant 0 : index
    %16 = vector.load %arg5[%c0_19, %c0_20] : memref<680x128xf32, #tpu.memory_space<vmem>>, vector<678x128xf32>
    %c2 = arith.constant 2 : index
    %c0_21 = arith.constant 0 : index
    %17 = vector.load %arg1[%c2, %c0_21] : memref<680x64xbf16, #tpu.memory_space<vmem>>, vector<678x64xbf16>
    %cst_22 = arith.constant dense<0.000000e+00> : vector<678x128xf32>
    %18 = tpu.matmul %17, %15, %cst_22 {dimension_numbers = #tpu.dot_dimension_numbers<[1], [0], [0], [1], [0, 0, 1, 1], [], []>} : vector<678x64xbf16>, vector<64x128xbf16>, vector<678x128xf32> -> vector<678x128xf32>
    %19 = arith.addf %16, %18 : vector<678x128xf32>
    %c0_23 = arith.constant 0 : index
    %c0_24 = arith.constant 0 : index
    %20 = vector.load %arg5[%c0_23, %c0_24] : memref<680x128xf32, #tpu.memory_space<vmem>>, vector<678x128xf32>
    tpu.vector_store %arg5[%c0_23, %c0_24], %19 {strides = array<i32>} : memref<680x128xf32, #tpu.memory_space<vmem>>, vector<678x128xf32>,
    %c678 = arith.constant 678 : index
    %c0_25 = arith.constant 0 : index
    %21 = vector.load %arg5[%c678, %c0_25] : memref<680x128xf32, #tpu.memory_space<vmem>>, vector<2x128xf32>
    %c0_26 = arith.constant 0 : index
    %c0_27 = arith.constant 0 : index
    %22 = vector.load %arg2[%c0_26, %c0_27] : memref<40x64xbf16, #tpu.memory_space<vmem>>, vector<2x64xbf16>
    %cst_28 = arith.constant dense<0.000000e+00> : vector<2x128xf32>
    %23 = tpu.matmul %22, %15, %cst_28 {dimension_numbers = #tpu.dot_dimension_numbers<[1], [0], [0], [1], [0, 0, 1, 1], [], []>} : vector<2x64xbf16>, vector<64x128xbf16>, vector<2x128xf32> -> vector<2x128xf32>
    %24 = arith.addf %21, %23 : vector<2x128xf32>
    %c678_29 = arith.constant 678 : index
    %c0_30 = arith.constant 0 : index
    %25 = vector.load %arg5[%c678_29, %c0_30] : memref<680x128xf32, #tpu.memory_space<vmem>>, vector<2x128xf32>
    tpu.vector_store %arg5[%c678_29, %c0_30], %24 {strides = array<i32>} : memref<680x128xf32, #tpu.memory_space<vmem>>, vector<2x128xf32>,
    %c192 = arith.constant 192 : index
    %c0_31 = arith.constant 0 : index
    %26 = vector.load %arg3[%c192, %c0_31] : memref<576x128xbf16, #tpu.memory_space<vmem>>, vector<64x128xbf16>
    %c0_32 = arith.constant 0 : index
    %c0_33 = arith.constant 0 : index
    %27 = vector.load %arg5[%c0_32, %c0_33] : memref<680x128xf32, #tpu.memory_space<vmem>>, vector<662x128xf32>
    %c18 = arith.constant 18 : index
    %c0_34 = arith.constant 0 : index
    %28 = vector.load %arg1[%c18, %c0_34] : memref<680x64xbf16, #tpu.memory_space<vmem>>, vector<662x64xbf16>
    %cst_35 = arith.constant dense<0.000000e+00> : vector<662x128xf32>
    %29 = tpu.matmul %28, %26, %cst_35 {dimension_numbers = #tpu.dot_dimension_numbers<[1], [0], [0], [1], [0, 0, 1, 1], [], []>} : vector<662x64xbf16>, vector<64x128xbf16>, vector<662x128xf32> -> vector<662x128xf32>
    %30 = arith.addf %27, %29 : vector<662x128xf32>
    %c0_36 = arith.constant 0 : index
    %c0_37 = arith.constant 0 : index
    %31 = vector.load %arg5[%c0_36, %c0_37] : memref<680x128xf32, #tpu.memory_space<vmem>>, vector<662x128xf32>
    tpu.vector_store %arg5[%c0_36, %c0_37], %30 {strides = array<i32>} : memref<680x128xf32, #tpu.memory_space<vmem>>, vector<662x128xf32>,
    %c662 = arith.constant 662 : index
    %c0_38 = arith.constant 0 : index
    %32 = vector.load %arg5[%c662, %c0_38] : memref<680x128xf32, #tpu.memory_space<vmem>>, vector<18x128xf32>
    %c0_39 = arith.constant 0 : index
    %c0_40 = arith.constant 0 : index
    %33 = vector.load %arg2[%c0_39, %c0_40] : memref<40x64xbf16, #tpu.memory_space<vmem>>, vector<18x64xbf16>
    %cst_41 = arith.constant dense<0.000000e+00> : vector<18x128xf32>
    %34 = tpu.matmul %33, %26, %cst_41 {dimension_numbers = #tpu.dot_dimension_numbers<[1], [0], [0], [1], [0, 0, 1, 1], [], []>} : vector<18x64xbf16>, vector<64x128xbf16>, vector<18x128xf32> -> vector<18x128xf32>
    %35 = arith.addf %32, %34 : vector<18x128xf32>
    %c662_42 = arith.constant 662 : index
    %c0_43 = arith.constant 0 : index
    %36 = vector.load %arg5[%c662_42, %c0_43] : memref<680x128xf32, #tpu.memory_space<vmem>>, vector<18x128xf32>
    tpu.vector_store %arg5[%c662_42, %c0_43], %35 {strides = array<i32>} : memref<680x128xf32, #tpu.memory_space<vmem>>, vector<18x128xf32>,
    %c256 = arith.constant 256 : index
    %c0_44 = arith.constant 0 : index
    %37 = vector.load %arg3[%c256, %c0_44] : memref<576x128xbf16, #tpu.memory_space<vmem>>, vector<64x128xbf16>
    %c0_45 = arith.constant 0 : index
    %c0_46 = arith.constant 0 : index
    %38 = vector.load %arg5[%c0_45, %c0_46] : memref<680x128xf32, #tpu.memory_space<vmem>>, vector<661x128xf32>
    %c19 = arith.constant 19 : index
    %c0_47 = arith.constant 0 : index
    %39 = vector.load %arg1[%c19, %c0_47] : memref<680x64xbf16, #tpu.memory_space<vmem>>, vector<661x64xbf16>
    %cst_48 = arith.constant dense<0.000000e+00> : vector<661x128xf32>
    %40 = tpu.matmul %39, %37, %cst_48 {dimension_numbers = #tpu.dot_dimension_numbers<[1], [0], [0], [1], [0, 0, 1, 1], [], []>} : vector<661x64xbf16>, vector<64x128xbf16>, vector<661x128xf32> -> vector<661x128xf32>
    %41 = arith.addf %38, %40 : vector<661x128xf32>
    %c0_49 = arith.constant 0 : index
    %c0_50 = arith.constant 0 : index
    %42 = vector.load %arg5[%c0_49, %c0_50] : memref<680x128xf32, #tpu.memory_space<vmem>>, vector<661x128xf32>
    tpu.vector_store %arg5[%c0_49, %c0_50], %41 {strides = array<i32>} : memref<680x128xf32, #tpu.memory_space<vmem>>, vector<661x128xf32>,
    %c661 = arith.constant 661 : index
    %c0_51 = arith.constant 0 : index
    %43 = vector.load %arg5[%c661, %c0_51] : memref<680x128xf32, #tpu.memory_space<vmem>>, vector<19x128xf32>
    %c0_52 = arith.constant 0 : index
    %c0_53 = arith.constant 0 : index
    %44 = vector.load %arg2[%c0_52, %c0_53] : memref<40x64xbf16, #tpu.memory_space<vmem>>, vector<19x64xbf16>
    %cst_54 = arith.constant dense<0.000000e+00> : vector<19x128xf32>
    %45 = tpu.matmul %44, %37, %cst_54 {dimension_numbers = #tpu.dot_dimension_numbers<[1], [0], [0], [1], [0, 0, 1, 1], [], []>} : vector<19x64xbf16>, vector<64x128xbf16>, vector<19x128xf32> -> vector<19x128xf32>
    %46 = arith.addf %43, %45 : vector<19x128xf32>
    %c661_55 = arith.constant 661 : index
    %c0_56 = arith.constant 0 : index
    %47 = vector.load %arg5[%c661_55, %c0_56] : memref<680x128xf32, #tpu.memory_space<vmem>>, vector<19x128xf32>
    tpu.vector_store %arg5[%c661_55, %c0_56], %46 {strides = array<i32>} : memref<680x128xf32, #tpu.memory_space<vmem>>, vector<19x128xf32>,
    %c320 = arith.constant 320 : index
    %c0_57 = arith.constant 0 : index
    %48 = vector.load %arg3[%c320, %c0_57] : memref<576x128xbf16, #tpu.memory_space<vmem>>, vector<64x128xbf16>
    %c0_58 = arith.constant 0 : index
    %c0_59 = arith.constant 0 : index
    %49 = vector.load %arg5[%c0_58, %c0_59] : memref<680x128xf32, #tpu.memory_space<vmem>>, vector<660x128xf32>
    %c20 = arith.constant 20 : index
    %c0_60 = arith.constant 0 : index
    %50 = vector.load %arg1[%c20, %c0_60] : memref<680x64xbf16, #tpu.memory_space<vmem>>, vector<660x64xbf16>
    %cst_61 = arith.constant dense<0.000000e+00> : vector<660x128xf32>
    %51 = tpu.matmul %50, %48, %cst_61 {dimension_numbers = #tpu.dot_dimension_numbers<[1], [0], [0], [1], [0, 0, 1, 1], [], []>} : vector<660x64xbf16>, vector<64x128xbf16>, vector<660x128xf32> -> vector<660x128xf32>
    %52 = arith.addf %49, %51 : vector<660x128xf32>
    %c0_62 = arith.constant 0 : index
    %c0_63 = arith.constant 0 : index
    %53 = vector.load %arg5[%c0_62, %c0_63] : memref<680x128xf32, #tpu.memory_space<vmem>>, vector<660x128xf32>
    tpu.vector_store %arg5[%c0_62, %c0_63], %52 {strides = array<i32>} : memref<680x128xf32, #tpu.memory_space<vmem>>, vector<660x128xf32>,
    %c660 = arith.constant 660 : index
    %c0_64 = arith.constant 0 : index
    %54 = vector.load %arg5[%c660, %c0_64] : memref<680x128xf32, #tpu.memory_space<vmem>>, vector<20x128xf32>
    %c0_65 = arith.constant 0 : index
    %c0_66 = arith.constant 0 : index
    %55 = vector.load %arg2[%c0_65, %c0_66] : memref<40x64xbf16, #tpu.memory_space<vmem>>, vector<20x64xbf16>
    %cst_67 = arith.constant dense<0.000000e+00> : vector<20x128xf32>
    %56 = tpu.matmul %55, %48, %cst_67 {dimension_numbers = #tpu.dot_dimension_numbers<[1], [0], [0], [1], [0, 0, 1, 1], [], []>} : vector<20x64xbf16>, vector<64x128xbf16>, vector<20x128xf32> -> vector<20x128xf32>
    %57 = arith.addf %54, %56 : vector<20x128xf32>
    %c660_68 = arith.constant 660 : index
    %c0_69 = arith.constant 0 : index
    %58 = vector.load %arg5[%c660_68, %c0_69] : memref<680x128xf32, #tpu.memory_space<vmem>>, vector<20x128xf32>
    tpu.vector_store %arg5[%c660_68, %c0_69], %57 {strides = array<i32>} : memref<680x128xf32, #tpu.memory_space<vmem>>, vector<20x128xf32>,
    %c384 = arith.constant 384 : index
    %c0_70 = arith.constant 0 : index
    %59 = vector.load %arg3[%c384, %c0_70] : memref<576x128xbf16, #tpu.memory_space<vmem>>, vector<64x128xbf16>
    %c0_71 = arith.constant 0 : index
    %c0_72 = arith.constant 0 : index
    %60 = vector.load %arg5[%c0_71, %c0_72] : memref<680x128xf32, #tpu.memory_space<vmem>>, vector<644x128xf32>
    %c36 = arith.constant 36 : index
    %c0_73 = arith.constant 0 : index
    %61 = vector.load %arg1[%c36, %c0_73] : memref<680x64xbf16, #tpu.memory_space<vmem>>, vector<644x64xbf16>
    %cst_74 = arith.constant dense<0.000000e+00> : vector<644x128xf32>
    %62 = tpu.matmul %61, %59, %cst_74 {dimension_numbers = #tpu.dot_dimension_numbers<[1], [0], [0], [1], [0, 0, 1, 1], [], []>} : vector<644x64xbf16>, vector<64x128xbf16>, vector<644x128xf32> -> vector<644x128xf32>
    %63 = arith.addf %60, %62 : vector<644x128xf32>
    %c0_75 = arith.constant 0 : index
    %c0_76 = arith.constant 0 : index
    %64 = vector.load %arg5[%c0_75, %c0_76] : memref<680x128xf32, #tpu.memory_space<vmem>>, vector<644x128xf32>
    tpu.vector_store %arg5[%c0_75, %c0_76], %63 {strides = array<i32>} : memref<680x128xf32, #tpu.memory_space<vmem>>, vector<644x128xf32>,
    %c644 = arith.constant 644 : index
    %c0_77 = arith.constant 0 : index
    %65 = vector.load %arg5[%c644, %c0_77] : memref<680x128xf32, #tpu.memory_space<vmem>>, vector<36x128xf32>
    %c0_78 = arith.constant 0 : index
    %c0_79 = arith.constant 0 : index
    %66 = vector.load %arg2[%c0_78, %c0_79] : memref<40x64xbf16, #tpu.memory_space<vmem>>, vector<36x64xbf16>
    %cst_80 = arith.constant dense<0.000000e+00> : vector<36x128xf32>
    %67 = tpu.matmul %66, %59, %cst_80 {dimension_numbers = #tpu.dot_dimension_numbers<[1], [0], [0], [1], [0, 0, 1, 1], [], []>} : vector<36x64xbf16>, vector<64x128xbf16>, vector<36x128xf32> -> vector<36x128xf32>
    %68 = arith.addf %65, %67 : vector<36x128xf32>
    %c644_81 = arith.constant 644 : index
    %c0_82 = arith.constant 0 : index
    %69 = vector.load %arg5[%c644_81, %c0_82] : memref<680x128xf32, #tpu.memory_space<vmem>>, vector<36x128xf32>
    tpu.vector_store %arg5[%c644_81, %c0_82], %68 {strides = array<i32>} : memref<680x128xf32, #tpu.memory_space<vmem>>, vector<36x128xf32>,
    %c448 = arith.constant 448 : index
    %c0_83 = arith.constant 0 : index
    %70 = vector.load %arg3[%c448, %c0_83] : memref<576x128xbf16, #tpu.memory_space<vmem>>, vector<64x128xbf16>
    %c0_84 = arith.constant 0 : index
    %c0_85 = arith.constant 0 : index
    %71 = vector.load %arg5[%c0_84, %c0_85] : memref<680x128xf32, #tpu.memory_space<vmem>>, vector<643x128xf32>
    %c37 = arith.constant 37 : index
    %c0_86 = arith.constant 0 : index
    %72 = vector.load %arg1[%c37, %c0_86] : memref<680x64xbf16, #tpu.memory_space<vmem>>, vector<643x64xbf16>
    %cst_87 = arith.constant dense<0.000000e+00> : vector<643x128xf32>
    %73 = tpu.matmul %72, %70, %cst_87 {dimension_numbers = #tpu.dot_dimension_numbers<[1], [0], [0], [1], [0, 0, 1, 1], [], []>} : vector<643x64xbf16>, vector<64x128xbf16>, vector<643x128xf32> -> vector<643x128xf32>
    %74 = arith.addf %71, %73 : vector<643x128xf32>
    %c0_88 = arith.constant 0 : index
    %c0_89 = arith.constant 0 : index
    %75 = vector.load %arg5[%c0_88, %c0_89] : memref<680x128xf32, #tpu.memory_space<vmem>>, vector<643x128xf32>
    tpu.vector_store %arg5[%c0_88, %c0_89], %74 {strides = array<i32>} : memref<680x128xf32, #tpu.memory_space<vmem>>, vector<643x128xf32>,
    %c643 = arith.constant 643 : index
    %c0_90 = arith.constant 0 : index
    %76 = vector.load %arg5[%c643, %c0_90] : memref<680x128xf32, #tpu.memory_space<vmem>>, vector<37x128xf32>
    %c0_91 = arith.constant 0 : index
    %c0_92 = arith.constant 0 : index
    %77 = vector.load %arg2[%c0_91, %c0_92] : memref<40x64xbf16, #tpu.memory_space<vmem>>, vector<37x64xbf16>
    %cst_93 = arith.constant dense<0.000000e+00> : vector<37x128xf32>
    %78 = tpu.matmul %77, %70, %cst_93 {dimension_numbers = #tpu.dot_dimension_numbers<[1], [0], [0], [1], [0, 0, 1, 1], [], []>} : vector<37x64xbf16>, vector<64x128xbf16>, vector<37x128xf32> -> vector<37x128xf32>
    %79 = arith.addf %76, %78 : vector<37x128xf32>
    %c643_94 = arith.constant 643 : index
    %c0_95 = arith.constant 0 : index
    %80 = vector.load %arg5[%c643_94, %c0_95] : memref<680x128xf32, #tpu.memory_space<vmem>>, vector<37x128xf32>
    tpu.vector_store %arg5[%c643_94, %c0_95], %79 {strides = array<i32>} : memref<680x128xf32, #tpu.memory_space<vmem>>, vector<37x128xf32>,
    %c512 = arith.constant 512 : index
    %c0_96 = arith.constant 0 : index
    %81 = vector.load %arg3[%c512, %c0_96] : memref<576x128xbf16, #tpu.memory_space<vmem>>, vector<64x128xbf16>
    %c0_97 = arith.constant 0 : index
    %c0_98 = arith.constant 0 : index
    %82 = vector.load %arg5[%c0_97, %c0_98] : memref<680x128xf32, #tpu.memory_space<vmem>>, vector<642x128xf32>
    %c38 = arith.constant 38 : index
    %c0_99 = arith.constant 0 : index
    %83 = vector.load %arg1[%c38, %c0_99] : memref<680x64xbf16, #tpu.memory_space<vmem>>, vector<642x64xbf16>
    %cst_100 = arith.constant dense<0.000000e+00> : vector<642x128xf32>
    %84 = tpu.matmul %83, %81, %cst_100 {dimension_numbers = #tpu.dot_dimension_numbers<[1], [0], [0], [1], [0, 0, 1, 1], [], []>} : vector<642x64xbf16>, vector<64x128xbf16>, vector<642x128xf32> -> vector<642x128xf32>
    %85 = arith.addf %82, %84 : vector<642x128xf32>
    %c0_101 = arith.constant 0 : index
    %c0_102 = arith.constant 0 : index
    %86 = vector.load %arg5[%c0_101, %c0_102] : memref<680x128xf32, #tpu.memory_space<vmem>>, vector<642x128xf32>
    tpu.vector_store %arg5[%c0_101, %c0_102], %85 {strides = array<i32>} : memref<680x128xf32, #tpu.memory_space<vmem>>, vector<642x128xf32>,
    %c642 = arith.constant 642 : index
    %c0_103 = arith.constant 0 : index
    %87 = vector.load %arg5[%c642, %c0_103] : memref<680x128xf32, #tpu.memory_space<vmem>>, vector<38x128xf32>
    %c0_104 = arith.constant 0 : index
    %c0_105 = arith.constant 0 : index
    %88 = vector.load %arg2[%c0_104, %c0_105] : memref<40x64xbf16, #tpu.memory_space<vmem>>, vector<38x64xbf16>
    %cst_106 = arith.constant dense<0.000000e+00> : vector<38x128xf32>
    %89 = tpu.matmul %88, %81, %cst_106 {dimension_numbers = #tpu.dot_dimension_numbers<[1], [0], [0], [1], [0, 0, 1, 1], [], []>} : vector<38x64xbf16>, vector<64x128xbf16>, vector<38x128xf32> -> vector<38x128xf32>
    %90 = arith.addf %87, %89 : vector<38x128xf32>
    %c642_107 = arith.constant 642 : index
    %c0_108 = arith.constant 0 : index
    %91 = vector.load %arg5[%c642_107, %c0_108] : memref<680x128xf32, #tpu.memory_space<vmem>>, vector<38x128xf32>
    tpu.vector_store %arg5[%c642_107, %c0_108], %90 {strides = array<i32>} : memref<680x128xf32, #tpu.memory_space<vmem>>, vector<38x128xf32>,
    %c0_109 = arith.constant 0 : index
    %c0_110 = arith.constant 0 : index
    %92 = vector.load %arg5[%c0_109, %c0_110] : memref<680x128xf32, #tpu.memory_space<vmem>>, vector<680x128xf32>
    %93 = arith.truncf %92 : vector<680x128xf32> to vector<680x128xbf16>
    %c0_111 = arith.constant 0 : index
    %c0_112 = arith.constant 0 : index
    %94 = vector.load %arg4[%c0_111, %c0_112] : memref<680x128xbf16, #tpu.memory_space<vmem>>, vector<680x128xbf16>
    tpu.vector_store %arg4[%c0_111, %c0_112], %93 {strides = array<i32>} : memref<680x128xbf16, #tpu.memory_space<vmem>>, vector<680x128xbf16>,
    return
  }
  func.func @transform_0(%arg0: i32) -> (i32, i32) {
    %c0_i32 = arith.constant 0 : i32
    %c0_i32_0 = arith.constant 0 : i32
    return %arg0, %c0_i32 : i32, i32
  }
  func.func @transform_1(%arg0: i32) -> (i32, i32) {
    %c1_i32 = arith.constant 1 : i32
    %0 = arith.addi %arg0, %c1_i32 : i32
    %c17_i32 = arith.constant 17 : i32
    %1 = arith.muli %0, %c17_i32 : i32
    %c0_i32 = arith.constant 0 : i32
    %c0_i32_0 = arith.constant 0 : i32
    return %1, %c0_i32 : i32, i32
  }
  func.func @transform_2(%arg0: i32) -> (i32, i32) {
    %c0_i32 = arith.constant 0 : i32
    %c0_i32_0 = arith.constant 0 : i32
    %c0_i32_1 = arith.constant 0 : i32
    return %c0_i32, %c0_i32_0 : i32, i32
  }
  func.func @transform_3(%arg0: i32) -> (i32, i32) {
    %c0_i32 = arith.constant 0 : i32
    %c0_i32_0 = arith.constant 0 : i32
    return %arg0, %c0_i32 : i32, i32
  }
}

</mosaic_0001>

<bundles_post_ra>
// kernel: tpu_custom_call.1
= control target key start
LH: loop header
LB: loop body
LE: loop exit
PB: predicated region body
PF: predicated region fallthrough
CT: control target
= control target key end

     0   :  { %v20309_v1 = vmov 0.0   ;;  %vm16321_vm0 = vmmov 0   ;;  %vm373_vm1 = vcmask 523264   ;;  %vm2836_vm2 = vcmask 1046528   ;;  %s20305_s0 = inlined_call_operand.vmem [shape: bf16[1360,64], index: 0, kind: input, shape index: {}]   ;;  %s20306_s1 = inlined_call_operand.vmem [shape: bf16[1360,64], index: 1, kind: input, shape index: {}]   ;;  %s20307_s2 = inlined_call_operand.vmem [shape: bf16[576,128], index: 2, kind: input, shape index: {}]   ;;  %s20308_s3 = inlined_call_operand.hbm [shape: bf16[680,128], index: 3, kind: output, shape index: {}]  }
   0x1   :  { %v15853_v0 = vld [vmem:[%s20307_s2] sm:$0xff]   ;;  %13852 = vmatprep.subr.bf16.mxu0 %v20309_v1  ;;  %14212 = vmatprep.subr.bf16.mxu1 %v20309_v1  ;;  %v15855_v3 = vld [vmem:[%s20307_s2 + $0x8] sm:$0xff]   ;;  %v15857_v5 = vld [vmem:[%s20307_s2 + $0x10] sm:$0xff]   ;;  %vm5273_vm3 = vsmask.f32 6400  ;;  %vm6791_vm5 = vcmask 1045504  }
   0x2   :  { %v15854_v2 = vld [vmem:[%s20307_s2 + $0x20] sm:$0xff]   ;;  %13853 = vmatpush3.bf16.msra.mxu0 %v15853_v0  ;;  %13860 = vmatprep.mubr.msk.bf16.mxu0 %vm16321_vm0, %v20309_v1  ;;  %v15856_v4 = vld [vmem:[%s20307_s2 + $0x28] sm:$0xff]   ;;  %v15858_v6 = vld [vmem:[%s20307_s2 + $0x30] sm:$0xff]   ;;  %vm1355_vm4 = vsmask.f32 7424 }
   0x3   :  { %14213 = vmatpush3.bf16.msra.mxu1 %v15854_v2  ;;  %13854 = vmatprep.subr.bf16.mxu0 %v20309_v1  ;;  %v15859_v7 = vld [vmem:[%s20307_s2 + $0x18] sm:$0xff]   ;;  %v15861_v9 = vld [vmem:[%s20305_s0] sm:$0xff]   ;;  %v12298_v10 = vld [vmem:[%s20306_s1 + $0x154] sm:$0x1] }
   0x4   :  { %14214 = vmatprep.subr.bf16.mxu1 %v20309_v1  ;;  %14220 = vmatprep.mubr.msk.bf16.mxu1 %vm16321_vm0, %v20309_v1  ;;  %v15860_v8 = vld [vmem:[%s20307_s2 + $0x38] sm:$0xff]   ;;  %v15862_v11 = vld [vmem:[%s20307_s2 + $0x40] sm:$0xff]   ;;  %v15863_v12 = vld [vmem:[%s20307_s2 + $0x48] sm:$0xff]  }
   0x5   :  { %v15864_v13 = vld [vmem:[%s20305_s0 + $0x8] sm:$0xff]   ;;  %v15865_v14 = vld [vmem:[%s20307_s2 + $0x50] sm:$0xff]   ;;  %v15866_v17 = vld [vmem:[%s20307_s2 + $0x58] sm:$0xff]  }
   0x6   :  { %13855 = vmatpush3.bf16.msra.mxu0 %v15855_v3  ;;  %v15873_v15 = vld [vmem:[%s20305_s0 + $0x8] sm:$0xfe]   ;;  %v15874_v16 = vld [vmem:[%s20305_s0 + $0x10] sm:$0xff]   ;;  %v15868_v18 = vld [vmem:[%s20307_s2 + $0x60] sm:$0xff]  }
   0x7   :  { %14215 = vmatpush3.bf16.msra.mxu1 %v15856_v4  ;;  %13856 = vmatprep.subr.bf16.mxu0 %v20309_v1  ;;  %v4050_v19 = vrot.slane %v15873_v15, 1  ;;  %v4051_v20 = vrot.slane %v15874_v16, 1  ;;  %v15867_v21 = vld [vmem:[%s20305_s0 + $0x10] sm:$0xff]   ;;  %v15869_v23 = vld [vmem:[%s20307_s2 + $0x68] sm:$0xff]   ;;  %v15870_v26 = vld [vmem:[%s20305_s0 + $0x18] sm:$0xff]  }
   0x8   :  { %14216 = vmatprep.subr.bf16.mxu1 %v20309_v1  ;;  %v12390_v22 = vld [vmem:[%s20306_s1 + $0x154] sm:$0x1]  ;;  %v15872_v27 = vld [vmem:[%s20307_s2 + $0x78] sm:$0xff]   ;;  %v15877_v29 = vld [vmem:[%s20305_s0 + $0x20] sm:$0xff]  }
   0x9   :  { %v4052_v24 = vsel %vm2836_vm2, %v4050_v19, %v4051_v20  ;;  %v15871_v25 = vld [vmem:[%s20307_s2 + $0x70] sm:$0xff]   ;;  %v15876_v28 = vld [vmem:[%s20305_s0 + $0x18] sm:$0xff]   ;;  %v4055_v31 = vrot.slane %v15877_v29, 1  ;;  %v15875_v32 = vld [vmem:[%s20305_s0 + $0x20] sm:$0xff]  }
   0xa   :  { %13857 = vmatpush3.bf16.msra.mxu0 %v15857_v5  ;;  %v4053_v30 = vrot.slane %v15876_v28, 1  ;;  %v15879_v34 = vld [vmem:[%s20305_s0 + $0x28] sm:$0xff]   ;;  %v15880_v36 = vld [vmem:[%s20305_s0 + $0x30] sm:$0xff]   ;;  %v15882_v41 = vld [vmem:[%s20305_s0 + $0x38] sm:$0xff]  }
   0xb   :  { %14217 = vmatpush3.bf16.msra.mxu1 %v15858_v6  ;;  %13858 = vmatprep.subr.bf16.mxu0 %v20309_v1  ;;  %v4057_v37 = vrot.slane %v15879_v34, 1  ;;  %v4059_v38 = vrot.slane %v15880_v36, 1  ;;  %v15878_v39 = vld [vmem:[%s20305_s0 + $0x28] sm:$0xff]   ;;  %v15883_v43 = vld [vmem:[%s20305_s0 + $0x40] sm:$0xff]   ;;  %v4061_v44 = vrot.slane %v15882_v41, 1  ;;  %v15881_v46 = vld [vmem:[%s20305_s0 + $0x30] sm:$0xff]  }
   0xc   :  { %14218 = vmatprep.subr.bf16.mxu1 %v20309_v1  ;;  %v4054_v33 = vsel %vm2836_vm2, %v4051_v20, %v4053_v30  ;;  %v4056_v35 = vsel %vm2836_vm2, %v4053_v30, %v4055_v31  ;;  %v4063_v45 = vrot.slane %v15883_v43, 1  ;;  %v15885_v48 = vld [vmem:[%s20305_s0 + $0x48] sm:$0xff]   ;;  %v15886_v50 = vld [vmem:[%s20305_s0 + $0x50] sm:$0xff]   ;;  %v15884_v53 = vld [vmem:[%s20305_s0 + $0x38] sm:$0xff]  }
   0xd   :  { %v4058_v40 = vsel %vm2836_vm2, %v4055_v31, %v4057_v37  ;;  %v4060_v42 = vsel %vm2836_vm2, %v4057_v37, %v4059_v38  ;;  %v4062_v47 = vsel %vm2836_vm2, %v4059_v38, %v4061_v44  ;;  %v4065_v51 = vrot.slane %v15885_v48, 1  ;;  %v15888_v55 = vld [vmem:[%s20305_s0 + $0x58] sm:$0xff]   ;;  %v15889_v57 = vld [vmem:[%s20305_s0 + $0x60] sm:$0xff]   ;;  %v15891_v62 = vld [vmem:[%s20305_s0 + $0x68] sm:$0xff]  }
   0xe   :  { %13859 = vmatpush3.bf16.msra.mxu0 %v15859_v7  ;;  %v4064_v49 = vsel %vm2836_vm2, %v4061_v44, %v4063_v45  ;;  %v4067_v52 = vrot.slane %v15886_v50, 1  ;;  %v4069_v58 = vrot.slane %v15888_v55, 1  ;;  %v4071_v59 = vrot.slane %v15889_v57, 1  ;;  %v15887_v60 = vld [vmem:[%s20305_s0 + $0x40] sm:$0xff]   ;;  %v15892_v0 = vld [vmem:[%s20305_s0 + $0x70] sm:$0xff]   ;;  %v15890_v3 = vld [vmem:[%s20305_s0 + $0x48] sm:$0xff]  }
   0xf   :  { %14219 = vmatpush3.bf16.msra.mxu1 %v15860_v8  ;;  %14032 = vmatprep.subr.bf16.mxu0 %v20309_v1  ;;  %v4066_v54 = vsel %vm2836_vm2, %v4063_v45, %v4065_v51  ;;  %v15894_v5 = vld [vmem:[%s20305_s0 + $0x78] sm:$0xff]   ;;  %v15895_v7 = vld [vmem:[%s20305_s0 + $0x80] sm:$0xff]   ;;  %v15898_v16 = vld [vmem:[%s20305_s0 + $0x90] sm:$0xff]  }
  0x10   :  { %14404 = vmatprep.subr.bf16.mxu1 %v20309_v1  ;;  %v4068_v56 = vsel %vm2836_vm2, %v4065_v51, %v4067_v52  ;;  %v4070_v61 = vsel %vm2836_vm2, %v4067_v52, %v4069_v58  ;;  %v4072_v63 = vsel %vm2836_vm2, %v4069_v58, %v4071_v59  ;;  %v15896_v19 = vld [vmem:[%s20305_s0 + $0x58] sm:$0xff]   ;;  %v15904_v30 = vld [vmem:[%s20305_s0 + $0xb0] sm:$0xff]   ;;  %v15907_v37 = vld [vmem:[%s20305_s0 + $0xc0] sm:$0xff]  }
  0x11   :  { %13861 = vmatmul.mubr.msk.bf16.vlgmr.msra.gmra.mrb[0].mxu0 %vm373_vm1, %v15861_v9  ;;  %v15906_v34 = vld [vmem:[%s20305_s0 + $0xb8] sm:$0xff]   ;;  %v15909_v41 = vld [vmem:[%s20305_s0 + $0xc8] sm:$0xff]   ;;  %v15910_v44 = vld [vmem:[%s20305_s0 + $0xd0] sm:$0xff]  }
  0x12   :  { %14033 = vmatpush3.bf16.msra.mxu0 %v15854_v2  ;;  %14221 = vmatmul.mubr.msk.bf16.vlgmr.msra.gmra.mrb[0].mxu1 %vm373_vm1, %v12298_v10  ;;  %v4073_v2 = vrot.slane %v15891_v62, 1  ;;  %v15893_v10 = vld [vmem:[%s20305_s0 + $0x50] sm:$0xff]   ;;  %v4093_v38 = vrot.slane %v15906_v34, 1  ;;  %v4097_v45 = vrot.slane %v15909_v41, 1  ;;  %v15912_v48 = vld [vmem:[%s20305_s0 + $0xd8] sm:$0xff]   ;;  %v15913_v51 = vld [vmem:[%s20305_s0 + $0xe0] sm:$0xff]  }
  0x13   :  { %14405 = vmatpush3.bf16.msra.mxu1 %v15862_v11  ;;  %13864 = vmatprep.mubr.msk.bf16.mxu0 %vm16321_vm0, %v20309_v1  ;;  %v4077_v11 = vrot.slane %v15894_v5, 1  ;;  %v4101_v52 = vrot.slane %v15912_v48, 1  ;;  %v15915_v55 = vld [vmem:[%s20305_s0 + $0xe8] sm:$0xff]   ;;  %v15916_v58 = vld [vmem:[%s20305_s0 + $0xf0] sm:$0xff]   ;;  %v15918_v62 = vld [vmem:[%s20305_s0 + $0xf8] sm:$0xff]  }
  0x14   :  { %14406 = vmatprep.subr.bf16.mxu1 %v20309_v1  ;;  %14412 = vmatprep.mubr.msk.bf16.mxu1 %vm16321_vm0, %v20309_v1  ;;  %v15935_v48 = vld [vmem:[%s20305_s0 + $0xc0] sm:$0xff]  }
  0x15   :  { %14034 = vmatprep.subr.bf16.mxu0 %v20309_v1 }
  0x16   :  { %14035 = vmatpush3.bf16.msra.mxu0 %v15856_v4  ;;  %v4075_v4 = vrot.slane %v15892_v0, 1 }
  0x17   :  { %14407 = vmatpush3.bf16.msra.mxu1 %v15863_v12  ;;  %14036 = vmatprep.subr.bf16.mxu0 %v20309_v1  ;;  %v4079_v12 = vrot.slane %v15895_v7, 1  ;;  %v15921_v7 = vld [vmem:[%s20305_s0 + $0x108] sm:$0xff]  }
  0x18   :  { %14408 = vmatprep.subr.bf16.mxu1 %v20309_v1  ;;  %v4076_v9 = vsel %vm2836_vm2, %v4073_v2, %v4075_v4 }
  0x19   :  { %13865 = vmatmul.mubr.msk.bf16.gmra.mrb[4].mxu0 %vm373_vm1, %v15864_v13  ;;  %v4078_v13 = vsel %vm2836_vm2, %v4075_v4, %v4077_v11  ;;  %v4080_v15 = vsel %vm2836_vm2, %v4077_v11, %v4079_v12  ;;  %v15917_v4 = vld [vmem:[%s20305_s0 + $0x90] sm:$0xff]   ;;  %v4113_v11 = vrot.slane %v15921_v7, 1 }
  0x1a   :  { %13868 = vmatprep.mubr.msk.bf16.mxu0 %vm16321_vm0, %v20309_v1  ;;  %14037 = vmatpush3.bf16.msra.mxu0 %v15858_v6  ;;  %v16551_v6 = vld [vmem:[%s20307_s2 + $0x80] sm:$0xff]  }
  0x1b   :  { %14409 = vmatpush3.bf16.msra.mxu1 %v15865_v14  ;;  %14038 = vmatprep.subr.bf16.mxu0 %v20309_v1  ;;  %v15897_v14 = vld [vmem:[%s20305_s0 + $0x88] sm:$0xff]  }
  0x1c   :  { %14410 = vmatprep.subr.bf16.mxu1 %v20309_v1 }
  0x1e   :  { %14039 = vmatpush3.bf16.msra.mxu0 %v15860_v8  ;;  %v4074_v8 = vsel %vm2836_vm2, %v4071_v59, %v4073_v2  ;;  %v4105_v59 = vrot.slane %v15915_v55, 1  ;;  %v15919_v2 = vld [vmem:[%s20305_s0 + $0x100] sm:$0xff]  }
  0x1f   :  { %14411 = vmatpush3.bf16.msra.mxu1 %v15866_v17  ;;  %14224 = vmatprep.subr.bf16.mxu0 %v20309_v1  ;;  %v4081_v17 = vrot.slane %v15897_v14, 1  ;;  %v4111_v5 = vrot.slane %v15919_v2, 1  ;;  %v15924_v14 = vld [vmem:[%s20305_s0 + $0x118] sm:$0xff]  }
  0x20   :  { %14416 = vmatprep.subr.bf16.mxu1 %v15868_v18 }
  0x21   :  { %13869 = vmatmul.mubr.msk.bf16.gmra.mrb[8].mxu0 %vm373_vm1, %v15867_v21  ;;  %v4082_v20 = vsel %vm2836_vm2, %v4079_v12, %v4081_v17  ;;  %v15900_v21 = vld [vmem:[%s20305_s0 + $0x98] sm:$0xff]  }
  0x22   :  { %14413 = vmatmul.mubr.msk.bf16.vlgmr.msra.gmra.mrb[4].mxu1 %vm373_vm1, %v12390_v22  ;;  %13872 = vmatprep.mubr.msk.bf16.mxu0 %vm16321_vm0, %v20309_v1  ;;  %v15920_v12 = vld [vmem:[%s20305_s0 + $0x98] sm:$0xff]  }
  0x23   :  { %14417 = vmatpush3.bf16.msra.mxu1 %v15868_v18  ;;  %14424 = vmatprep.mubr.msk.bf16.mxu1 %vm373_vm1, %v4052_v24  ;;  %v4085_v24 = vrot.slane %v15900_v21, 1  ;;  %v15927_v21 = vld [vmem:[%s20305_s0 + $0x128] sm:$0xff]  }
  0x24   :  { %14418 = vmatprep.subr.bf16.mxu1 %v15869_v23 }
  0x27   :  { %14419 = vmatpush3.bf16.msra.mxu1 %v15869_v23 }
  0x28   :  { %14420 = vmatprep.subr.bf16.mxu1 %v15871_v25 }
  0x29   :  { %13873 = vmatmul.mubr.msk.bf16.gmra.mrb[12].mxu0 %vm373_vm1, %v15870_v26 }
  0x2a   :  { %13876 = vmatprep.mubr.msk.bf16.mxu0 %vm16321_vm0, %v20309_v1 }
  0x2b   :  { %14421 = vmatpush3.bf16.msra.mxu1 %v15871_v25 }
  0x2c   :  { %14422 = vmatprep.subr.bf16.mxu1 %v15872_v27 }
  0x2f   :  { %14423 = vmatpush3.bf16.msra.mxu1 %v15872_v27 }
  0x30   :  { %14508 = vmatprep.subr.bf16.mxu1 %v15868_v18 }
  0x31   :  { %13877 = vmatmul.mubr.msk.bf16.gmra.mrb[16].mxu0 %vm373_vm1, %v15875_v32  ;;  %v15902_v32 = vld [vmem:[%s20305_s0 + $0x68] sm:$0xff]  }
  0x32   :  { %14425 = vmatmul.mubr.msk.bf16.vlgmr.msra.gmra.mrb[8].mxu1 %vm373_vm1, %v4054_v33  ;;  %13880 = vmatprep.mubr.msk.bf16.mxu0 %vm16321_vm0, %v20309_v1  ;;  %v4091_v33 = vrot.slane %v15904_v30, 1 }
  0x33   :  { %14509 = vmatpush3.bf16.msra.mxu1 %v15868_v18  ;;  %14428 = vmatprep.mubr.msk.bf16.mxu1 %vm373_vm1, %v4056_v35  ;;  %v4083_v18 = vrot.slane %v15898_v16, 1 }
  0x34   :  { %14510 = vmatprep.subr.bf16.mxu1 %v15869_v23 }
  0x35   :  { %v4084_v22 = vsel %vm2836_vm2, %v4081_v17, %v4083_v18  ;;  %v4086_v28 = vsel %vm2836_vm2, %v4083_v18, %v4085_v24  ;;  %v15925_v17 = vld [vmem:[%s20305_s0 + $0x120] sm:$0xff]   ;;  %v4117_v18 = vrot.slane %v15924_v14, 1 }
  0x37   :  { %14511 = vmatpush3.bf16.msra.mxu1 %v15869_v23  ;;  %v15901_v23 = vld [vmem:[%s20305_s0 + $0xa0] sm:$0xff]  }
  0x38   :  { %14512 = vmatprep.subr.bf16.mxu1 %v15871_v25  ;;  %v4087_v26 = vrot.slane %v15901_v23, 1 }
  0x39   :  { %13881 = vmatmul.mubr.msk.bf16.gmra.mrb[20].mxu0 %vm373_vm1, %v15878_v39  ;;  %v15905_v39 = vld [vmem:[%s20305_s0 + $0x70] sm:$0xff]  }
  0x3a   :  { %14429 = vmatmul.mubr.msk.bf16.gmra.mrb[12].mxu1 %vm373_vm1, %v4058_v40  ;;  %13884 = vmatprep.mubr.msk.bf16.mxu0 %vm16321_vm0, %v20309_v1  ;;  %v4088_v29 = vsel %vm2836_vm2, %v4085_v24, %v4087_v26  ;;  %v4095_v40 = vrot.slane %v15907_v37, 1  ;;  %v15928_v24 = vld [vmem:[%s20305_s0 + $0x130] sm:$0xff]  }
  0x3b   :  { %14432 = vmatprep.mubr.msk.bf16.mxu1 %vm373_vm1, %v4060_v42  ;;  %14513 = vmatpush3.bf16.msra.mxu1 %v15871_v25  ;;  %v15899_v25 = vld [vmem:[%s20305_s0 + $0x60] sm:$0xff]   ;;  %v4094_v42 = vsel %vm2836_vm2, %v4091_v33, %v4093_v38 }
  0x3c   :  { %14514 = vmatprep.subr.bf16.mxu1 %v15872_v27  ;;  %v4096_v43 = vsel %vm2836_vm2, %v4093_v38, %v4095_v40  ;;  %v15934_v38 = vld [vmem:[%s20305_s0 + $0x150] ss:$0 sps:$4 sm:$0xff]  }
  0x3d   :  { %v4131_v41 = vrot.slane %v15934_v38, 1  ;;  %v15950_v38 = vld [vmem:[%s20305_s0 + $0xe0] sm:$0xff]  }
  0x3f   :  { %14515 = vmatpush3.bf16.msra.mxu1 %v15872_v27  ;;  %v15903_v27 = vld [vmem:[%s20305_s0 + $0xa8] sm:$0xff]  }
  0x40   :  { %14520 = vmatprep.subr.bf16.mxu1 %v16551_v6  ;;  %v4089_v31 = vrot.slane %v15903_v27, 1  ;;  %v4123_v27 = vrot.slane %v15928_v24, 1 }
  0x41   :  { %13885 = vmatmul.mubr.msk.bf16.gmra.mrb[24].mxu0 %vm373_vm1, %v15881_v46  ;;  %v15908_v46 = vld [vmem:[%s20305_s0 + $0x78] sm:$0xff]  }
  0x42   :  { %14433 = vmatmul.mubr.msk.bf16.gmra.mrb[16].mxu1 %vm373_vm1, %v4062_v47  ;;  %13888 = vmatprep.mubr.msk.bf16.mxu0 %vm16321_vm0, %v20309_v1  ;;  %v4090_v35 = vsel %vm2836_vm2, %v4087_v26, %v4089_v31  ;;  %v4092_v36 = vsel %vm2836_vm2, %v4089_v31, %v4091_v33  ;;  %v4099_v47 = vrot.slane %v15910_v44, 1  ;;  %v15926_v26 = vld [vmem:[%s20305_s0 + $0xa8] sm:$0xff]   ;;  %v15931_v31 = vld [vmem:[%s20305_s0 + $0x140] sm:$0xff]   ;;  %v15929_v33 = vld [vmem:[%s20305_s0 + $0xb0] sm:$0xff]  }
  0x43   :  { %14436 = vmatprep.mubr.msk.bf16.mxu1 %vm373_vm1, %v4064_v49  ;;  %v4098_v49 = vsel %vm2836_vm2, %v4095_v40, %v4097_v45  ;;  %v4127_v34 = vrot.slane %v15931_v31, 1  ;;  %v15932_v40 = vld [vmem:[%s20305_s0 + $0xb8] sm:$0xff]  }
  0x44   :  { %v4100_v50 = vsel %vm2836_vm2, %v4097_v45, %v4099_v47  ;;  %v15945_v45 = vld [vmem:[%s20305_s0 + $0x10] sm:$0xff]  }
  0x49   :  { %13889 = vmatmul.mubr.msk.bf16.gmra.mrb[28].mxu0 %vm373_vm1, %v15884_v53  ;;  %v15911_v53 = vld [vmem:[%s20305_s0 + $0x80] sm:$0xff]  }
  0x4a   :  { %14437 = vmatmul.mubr.msk.bf16.gmra.mrb[20].mxu1 %vm373_vm1, %v4066_v54  ;;  %13892 = vmatprep.mubr.msk.bf16.mxu0 %vm16321_vm0, %v20309_v1  ;;  %v4103_v54 = vrot.slane %v15913_v51, 1  ;;  %v15936_v51 = vld [vmem:[%s20306_s1 + $0x154] sm:$0xff]  }
  0x4b   :  { %14440 = vmatprep.mubr.msk.bf16.mxu1 %vm373_vm1, %v4068_v56  ;;  %v4102_v56 = vsel %vm2836_vm2, %v4099_v47, %v4101_v52 }
  0x4c   :  { %v4104_v57 = vsel %vm2836_vm2, %v4101_v52, %v4103_v54 }
  0x51   :  { %13893 = vmatmul.mubr.msk.bf16.gmra.mrb[32].mxu0 %vm373_vm1, %v15887_v60  ;;  %v15914_v60 = vld [vmem:[%s20305_s0 + $0x88] sm:$0xff]  }
  0x52   :  { %14441 = vmatmul.mubr.msk.bf16.gmra.mrb[24].mxu1 %vm373_vm1, %v4070_v61  ;;  %13896 = vmatprep.mubr.msk.bf16.mxu0 %vm16321_vm0, %v20309_v1  ;;  %v4107_v61 = vrot.slane %v15916_v58, 1  ;;  %v15939_v58 = vld [vmem:[%s20306_s1 + $0x15c] ss:$0 sps:$4 sm:$0x11]  }
  0x53   :  { %14444 = vmatprep.mubr.msk.bf16.mxu1 %vm373_vm1, %v4072_v63  ;;  %v4106_v63 = vsel %vm2836_vm2, %v4103_v54, %v4105_v59 }
  0x54   :  { %v4108_v0 = vsel %vm2836_vm2, %v4105_v59, %v4107_v61 }
  0x59   :  { %13897 = vmatmul.mubr.msk.bf16.gmra.mrb[36].mxu0 %vm373_vm1, %v15890_v3  ;;  %v4109_v3 = vrot.slane %v15918_v62, 1  ;;  %v15948_v62 = vld [vmem:[%s20305_s0 + $0x20] sm:$0xff]  }
  0x5a   :  { %14445 = vmatmul.mubr.msk.bf16.gmra.mrb[28].mxu1 %vm373_vm1, %v4074_v8  ;;  %13900 = vmatprep.mubr.msk.bf16.mxu0 %vm16321_vm0, %v20309_v1 }
  0x5b   :  { %14448 = vmatprep.mubr.msk.bf16.mxu1 %vm373_vm1, %v4076_v9  ;;  %v4110_v8 = vsel %vm2836_vm2, %v4107_v61, %v4109_v3  ;;  %v4112_v9 = vsel %vm2836_vm2, %v4109_v3, %v4111_v5  ;;  %v5301_v3 = vshrl.u32 %v15948_v62, 16 }
  0x61   :  { %13901 = vmatmul.mubr.msk.bf16.gmra.mrb[40].mxu0 %vm373_vm1, %v15893_v10  ;;  %v15922_v10 = vld [vmem:[%s20305_s0 + $0x110] sm:$0xff]  }
  0x62   :  { %14449 = vmatmul.mubr.msk.bf16.gmra.mrb[32].mxu1 %vm373_vm1, %v4078_v13  ;;  %13904 = vmatprep.mubr.msk.bf16.mxu0 %vm16321_vm0, %v20309_v1  ;;  %v4115_v13 = vrot.slane %v15922_v10, 1  ;;  %v5303_v10 = vrot.slane %v5301_v3, 1 }
  0x63   :  { %14452 = vmatprep.mubr.msk.bf16.mxu1 %vm373_vm1, %v4080_v15  ;;  %v4114_v15 = vsel %vm2836_vm2, %v4111_v5, %v4113_v11  ;;  %v15942_v5 = vld [vmem:[%s20305_s0 + $0xd0] sm:$0xff]  }
  0x64   :  { %v4116_v16 = vsel %vm2836_vm2, %v4113_v11, %v4115_v13  ;;  %v15949_v11 = vld [vmem:[%s20305_s0 + $0x28] sm:$0xff]  }
  0x65   :  { %v5310_v14 = vshrl.u32 %v15949_v11, 16 }
  0x67   :  { %v5312_v24 = vrot.slane %v5310_v14, 1 }
  0x69   :  { %13905 = vmatmul.mubr.msk.bf16.gmra.mrb[44].mxu0 %vm373_vm1, %v15896_v19  ;;  %v15923_v19 = vld [vmem:[%s20305_s0 + $0xa0] sm:$0xff]  }
  0x6a   :  { %14453 = vmatmul.mubr.msk.bf16.gmra.mrb[36].mxu1 %vm373_vm1, %v4082_v20  ;;  %13908 = vmatprep.mubr.msk.bf16.mxu0 %vm16321_vm0, %v20309_v1  ;;  %v4119_v20 = vrot.slane %v15925_v17, 1 }
  0x6b   :  { %14456 = vmatprep.mubr.msk.bf16.mxu1 %vm373_vm1, %v4084_v22  ;;  %v4118_v22 = vsel %vm2836_vm2, %v4115_v13, %v4117_v18  ;;  %v15951_v13 = vld [vmem:[%s20305_s0 + $0x30] sm:$0xff]  }
  0x6c   :  { %v4120_v23 = vsel %vm2836_vm2, %v4117_v18, %v4119_v20  ;;  %v5319_v18 = vshrl.u32 %v15951_v13, 16 }
  0x71   :  { %13909 = vmatmul.mubr.msk.bf16.gmra.mrb[48].mxu0 %vm373_vm1, %v15899_v25  ;;  %v4121_v25 = vrot.slane %v15927_v21, 1  ;;  %v15947_v21 = vld [vmem:[%s20305_s0 + $0xd8] sm:$0xff]  }
  0x72   :  { %14457 = vmatmul.mubr.msk.bf16.gmra.mrb[40].mxu1 %vm373_vm1, %v4086_v28  ;;  %13912 = vmatprep.mubr.msk.bf16.mxu0 %vm16321_vm0, %v20309_v1  ;;  %v15930_v28 = vld [vmem:[%s20305_s0 + $0x138] sm:$0xff]  }
  0x73   :  { %14460 = vmatprep.mubr.msk.bf16.mxu1 %vm373_vm1, %v4088_v29  ;;  %v4122_v29 = vsel %vm2836_vm2, %v4119_v20, %v4121_v25  ;;  %v4124_v30 = vsel %vm2836_vm2, %v4121_v25, %v4123_v27  ;;  %v15954_v25 = vld [vmem:[%s20305_s0 + $0x40] sm:$0xff]  }
  0x79   :  { %13913 = vmatmul.mubr.msk.bf16.gmra.mrb[52].mxu0 %vm373_vm1, %v15902_v32  ;;  %v4125_v32 = vrot.slane %v15930_v28, 1 }
  0x7a   :  { %14461 = vmatmul.mubr.msk.bf16.gmra.mrb[44].mxu1 %vm373_vm1, %v4090_v35  ;;  %13916 = vmatprep.mubr.msk.bf16.mxu0 %vm16321_vm0, %v20309_v1  ;;  %v15933_v35 = vld [vmem:[%s20305_s0 + $0x148] sm:$0xff]  }
  0x7b   :  { %14464 = vmatprep.mubr.msk.bf16.mxu1 %vm373_vm1, %v4092_v36  ;;  %v4126_v36 = vsel %vm2836_vm2, %v4123_v27, %v4125_v32  ;;  %v4128_v37 = vsel %vm2836_vm2, %v4125_v32, %v4127_v34  ;;  %v5321_v32 = vrot.slane %v5319_v18, 1 }
  0x81   :  { %13917 = vmatmul.mubr.msk.bf16.gmra.mrb[56].mxu0 %vm373_vm1, %v15905_v39  ;;  %v4129_v39 = vrot.slane %v15933_v35, 1 }
  0x82   :  { %14465 = vmatmul.mubr.msk.bf16.gmra.mrb[48].mxu1 %vm373_vm1, %v4094_v42  ;;  %13920 = vmatprep.mubr.msk.bf16.mxu0 %vm16321_vm0, %v20309_v1  ;;  %v15944_v42 = vld [vmem:[%s20305_s0 + $0x8] sm:$0xfe]  }
  0x83   :  { %14468 = vmatprep.mubr.msk.bf16.mxu1 %vm373_vm1, %v4096_v43  ;;  %v4130_v43 = vsel %vm2836_vm2, %v4127_v34, %v4129_v39  ;;  %v4132_v44 = vsel %vm2836_vm2, %v4129_v39, %v4131_v41  ;;  %v5278_v47 = vshll.u32 %v15944_v42, 16 }
  0x89   :  { %13921 = vmatmul.mubr.msk.bf16.gmra.mrb[60].mxu0 %vm373_vm1, %v15908_v46  ;;  %v5275_v46 = vshrl.u32 %v15944_v42, 16 }
  0x8a   :  { %14469 = vmatmul.mubr.msk.bf16.gmra.mrb[52].mxu1 %vm373_vm1, %v4098_v49  ;;  %13924 = vmatprep.mubr.msk.bf16.mxu0 %vm16321_vm0, %v20309_v1  ;;  %v5283_v49 = vshrl.u32 %v15945_v45, 16 }
  0x8b   :  { %14472 = vmatprep.mubr.msk.bf16.mxu1 %vm373_vm1, %v4100_v50  ;;  %v5286_v50 = vshll.u32 %v15945_v45, 16  ;;  %v5277_v52 = vrot.slane %v5275_v46, 1 }
  0x8c   :  { %v5285_v54 = vrot.slane %v5283_v49, 1 }
  0x8d   :  { %v5288_v55 = vrot.slane %v5286_v50, 2 }
  0x91   :  { %13925 = vmatmul.mubr.msk.bf16.gmra.mrb[64].mxu0 %vm373_vm1, %v15911_v53  ;;  %v5280_v53 = vrot.slane %v5278_v47, 2 }
  0x92   :  { %14473 = vmatmul.mubr.msk.bf16.gmra.mrb[56].mxu1 %vm373_vm1, %v4102_v56  ;;  %13928 = vmatprep.mubr.msk.bf16.mxu0 %vm16321_vm0, %v20309_v1  ;;  %v15946_v56 = vld [vmem:[%s20305_s0 + $0x18] sm:$0xff]  }
  0x93   :  { %14476 = vmatprep.mubr.msk.bf16.mxu1 %vm373_vm1, %v4104_v57  ;;  %v15938_v57 = vld [vmem:[%s20305_s0 + $0xc8] sm:$0xff]   ;;  %v5281_v59 = vor.u32 %v5280_v53, %v5277_v52  ;;  %v5292_v61 = vshrl.u32 %v15946_v56, 16  ;;  %v5295_v2 = vshll.u32 %v15946_v56, 16 }
  0x94   :  { %v15953_v56 = vld [vmem:[%s20305_s0 + $0xe8] sm:$0xff]  }
  0x95   :  { %v5294_v7 = vrot.slane %v5292_v61, 1 }
  0x99   :  { %13929 = vmatmul.mubr.msk.bf16.gmra.mrb[68].mxu0 %vm373_vm1, %v15914_v60  ;;  %v5289_v60 = vor.u32 %v5288_v55, %v5285_v54 }
  0x9a   :  { %14477 = vmatmul.mubr.msk.bf16.gmra.mrb[60].mxu1 %vm373_vm1, %v4106_v63  ;;  %13932 = vmatprep.mubr.msk.bf16.mxu0 %vm16321_vm0, %v20309_v1  ;;  %v16814_v63 = vld [vmem:[%s20307_s2 + $0x88] sm:$0xff]  }
  0x9b   :  { %14480 = vmatprep.mubr.msk.bf16.mxu1 %vm373_vm1, %v4108_v0  ;;  %v5290_v0 = vsel %vm5273_vm3, %v5281_v59, %v5289_v60 }
  0xa1   :  { %13933 = vmatmul.mubr.msk.bf16.gmra.mrb[72].mxu0 %vm373_vm1, %v15917_v4  ;;  %v16824_v4 = vld [vmem:[%s20307_s2 + $0x90] sm:$0xff]  }
  0xa2   :  { %14481 = vmatmul.mubr.msk.bf16.gmra.mrb[64].mxu1 %vm373_vm1, %v4110_v8  ;;  %13936 = vmatprep.mubr.msk.bf16.mxu0 %vm16321_vm0, %v20309_v1  ;;  %v5297_v8 = vrot.slane %v5295_v2, 2 }
  0xa3   :  { %14484 = vmatprep.mubr.msk.bf16.mxu1 %vm373_vm1, %v4112_v9  ;;  %v5304_v9 = vshll.u32 %v15948_v62, 16 }
  0xa9   :  { %13937 = vmatmul.mubr.msk.bf16.gmra.mrb[76].mxu0 %vm373_vm1, %v15920_v12  ;;  %v5306_v12 = vrot.slane %v5304_v9, 2 }
  0xaa   :  { %14485 = vmatmul.mubr.msk.bf16.gmra.mrb[68].mxu1 %vm373_vm1, %v4114_v15  ;;  %13940 = vmatprep.mubr.msk.bf16.mxu0 %vm16321_vm0, %v20309_v1  ;;  %v5298_v15 = vor.u32 %v5297_v8, %v5294_v7  ;;  %v15961_v8 = vld [vmem:[%s20305_s0 + $0x68] sm:$0xff]  }
  0xab   :  { %14488 = vmatprep.mubr.msk.bf16.mxu1 %vm373_vm1, %v4116_v16  ;;  %v5313_v16 = vshll.u32 %v15949_v11, 16  ;;  %v5307_v17 = vor.u32 %v5306_v12, %v5303_v10  ;;  %v15956_v10 = vld [vmem:[%s20305_s0 + $0xf0] sm:$0xff]  }
  0xac   :  { %v5299_v27 = vsel %vm5273_vm3, %v5289_v60, %v5298_v15 }
  0xad   :  { %v5315_v28 = vrot.slane %v5313_v16, 2  ;;  %v5308_v31 = vsel %vm5273_vm3, %v5298_v15, %v5307_v17  ;;  %v5382_v16 = vshrl.u32 %v15961_v8, 16 }
  0xb1   :  { %13941 = vmatmul.mubr.msk.bf16.gmra.mrb[80].mxu0 %vm373_vm1, %v15923_v19  ;;  %v5322_v19 = vshll.u32 %v15951_v13, 16  ;;  %v15963_v13 = vld [vmem:[%s20305_s0 + $0x70] sm:$0xff]  }
  0xb2   :  { %14489 = vmatmul.mubr.msk.bf16.gmra.mrb[72].mxu1 %vm373_vm1, %v4118_v22  ;;  %13944 = vmatprep.mubr.msk.bf16.mxu0 %vm16321_vm0, %v20309_v1  ;;  %v15952_v22 = vld [vmem:[%s20305_s0 + $0x38] sm:$0xff]  }
  0xb3   :  { %14492 = vmatprep.mubr.msk.bf16.mxu1 %vm373_vm1, %v4120_v23  ;;  %v5328_v34 = vshrl.u32 %v15952_v22, 16  ;;  %v5331_v35 = vshll.u32 %v15952_v22, 16 }
  0xb5   :  { %v5333_v42 = vrot.slane %v5331_v35, 2 }
  0xb9   :  { %13945 = vmatmul.mubr.msk.bf16.gmra.mrb[84].mxu0 %vm373_vm1, %v15926_v26 }
  0xba   :  { %14493 = vmatmul.mubr.msk.bf16.gmra.mrb[76].mxu1 %vm373_vm1, %v4122_v29  ;;  %13948 = vmatprep.mubr.msk.bf16.mxu0 %vm16321_vm0, %v20309_v1 }
  0xbb   :  { %14496 = vmatprep.mubr.msk.bf16.mxu1 %vm373_vm1, %v4124_v30  ;;  %v16282_v30 = vld [vmem:[%s20307_s2 + $0x80] sm:$0xff]  }
  0xc1   :  { %13949 = vmatmul.mubr.msk.bf16.gmra.mrb[88].mxu0 %vm373_vm1, %v15929_v33  ;;  %v5324_v33 = vrot.slane %v5322_v19, 2 }
  0xc2   :  { %14497 = vmatmul.mubr.msk.bf16.gmra.mrb[80].mxu1 %vm373_vm1, %v4126_v36  ;;  %13952 = vmatprep.mubr.msk.bf16.mxu0 %vm16321_vm0, %v20309_v1  ;;  %v5337_v36 = vshrl.u32 %v15954_v25, 16 }
  0xc3   :  { %14500 = vmatprep.mubr.msk.bf16.mxu1 %vm373_vm1, %v4128_v37  ;;  %v5316_v37 = vor.u32 %v5315_v28, %v5312_v24  ;;  %v5325_v39 = vor.u32 %v5324_v33, %v5321_v32  ;;  %v15964_v24 = vld [vmem:[%s20305_s0 + $0x78] sm:$0xff]  }
  0xc4   :  { %v15959_v28 = vld [vmem:[%s20305_s0 + $0xf8] sm:$0xff]   ;;  %v5400_v33 = vshrl.u32 %v15964_v24, 16 }
  0xc5   :  { %v5317_v45 = vsel %vm5273_vm3, %v5307_v17, %v5316_v37  ;;  %v5326_v46 = vsel %vm5273_vm3, %v5316_v37, %v5325_v39  ;;  %v5385_v17 = vshll.u32 %v15961_v8, 16  ;;  %v5403_v37 = vshll.u32 %v15964_v24, 16  ;;  %v15970_v8 = vld [vmem:[%s20305_s0 + $0x98] sm:$0xff]  }
  0xc9   :  { %13953 = vmatmul.mubr.msk.bf16.gmra.mrb[92].mxu0 %vm373_vm1, %v15932_v40  ;;  %v5340_v40 = vshll.u32 %v15954_v25, 16  ;;  %v5394_v25 = vshll.u32 %v15963_v13, 16 }
  0xca   :  { %14501 = vmatmul.mubr.msk.bf16.gmra.mrb[84].mxu1 %vm373_vm1, %v4130_v43  ;;  %13956 = vmatprep.mubr.msk.bf16.mxu0 %vm16321_vm0, %v20309_v1  ;;  %v5339_v43 = vrot.slane %v5337_v36, 1 }
  0xcb   :  { %14504 = vmatprep.mubr.msk.bf16.mxu1 %vm373_vm1, %v4132_v44  ;;  %v15955_v44 = vld [vmem:[%s20305_s0 + $0x48] sm:$0xff]   ;;  %v5342_v47 = vrot.slane %v5340_v40, 2  ;;  %v5396_v36 = vrot.slane %v5394_v25, 2 }
  0xcc   :  { %v5346_v49 = vshrl.u32 %v15955_v44, 16 }
  0xcd   :  { %v5343_v52 = vor.u32 %v5342_v47, %v5339_v43 }
  0xce   :  { %v5348_v59 = vrot.slane %v5346_v49, 1 }
  0xd1   :  { %13957 = vmatmul.mubr.msk.bf16.gmra.mrb[96].mxu0 %vm373_vm1, %v15935_v48  ;;  %v15957_v48 = vld [vmem:[%s20305_s0 + $0x50] sm:$0xff]  }
  0xd2   :  { %14505 = vmatmul.mubr.msk.bf16.gmra.mrb[88].mxu1 %vm373_vm1, %v4131_v41  ;;  %13960 = vmatprep.mubr.msk.bf16.mxu0 %vm16321_vm0, %v20309_v1  ;;  %v5330_v41 = vrot.slane %v5328_v34, 1  ;;  %v5355_v53 = vshrl.u32 %v15957_v48, 16  ;;  %v5358_v54 = vshll.u32 %v15957_v48, 16 }
  0xd3   :  { %14516 = vmatprep.mubr.msk.bf16.mxu1 %vm373_vm1, %v15936_v51  ;;  %v5349_v51 = vshll.u32 %v15955_v44, 16 }
  0xd4   :  { %v5334_v50 = vor.u32 %v5333_v42, %v5330_v41  ;;  %v5357_v2 = vrot.slane %v5355_v53, 1  ;;  %v5360_v3 = vrot.slane %v5358_v54, 2  ;;  %v15967_v41 = vld [vmem:[%s20305_s0 + $0x88] sm:$0xff]   ;;  %v5402_v53 = vrot.slane %v5400_v33, 1 }
  0xd5   :  { %v5351_v62 = vrot.slane %v5349_v51, 2  ;;  %v5418_v49 = vshrl.u32 %v15967_v41, 16  ;;  %v5405_v54 = vrot.slane %v5403_v37, 2 }
  0xd6   :  { %v5335_v61 = vsel %vm5273_vm3, %v5325_v39, %v5334_v50  ;;  %v5361_v11 = vor.u32 %v5360_v3, %v5357_v2  ;;  %v15965_v2 = vld [vmem:[%s20305_s0 + $0x108] sm:$0xff]  }
  0xd7   :  { %v5352_v9 = vor.u32 %v5351_v62, %v5348_v59  ;;  %v5420_v62 = vrot.slane %v5418_v49, 1 }
  0xd9   :  { %13961 = vmatmul.mubr.msk.bf16.gmra.mrb[100].mxu0 %vm373_vm1, %v15938_v57  ;;  %v15958_v57 = vld [vmem:[%s20305_s0 + $0x58] sm:$0xff]   ;;  %v5353_v18 = vsel %vm5273_vm3, %v5343_v52, %v5352_v9  ;;  %v5362_v19 = vsel %vm5273_vm3, %v5352_v9, %v5361_v11 }
  0xda   :  { %14517 = vmatmul.mubr.msk.bf16.vlgmr.msra.gmra.mrb[92].mxu1 %vm373_vm1, %v15939_v58  ;;  %13964 = vmatprep.mubr.msk.bf16.mxu0 %vm16321_vm0, %v20309_v1  ;;  %v5367_v7 = vshll.u32 %v15958_v57, 16 }
  0xdb   :  { %14521 = vmatpush3.bf16.msra.mxu1 %v16551_v6  ;;  %14528 = vmatprep.mubr.msk.bf16.mxu1 %vm373_vm1, %v5290_v0  ;;  %v16838_v6 = vld [vmem:[%s20307_s2 + $0x98] sm:$0xff]   ;;  %v5344_v0 = vsel %vm5273_vm3, %v5334_v50, %v5343_v52 }
  0xdc   :  { %14522 = vmatprep.subr.bf16.mxu1 %v16814_v63  ;;  %v5369_v15 = vrot.slane %v5367_v7, 2 }
  0xdf   :  { %14523 = vmatpush3.bf16.msra.mxu1 %v16814_v63 }
  0xe0   :  { %14524 = vmatprep.subr.bf16.mxu1 %v16824_v4 }
  0xe1   :  { %13965 = vmatmul.mubr.msk.bf16.gmra.mrb[104].mxu0 %vm373_vm1, %v15942_v5  ;;  %v5364_v5 = vshrl.u32 %v15958_v57, 16  ;;  %v16009_v57 = vld [vmem:[%s20307_s2 + $0xa0] sm:$0xff]  }
  0xe2   :  { %13968 = vmatprep.mubr.msk.bf16.mxu0 %vm16321_vm0, %v20309_v1 }
  0xe3   :  { %14525 = vmatpush3.bf16.msra.mxu1 %v16824_v4  ;;  %v5366_v14 = vrot.slane %v5364_v5, 1 }
  0xe4   :  { %14526 = vmatprep.subr.bf16.mxu1 %v16838_v6 }
  0xe5   :  { %v16850_v20 = vpop.f32.mrb[0].mxu1 }
  0xe6   :  { %v14222_v23 = vpop.f32.mrb[1].mxu1 }
  0xe7   :  { %14527 = vmatpush3.bf16.msra.mxu1 %v16838_v6  ;;  %v2440_v26 = vpop.f32.mrb[2].mxu1  ;;  %v5391_v23 = vshrl.u32 %v15963_v13, 16  ;;  %v15972_v13 = vld [vmem:[%s20305_s0 + $0xa0] sm:$0xff]  }
  0xe8   :  { %v14223_v29 = vpop.f32.mrb[3].mxu1  ;;  %14612 = vmatprep.subr.bf16.mxu1 %v16282_v30  ;;  %v15966_v26 = vld [vmem:[%s20305_s0 + $0x80] sm:$0xff]   ;;  %v5448_v24 = vshll.u32 %v15972_v13, 16 }
  0xe9   :  { %13969 = vmatmul.mubr.msk.bf16.gmra.mrb[108].mxu0 %vm373_vm1, %v15947_v21  ;;  %v5393_v35 = vrot.slane %v5391_v23, 1  ;;  %v5409_v40 = vshrl.u32 %v15966_v26, 16  ;;  %v5412_v44 = vshll.u32 %v15966_v26, 16  ;;  %v15968_v26 = vld [vmem:[%s20305_s0 + $0x110] sm:$0xff]  }
  0xea   :  { %14529 = vmatmul.mubr.msk.bf16.vlgmr.msra.gmra.mrb[96].mxu1 %vm373_vm1, %v5299_v27  ;;  %13972 = vmatprep.mubr.msk.bf16.mxu0 %vm16321_vm0, %v20309_v1  ;;  %v5370_v27 = vor.u32 %v5369_v15, %v5366_v14 }
  0xeb   :  { %14613 = vmatpush3.bf16.msra.mxu1 %v16282_v30  ;;  %14532 = vmatprep.mubr.msk.bf16.mxu1 %vm373_vm1, %v5308_v31  ;;  %v5384_v30 = vrot.slane %v5382_v16, 1  ;;  %v5387_v31 = vrot.slane %v5385_v17, 2  ;;  %v5397_v47 = vor.u32 %v5396_v36, %v5393_v35  ;;  %v5436_v17 = vshrl.u32 %v15970_v8, 16 }
  0xec   :  { %14614 = vmatprep.subr.bf16.mxu1 %v16814_v63  ;;  %v5371_v39 = vsel %vm5273_vm3, %v5361_v11, %v5370_v27 }
  0xef   :  { %14615 = vmatpush3.bf16.msra.mxu1 %v16814_v63 }
  0xf0   :  { %14616 = vmatprep.subr.bf16.mxu1 %v16824_v4 }
  0xf1   :  { %13973 = vmatmul.mubr.msk.bf16.gmra.mrb[112].mxu0 %vm373_vm1, %v15950_v38 }
  0xf2   :  { %14533 = vmatmul.mubr.msk.bf16.gmra.mrb[100].mxu1 %vm373_vm1, %v5317_v45  ;;  %13976 = vmatprep.mubr.msk.bf16.mxu0 %vm16321_vm0, %v20309_v1  ;;  %v5388_v45 = vor.u32 %v5387_v31, %v5384_v30  ;;  %v5438_v30 = vrot.slane %v5436_v17, 1 }
  0xf3   :  { %14536 = vmatprep.mubr.msk.bf16.mxu1 %vm373_vm1, %v5326_v46  ;;  %14617 = vmatpush3.bf16.msra.mxu1 %v16824_v4  ;;  %v15960_v4 = vld [vmem:[%s20305_s0 + $0x60] sm:$0xff]  }
  0xf4   :  { %14618 = vmatprep.subr.bf16.mxu1 %v16838_v6  ;;  %v5376_v12 = vshll.u32 %v15960_v4, 16  ;;  %v15962_v46 = vld [vmem:[%s20305_s0 + $0x100] sm:$0xff]   ;;  %v5398_v59 = vsel %vm5273_vm3, %v5388_v45, %v5397_v47 }
  0xf5   :  { %v16893_v55 = vpop.f32.mrb[4].mxu1 }
  0xf6   :  { %v14414_v58 = vpop.f32.mrb[5].mxu1  ;;  %v5378_v22 = vrot.slane %v5376_v12, 2 }
  0xf7   :  { %v3663_v60 = vpop.f32.mrb[6].mxu1  ;;  %14619 = vmatpush3.bf16.msra.mxu1 %v16838_v6  ;;  %v5373_v6 = vshrl.u32 %v15960_v4, 16 }
  0xf8   :  { %v14415_v63 = vpop.f32.mrb[7].mxu1  ;;  %v5411_v60 = vrot.slane %v5409_v40, 1  ;;  %14624 = vmatprep.subr.bf16.mxu1 %v16009_v57 }
  0xf9   :  { %13977 = vmatmul.mubr.msk.bf16.gmra.mrb[116].mxu0 %vm373_vm1, %v15953_v56  ;;  %v5375_v21 = vrot.slane %v5373_v6, 1  ;;  %v15969_v56 = vld [vmem:[%s20305_s0 + $0x90] sm:$0xff]   ;;  %v5421_v63 = vshll.u32 %v15967_v41, 16  ;;  %v5450_v41 = vrot.slane %v5448_v24, 2 }
  0xfa   :  { %14537 = vmatmul.mubr.msk.bf16.gmra.mrb[104].mxu1 %vm373_vm1, %v5335_v61  ;;  %13980 = vmatprep.mubr.msk.bf16.mxu0 %vm16321_vm0, %v20309_v1  ;;  %v5414_v61 = vrot.slane %v5412_v44, 2  ;;  %v5427_v3 = vshrl.u32 %v15969_v56, 16  ;;  %v5430_v4 = vshll.u32 %v15969_v56, 16  ;;  %v15976_v44 = vld [vmem:[%s20305_s0 + $0xb8] sm:$0xff]  }
  0xfb   :  { %14540 = vmatprep.mubr.msk.bf16.mxu1 %vm373_vm1, %v5344_v0  ;;  %v5379_v29 = vor.u32 %v5378_v22, %v5375_v21  ;;  %v5406_v0 = vor.u32 %v5405_v54, %v5402_v53  ;;  %v5445_v21 = vshrl.u32 %v15972_v13, 16  ;;  %v15973_v22 = vld [vmem:[%s20305_s0 + $0xa8] sm:$0xff]   ;;  %v15978_v54 = vld [vmem:[%s20305_s0 + $0xc0] sm:$0xff]  }
  0xfc   :  { %v5415_v5 = vor.u32 %v5414_v61, %v5411_v60  ;;  %v5429_v12 = vrot.slane %v5427_v3, 1  ;;  %v5432_v16 = vrot.slane %v5430_v4, 2  ;;  %v5454_v36 = vshrl.u32 %v15973_v22, 16  ;;  %v15974_v13 = vld [vmem:[%s20305_s0 + $0x120] sm:$0xff]  }
  0xfd   :  { %v5380_v43 = vsel %vm5273_vm3, %v5370_v27, %v5379_v29  ;;  %v5389_v52 = vsel %vm5273_vm3, %v5379_v29, %v5388_v45  ;;  %v5407_v6 = vsel %vm5273_vm3, %v5397_v47, %v5406_v0  ;;  %v15975_v27 = vld [vmem:[%s20305_s0 + $0xb0] sm:$0xff]   ;;  %v5447_v35 = vrot.slane %v5445_v21, 1 }
  0xfe   :  { %v5416_v15 = vsel %vm5273_vm3, %v5406_v0, %v5415_v5  ;;  %v5433_v23 = vor.u32 %v5432_v16, %v5429_v12  ;;  %v5457_v37 = vshll.u32 %v15973_v22, 16  ;;  %v5466_v47 = vshll.u32 %v15975_v27, 16 }
  0xff   :  { %v5456_v53 = vrot.slane %v5454_v36, 1  ;;  %v5481_v4 = vshrl.u32 %v15978_v54, 16 }
 0x100   :  { %v5459_v57 = vrot.slane %v5457_v37, 2  ;;  %v5468_v3 = vrot.slane %v5466_v47, 2 }
 0x101   :  { %13981 = vmatmul.mubr.msk.bf16.gmra.mrb[120].mxu0 %vm373_vm1, %v15956_v10  ;;  %v5423_v10 = vrot.slane %v5421_v63, 2  ;;  %v5475_v63 = vshll.u32 %v15976_v44, 16  ;;  %v5483_v21 = vrot.slane %v5481_v4, 1  ;;  %v15987_v4 = vld [vmem:[%s20305_s0 + $0xf0] sm:$0xff]  }
 0x102   :  { %14541 = vmatmul.mubr.msk.bf16.gmra.mrb[108].mxu1 %vm373_vm1, %v5353_v18  ;;  %13984 = vmatprep.mubr.msk.bf16.mxu0 %vm16321_vm0, %v20309_v1  ;;  %v5439_v18 = vshll.u32 %v15970_v8, 16  ;;  %v5460_v8 = vor.u32 %v5459_v57, %v5456_v53 }
 0x103   :  { %14544 = vmatprep.mubr.msk.bf16.mxu1 %vm373_vm1, %v5362_v19  ;;  %v5424_v19 = vor.u32 %v5423_v10, %v5420_v62  ;;  %v5472_v62 = vshrl.u32 %v15976_v44, 16  ;;  %v5477_v17 = vrot.slane %v5475_v63, 2 }
 0x104   :  { %v5441_v33 = vrot.slane %v5439_v18, 2 }
 0x105   :  { %v16937_v32 = vpop.f32.mrb[8].mxu1  ;;  %v5425_v29 = vsel %vm5273_vm3, %v5415_v5, %v5424_v19  ;;  %v5434_v40 = vsel %vm5273_vm3, %v5424_v19, %v5433_v23  ;;  %v15979_v5 = vld [vmem:[%s20305_s0 + $0xc8] sm:$0xff]  }
 0x106   :  { %v16939_v34 = vpop.f32.mrb[9].mxu1  ;;  %v5442_v45 = vor.u32 %v5441_v33, %v5438_v30  ;;  %v5490_v22 = vshrl.u32 %v15979_v5, 16  ;;  %v15982_v30 = vld [vmem:[%s20305_s0 + $0xd8] sm:$0xff]  }
 0x107   :  { %v16941_v38 = vpop.f32.mrb[10].mxu1 }
 0x108   :  { %v16947_v42 = vpop.f32.mrb[11].mxu1  ;;  %v5443_v60 = vsel %vm5273_vm3, %v5433_v23, %v5442_v45  ;;  %v15981_v23 = vld [vmem:[%s20305_s0 + $0xd0] sm:$0xff]   ;;  %v5492_v44 = vrot.slane %v5490_v22, 1 }
 0x109   :  { %13985 = vmatmul.mubr.msk.bf16.gmra.mrb[124].mxu0 %vm373_vm1, %v15959_v28  ;;  %v5499_v36 = vshrl.u32 %v15981_v23, 16  ;;  %v5502_v37 = vshll.u32 %v15981_v23, 16 }
 0x10a   :  { %14545 = vmatmul.mubr.msk.bf16.gmra.mrb[112].mxu1 %vm373_vm1, %v5371_v39  ;;  %13988 = vmatprep.mubr.msk.bf16.mxu0 %vm16321_vm0, %v20309_v1 }
 0x10b   :  { %14548 = vmatprep.mubr.msk.bf16.mxu1 %vm373_vm1, %v5380_v43  ;;  %v5463_v43 = vshrl.u32 %v15975_v27, 16  ;;  %v5501_v57 = vrot.slane %v5499_v36, 1  ;;  %v5538_v36 = vshll.u32 %v15987_v4, 16 }
 0x10d   :  { %v16958_v48 = vpop.f32.mrb[12].mxu1  ;;  %v5465_v61 = vrot.slane %v5463_v43, 1 }
 0x10e   :  { %v16960_v50 = vpop.f32.mrb[13].mxu1 }
 0x10f   :  { %v16962_v51 = vpop.f32.mrb[14].mxu1  ;;  %v5469_v10 = vor.u32 %v5468_v3, %v5465_v61  ;;  %v15985_v61 = vld [vmem:[%s20305_s0 + $0xe8] sm:$0xff]  }
 0x110   :  { %v16971_v58 = vpop.f32.mrb[15].mxu1  ;;  %v5529_v22 = vshll.u32 %v15985_v61, 16 }
 0x111   :  { %13989 = vmatmul.mubr.msk.bf16.gmra.mrb[128].mxu0 %vm373_vm1, %v15962_v46  ;;  %v5451_v46 = vor.u32 %v5450_v41, %v5447_v35  ;;  %v15977_v35 = vld [vmem:[%s20305_s0 + $0x128] sm:$0xff]   ;;  %v15984_v41 = vld [vmem:[%s20305_s0 + $0xe0] sm:$0xff]  }
 0x112   :  { %14549 = vmatmul.mubr.msk.bf16.gmra.mrb[116].mxu1 %vm373_vm1, %v5389_v52  ;;  %13992 = vmatprep.mubr.msk.bf16.mxu0 %vm16321_vm0, %v20309_v1  ;;  %v15971_v52 = vld [vmem:[%s20305_s0 + $0x118] sm:$0xff]   ;;  %v5520_v3 = vshll.u32 %v15984_v41, 16 }
 0x113   :  { %14552 = vmatprep.mubr.msk.bf16.mxu1 %vm373_vm1, %v5398_v59  ;;  %v5461_v19 = vsel %vm5273_vm3, %v5451_v46, %v5460_v8 }
 0x115   :  { %v16982_v7 = vpop.f32.mrb[16].mxu1 }
 0x116   :  { %v16987_v9 = vpop.f32.mrb[17].mxu1 }
 0x117   :  { %v16989_v11 = vpop.f32.mrb[18].mxu1 }
 0x118   :  { %v16995_v14 = vpop.f32.mrb[19].mxu1 }
 0x119   :  { %13993 = vmatmul.mubr.msk.bf16.gmra.mrb[132].mxu0 %vm373_vm1, %v15965_v2  ;;  %v5452_v2 = vsel %vm5273_vm3, %v5442_v45, %v5451_v46  ;;  %v5508_v46 = vshrl.u32 %v15982_v30, 16 }
 0x11a   :  { %14553 = vmatmul.mubr.msk.bf16.gmra.mrb[120].mxu1 %vm373_vm1, %v5407_v6  ;;  %13996 = vmatprep.mubr.msk.bf16.mxu0 %vm16321_vm0, %v20309_v1  ;;  %v5484_v6 = vshll.u32 %v15978_v54, 16 }
 0x11b   :  { %14556 = vmatprep.mubr.msk.bf16.mxu1 %vm373_vm1, %v5416_v15  ;;  %v5474_v15 = vrot.slane %v5472_v62, 1 }
 0x11c   :  { %v5486_v27 = vrot.slane %v5484_v6, 2  ;;  %v5510_v6 = vrot.slane %v5508_v46, 1 }
 0x11d   :  { %v17006_v25 = vpop.f32.mrb[20].mxu1  ;;  %v5478_v33 = vor.u32 %v5477_v17, %v5474_v15  ;;  %v5526_v17 = vshrl.u32 %v15985_v61, 16 }
 0x11e   :  { %v17014_v28 = vpop.f32.mrb[21].mxu1 }
 0x11f   :  { %v17017_v31 = vpop.f32.mrb[22].mxu1  ;;  %v5479_v54 = vsel %vm5273_vm3, %v5469_v10, %v5478_v33  ;;  %v5528_v46 = vrot.slane %v5526_v17, 1 }
 0x120   :  { %v17019_v39 = vpop.f32.mrb[23].mxu1 }
 0x121   :  { %13997 = vmatmul.mubr.msk.bf16.gmra.mrb[136].mxu0 %vm373_vm1, %v15968_v26  ;;  %v5470_v26 = vsel %vm5273_vm3, %v5460_v8, %v5469_v10  ;;  %v15980_v8 = vld [vmem:[%s20305_s0 + $0x130] sm:$0xff]  }
 0x122   :  { %14557 = vmatmul.mubr.msk.bf16.gmra.mrb[124].mxu1 %vm373_vm1, %v5425_v29  ;;  %14000 = vmatprep.mubr.msk.bf16.mxu0 %vm16321_vm0, %v20309_v1  ;;  %v5493_v29 = vshll.u32 %v15979_v5, 16 }
 0x123   :  { %14560 = vmatprep.mubr.msk.bf16.mxu1 %vm373_vm1, %v5434_v40  ;;  %v5487_v40 = vor.u32 %v5486_v27, %v5483_v21 }
 0x124   :  { %v5495_v45 = vrot.slane %v5493_v29, 2  ;;  %v5522_v29 = vrot.slane %v5520_v3, 2 }
 0x125   :  { %v17030_v49 = vpop.f32.mrb[24].mxu1  ;;  %v5488_v63 = vsel %vm5273_vm3, %v5478_v33, %v5487_v40 }
 0x126   :  { %v17038_v56 = vpop.f32.mrb[25].mxu1  ;;  %v5496_v5 = vor.u32 %v5495_v45, %v5492_v44  ;;  %v15983_v44 = vld [vmem:[%s20305_s0 + $0x138] sm:$0xff]  }
 0x127   :  { %v17040_v59 = vpop.f32.mrb[26].mxu1 }
 0x128   :  { %v17043_v0 = vpop.f32.mrb[27].mxu1 }
 0x129   :  { %14001 = vmatmul.mubr.msk.bf16.gmra.mrb[140].mxu0 %vm373_vm1, %v15971_v52  ;;  %v5511_v52 = vshll.u32 %v15982_v30, 16  ;;  %v5535_v30 = vshrl.u32 %v15987_v4, 16 }
 0x12a   :  { %14561 = vmatmul.mubr.msk.bf16.gmra.mrb[128].mxu1 %vm373_vm1, %v5443_v60  ;;  %14004 = vmatprep.mubr.msk.bf16.mxu0 %vm16321_vm0, %v20309_v1  ;;  %v5504_v60 = vrot.slane %v5502_v37, 2 }
 0x12b   :  { %14564 = vmatprep.mubr.msk.bf16.mxu1 %vm373_vm1, %v5452_v2  ;;  %v5517_v2 = vshrl.u32 %v15984_v41, 16  ;;  %v5513_v15 = vrot.slane %v5511_v52, 2  ;;  %v15990_v41 = vld [vmem:[%s20305_s0 + $0x100] sm:$0xff]   ;;  %v15991_v52 = vld [vmem:[%s20305_s0 + $0x108] sm:$0xff]  }
 0x12c   :  { %v5505_v10 = vor.u32 %v5504_v60, %v5501_v57  ;;  %v5531_v57 = vrot.slane %v5529_v22, 2  ;;  %v5537_v60 = vrot.slane %v5535_v30, 1  ;;  %v5565_v22 = vshll.u32 %v15991_v52, 16 }
 0x12d   :  { %v17054_v12 = vpop.f32.mrb[28].mxu1  ;;  %v5519_v27 = vrot.slane %v5517_v2, 1  ;;  %v5540_v2 = vrot.slane %v5538_v36, 2 }
 0x12e   :  { %20314 = vst [vmem:[#allocation6_spill] sm:$0xff] %v17054_v12  ;;  %v17059_v16 = vpop.f32.mrb[29].mxu1 }
 0x12f   :  { %20315 = vst [vmem:[#allocation7_spill] sm:$0xff] %v17059_v16  ;;  %v17061_v18 = vpop.f32.mrb[30].mxu1  ;;  %v5523_v45 = vor.u32 %v5522_v29, %v5519_v27  ;;  %v15986_v27 = vld [vmem:[%s20305_s0 + $0x140] sm:$0xff]   ;;  %v5541_v29 = vor.u32 %v5540_v2, %v5537_v60 }
 0x130   :  { %20316 = vst [vmem:[#allocation8_spill] sm:$0xff] %v17061_v18  ;;  %v17067_v24 = vpop.f32.mrb[31].mxu1  ;;  %v15995_v60 = vld [vmem:[%s20305_s0] sm:$0xff]  }
 0x131   :  { %20317 = vst [vmem:[#allocation9_spill] sm:$0xff] %v17067_v24  ;;  %14005 = vmatmul.mubr.msk.bf16.gmra.mrb[144].mxu0 %vm373_vm1, %v15974_v13 }
 0x132   :  { %14565 = vmatmul.mubr.msk.bf16.gmra.mrb[132].mxu1 %vm373_vm1, %v5461_v19  ;;  %14008 = vmatprep.mubr.msk.bf16.mxu0 %vm16321_vm0, %v20309_v1  ;;  %v15988_v19 = vld [vmem:[%s20305_s0 + $0xf8] sm:$0xff]  }
 0x133   :  { %14568 = vmatprep.mubr.msk.bf16.mxu1 %vm373_vm1, %v5470_v26  ;;  %v5497_v26 = vsel %vm5273_vm3, %v5487_v40, %v5496_v5  ;;  %v5544_v37 = vshrl.u32 %v15988_v19, 16  ;;  %v5514_v40 = vor.u32 %v5513_v15, %v5510_v6  ;;  %v5547_v61 = vshll.u32 %v15988_v19, 16  ;;  %v15993_v19 = vld [vmem:[%s20305_s0 + $0x110] sm:$0xff]  }
 0x134   :  { %v5556_v6 = vshll.u32 %v15990_v41, 16 }
 0x135   :  { %v17084_v43 = vpop.f32.mrb[32].mxu1  ;;  %v5515_v4 = vsel %vm5273_vm3, %v5505_v10, %v5514_v40  ;;  %v5524_v17 = vsel %vm5273_vm3, %v5514_v40, %v5523_v45  ;;  %v5549_v30 = vrot.slane %v5547_v61, 2 }
 0x136   :  { %20318 = vst [vmem:[#allocation10_spill] sm:$0xff] %v17084_v43  ;;  %v17086_v47 = vpop.f32.mrb[33].mxu1 }
 0x137   :  { %20319 = vst [vmem:[#allocation11_spill] sm:$0xff] %v17086_v47  ;;  %v17088_v53 = vpop.f32.mrb[34].mxu1 }
 0x138   :  { %20320 = vst [vmem:[#allocation12_spill] sm:$0xff] %v17088_v53  ;;  %v17094_v62 = vpop.f32.mrb[35].mxu1 }
 0x139   :  { %20321 = vst [vmem:[#allocation13_spill] sm:$0xff] %v17094_v62  ;;  %14009 = vmatmul.mubr.msk.bf16.gmra.mrb[148].mxu0 %vm373_vm1, %v15977_v35  ;;  %v5506_v35 = vsel %vm5273_vm3, %v5496_v5, %v5505_v10  ;;  %v5546_v5 = vrot.slane %v5544_v37, 1  ;;  %v5532_v10 = vor.u32 %v5531_v57, %v5528_v46  ;;  %v5571_v57 = vshrl.u32 %v15993_v19, 16 }
 0x13a   :  { %14569 = vmatmul.mubr.msk.bf16.gmra.mrb[136].mxu1 %vm373_vm1, %v5479_v54  ;;  %14012 = vmatprep.mubr.msk.bf16.mxu0 %vm16321_vm0, %v20309_v1 }
 0x13b   :  { %14572 = vmatprep.mubr.msk.bf16.mxu1 %vm373_vm1, %v5488_v63  ;;  %v5533_v46 = vsel %vm5273_vm3, %v5523_v45, %v5532_v10  ;;  %v5542_v2 = vsel %vm5273_vm3, %v5532_v10, %v5541_v29  ;;  %v15997_v45 = vld [vmem:[%s20305_s0 + $0x120] sm:$0xff]  }
 0x13d   :  { %v17108_v13 = vpop.f32.mrb[36].mxu1 }
 0x13e   :  { %20322 = vst [vmem:[#allocation14_spill] sm:$0xff] %v17108_v13  ;;  %v17113_v21 = vpop.f32.mrb[37].mxu1 }
 0x13f   :  { %20323 = vst [vmem:[#allocation15_spill] sm:$0xff] %v17113_v21  ;;  %v17115_v23 = vpop.f32.mrb[38].mxu1 }
 0x140   :  { %20324 = vst [vmem:[#allocation16_spill] sm:$0xff] %v17115_v23  ;;  %v17118_v33 = vpop.f32.mrb[39].mxu1 }
 0x141   :  { %20325 = vst [vmem:[#allocation17_spill] sm:$0xff] %v17118_v33  ;;  %14013 = vmatmul.mubr.msk.bf16.gmra.mrb[152].mxu0 %vm373_vm1, %v15980_v8  ;;  %v5553_v8 = vshrl.u32 %v15990_v41, 16  ;;  %v5558_v41 = vrot.slane %v5556_v6, 2 }
 0x142   :  { %14573 = vmatmul.mubr.msk.bf16.gmra.mrb[140].mxu1 %vm373_vm1, %v5497_v26  ;;  %14016 = vmatprep.mubr.msk.bf16.mxu0 %vm16321_vm0, %v20309_v1  ;;  %v5562_v26 = vshrl.u32 %v15991_v52, 16  ;;  %v5567_v52 = vrot.slane %v5565_v22, 2  ;;  %v5550_v22 = vor.u32 %v5549_v30, %v5546_v5  ;;  %v1357_v30 = vshrl.u32 %v15995_v60, 16 }
 0x143   :  { %14576 = vmatprep.mubr.msk.bf16.mxu1 %vm373_vm1, %v5506_v35  ;;  %v15994_v35 = vld [vmem:[%s20305_s0 + $0x118] sm:$0xff]   ;;  %v5555_v37 = vrot.slane %v5553_v8, 1 }
 0x144   :  { %v5564_v40 = vrot.slane %v5562_v26, 1  ;;  %v5580_v8 = vshrl.u32 %v15994_v35, 16  ;;  %v5583_v6 = vshll.u32 %v15994_v35, 16  ;;  %v17176_v26 = vld [vmem:[%s20305_s0 + $0x8] sm:$0xff]   ;;  %v5551_v5 = vsel %vm5273_vm3, %v5541_v29, %v5550_v22 }
 0x145   :  { %v17135_v54 = vpop.f32.mrb[40].mxu1  ;;  %v5559_v10 = vor.u32 %v5558_v41, %v5555_v37  ;;  %v1364_v37 = vshll.u32 %v17176_v26, 16  ;;  %v5589_v41 = vshrl.u32 %v15997_v45, 16  ;;  %v20338_v29 = vmov 0.0  }
 0x146   :  { %20326 = vst [vmem:[#allocation18_spill] sm:$0xff] %v17135_v54  ;;  %v17137_v63 = vpop.f32.mrb[41].mxu1 }
 0x147   :  { %20327 = vst [vmem:[#allocation19_spill] sm:$0xff] %v17137_v63  ;;  %v17139_v3 = vpop.f32.mrb[42].mxu1 }
 0x148   :  { %20328 = vst [vmem:[#allocation20_spill] sm:$0xff] %v17139_v3  ;;  %v17142_v15 = vpop.f32.mrb[43].mxu1 }
 0x149   :  { %20329 = vst [vmem:[#allocation21_spill] sm:$0xff] %v17142_v15  ;;  %14017 = vmatmul.mubr.msk.bf16.gmra.mrb[156].mxu0 %vm373_vm1, %v15983_v44 }
 0x14a   :  { %14577 = vmatmul.mubr.msk.bf16.gmra.mrb[144].mxu1 %vm373_vm1, %v5515_v4  ;;  %14020 = vmatprep.mubr.msk.bf16.mxu0 %vm16321_vm0, %v20309_v1 }
 0x14b   :  { %14580 = vmatprep.mubr.msk.bf16.mxu1 %vm373_vm1, %v5524_v17  ;;  %v5574_v17 = vshll.u32 %v15993_v19, 16  ;;  %v15989_v19 = vld [vmem:[%s20305_s0 + $0x148] sm:$0xff]  }
 0x14d   :  { %v17159_v36 = vpop.f32.mrb[44].mxu1  ;;  %v5576_v35 = vrot.slane %v5574_v17, 2  ;;  %v5560_v17 = vsel %vm5273_vm3, %v5550_v22, %v5559_v10 }
 0x14e   :  { %20330 = vst [vmem:[#allocation22_spill] sm:$0xff] %v17159_v36  ;;  %v17161_v44 = vpop.f32.mrb[45].mxu1  ;;  %v5582_v36 = vrot.slane %v5580_v8, 1  ;;  %v5592_v8 = vshll.u32 %v15997_v45, 16  ;;  %v15992_v45 = vld [vmem:[%s20305_s0 + $0x150] ss:$0 sps:$4 sm:$0xff]  }
 0x14f   :  { %20331 = vst [vmem:[#allocation23_spill] sm:$0xff] %v17161_v44  ;;  %v17163_v4 = vpop.f32.mrb[46].mxu1 }
 0x150   :  { %20332 = vst [vmem:[#allocation24_spill] sm:$0xff] %v17163_v4  ;;  %v17169_v61 = vpop.f32.mrb[47].mxu1 }
 0x151   :  { %20333 = vst [vmem:[#allocation25_spill] sm:$0xff] %v17169_v61  ;;  %14021 = vmatmul.mubr.msk.bf16.gmra.mrb[160].mxu0 %vm373_vm1, %v15986_v27  ;;  %v5573_v27 = vrot.slane %v5571_v57, 1  ;;  %v1359_v61 = vshll.u32 %v15995_v60, 16  ;;  %v5568_v60 = vor.u32 %v5567_v52, %v5564_v40  ;;  %v5591_v52 = vrot.slane %v5589_v41, 1 }
 0x152   :  { %14581 = vmatmul.mubr.msk.bf16.gmra.mrb[148].mxu1 %vm373_vm1, %v5533_v46  ;;  %14024 = vmatprep.mubr.msk.bf16.mxu0 %vm16321_vm0, %v20309_v1  ;;  %v15998_v46 = vld [vmem:[%s20305_s0 + $0x128] sm:$0xff]   ;;  %v5585_v1 = vrot.slane %v5583_v6, 2  ;;  %v17206_v6 = vld [vmem:[%s20305_s0 + $0x10] sm:$0xff]  }
 0x153   :  { %14584 = vmatprep.mubr.msk.bf16.mxu1 %vm373_vm1, %v5542_v2  ;;  %v5577_v22 = vor.u32 %v5576_v35, %v5573_v27  ;;  %v5569_v27 = vsel %vm5273_vm3, %v5559_v10, %v5568_v60  ;;  %v1372_v54 = vshll.u32 %v17206_v6, 16 }
 0x155   :  { %v17188_v4 = vpop.f32.mrb[48].mxu1 }
 0x156   :  { %20334 = vst [vmem:[#allocation26_spill] sm:$0xff] %v17188_v4  ;;  %v17193_v44 = vpop.f32.mrb[49].mxu1  ;;  %v5598_v4 = vshrl.u32 %v15998_v46, 16 }
 0x157   :  { %20335 = vst [vmem:[#allocation27_spill] sm:$0xff] %v17193_v44  ;;  %v17195_v2 = vpop.f32.mrb[50].mxu1  ;;  %v5601_v44 = vshll.u32 %v15998_v46, 16 }
 0x158   :  { %20336 = vst [vmem:[#allocation28_spill] sm:$0xff] %v17195_v2  ;;  %v17199_v57 = vpop.f32.mrb[51].mxu1  ;;  %v16000_v2 = vld [vmem:[%s20305_s0 + $0x130] sm:$0xff]   ;;  %v5600_v35 = vrot.slane %v5598_v4, 1  ;;  %v5586_v4 = vor.u32 %v5585_v1, %v5582_v36 }
 0x159   :  { %20337 = vst [vmem:[#allocation29_spill] sm:$0xff] %v17199_v57  ;;  %14025 = vmatmul.mubr.msk.bf16.gmra.mrb[164].mxu0 %vm373_vm1, %v15989_v19  ;;  %v1361_v19 = vrot.slane %v1359_v61, 1  ;;  %v5594_v61 = vrot.slane %v5592_v8, 2  ;;  %v5607_v46 = vshrl.u32 %v16000_v2, 16  ;;  %v5603_v8 = vrot.slane %v5601_v44, 2 }
 0x15a   :  { %14585 = vmatmul.mubr.msk.bf16.gmra.mrb[152].mxu1 %vm373_vm1, %v5551_v5  ;;  %14028 = vmatprep.mubr.msk.bf16.mxu0 %vm16321_vm0, %v20338_v29  ;;  %v1366_v5 = vrot.slane %v1364_v37, 1  ;;  %v5578_v37 = vsel %vm5273_vm3, %v5568_v60, %v5577_v22  ;;  %v17240_v60 = vld [vmem:[%s20305_s0 + $0x18] sm:$0xff]  }
 0x15b   :  { %14588 = vmatprep.mubr.msk.bf16.mxu1 %vm373_vm1, %v5560_v17  ;;  %v16001_v17 = vld [vmem:[%s20305_s0 + $0x138] sm:$0xff]   ;;  %v1362_v41 = vor.u32 %v1361_v19, %v1357_v30  ;;  %v5595_v10 = vor.u32 %v5594_v61, %v5591_v52  ;;  %v5587_v19 = vsel %vm5273_vm3, %v5577_v22, %v5586_v4  ;;  %v5609_v52 = vrot.slane %v5607_v46, 1 }
 0x15c   :  { %v5616_v63 = vshrl.u32 %v16001_v17, 16  ;;  %v5619_v36 = vshll.u32 %v16001_v17, 16  ;;  %v16004_v17 = vld [vmem:[%s20305_s0 + $0x148] sm:$0xff]   ;;  %v5604_v22 = vor.u32 %v5603_v8, %v5600_v35 }
 0x15d   :  { %v17218_v57 = vpop.f32.mrb[52].mxu1  ;;  %v1367_v1 = vsel %vm1355_vm4, %v1362_v41, %v1366_v5  ;;  %v16284_v35 = vld [vmem:[%s20307_s2 + $0x48] sm:$0xff]  }
 0x15e   :  { %20339 = vst [vmem:[#allocation30_spill] sm:$0xff] %v17218_v57  ;;  %v17223_v40 = vpop.f32.mrb[53].mxu1  ;;  %v5610_v57 = vshll.u32 %v16000_v2, 16  ;;  %v1368_v2 = vshrl.u32 %v17176_v26, 16  ;;  %v1380_v26 = vshll.u32 %v17240_v60, 16  ;;  %v5621_v41 = vrot.slane %v5619_v36, 2 }
 0x15f   :  { %20340 = vst [vmem:[#allocation31_spill] sm:$0xff] %v17223_v40  ;;  %v17225_v3 = vpop.f32.mrb[54].mxu1 }
 0x160   :  { %20341 = vst [vmem:[#allocation32_spill] sm:$0xff] %v17225_v3  ;;  %v17229_v15 = vpop.f32.mrb[55].mxu1  ;;  %v5612_v61 = vrot.slane %v5610_v57, 2  ;;  %v16283_v57 = vld [vmem:[%s20307_s2 + $0x40] sm:$0xff]  }
 0x161   :  { %20342 = vst [vmem:[#allocation33_spill] sm:$0xff] %v17229_v15  ;;  %14029 = vmatmul.mubr.msk.bf16.gmra.mrb[168].mxu0 %vm373_vm1, %v15992_v45  ;;  %v1374_v45 = vrot.slane %v1372_v54, 1  ;;  %v5596_v54 = vsel %vm5273_vm3, %v5586_v4, %v5595_v10 }
 0x162   :  { %14589 = vmatmul.mubr.msk.bf16.gmra.mrb[156].mxu1 %vm373_vm1, %v5569_v27  ;;  %14040 = vmatprep.mubr.msk.bf16.mxu0 %vm16321_vm0, %v20338_v29  ;;  %v16003_v27 = vld [vmem:[%s20305_s0 + $0x140] sm:$0xff]   ;;  %v5613_v46 = vor.u32 %v5612_v61, %v5609_v52  ;;  %v5637_v52 = vshll.u32 %v16004_v17, 16 }
 0x163   :  { %14592 = vmatprep.mubr.msk.bf16.mxu1 %vm373_vm1, %v5578_v37  ;;  %v5618_v37 = vrot.slane %v5616_v63, 1  ;;  %v5625_v15 = vshrl.u32 %v16003_v27, 16  ;;  %v1370_v63 = vor.u32 %v1368_v2, %v1366_v5  ;;  %v5628_v4 = vshll.u32 %v16003_v27, 16 }
 0x164   :  { %v5605_v27 = vsel %vm5273_vm3, %v5595_v10, %v5604_v22 }
 0x165   :  { %v17242_v3 = vpop.f32.mrb[56].mxu1  ;;  %v1375_v2 = vsel %vm1355_vm4, %v1370_v63, %v1374_v45  ;;  %v5627_v36 = vrot.slane %v5625_v15, 1  ;;  %v5630_v63 = vrot.slane %v5628_v4, 2  ;;  %v5622_v10 = vor.u32 %v5621_v41, %v5618_v37 }
 0x166   :  { %20343 = vst [vmem:[#allocation34_spill] sm:$0xff] %v17242_v3  ;;  %v17248_v30 = vpop.f32.mrb[57].mxu1 }
 0x167   :  { %20344 = vst [vmem:[#allocation35_spill] sm:$0xff] %v17248_v30  ;;  %v17251_v44 = vpop.f32.mrb[58].mxu1  ;;  %v5623_v37 = vsel %vm5273_vm3, %v5613_v46, %v5622_v10 }
 0x168   :  { %20345 = vst [vmem:[#allocation36_spill] sm:$0xff] %v17251_v44  ;;  %v17254_v3 = vpop.f32.mrb[59].mxu1 }
 0x169   :  { %20346 = vst [vmem:[#allocation37_spill] sm:$0xff] %v17254_v3  ;;  %14041 = vmatmul.mubr.msk.bf16.vlgmr.msra.gmra.mrb[0].mxu0 %vm373_vm1, %v1367_v1 }
 0x16a   :  { %14593 = vmatmul.mubr.msk.bf16.gmra.mrb[160].mxu1 %vm373_vm1, %v5587_v19  ;;  %14225 = vmatpush3.bf16.msra.mxu0 %v16283_v57  ;;  %v1376_v19 = vshrl.u32 %v17206_v6, 16  ;;  %v16006_v57 = vld [vmem:[%s20305_s0 + $0x150] ss:$0 sps:$4 sm:$0xff]   ;;  %v5634_v6 = vshrl.u32 %v16004_v17, 16 }
 0x16b   :  { %14596 = vmatprep.mubr.msk.bf16.mxu1 %vm373_vm1, %v5596_v54  ;;  %14044 = vmatprep.mubr.msk.bf16.mxu0 %vm16321_vm0, %v20338_v29  ;;  %v1382_v54 = vrot.slane %v1380_v26, 1  ;;  %v16005_v26 = vld [vmem:[%s20305_s0 + $0x20] sm:$0xff]   ;;  %v16285_v17 = vld [vmem:[%s20307_s2 + $0x50] sm:$0xff]   ;;  %v5646_v4 = vshll.u32 %v16006_v57, 16 }
 0x16c   :  { %14226 = vmatprep.subr.bf16.mxu0 %v20338_v29  ;;  %v1378_v15 = vor.u32 %v1376_v19, %v1374_v45  ;;  %v1384_v45 = vshrl.u32 %v17240_v60, 16  ;;  %v5636_v41 = vrot.slane %v5634_v6, 1  ;;  %v5639_v19 = vrot.slane %v5637_v52, 2 }
 0x16d   :  { %v17270_v1 = vpop.f32.mrb[60].mxu1 }
 0x16e   :  { %20347 = vst [vmem:[#allocation38_spill] sm:$0xff] %v17270_v1  ;;  %v17276_v5 = vpop.f32.mrb[61].mxu1  ;;  %14227 = vmatpush3.bf16.msra.mxu0 %v16284_v35  ;;  %v5614_v1 = vsel %vm5273_vm3, %v5604_v22, %v5613_v46  ;;  %v5643_v35 = vshrl.u32 %v16006_v57, 16  ;;  %v5631_v22 = vor.u32 %v5630_v63, %v5627_v36  ;;  %v16286_v57 = vld [vmem:[%s20307_s2 + $0x58] sm:$0xff]   ;;  %v16007_v46 = vld [vmem:[%s20305_s0 + $0x28] sm:$0xff]   ;;  %v1386_v6 = vor.u32 %v1384_v45, %v1382_v54 }
 0x16f   :  { %20348 = vst [vmem:[#allocation39_spill] sm:$0xff] %v17276_v5  ;;  %v17282_v8 = vpop.f32.mrb[62].mxu1  ;;  %14228 = vmatprep.subr.bf16.mxu0 %v20338_v29  ;;  %v5640_v52 = vor.u32 %v5639_v19, %v5636_v41 }
 0x170   :  { %20349 = vst [vmem:[#allocation40_spill] sm:$0xff] %v17282_v8  ;;  %v17286_v61 = vpop.f32.mrb[63].mxu1  ;;  %v1388_v8 = vshll.u32 %v16005_v26, 16  ;;  %v5632_v63 = vsel %vm5273_vm3, %v5622_v10, %v5631_v22  ;;  %v1396_v10 = vshll.u32 %v16007_v46, 16 }
 0x171   :  { %20350 = vst [vmem:[#allocation41_spill] sm:$0xff] %v17286_v61  ;;  %14045 = vmatmul.mubr.msk.bf16.gmra.mrb[4].mxu0 %vm373_vm1, %v1375_v2  ;;  %v1383_v61 = vsel %vm1355_vm4, %v1378_v15, %v1382_v54 }
 0x172   :  { %14597 = vmatmul.mubr.msk.bf16.gmra.mrb[164].mxu1 %vm373_vm1, %v5605_v27  ;;  %14048 = vmatprep.mubr.msk.bf16.mxu0 %vm16321_vm0, %v20338_v29  ;;  %v1390_v60 = vrot.slane %v1388_v8, 1  ;;  %v1398_v45 = vrot.slane %v1396_v10, 1 }
 0x173   :  { %14600 = vmatprep.mubr.msk.bf16.mxu1 %vm373_vm1, %v5614_v1  ;;  %14229 = vmatpush3.bf16.msra.mxu0 %v16285_v17  ;;  %v5645_v17 = vrot.slane %v5643_v35, 1 }
 0x174   :  { %14230 = vmatprep.subr.bf16.mxu0 %v20338_v29  ;;  %v1391_v8 = vsel %vm1355_vm4, %v1386_v6, %v1390_v60 }
 0x175   :  { %v17301_v2 = vpop.f32.mrb[64].mxu1 }
 0x176   :  { %20351 = vst [vmem:[#allocation42_spill] sm:$0xff] %v17301_v2  ;;  %v17303_v27 = vpop.f32.mrb[65].mxu1  ;;  %v5648_v2 = vrot.slane %v5646_v4, 2 }
 0x177   :  { %20352 = vst [vmem:[#allocation43_spill] sm:$0xff] %v17303_v27  ;;  %v17307_v1 = vpop.f32.mrb[66].mxu1  ;;  %14231 = vmatpush3.bf16.msra.mxu0 %v16286_v57 }
 0x178   :  { %20353 = vst [vmem:[#allocation44_spill] sm:$0xff] %v17307_v1  ;;  %v17313_v36 = vpop.f32.mrb[67].mxu1  ;;  %14728 = vmatprep.subr.bf16.mxu0 %v20338_v29  ;;  %v5649_v35 = vor.u32 %v5648_v2, %v5645_v17  ;;  %v16011_v2 = vld [vmem:[%s20305_s0 + $0x30] sm:$0xff]  }
 0x179   :  { %20354 = vst [vmem:[#allocation45_spill] sm:$0xff] %v17313_v36  ;;  %14049 = vmatmul.mubr.msk.bf16.gmra.mrb[8].mxu0 %vm373_vm1, %v1383_v61  ;;  %v1392_v61 = vshrl.u32 %v16005_v26, 16  ;;  %v1404_v41 = vshll.u32 %v16011_v2, 16 }
 0x17a   :  { %14601 = vmatmul.mubr.msk.bf16.gmra.mrb[168].mxu1 %vm373_vm1, %v5623_v37  ;;  %14052 = vmatprep.mubr.msk.bf16.mxu0 %vm16321_vm0, %v20338_v29  ;;  %v5641_v37 = vsel %vm5273_vm3, %v5631_v22, %v5640_v52  ;;  %v5650_v54 = vsel %vm5273_vm3, %v5640_v52, %v5649_v35  ;;  %v16008_v52 = vld [vmem:[%s20306_s1 + $0x154] sm:$0xff]  }
 0x17b   :  { %14604 = vmatprep.mubr.msk.bf16.mxu1 %vm373_vm1, %v5632_v63  ;;  %v1394_v26 = vor.u32 %v1392_v61, %v1390_v60  ;;  %v1400_v63 = vshrl.u32 %v16007_v46, 16  ;;  %v16016_v60 = vld [vmem:[%s20305_s0 + $0x8] sm:$0xfc]   ;;  %v1406_v46 = vrot.slane %v1404_v41, 1  ;;  %v16014_v61 = vld [vmem:[%s20305_s0 + $0x38] sm:$0xff]  }
 0x17d   :  { %v17325_v15 = vpop.f32.mrb[68].mxu1  ;;  %v1399_v17 = vsel %vm1355_vm4, %v1394_v26, %v1398_v45  ;;  %v6792_v26 = vrot.slane %v16016_v60, 2 }
 0x17e   :  { %20355 = vst [vmem:[#allocation46_spill] sm:$0xff] %v17325_v15  ;;  %v17327_v4 = vpop.f32.mrb[69].mxu1 }
 0x17f   :  { %20356 = vst [vmem:[#allocation47_spill] sm:$0xff] %v17327_v4  ;;  %v17330_v57 = vpop.f32.mrb[70].mxu1 }
 0x180   :  { %20357 = vst [vmem:[#allocation48_spill] sm:$0xff] %v17330_v57  ;;  %v17333_v1 = vpop.f32.mrb[71].mxu1 }
 0x181   :  { %20358 = vst [vmem:[#allocation49_spill] sm:$0xff] %v17333_v1  ;;  %14053 = vmatmul.mubr.msk.bf16.gmra.mrb[12].mxu0 %vm373_vm1, %v1391_v8  ;;  %v17362_v8 = vld [vmem:[%s20305_s0 + $0x10] sm:$0xff]  }
 0x182   :  { %14605 = vmatmul.mubr.msk.bf16.gmra.mrb[172].mxu1 %vm373_vm1, %v5641_v37  ;;  %14056 = vmatprep.mubr.msk.bf16.mxu0 %vm16321_vm0, %v20338_v29  ;;  %v1402_v37 = vor.u32 %v1400_v63, %v1398_v45  ;;  %v17388_v63 = vld [vmem:[%s20307_s2 + $0xa8] sm:$0xff]  }
 0x183   :  { %14608 = vmatprep.mubr.msk.bf16.mxu1 %vm373_vm1, %v5650_v54  ;;  %v16010_v54 = vld [vmem:[%s20306_s1 + $0x15c] ss:$0 sps:$4 sm:$0x33]  }
 0x185   :  { %v17344_v22 = vpop.f32.mrb[72].mxu1 }
 0x186   :  { %20359 = vst [vmem:[#allocation50_spill] sm:$0xff] %v17344_v22  ;;  %v17346_v19 = vpop.f32.mrb[73].mxu1 }
 0x187   :  { %20360 = vst [vmem:[#allocation51_spill] sm:$0xff] %v17346_v19  ;;  %v17349_v6 = vpop.f32.mrb[74].mxu1 }
 0x188   :  { %20361 = vst [vmem:[#allocation52_spill] sm:$0xff] %v17349_v6  ;;  %v17357_v10 = vpop.f32.mrb[75].mxu1  ;;  %v1412_v6 = vshll.u32 %v16014_v61, 16 }
 0x189   :  { %20362 = vst [vmem:[#allocation53_spill] sm:$0xff] %v17357_v10  ;;  %14057 = vmatmul.mubr.msk.bf16.gmra.mrb[16].mxu0 %vm373_vm1, %v1399_v17  ;;  %v6793_v17 = vrot.slane %v17362_v8, 2  ;;  %v1408_v10 = vshrl.u32 %v16011_v2, 16  ;;  %v16018_v8 = vld [vmem:[%s20305_s0 + $0x18] sm:$0xff]   ;;  %v16019_v2 = vld [vmem:[%s20305_s0 + $0x40] sm:$0xff]  }
 0x18a   :  { %14609 = vmatmul.mubr.msk.bf16.gmra.mrb[176].mxu1 %vm373_vm1, %v5649_v35  ;;  %14060 = vmatprep.mubr.msk.bf16.mxu0 %vm16321_vm0, %v20338_v29  ;;  %v1407_v35 = vsel %vm1355_vm4, %v1402_v37, %v1406_v46  ;;  %v1414_v60 = vrot.slane %v1412_v6, 1  ;;  %v17409_v6 = vld [vmem:[%s20307_s2 + $0xb0] sm:$0xff]   ;;  %v1424_v15 = vshrl.u32 %v16019_v2, 16 }
 0x18b   :  { %14620 = vmatprep.mubr.msk.bf16.mxu1 %vm373_vm1, %v16008_v52  ;;  %v6794_v52 = vsel %vm6791_vm5, %v6792_v26, %v6793_v17  ;;  %v1410_v37 = vor.u32 %v1408_v10, %v1406_v46  ;;  %v16287_v26 = vld [vmem:[%s20307_s2 + $0xa0] sm:$0xff]   ;;  %v1416_v46 = vshrl.u32 %v16014_v61, 16 }
 0x18d   :  { %v17376_v41 = vpop.f32.mrb[76].mxu1  ;;  %v1415_v10 = vsel %vm1355_vm4, %v1410_v37, %v1414_v60  ;;  %v16021_v37 = vld [vmem:[%s20305_s0 + $0x28] sm:$0xff]  }
 0x18e   :  { %20363 = vst [vmem:[#allocation54_spill] sm:$0xff] %v17376_v41  ;;  %v17378_v22 = vpop.f32.mrb[77].mxu1 }
 0x18f   :  { %20364 = vst [vmem:[#allocation55_spill] sm:$0xff] %v17378_v22  ;;  %v17381_v19 = vpop.f32.mrb[78].mxu1 }
 0x190   :  { %20365 = vst [vmem:[#allocation56_spill] sm:$0xff] %v17381_v19  ;;  %v17383_v45 = vpop.f32.mrb[79].mxu1 }
 0x191   :  { %20366 = vst [vmem:[#allocation57_spill] sm:$0xff] %v17383_v45  ;;  %14061 = vmatmul.mubr.msk.bf16.gmra.mrb[20].mxu0 %vm373_vm1, %v1407_v35  ;;  %v6795_v45 = vrot.slane %v16018_v8, 2  ;;  %v1418_v8 = vor.u32 %v1416_v46, %v1414_v60  ;;  %v6799_v60 = vrot.slane %v16021_v37, 2 }
 0x192   :  { %14621 = vmatmul.mubr.msk.bf16.vlgmr.msra.gmra.mrb[180].mxu1 %vm373_vm1, %v16010_v54  ;;  %14064 = vmatprep.mubr.msk.bf16.mxu0 %vm16321_vm0, %v20338_v29  ;;  %v1420_v54 = vshll.u32 %v16019_v2, 16  ;;  %v16025_v2 = vld [vmem:[%s20305_s0 + $0x50] sm:$0xff]  }
 0x193   :  { %14625 = vmatpush3.bf16.msra.mxu1 %v16287_v26  ;;  %14632 = vmatprep.mubr.msk.bf16.mxu1 %vm373_vm1, %v6794_v52  ;;  %v17422_v52 = vld [vmem:[%s20307_s2 + $0xb8] sm:$0xff]   ;;  %v6796_v4 = vsel %vm6791_vm5, %v6793_v17, %v6795_v45 }
 0x194   :  { %14626 = vmatprep.subr.bf16.mxu1 %v17388_v63  ;;  %v1422_v61 = vrot.slane %v1420_v54, 1 }
 0x195   :  { %v17411_v35 = vpop.f32.mrb[80].mxu1 }
 0x196   :  { %20367 = vst [vmem:[#allocation58_spill] sm:$0xff] %v17411_v35  ;;  %v17413_v19 = vpop.f32.mrb[81].mxu1  ;;  %v16020_v35 = vld [vmem:[%s20305_s0 + $0x20] sm:$0xff]   ;;  %v1423_v57 = vsel %vm1355_vm4, %v1418_v8, %v1422_v61  ;;  %v1426_v17 = vor.u32 %v1424_v15, %v1422_v61 }
 0x197   :  { %20368 = vst [vmem:[#allocation59_spill] sm:$0xff] %v17413_v19  ;;  %14627 = vmatpush3.bf16.msra.mxu1 %v17388_v63  ;;  %v17417_v41 = vpop.f32.mrb[82].mxu1 }
 0x198   :  { %20369 = vst [vmem:[#allocation60_spill] sm:$0xff] %v17417_v41  ;;  %v17424_v22 = vpop.f32.mrb[83].mxu1  ;;  %14628 = vmatprep.subr.bf16.mxu1 %v17409_v6  ;;  %v16022_v41 = vld [vmem:[%s20305_s0 + $0x48] sm:$0xff]  }
 0x199   :  { %20370 = vst [vmem:[#allocation61_spill] sm:$0xff] %v17424_v22  ;;  %14065 = vmatmul.mubr.msk.bf16.gmra.mrb[24].mxu0 %vm373_vm1, %v1415_v10  ;;  %v6797_v22 = vrot.slane %v16020_v35, 2  ;;  %v1428_v54 = vshll.u32 %v16022_v41, 16 }
 0x19a   :  { %14068 = vmatprep.mubr.msk.bf16.mxu0 %vm16321_vm0, %v20338_v29 }
 0x19b   :  { %14629 = vmatpush3.bf16.msra.mxu1 %v17409_v6  ;;  %v6798_v35 = vsel %vm6791_vm5, %v6795_v45, %v6797_v22  ;;  %v1430_v8 = vrot.slane %v1428_v54, 1 }
 0x19c   :  { %14630 = vmatprep.subr.bf16.mxu1 %v17422_v52 }
 0x19d   :  { %v17441_v19 = vpop.f32.mrb[84].mxu1 }
 0x19e   :  { %20371 = vst [vmem:[#allocation62_spill] sm:$0xff] %v17441_v19  ;;  %v17443_v10 = vpop.f32.mrb[85].mxu1  ;;  %v16023_v19 = vld [vmem:[%s20305_s0 + $0x30] sm:$0xff]  }
 0x19f   :  { %20372 = vst [vmem:[#allocation63_spill] sm:$0xff] %v17443_v10  ;;  %14631 = vmatpush3.bf16.msra.mxu1 %v17422_v52  ;;  %v17447_v1 = vpop.f32.mrb[86].mxu1  ;;  %v6801_v45 = vrot.slane %v16023_v19, 2 }
 0x1a0   :  { %20373 = vst [vmem:[#allocation64_spill] sm:$0xff] %v17447_v1  ;;  %v17450_v46 = vpop.f32.mrb[87].mxu1  ;;  %14716 = vmatprep.subr.bf16.mxu1 %v16287_v26 }
 0x1a1   :  { %20374 = vst [vmem:[#allocation65_spill] sm:$0xff] %v17450_v46  ;;  %14069 = vmatmul.mubr.msk.bf16.gmra.mrb[28].mxu0 %vm373_vm1, %v1423_v57 }
 0x1a2   :  { %14633 = vmatmul.mubr.msk.bf16.vlgmr.msra.gmra.mrb[184].mxu1 %vm373_vm1, %v6796_v4  ;;  %14072 = vmatprep.mubr.msk.bf16.mxu0 %vm16321_vm0, %v20338_v29 }
 0x1a3   :  { %14717 = vmatpush3.bf16.msra.mxu1 %v16287_v26  ;;  %14636 = vmatprep.mubr.msk.bf16.mxu1 %vm373_vm1, %v6798_v35 }
 0x1a4   :  { %14718 = vmatprep.subr.bf16.mxu1 %v17388_v63 }
 0x1a5   :  { %v17465_v37 = vpop.f32.mrb[88].mxu1 }
 0x1a6   :  { %20375 = vst [vmem:[#allocation66_spill] sm:$0xff] %v17465_v37 }
 0x1a7   :  { %8 = vsyncpa [#allocation4], 0  ;;  %v17467_v57 = vpop.f32.mrb[89].mxu1  ;;  %v1431_v54 = vsel %vm1355_vm4, %v1426_v17, %v1430_v8  ;;  %v1432_v1 = vshrl.u32 %v16022_v41, 16  ;;  %v1436_v46 = vshll.u32 %v16025_v2, 16  ;;  %v6800_v10 = vsel %vm6791_vm5, %v6797_v22, %v6799_v60  ;;  %v16024_v15 = vld [vmem:[%s20305_s0 + $0x38] sm:$0xff]   ;;  %14719 = vmatpush3.bf16.msra.mxu1 %v17388_v63 }
 0x1a8   :  { %20376 = vst [vmem:[#allocation67_spill] sm:$0xff] %v17467_v57  ;;  %v14507_v4 = vpop.f32.mrb[90].mxu1  ;;  %v6802_v26 = vsel %vm6791_vm5, %v6799_v60, %v6801_v45  ;;  %v16026_v61 = vld [vmem:[%s20305_s0 + $0x40] sm:$0xff]   ;;  %14720 = vmatprep.subr.bf16.mxu1 %v17409_v6  ;;  %v16028_v63 = vld [vmem:[%s20305_s0 + $0x58] sm:$0xff]   ;;  %v6803_v60 = vrot.slane %v16024_v15, 2  ;;  %v16027_v15 = vld [vmem:[%s20305_s0 + $0x48] sm:$0xff]  }
 0x1a9   :  { %v17475_v19 = vpop.f32.mrb[91].mxu1  ;;  %14073 = vmatmul.mubr.msk.bf16.gmra.mrb[32].mxu0 %vm373_vm1, %v1431_v54  ;;  %v1434_v22 = vor.u32 %v1432_v1, %v1430_v8  ;;  %v1438_v41 = vrot.slane %v1436_v46, 1  ;;  %v6805_v35 = vrot.slane %v16026_v61, 2  ;;  %v1440_v1 = vshrl.u32 %v16025_v2, 16  ;;  %v16029_v61 = vld [vmem:[%s20305_s0 + $0x50] sm:$0xff]  }
 0x1aa   :  { %20377 = vst [vmem:[#allocation68_spill] sm:$0xff] %v17475_v19  ;;  %14637 = vmatmul.mubr.msk.bf16.gmra.mrb[188].mxu1 %vm373_vm1, %v6800_v10  ;;  %14076 = vmatprep.mubr.msk.bf16.mxu0 %vm16321_vm0, %v20338_v29  ;;  %v1444_v46 = vshll.u32 %v16028_v63, 16  ;;  %v6804_v4 = vsel %vm6791_vm5, %v6801_v45, %v6803_v60  ;;  %vm9227_vm6 = vsmask.f32 5376  ;;  %vm10736_vm7 = vcmask 1044480  }
 0x1ab   :  { %14640 = vmatprep.mubr.msk.bf16.mxu1 %vm373_vm1, %v6802_v26  ;;  %14721 = vmatpush3.bf16.msra.mxu1 %v17409_v6  ;;  %v1439_v54 = vsel %vm1355_vm4, %v1434_v22, %v1438_v41  ;;  %v6806_v26 = vsel %vm6791_vm5, %v6803_v60, %v6805_v35  ;;  %v1442_v2 = vor.u32 %v1440_v1, %v1438_v41  ;;  %v6807_v22 = vrot.slane %v16027_v15, 2  ;;  %v16032_v1 = vld [vmem:[%s20305_s0 + $0x60] sm:$0xff]  }
 0x1ac   :  { %14722 = vmatprep.subr.bf16.mxu1 %v17422_v52  ;;  %v1446_v45 = vrot.slane %v1444_v46, 1  ;;  %v6809_v60 = vrot.slane %v16029_v61, 2 }
 0x1ad   :  { %v17492_v17 = vpop.f32.mrb[92].mxu1 }
 0x1ae   :  { %v17494_v10 = vpop.f32.mrb[93].mxu1  ;;  %v6810_v41 = vsel %vm6791_vm5, %v6807_v22, %v6809_v60 }
 0x1af   :  { %20378 = vst [vmem:[#allocation69_spill] sm:$0xff] %v17494_v10  ;;  %v14519_v8 = vpop.f32.mrb[94].mxu1  ;;  %14723 = vmatpush3.bf16.msra.mxu1 %v17422_v52  ;;  %v16031_v52 = vld [vmem:[%s20305_s0 + $0x60] sm:$0xff]  }
 0x1b0   :  { %v17502_v6 = vpop.f32.mrb[95].mxu1  ;;  %15304 = vmatprep.subr.bf16.mxu1 %v20338_v29  ;;  %v1447_v8 = vsel %vm1355_vm4, %v1442_v2, %v1446_v45  ;;  %v1452_v10 = vshll.u32 %v16031_v52, 16 }
 0x1b1   :  { %20379 = vst [vmem:[#allocation70_spill] sm:$0xff] %v17502_v6  ;;  %14077 = vmatmul.mubr.msk.bf16.gmra.mrb[36].mxu0 %vm373_vm1, %v1439_v54  ;;  %v1448_v6 = vshrl.u32 %v16028_v63, 16  ;;  %v6808_v54 = vsel %vm6791_vm5, %v6805_v35, %v6807_v22  ;;  %v16034_v35 = vld [vmem:[%s20305_s0 + $0x68] sm:$0xff]  }
 0x1b2   :  { %14641 = vmatmul.mubr.msk.bf16.gmra.mrb[192].mxu1 %vm373_vm1, %v6804_v4  ;;  %14080 = vmatprep.mubr.msk.bf16.mxu0 %vm16321_vm0, %v20338_v29  ;;  %v16030_v4 = vld [vmem:[%s20305_s0 + $0x58] sm:$0xff]   ;;  %v1454_v46 = vrot.slane %v1452_v10, 1 }
 0x1b3   :  { %14644 = vmatprep.mubr.msk.bf16.mxu1 %vm373_vm1, %v6806_v26  ;;  %v1450_v63 = vor.u32 %v1448_v6, %v1446_v45  ;;  %v6811_v15 = vrot.slane %v16030_v4, 2  ;;  %v6813_v26 = vrot.slane %v16032_v1, 2  ;;  %v16033_v6 = vld [vmem:[%s20305_s0 + $0x68] sm:$0xff]   ;;  %v16037_v1 = vld [vmem:[%s20305_s0 + $0x70] sm:$0xff]  }
 0x1b4   :  { %v1468_v36 = vshll.u32 %v16037_v1, 16 }
 0x1b5   :  { %v1455_v22 = vsel %vm1355_vm4, %v1450_v63, %v1454_v46  ;;  %v6812_v10 = vsel %vm6791_vm5, %v6809_v60, %v6811_v15  ;;  %v6814_v4 = vsel %vm6791_vm5, %v6811_v15, %v6813_v26  ;;  %v6815_v63 = vrot.slane %v16033_v6, 2 }
 0x1b9   :  { %14081 = vmatmul.mubr.msk.bf16.gmra.mrb[40].mxu0 %vm373_vm1, %v1447_v8  ;;  %v1456_v8 = vshrl.u32 %v16031_v52, 16 }
 0x1ba   :  { %14645 = vmatmul.mubr.msk.bf16.gmra.mrb[196].mxu1 %vm373_vm1, %v6808_v54  ;;  %14084 = vmatprep.mubr.msk.bf16.mxu0 %vm16321_vm0, %v20338_v29  ;;  %v1460_v54 = vshll.u32 %v16034_v35, 16 }
 0x1bb   :  { %14648 = vmatprep.mubr.msk.bf16.mxu1 %vm373_vm1, %v6810_v41  ;;  %v16035_v41 = vld [vmem:[%s20305_s0 + $0x70] sm:$0xff]   ;;  %v1458_v52 = vor.u32 %v1456_v8, %v1454_v46  ;;  %v6816_v46 = vsel %vm6791_vm5, %v6813_v26, %v6815_v63  ;;  %v16036_v8 = vld [vmem:[%s20305_s0 + $0x78] sm:$0xff]   ;;  %v1470_v26 = vrot.slane %v1468_v36, 1 }
 0x1bc   :  { %v1462_v60 = vrot.slane %v1460_v54, 1  ;;  %v6817_v15 = vrot.slane %v16035_v41, 2  ;;  %v16040_v41 = vld [vmem:[%s20305_s0 + $0x78] sm:$0xff]  }
 0x1bd   :  { %v17534_v61 = vpop.f32.mrb[96].mxu1  ;;  %v1476_v3 = vshll.u32 %v16040_v41, 16 }
 0x1be   :  { %v17536_v2 = vpop.f32.mrb[97].mxu1  ;;  %v6818_v6 = vsel %vm6791_vm5, %v6815_v63, %v6817_v15 }
 0x1bf   :  { %v17539_v37 = vpop.f32.mrb[98].mxu1 }
 0x1c0   :  { %v17545_v45 = vpop.f32.mrb[99].mxu1 }
 0x1c1   :  { %14085 = vmatmul.mubr.msk.bf16.gmra.mrb[44].mxu0 %vm373_vm1, %v1455_v22  ;;  %v1463_v22 = vsel %vm1355_vm4, %v1458_v52, %v1462_v60  ;;  %v6819_v52 = vrot.slane %v16036_v8, 2 }
 0x1c2   :  { %14649 = vmatmul.mubr.msk.bf16.gmra.mrb[200].mxu1 %vm373_vm1, %v6812_v10  ;;  %14088 = vmatprep.mubr.msk.bf16.mxu0 %vm16321_vm0, %v20338_v29  ;;  %v1464_v10 = vshrl.u32 %v16034_v35, 16 }
 0x1c3   :  { %14652 = vmatprep.mubr.msk.bf16.mxu1 %vm373_vm1, %v6814_v4  ;;  %v16038_v4 = vld [vmem:[%s20305_s0 + $0x80] sm:$0xff]   ;;  %v6820_v36 = vsel %vm6791_vm5, %v6817_v15, %v6819_v52  ;;  %v1478_v15 = vrot.slane %v1476_v3, 1 }
 0x1c4   :  { %v1466_v35 = vor.u32 %v1464_v10, %v1462_v60  ;;  %v6821_v63 = vrot.slane %v16038_v4, 2  ;;  %v16039_v60 = vld [vmem:[%s20305_s0 + $0x88] sm:$0xff]   ;;  %v16043_v4 = vld [vmem:[%s20305_s0 + $0x80] sm:$0xff]  }
 0x1c5   :  { %v17559_v19 = vpop.f32.mrb[100].mxu1  ;;  %v1484_v13 = vshll.u32 %v16043_v4, 16 }
 0x1c6   :  { %v17561_v57 = vpop.f32.mrb[101].mxu1  ;;  %v6822_v8 = vsel %vm6791_vm5, %v6819_v52, %v6821_v63 }
 0x1c7   :  { %v17564_v27 = vpop.f32.mrb[102].mxu1 }
 0x1c8   :  { %v17570_v54 = vpop.f32.mrb[103].mxu1 }
 0x1c9   :  { %14089 = vmatmul.mubr.msk.bf16.gmra.mrb[48].mxu0 %vm373_vm1, %v1463_v22  ;;  %v1471_v22 = vsel %vm1355_vm4, %v1466_v35, %v1470_v26  ;;  %v6823_v35 = vrot.slane %v16039_v60, 2 }
 0x1ca   :  { %14653 = vmatmul.mubr.msk.bf16.gmra.mrb[204].mxu1 %vm373_vm1, %v6816_v46  ;;  %14092 = vmatprep.mubr.msk.bf16.mxu0 %vm16321_vm0, %v20338_v29  ;;  %v1472_v46 = vshrl.u32 %v16037_v1, 16 }
 0x1cb   :  { %14656 = vmatprep.mubr.msk.bf16.mxu1 %vm373_vm1, %v6818_v6  ;;  %v16041_v6 = vld [vmem:[%s20305_s0 + $0x90] sm:$0xff]   ;;  %v6824_v3 = vsel %vm6791_vm5, %v6821_v63, %v6823_v35  ;;  %v1486_v63 = vrot.slane %v1484_v13, 1 }
 0x1cc   :  { %v1474_v1 = vor.u32 %v1472_v46, %v1470_v26  ;;  %v6825_v52 = vrot.slane %v16041_v6, 2  ;;  %v16042_v26 = vld [vmem:[%s20305_s0 + $0x98] sm:$0xff]   ;;  %v16046_v6 = vld [vmem:[%s20305_s0 + $0x88] sm:$0xff]  }
 0x1cd   :  { %v17584_v5 = vpop.f32.mrb[104].mxu1  ;;  %v1492_v43 = vshll.u32 %v16046_v6, 16 }
 0x1ce   :  { %v17586_v44 = vpop.f32.mrb[105].mxu1  ;;  %v6826_v60 = vsel %vm6791_vm5, %v6823_v35, %v6825_v52 }
 0x1cf   :  { %v17589_v30 = vpop.f32.mrb[106].mxu1 }
 0x1d0   :  { %v17595_v10 = vpop.f32.mrb[107].mxu1 }
 0x1d1   :  { %14093 = vmatmul.mubr.msk.bf16.gmra.mrb[52].mxu0 %vm373_vm1, %v1471_v22  ;;  %v1479_v22 = vsel %vm1355_vm4, %v1474_v1, %v1478_v15  ;;  %v6827_v1 = vrot.slane %v16042_v26, 2 }
 0x1d2   :  { %14657 = vmatmul.mubr.msk.bf16.gmra.mrb[208].mxu1 %vm373_vm1, %v6820_v36  ;;  %14096 = vmatprep.mubr.msk.bf16.mxu0 %vm16321_vm0, %v20338_v29  ;;  %v1480_v36 = vshrl.u32 %v16040_v41, 16 }
 0x1d3   :  { %14660 = vmatprep.mubr.msk.bf16.mxu1 %vm373_vm1, %v6822_v8  ;;  %v16044_v8 = vld [vmem:[%s20305_s0 + $0xa0] sm:$0xff]   ;;  %v6828_v13 = vsel %vm6791_vm5, %v6825_v52, %v6827_v1  ;;  %v1494_v52 = vrot.slane %v1492_v43, 1 }
 0x1d4   :  { %v1482_v41 = vor.u32 %v1480_v36, %v1478_v15  ;;  %v6829_v35 = vrot.slane %v16044_v8, 2  ;;  %v16045_v15 = vld [vmem:[%s20305_s0 + $0xa8] sm:$0xff]   ;;  %v16049_v8 = vld [vmem:[%s20305_s0 + $0x90] sm:$0xff]  }
 0x1d5   :  { %v17609_v40 = vpop.f32.mrb[108].mxu1  ;;  %v1500_v12 = vshll.u32 %v16049_v8, 16 }
 0x1d6   :  { %v17611_v23 = vpop.f32.mrb[109].mxu1  ;;  %v6830_v26 = vsel %vm6791_vm5, %v6827_v1, %v6829_v35 }
 0x1d7   :  { %v17614_v33 = vpop.f32.mrb[110].mxu1 }
 0x1d8   :  { %v17620_v46 = vpop.f32.mrb[111].mxu1 }
 0x1d9   :  { %14097 = vmatmul.mubr.msk.bf16.gmra.mrb[56].mxu0 %vm373_vm1, %v1479_v22  ;;  %v1487_v22 = vsel %vm1355_vm4, %v1482_v41, %v1486_v63  ;;  %v6831_v41 = vrot.slane %v16045_v15, 2 }
 0x1da   :  { %14661 = vmatmul.mubr.msk.bf16.gmra.mrb[212].mxu1 %vm373_vm1, %v6824_v3  ;;  %14100 = vmatprep.mubr.msk.bf16.mxu0 %vm16321_vm0, %v20338_v29  ;;  %v1488_v3 = vshrl.u32 %v16043_v4, 16 }
 0x1db   :  { %14664 = vmatprep.mubr.msk.bf16.mxu1 %vm373_vm1, %v6826_v60  ;;  %v16047_v60 = vld [vmem:[%s20305_s0 + $0xb0] sm:$0xff]   ;;  %v6832_v43 = vsel %vm6791_vm5, %v6829_v35, %v6831_v41  ;;  %v1502_v35 = vrot.slane %v1500_v12, 1 }
 0x1dc   :  { %v1490_v4 = vor.u32 %v1488_v3, %v1486_v63  ;;  %v6833_v1 = vrot.slane %v16047_v60, 2  ;;  %v16048_v63 = vld [vmem:[%s20305_s0 + $0xb8] sm:$0xff]  }
 0x1dd   :  { %v17634_v21 = vpop.f32.mrb[112].mxu1  ;;  %v16052_v60 = vld [vmem:[%s20305_s0 + $0x98] sm:$0xff]  }
 0x1de   :  { %v17636_v53 = vpop.f32.mrb[113].mxu1  ;;  %v6834_v15 = vsel %vm6791_vm5, %v6831_v41, %v6833_v1 }
 0x1df   :  { %v17639_v62 = vpop.f32.mrb[114].mxu1 }
 0x1e0   :  { %20380 = vst [vmem:[#allocation71_spill] sm:$0xff] %v17639_v62  ;;  %v17645_v36 = vpop.f32.mrb[115].mxu1 }
 0x1e1   :  { %14101 = vmatmul.mubr.msk.bf16.gmra.mrb[60].mxu0 %vm373_vm1, %v1487_v22  ;;  %v1495_v22 = vsel %vm1355_vm4, %v1490_v4, %v1494_v52  ;;  %v6835_v4 = vrot.slane %v16048_v63, 2 }
 0x1e2   :  { %14665 = vmatmul.mubr.msk.bf16.gmra.mrb[216].mxu1 %vm373_vm1, %v6828_v13  ;;  %14104 = vmatprep.mubr.msk.bf16.mxu0 %vm16321_vm0, %v20338_v29  ;;  %v1496_v13 = vshrl.u32 %v16046_v6, 16 }
 0x1e3   :  { %14668 = vmatprep.mubr.msk.bf16.mxu1 %vm373_vm1, %v6830_v26  ;;  %v16050_v26 = vld [vmem:[%s20305_s0 + $0xc0] sm:$0xff]   ;;  %v6836_v12 = vsel %vm6791_vm5, %v6833_v1, %v6835_v4 }
 0x1e4   :  { %v1498_v6 = vor.u32 %v1496_v13, %v1494_v52  ;;  %v6837_v41 = vrot.slane %v16050_v26, 2  ;;  %v16051_v52 = vld [vmem:[%s20305_s0 + $0xc8] sm:$0xff]   ;;  %v16055_v26 = vld [vmem:[%s20305_s0 + $0xa0] sm:$0xff]  }
 0x1e5   :  { %v17659_v47 = vpop.f32.mrb[116].mxu1 }
 0x1e6   :  { %20381 = vst [vmem:[#allocation72_spill] sm:$0xff] %v17659_v47  ;;  %v17661_v18 = vpop.f32.mrb[117].mxu1  ;;  %v6838_v63 = vsel %vm6791_vm5, %v6835_v4, %v6837_v41 }
 0x1e7   :  { %20382 = vst [vmem:[#allocation73_spill] sm:$0xff] %v17661_v18  ;;  %v17664_v24 = vpop.f32.mrb[118].mxu1 }
 0x1e8   :  { %20383 = vst [vmem:[#allocation74_spill] sm:$0xff] %v17664_v24  ;;  %v17670_v3 = vpop.f32.mrb[119].mxu1 }
 0x1e9   :  { %20384 = vst [vmem:[#allocation75_spill] sm:$0xff] %v17670_v3  ;;  %14105 = vmatmul.mubr.msk.bf16.gmra.mrb[64].mxu0 %vm373_vm1, %v1495_v22  ;;  %v1503_v22 = vsel %vm1355_vm4, %v1498_v6, %v1502_v35  ;;  %v1508_v3 = vshll.u32 %v16052_v60, 16  ;;  %v6839_v6 = vrot.slane %v16051_v52, 2 }
 0x1ea   :  { %14669 = vmatmul.mubr.msk.bf16.gmra.mrb[220].mxu1 %vm373_vm1, %v6832_v43  ;;  %14108 = vmatprep.mubr.msk.bf16.mxu0 %vm16321_vm0, %v20338_v29  ;;  %v1504_v43 = vshrl.u32 %v16049_v8, 16 }
 0x1eb   :  { %14672 = vmatprep.mubr.msk.bf16.mxu1 %vm373_vm1, %v6834_v15  ;;  %v16053_v15 = vld [vmem:[%s20305_s0 + $0xd0] sm:$0xff]   ;;  %v1510_v1 = vrot.slane %v1508_v3, 1  ;;  %v6840_v3 = vsel %vm6791_vm5, %v6837_v41, %v6839_v6 }
 0x1ec   :  { %v1506_v8 = vor.u32 %v1504_v43, %v1502_v35  ;;  %v6841_v4 = vrot.slane %v16053_v15, 2  ;;  %v16054_v35 = vld [vmem:[%s20305_s0 + $0xd8] sm:$0xff]   ;;  %v16058_v15 = vld [vmem:[%s20305_s0 + $0xa8] sm:$0xff]  }
 0x1ed   :  { %v17684_v24 = vpop.f32.mrb[120].mxu1 }
 0x1ee   :  { %20385 = vst [vmem:[#allocation76_spill] sm:$0xff] %v17684_v24  ;;  %v17686_v47 = vpop.f32.mrb[121].mxu1  ;;  %v6842_v52 = vsel %vm6791_vm5, %v6839_v6, %v6841_v4 }
 0x1ef   :  { %20386 = vst [vmem:[#allocation77_spill] sm:$0xff] %v17686_v47  ;;  %v17689_v18 = vpop.f32.mrb[122].mxu1 }
 0x1f0   :  { %20387 = vst [vmem:[#allocation78_spill] sm:$0xff] %v17689_v18  ;;  %v17695_v13 = vpop.f32.mrb[123].mxu1 }
 0x1f1   :  { %20388 = vst [vmem:[#allocation79_spill] sm:$0xff] %v17695_v13  ;;  %14109 = vmatmul.mubr.msk.bf16.gmra.mrb[68].mxu0 %vm373_vm1, %v1503_v22  ;;  %v1511_v22 = vsel %vm1355_vm4, %v1506_v8, %v1510_v1  ;;  %v1516_v13 = vshll.u32 %v16055_v26, 16  ;;  %v6843_v8 = vrot.slane %v16054_v35, 2 }
 0x1f2   :  { %14673 = vmatmul.mubr.msk.bf16.gmra.mrb[224].mxu1 %vm373_vm1, %v6836_v12  ;;  %14112 = vmatprep.mubr.msk.bf16.mxu0 %vm16321_vm0, %v20338_v29  ;;  %v1512_v12 = vshrl.u32 %v16052_v60, 16 }
 0x1f3   :  { %14676 = vmatprep.mubr.msk.bf16.mxu1 %vm373_vm1, %v6838_v63  ;;  %v16056_v63 = vld [vmem:[%s20305_s0 + $0xe0] sm:$0xff]   ;;  %v1518_v41 = vrot.slane %v1516_v13, 1  ;;  %v6844_v13 = vsel %vm6791_vm5, %v6841_v4, %v6843_v8 }
 0x1f4   :  { %v1514_v60 = vor.u32 %v1512_v12, %v1510_v1  ;;  %v6845_v6 = vrot.slane %v16056_v63, 2  ;;  %v16057_v1 = vld [vmem:[%s20305_s0 + $0xe8] sm:$0xff]   ;;  %v16061_v63 = vld [vmem:[%s20305_s0 + $0xb0] sm:$0xff]  }
 0x1f5   :  { %v17709_v18 = vpop.f32.mrb[124].mxu1 }
 0x1f6   :  { %20389 = vst [vmem:[#allocation80_spill] sm:$0xff] %v17709_v18  ;;  %v17711_v24 = vpop.f32.mrb[125].mxu1  ;;  %v6846_v35 = vsel %vm6791_vm5, %v6843_v8, %v6845_v6 }
 0x1f7   :  { %20390 = vst [vmem:[#allocation81_spill] sm:$0xff] %v17711_v24  ;;  %v17714_v47 = vpop.f32.mrb[126].mxu1 }
 0x1f8   :  { %20391 = vst [vmem:[#allocation82_spill] sm:$0xff] %v17714_v47  ;;  %v17720_v43 = vpop.f32.mrb[127].mxu1 }
 0x1f9   :  { %20392 = vst [vmem:[#allocation83_spill] sm:$0xff] %v17720_v43  ;;  %14113 = vmatmul.mubr.msk.bf16.gmra.mrb[72].mxu0 %vm373_vm1, %v1511_v22  ;;  %v1519_v22 = vsel %vm1355_vm4, %v1514_v60, %v1518_v41  ;;  %v1524_v43 = vshll.u32 %v16058_v15, 16  ;;  %v6847_v60 = vrot.slane %v16057_v1, 2 }
 0x1fa   :  { %14677 = vmatmul.mubr.msk.bf16.gmra.mrb[228].mxu1 %vm373_vm1, %v6840_v3  ;;  %14116 = vmatprep.mubr.msk.bf16.mxu0 %vm16321_vm0, %v20338_v29  ;;  %v1520_v3 = vshrl.u32 %v16055_v26, 16 }
 0x1fb   :  { %14680 = vmatprep.mubr.msk.bf16.mxu1 %vm373_vm1, %v6842_v52  ;;  %v16059_v52 = vld [vmem:[%s20305_s0 + $0xf0] sm:$0xff]   ;;  %v1526_v4 = vrot.slane %v1524_v43, 1  ;;  %v6848_v43 = vsel %vm6791_vm5, %v6845_v6, %v6847_v60 }
 0x1fc   :  { %v1522_v26 = vor.u32 %v1520_v3, %v1518_v41  ;;  %v6849_v8 = vrot.slane %v16059_v52, 2  ;;  %v16060_v41 = vld [vmem:[%s20305_s0 + $0xf8] sm:$0xff]  }
 0x1fd   :  { %v17734_v47 = vpop.f32.mrb[128].mxu1  ;;  %v16064_v52 = vld [vmem:[%s20305_s0 + $0xb8] sm:$0xff]  }
 0x1fe   :  { %20393 = vst [vmem:[#allocation84_spill] sm:$0xff] %v17734_v47  ;;  %v17736_v18 = vpop.f32.mrb[129].mxu1  ;;  %v6850_v1 = vsel %vm6791_vm5, %v6847_v60, %v6849_v8 }
 0x1ff   :  { %20394 = vst [vmem:[#allocation85_spill] sm:$0xff] %v17736_v18  ;;  %v17739_v24 = vpop.f32.mrb[130].mxu1 }
 0x200   :  { %20395 = vst [vmem:[#allocation86_spill] sm:$0xff] %v17739_v24  ;;  %v17745_v12 = vpop.f32.mrb[131].mxu1 }
 0x201   :  { %20396 = vst [vmem:[#allocation87_spill] sm:$0xff] %v17745_v12  ;;  %14117 = vmatmul.mubr.msk.bf16.gmra.mrb[76].mxu0 %vm373_vm1, %v1519_v22  ;;  %v1527_v22 = vsel %vm1355_vm4, %v1522_v26, %v1526_v4  ;;  %v1532_v12 = vshll.u32 %v16061_v63, 16  ;;  %v6851_v26 = vrot.slane %v16060_v41, 2 }
 0x202   :  { %14681 = vmatmul.mubr.msk.bf16.gmra.mrb[232].mxu1 %vm373_vm1, %v6844_v13  ;;  %14120 = vmatprep.mubr.msk.bf16.mxu0 %vm16321_vm0, %v20338_v29  ;;  %v1528_v13 = vshrl.u32 %v16058_v15, 16 }
 0x203   :  { %14684 = vmatprep.mubr.msk.bf16.mxu1 %vm373_vm1, %v6846_v35  ;;  %v16062_v35 = vld [vmem:[%s20305_s0 + $0x100] sm:$0xff]   ;;  %v1534_v6 = vrot.slane %v1532_v12, 1  ;;  %v6852_v12 = vsel %vm6791_vm5, %v6849_v8, %v6851_v26 }
 0x204   :  { %v1530_v15 = vor.u32 %v1528_v13, %v1526_v4  ;;  %v6853_v60 = vrot.slane %v16062_v35, 2  ;;  %v16063_v4 = vld [vmem:[%s20305_s0 + $0x108] sm:$0xff]   ;;  %v16067_v35 = vld [vmem:[%s20305_s0 + $0xc0] sm:$0xff]  }
 0x205   :  { %v17759_v24 = vpop.f32.mrb[132].mxu1 }
 0x206   :  { %20397 = vst [vmem:[#allocation88_spill] sm:$0xff] %v17759_v24  ;;  %v17761_v47 = vpop.f32.mrb[133].mxu1  ;;  %v6854_v41 = vsel %vm6791_vm5, %v6851_v26, %v6853_v60 }
 0x207   :  { %20398 = vst [vmem:[#allocation89_spill] sm:$0xff] %v17761_v47  ;;  %v17764_v18 = vpop.f32.mrb[134].mxu1 }
 0x208   :  { %20399 = vst [vmem:[#allocation90_spill] sm:$0xff] %v17764_v18  ;;  %v17770_v3 = vpop.f32.mrb[135].mxu1 }
 0x209   :  { %20400 = vst [vmem:[#allocation91_spill] sm:$0xff] %v17770_v3  ;;  %14121 = vmatmul.mubr.msk.bf16.gmra.mrb[80].mxu0 %vm373_vm1, %v1527_v22  ;;  %v1535_v22 = vsel %vm1355_vm4, %v1530_v15, %v1534_v6  ;;  %v1540_v3 = vshll.u32 %v16064_v52, 16  ;;  %v6855_v15 = vrot.slane %v16063_v4, 2 }
 0x20a   :  { %14685 = vmatmul.mubr.msk.bf16.gmra.mrb[236].mxu1 %vm373_vm1, %v6848_v43  ;;  %14124 = vmatprep.mubr.msk.bf16.mxu0 %vm16321_vm0, %v20338_v29  ;;  %v1536_v43 = vshrl.u32 %v16061_v63, 16 }
 0x20b   :  { %14688 = vmatprep.mubr.msk.bf16.mxu1 %vm373_vm1, %v6850_v1  ;;  %v16065_v1 = vld [vmem:[%s20305_s0 + $0x110] sm:$0xff]   ;;  %v1542_v8 = vrot.slane %v1540_v3, 1  ;;  %v6856_v3 = vsel %vm6791_vm5, %v6853_v60, %v6855_v15 }
 0x20c   :  { %v1538_v63 = vor.u32 %v1536_v43, %v1534_v6  ;;  %v6857_v26 = vrot.slane %v16065_v1, 2  ;;  %v16066_v6 = vld [vmem:[%s20305_s0 + $0x118] sm:$0xff]   ;;  %v16070_v1 = vld [vmem:[%s20305_s0 + $0xc8] sm:$0xff]  }
 0x20d   :  { %v17784_v18 = vpop.f32.mrb[136].mxu1 }
 0x20e   :  { %20401 = vst [vmem:[#allocation92_spill] sm:$0xff] %v17784_v18  ;;  %v17786_v24 = vpop.f32.mrb[137].mxu1  ;;  %v6858_v4 = vsel %vm6791_vm5, %v6855_v15, %v6857_v26 }
 0x20f   :  { %20402 = vst [vmem:[#allocation93_spill] sm:$0xff] %v17786_v24  ;;  %v17789_v47 = vpop.f32.mrb[138].mxu1 }
 0x210   :  { %20403 = vst [vmem:[#allocation94_spill] sm:$0xff] %v17789_v47  ;;  %v17795_v13 = vpop.f32.mrb[139].mxu1 }
 0x211   :  { %20404 = vst [vmem:[#allocation95_spill] sm:$0xff] %v17795_v13  ;;  %14125 = vmatmul.mubr.msk.bf16.gmra.mrb[84].mxu0 %vm373_vm1, %v1535_v22  ;;  %v1543_v22 = vsel %vm1355_vm4, %v1538_v63, %v1542_v8  ;;  %v1548_v13 = vshll.u32 %v16067_v35, 16  ;;  %v6859_v63 = vrot.slane %v16066_v6, 2 }
 0x212   :  { %14689 = vmatmul.mubr.msk.bf16.gmra.mrb[240].mxu1 %vm373_vm1, %v6852_v12  ;;  %14128 = vmatprep.mubr.msk.bf16.mxu0 %vm16321_vm0, %v20338_v29  ;;  %v1544_v12 = vshrl.u32 %v16064_v52, 16 }
 0x213   :  { %14692 = vmatprep.mubr.msk.bf16.mxu1 %vm373_vm1, %v6854_v41  ;;  %v16068_v41 = vld [vmem:[%s20305_s0 + $0x120] sm:$0xff]   ;;  %v1550_v60 = vrot.slane %v1548_v13, 1  ;;  %v6860_v13 = vsel %vm6791_vm5, %v6857_v26, %v6859_v63 }
 0x214   :  { %v1546_v52 = vor.u32 %v1544_v12, %v1542_v8  ;;  %v6861_v15 = vrot.slane %v16068_v41, 2  ;;  %v16069_v8 = vld [vmem:[%s20305_s0 + $0x128] sm:$0xff]   ;;  %v16073_v41 = vld [vmem:[%s20305_s0 + $0xd0] sm:$0xff]  }
 0x215   :  { %v17809_v47 = vpop.f32.mrb[140].mxu1 }
 0x216   :  { %20405 = vst [vmem:[#allocation96_spill] sm:$0xff] %v17809_v47  ;;  %v17811_v18 = vpop.f32.mrb[141].mxu1  ;;  %v6862_v6 = vsel %vm6791_vm5, %v6859_v63, %v6861_v15 }
 0x217   :  { %20406 = vst [vmem:[#allocation97_spill] sm:$0xff] %v17811_v18  ;;  %v17814_v24 = vpop.f32.mrb[142].mxu1 }
 0x218   :  { %20407 = vst [vmem:[#allocation98_spill] sm:$0xff] %v17814_v24  ;;  %v17820_v43 = vpop.f32.mrb[143].mxu1 }
 0x219   :  { %20408 = vst [vmem:[#allocation99_spill] sm:$0xff] %v17820_v43  ;;  %14129 = vmatmul.mubr.msk.bf16.gmra.mrb[88].mxu0 %vm373_vm1, %v1543_v22  ;;  %v1551_v22 = vsel %vm1355_vm4, %v1546_v52, %v1550_v60  ;;  %v1556_v43 = vshll.u32 %v16070_v1, 16  ;;  %v6863_v52 = vrot.slane %v16069_v8, 2 }
 0x21a   :  { %14693 = vmatmul.mubr.msk.bf16.gmra.mrb[244].mxu1 %vm373_vm1, %v6856_v3  ;;  %14132 = vmatprep.mubr.msk.bf16.mxu0 %vm16321_vm0, %v20338_v29  ;;  %v1552_v3 = vshrl.u32 %v16067_v35, 16 }
 0x21b   :  { %14696 = vmatprep.mubr.msk.bf16.mxu1 %vm373_vm1, %v6858_v4  ;;  %v16071_v4 = vld [vmem:[%s20305_s0 + $0x130] sm:$0xff]   ;;  %v1558_v26 = vrot.slane %v1556_v43, 1  ;;  %v6864_v43 = vsel %vm6791_vm5, %v6861_v15, %v6863_v52 }
 0x21c   :  { %v1554_v35 = vor.u32 %v1552_v3, %v1550_v60  ;;  %v6865_v63 = vrot.slane %v16071_v4, 2  ;;  %v16072_v60 = vld [vmem:[%s20305_s0 + $0x138] sm:$0xff]  }
 0x21d   :  { %v17834_v24 = vpop.f32.mrb[144].mxu1  ;;  %v16076_v4 = vld [vmem:[%s20305_s0 + $0xd8] sm:$0xff]  }
 0x21e   :  { %20409 = vst [vmem:[#allocation100_spill] sm:$0xff] %v17834_v24  ;;  %v17836_v47 = vpop.f32.mrb[145].mxu1  ;;  %v6866_v8 = vsel %vm6791_vm5, %v6863_v52, %v6865_v63 }
 0x21f   :  { %20410 = vst [vmem:[#allocation101_spill] sm:$0xff] %v17836_v47  ;;  %v17839_v18 = vpop.f32.mrb[146].mxu1 }
 0x220   :  { %20411 = vst [vmem:[#allocation102_spill] sm:$0xff] %v17839_v18  ;;  %v17845_v12 = vpop.f32.mrb[147].mxu1 }
 0x221   :  { %20412 = vst [vmem:[#allocation103_spill] sm:$0xff] %v17845_v12  ;;  %14133 = vmatmul.mubr.msk.bf16.gmra.mrb[92].mxu0 %vm373_vm1, %v1551_v22  ;;  %v1559_v22 = vsel %vm1355_vm4, %v1554_v35, %v1558_v26  ;;  %v1564_v12 = vshll.u32 %v16073_v41, 16  ;;  %v6867_v35 = vrot.slane %v16072_v60, 2 }
 0x222   :  { %14697 = vmatmul.mubr.msk.bf16.gmra.mrb[248].mxu1 %vm373_vm1, %v6860_v13  ;;  %14136 = vmatprep.mubr.msk.bf16.mxu0 %vm16321_vm0, %v20338_v29  ;;  %v1560_v13 = vshrl.u32 %v16070_v1, 16 }
 0x223   :  { %14700 = vmatprep.mubr.msk.bf16.mxu1 %vm373_vm1, %v6862_v6  ;;  %v16074_v6 = vld [vmem:[%s20305_s0 + $0x140] sm:$0xff]   ;;  %v1566_v15 = vrot.slane %v1564_v12, 1  ;;  %v6868_v12 = vsel %vm6791_vm5, %v6865_v63, %v6867_v35 }
 0x224   :  { %v1562_v1 = vor.u32 %v1560_v13, %v1558_v26  ;;  %v6869_v52 = vrot.slane %v16074_v6, 2  ;;  %v16075_v26 = vld [vmem:[%s20305_s0 + $0x148] sm:$0xff]   ;;  %v16078_v6 = vld [vmem:[%s20305_s0 + $0xe0] sm:$0xff]  }
 0x225   :  { %v17859_v18 = vpop.f32.mrb[148].mxu1 }
 0x226   :  { %20413 = vst [vmem:[#allocation104_spill] sm:$0xff] %v17859_v18  ;;  %v17861_v24 = vpop.f32.mrb[149].mxu1  ;;  %v6870_v60 = vsel %vm6791_vm5, %v6867_v35, %v6869_v52 }
 0x227   :  { %20414 = vst [vmem:[#allocation105_spill] sm:$0xff] %v17861_v24  ;;  %v17864_v47 = vpop.f32.mrb[150].mxu1 }
 0x228   :  { %20415 = vst [vmem:[#allocation106_spill] sm:$0xff] %v17864_v47  ;;  %v17870_v3 = vpop.f32.mrb[151].mxu1 }
 0x229   :  { %20416 = vst [vmem:[#allocation107_spill] sm:$0xff] %v17870_v3  ;;  %14137 = vmatmul.mubr.msk.bf16.gmra.mrb[96].mxu0 %vm373_vm1, %v1559_v22  ;;  %v1567_v22 = vsel %vm1355_vm4, %v1562_v1, %v1566_v15  ;;  %v1572_v3 = vshll.u32 %v16076_v4, 16  ;;  %v6871_v1 = vrot.slane %v16075_v26, 2 }
 0x22a   :  { %14701 = vmatmul.mubr.msk.bf16.gmra.mrb[252].mxu1 %vm373_vm1, %v6864_v43  ;;  %14140 = vmatprep.mubr.msk.bf16.mxu0 %vm16321_vm0, %v20338_v29  ;;  %v1568_v43 = vshrl.u32 %v16073_v41, 16 }
 0x22b   :  { %14704 = vmatprep.mubr.msk.bf16.mxu1 %vm373_vm1, %v6866_v8  ;;  %v16077_v8 = vld [vmem:[%s20305_s0 + $0x150] ss:$0 sps:$4 sm:$0xff]   ;;  %v1574_v63 = vrot.slane %v1572_v3, 1  ;;  %v1580_v3 = vshll.u32 %v16078_v6, 16  ;;  %v6872_v16 = vsel %vm6791_vm5, %v6869_v52, %v6871_v1 }
 0x22c   :  { %v1570_v41 = vor.u32 %v1568_v43, %v1566_v15  ;;  %v1576_v15 = vshrl.u32 %v16076_v4, 16  ;;  %v16082_v4 = vld [vmem:[%s20305_s0 + $0xe8] sm:$0xff]  }
 0x22d   :  { %v17884_v47 = vpop.f32.mrb[152].mxu1 }
 0x22e   :  { %20417 = vst [vmem:[#allocation108_spill] sm:$0xff] %v17884_v47  ;;  %v17886_v18 = vpop.f32.mrb[153].mxu1 }
 0x22f   :  { %20418 = vst [vmem:[#allocation109_spill] sm:$0xff] %v17886_v18  ;;  %v17889_v24 = vpop.f32.mrb[154].mxu1  ;;  %v1575_v18 = vsel %vm1355_vm4, %v1570_v41, %v1574_v63  ;;  %v1582_v41 = vrot.slane %v1580_v3, 1 }
 0x230   :  { %20419 = vst [vmem:[#allocation110_spill] sm:$0xff] %v17889_v24  ;;  %v17895_v13 = vpop.f32.mrb[155].mxu1  ;;  %v6873_v24 = vrot.slane %v16077_v8, 2  ;;  %v1578_v8 = vor.u32 %v1576_v15, %v1574_v63  ;;  %v16079_v15 = vld [vmem:[%s20306_s1 + $0x154] sm:$0xff]  }
 0x231   :  { %20420 = vst [vmem:[#allocation111_spill] sm:$0xff] %v17895_v13  ;;  %14141 = vmatmul.mubr.msk.bf16.gmra.mrb[100].mxu0 %vm373_vm1, %v1567_v22 }
 0x232   :  { %14705 = vmatmul.mubr.msk.bf16.gmra.mrb[0].mxu1 %vm373_vm1, %v6868_v12  ;;  %14144 = vmatprep.mubr.msk.bf16.mxu0 %vm16321_vm0, %v20338_v29 }
 0x233   :  { %14708 = vmatprep.mubr.msk.bf16.mxu1 %vm373_vm1, %v6870_v60  ;;  %v6874_v60 = vsel %vm6791_vm5, %v6871_v1, %v6873_v24 }
 0x234   :  { %v873_v35 = vpop.f32.mrb[168].mxu0 }
 0x235   :  { %v17909_v47 = vpop.f32.mrb[156].mxu1  ;;  %963 = vst [vmem:[#allocation2 + $0x2a0] sm:$0xff] %v873_v35  ;;  %v14030_v22 = vpop.f32.mrb[169].mxu0 }
 0x236   :  { %20421 = vst [vmem:[#allocation112_spill] sm:$0xff] %v17909_v47  ;;  %v17911_v13 = vpop.f32.mrb[157].mxu1  ;;  %v876_v12 = vpop.f32.mrb[170].mxu0 }
 0x237   :  { %20422 = vst [vmem:[#allocation113_spill] sm:$0xff] %v17911_v13  ;;  %v17914_v43 = vpop.f32.mrb[158].mxu1  ;;  %v14031_v26 = vpop.f32.mrb[171].mxu0  ;;  %v1588_v12 = vshll.u32 %v16082_v4, 16 }
 0x238   :  { %20423 = vst [vmem:[#allocation114_spill] sm:$0xff] %v17914_v43  ;;  %v17917_v62 = vpop.f32.mrb[159].mxu1 }
 0x239   :  { %20424 = vst [vmem:[#allocation115_spill] sm:$0xff] %v17917_v62  ;;  %14145 = vmatmul.mubr.msk.bf16.gmra.mrb[104].mxu0 %vm373_vm1, %v1575_v18  ;;  %v1584_v18 = vshrl.u32 %v16078_v6, 16  ;;  %v1590_v26 = vrot.slane %v1588_v12, 1  ;;  %v16085_v6 = vld [vmem:[%s20305_s0 + $0xf0] sm:$0xff]  }
 0x23a   :  { %14709 = vmatmul.mubr.msk.bf16.gmra.mrb[4].mxu1 %vm373_vm1, %v6872_v16  ;;  %14148 = vmatprep.mubr.msk.bf16.mxu0 %vm16321_vm0, %v20338_v29  ;;  %v1583_v16 = vsel %vm1355_vm4, %v1578_v8, %v1582_v41 }
 0x23b   :  { %14712 = vmatprep.mubr.msk.bf16.mxu1 %vm373_vm1, %v6874_v60 }
 0x23c   :  { %v2398_v52 = vld [vmem:[#allocation2 + $0x2a7] sm:$0x1] }
 0x23d   :  { %v2443_v35 = vadd.f32 %v16850_v20, %v2398_v52  ;;  %v17929_v22 = vpop.f32.mrb[160].mxu1  ;;  %v1586_v20 = vor.u32 %v1584_v18, %v1582_v41  ;;  %v16080_v52 = vld [vmem:[%s20306_s1 + $0x15c] ss:$0 sps:$4 sm:$0x33]   ;;  %v17962_v18 = vld [vmem:[%s20307_s2 + $0xc0] sm:$0xff]  }
 0x23e   :  { %20425 = vst [vmem:[#allocation116_spill] sm:$0xff] %v17929_v22  ;;  %v17931_v1 = vpop.f32.mrb[161].mxu1 }
 0x23f   :  { %20426 = vst [vmem:[#allocation117_spill] sm:$0xff] %v17931_v1  ;;  %2444 = vst [vmem:[#allocation2 + $0x2a7] sm:$0x1] %v2443_v35  ;;  %v17934_v63 = vpop.f32.mrb[162].mxu1  ;;  %v1592_v35 = vshrl.u32 %v16082_v4, 16  ;;  %v16089_v4 = vld [vmem:[%s20305_s0 + $0xf8] sm:$0xff]  }
 0x240   :  { %20427 = vst [vmem:[#allocation118_spill] sm:$0xff] %v17934_v63  ;;  %v17939_v3 = vpop.f32.mrb[163].mxu1  ;;  %v18016_v63 = vld [vmem:[%s20307_s2 + $0xd8] sm:$0xff]  }
 0x241   :  { %20428 = vst [vmem:[#allocation119_spill] sm:$0xff] %v17939_v3  ;;  %14149 = vmatmul.mubr.msk.bf16.gmra.mrb[108].mxu0 %vm373_vm1, %v1583_v16  ;;  %v1596_v16 = vshll.u32 %v16085_v6, 16 }
 0x242   :  { %14713 = vmatmul.mubr.msk.bf16.gmra.mrb[8].mxu1 %vm373_vm1, %v6873_v24  ;;  %14152 = vmatprep.mubr.msk.bf16.mxu0 %vm16321_vm0, %v20338_v29  ;;  %v1591_v24 = vsel %vm1355_vm4, %v1586_v20, %v1590_v26 }
 0x243   :  { %14724 = vmatprep.mubr.msk.bf16.mxu1 %vm373_vm1, %v16079_v15  ;;  %v1594_v15 = vor.u32 %v1592_v35, %v1590_v26  ;;  %v1598_v20 = vrot.slane %v1596_v16, 1  ;;  %v1600_v35 = vshrl.u32 %v16085_v6, 16  ;;  %v1604_v16 = vshll.u32 %v16089_v4, 16 }
 0x245   :  { %v17949_v60 = vpop.f32.mrb[164].mxu1 }
 0x246   :  { %20429 = vst [vmem:[#allocation120_spill] sm:$0xff] %v17949_v60  ;;  %v17951_v8 = vpop.f32.mrb[165].mxu1 }
 0x247   :  { %20430 = vst [vmem:[#allocation121_spill] sm:$0xff] %v17951_v8  ;;  %v17957_v41 = vpop.f32.mrb[166].mxu1  ;;  %v17998_v8 = vld [vmem:[%s20305_s0 + $0x110] sm:$0xff]  }
 0x248   :  { %20431 = vst [vmem:[#allocation122_spill] sm:$0xff] %v17957_v41  ;;  %v17964_v12 = vpop.f32.mrb[167].mxu1  ;;  %v17977_v41 = vld [vmem:[%s20307_s2 + $0xc8] sm:$0xff]   ;;  %20436 = vst [vmem:[#allocation127_spill] sm:$0xff] %v17998_v8 }
 0x249   :  { %20432 = vst [vmem:[#allocation123_spill] sm:$0xff] %v17964_v12  ;;  %14153 = vmatmul.mubr.msk.bf16.gmra.mrb[112].mxu0 %vm373_vm1, %v1591_v24  ;;  %v1599_v24 = vsel %vm1355_vm4, %v1594_v15, %v1598_v20  ;;  %v17993_v12 = vld [vmem:[%s20307_s2 + $0xd0] sm:$0xff]   ;;  %v16088_v15 = vld [vmem:[%s20305_s0 + $0x118] sm:$0xff]  }
 0x24a   :  { %14725 = vmatmul.mubr.msk.bf16.vlgmr.msra.gmra.mrb[12].mxu1 %vm373_vm1, %v16080_v52  ;;  %14156 = vmatprep.mubr.msk.bf16.mxu0 %vm16321_vm0, %v20338_v29  ;;  %v8071_v22 = vrot.slane %v16088_v15, 2  ;;  %v16090_v15 = vld [vmem:[%s20305_s0 + $0x120] sm:$0xff]  }
 0x24b   :  { %15308 = vmatpush3.bf16.msra.mxu1 %v17962_v18  ;;  %14864 = vmatprep.mubr.msk.bf16.mxu1 %vm16321_vm0, %v20338_v29 }
 0x24c   :  { %15305 = vmatprep.subr.bf16.mxu1 %v20338_v29 }
 0x24d   :  { %v17982_v52 = vpop.f32.mrb[168].mxu1 }
 0x24e   :  { %20433 = vst [vmem:[#allocation124_spill] sm:$0xff] %v17982_v52  ;;  %v17984_v26 = vpop.f32.mrb[169].mxu1  ;;  %v1606_v52 = vrot.slane %v1604_v16, 1  ;;  %v1608_v16 = vshrl.u32 %v16089_v4, 16 }
 0x24f   :  { %20434 = vst [vmem:[#allocation125_spill] sm:$0xff] %v17984_v26  ;;  %15309 = vmatpush3.bf16.msra.mxu1 %v17977_v41  ;;  %v17988_v60 = vpop.f32.mrb[170].mxu1  ;;  %v16091_v26 = vld [vmem:[%s20305_s0 + $0x100] sm:$0xff]  }
 0x250   :  { %20435 = vst [vmem:[#allocation126_spill] sm:$0xff] %v17988_v60  ;;  %v18003_v6 = vpop.f32.mrb[171].mxu1  ;;  %15306 = vmatprep.subr.bf16.mxu1 %v20338_v29  ;;  %v1602_v60 = vor.u32 %v1600_v35, %v1598_v20  ;;  %v1612_v3 = vshll.u32 %v16091_v26, 16 }
 0x251   :  { %20437 = vst [vmem:[#allocation128_spill] sm:$0xff] %v18003_v6  ;;  %14157 = vmatmul.mubr.msk.bf16.gmra.mrb[116].mxu0 %vm373_vm1, %v1599_v24  ;;  %v20311_v6 = vrot.slane %v17998_v8, 2  ;;  %v8073_v8 = vrot.slane %v16090_v15, 2 }
 0x252   :  { %14160 = vmatprep.mubr.msk.bf16.mxu0 %vm16321_vm0, %v20338_v29  ;;  %v1607_v35 = vsel %vm1355_vm4, %v1602_v60, %v1606_v52  ;;  %v1610_v60 = vor.u32 %v1608_v16, %v1606_v52  ;;  %v1614_v4 = vrot.slane %v1612_v3, 1  ;;  %v1616_v52 = vshrl.u32 %v16091_v26, 16 }
 0x253   :  { %15310 = vmatpush3.bf16.msra.mxu1 %v17993_v12  ;;  %v8072_v43 = vsel %vm6791_vm5, %v20311_v6, %v8071_v22  ;;  %v16093_v6 = vld [vmem:[%s20305_s0 + $0x108] sm:$0xff]  }
 0x254   :  { %15307 = vmatprep.subr.bf16.mxu1 %v20338_v29  ;;  %v1620_v3 = vshll.u32 %v16093_v6, 16  ;;  %v1618_v26 = vor.u32 %v1616_v52, %v1614_v4 }
 0x255   :  { %v18020_v24 = vpop.f32.mrb[172].mxu1 }
 0x256   :  { %20438 = vst [vmem:[#allocation129_spill] sm:$0xff] %v18020_v24  ;;  %v18022_v20 = vpop.f32.mrb[173].mxu1  ;;  %v8074_v24 = vsel %vm6791_vm5, %v8071_v22, %v8073_v8  ;;  %v16095_v22 = vld [vmem:[%s20305_s0 + $0x110] sm:$0xff]  }
 0x257   :  { %20439 = vst [vmem:[#allocation130_spill] sm:$0xff] %v18022_v20  ;;  %15311 = vmatpush3.bf16.msra.mxu1 %v18016_v63  ;;  %v18026_v1 = vpop.f32.mrb[174].mxu1  ;;  %v1628_v52 = vshll.u32 %v16095_v22, 16 }
 0x258   :  { %20440 = vst [vmem:[#allocation131_spill] sm:$0xff] %v18026_v1  ;;  %v18034_v47 = vpop.f32.mrb[175].mxu1  ;;  %14900 = vmatprep.subr.bf16.mxu1 %v20338_v29  ;;  %v1615_v1 = vsel %vm1355_vm4, %v1610_v60, %v1614_v4  ;;  %v1622_v60 = vrot.slane %v1620_v3, 1  ;;  %v1624_v4 = vshrl.u32 %v16093_v6, 16 }
 0x259   :  { %20441 = vst [vmem:[#allocation132_spill] sm:$0xff] %v18034_v47  ;;  %14161 = vmatmul.mubr.msk.bf16.gmra.mrb[120].mxu0 %vm373_vm1, %v1607_v35  ;;  %v16092_v47 = vld [vmem:[%s20305_s0 + $0x128] sm:$0xff]  }
 0x25a   :  { %14865 = vmatmul.mubr.msk.bf16.vlgmr.msra.gmra.mrb[16].mxu1 %vm373_vm1, %v8072_v43  ;;  %14164 = vmatprep.mubr.msk.bf16.mxu0 %vm16321_vm0, %v20338_v29  ;;  %v1626_v6 = vor.u32 %v1624_v4, %v1622_v60 }
 0x25b   :  { %14901 = vmatpush3.bf16.msra.mxu1 %v17962_v18  ;;  %14868 = vmatprep.mubr.msk.bf16.mxu1 %vm16321_vm0, %v20338_v29 }
 0x25c   :  { %14902 = vmatprep.subr.bf16.mxu1 %v20338_v29 }
 0x25d   :  { %v18048_v35 = vpop.f32.mrb[176].mxu1 }
 0x25e   :  { %20442 = vst [vmem:[#allocation133_spill] sm:$0xff] %v18048_v35  ;;  %v18050_v43 = vpop.f32.mrb[177].mxu1  ;;  %v1623_v35 = vsel %vm1355_vm4, %v1618_v26, %v1622_v60  ;;  %v1630_v26 = vrot.slane %v1628_v52, 1 }
 0x25f   :  { %20443 = vst [vmem:[#allocation134_spill] sm:$0xff] %v18050_v43  ;;  %v14611_v16 = vpop.f32.mrb[178].mxu1  ;;  %14903 = vmatpush3.bf16.msra.mxu1 %v17977_v41  ;;  %v16094_v43 = vld [vmem:[%s20305_s0 + $0x130] sm:$0xff]  }
 0x260   :  { %v18058_v15 = vpop.f32.mrb[179].mxu1  ;;  %14904 = vmatprep.subr.bf16.mxu1 %v20338_v29  ;;  %v8075_v16 = vrot.slane %v16092_v47, 2 }
 0x261   :  { %20444 = vst [vmem:[#allocation135_spill] sm:$0xff] %v18058_v15  ;;  %14165 = vmatmul.mubr.msk.bf16.gmra.mrb[124].mxu0 %vm373_vm1, %v1615_v1 }
 0x262   :  { %14869 = vmatmul.mubr.msk.bf16.gmra.mrb[20].mxu1 %vm373_vm1, %v8074_v24  ;;  %14168 = vmatprep.mubr.msk.bf16.mxu0 %vm16321_vm0, %v20338_v29  ;;  %v8076_v15 = vsel %vm6791_vm5, %v8073_v8, %v8075_v16  ;;  %v16097_v8 = vld [vmem:[%s20305_s0 + $0x118] sm:$0xff]  }
 0x263   :  { %14872 = vmatprep.mubr.msk.bf16.mxu1 %vm16321_vm0, %v20338_v29  ;;  %14905 = vmatpush3.bf16.msra.mxu1 %v17993_v12 }
 0x264   :  { %14906 = vmatprep.subr.bf16.mxu1 %v20338_v29 }
 0x265   :  { %v18072_v1 = vpop.f32.mrb[180].mxu1 }
 0x266   :  { %20445 = vst [vmem:[#allocation136_spill] sm:$0xff] %v18072_v1  ;;  %v18074_v24 = vpop.f32.mrb[181].mxu1  ;;  %v1631_v1 = vsel %vm1355_vm4, %v1626_v6, %v1630_v26  ;;  %v1640_v6 = vshrl.u32 %v16097_v8, 16 }
 0x267   :  { %20446 = vst [vmem:[#allocation137_spill] sm:$0xff] %v18074_v24  ;;  %v14623_v3 = vpop.f32.mrb[182].mxu1  ;;  %14907 = vmatpush3.bf16.msra.mxu1 %v18016_v63  ;;  %v1636_v24 = vshll.u32 %v16097_v8, 16 }
 0x268   :  { %v18082_v47 = vpop.f32.mrb[183].mxu1  ;;  %14920 = vmatprep.subr.bf16.mxu1 %v20338_v29  ;;  %v8077_v3 = vrot.slane %v16094_v43, 2  ;;  %v16099_v43 = vld [vmem:[%s20305_s0 + $0x120] sm:$0xff]  }
 0x269   :  { %20447 = vst [vmem:[#allocation138_spill] sm:$0xff] %v18082_v47  ;;  %14169 = vmatmul.mubr.msk.bf16.gmra.mrb[128].mxu0 %vm373_vm1, %v1623_v35  ;;  %v1632_v47 = vshrl.u32 %v16095_v22, 16  ;;  %v1638_v4 = vrot.slane %v1636_v24, 1 }
 0x26a   :  { %14873 = vmatmul.mubr.msk.bf16.gmra.mrb[24].mxu1 %vm373_vm1, %v8076_v15  ;;  %14172 = vmatprep.mubr.msk.bf16.mxu0 %vm16321_vm0, %v20338_v29  ;;  %v8078_v35 = vsel %vm6791_vm5, %v8075_v16, %v8077_v3  ;;  %v16096_v15 = vld [vmem:[%s20305_s0 + $0x138] sm:$0xff]  }
 0x26b   :  { %14876 = vmatprep.mubr.msk.bf16.mxu1 %vm16321_vm0, %v20338_v29  ;;  %v1634_v60 = vor.u32 %v1632_v47, %v1630_v26  ;;  %v8079_v22 = vrot.slane %v16096_v15, 2  ;;  %v16098_v47 = vld [vmem:[%s20305_s0 + $0x140] sm:$0xff]   ;;  %v1642_v15 = vor.u32 %v1640_v6, %v1638_v4  ;;  %v16100_v6 = vld [vmem:[%s20305_s0 + $0x148] sm:$0xff]  }
 0x26d   :  { %v8080_v24 = vsel %vm6791_vm5, %v8077_v3, %v8079_v22  ;;  %v8081_v3 = vrot.slane %v16098_v47, 2 }
 0x271   :  { %14173 = vmatmul.mubr.msk.bf16.gmra.mrb[132].mxu0 %vm373_vm1, %v1631_v1  ;;  %v1639_v1 = vsel %vm1355_vm4, %v1634_v60, %v1638_v4  ;;  %v16101_v60 = vld [vmem:[%s20305_s0 + $0x128] sm:$0xff]   ;;  %v8082_v4 = vsel %vm6791_vm5, %v8079_v22, %v8081_v3  ;;  %v8083_v22 = vrot.slane %v16100_v6, 2 }
 0x272   :  { %14877 = vmatmul.mubr.msk.bf16.gmra.mrb[28].mxu1 %vm373_vm1, %v8078_v35  ;;  %14176 = vmatprep.mubr.msk.bf16.mxu0 %vm16321_vm0, %v20338_v29  ;;  %v1644_v35 = vshll.u32 %v16099_v43, 16 }
 0x273   :  { %14880 = vmatprep.mubr.msk.bf16.mxu1 %vm16321_vm0, %v20338_v29 }
 0x274   :  { %v1646_v8 = vrot.slane %v1644_v35, 1 }
 0x275   :  { %v18108_v16 = vpop.f32.mrb[184].mxu1 }
 0x276   :  { %20448 = vst [vmem:[#allocation139_spill] sm:$0xff] %v18108_v16  ;;  %v18110_v52 = vpop.f32.mrb[185].mxu1 }
 0x277   :  { %20449 = vst [vmem:[#allocation140_spill] sm:$0xff] %v18110_v52  ;;  %v18113_v20 = vpop.f32.mrb[186].mxu1 }
 0x278   :  { %20450 = vst [vmem:[#allocation141_spill] sm:$0xff] %v18113_v20  ;;  %v18119_v26 = vpop.f32.mrb[187].mxu1 }
 0x279   :  { %20451 = vst [vmem:[#allocation142_spill] sm:$0xff] %v18119_v26  ;;  %14177 = vmatmul.mubr.msk.bf16.gmra.mrb[136].mxu0 %vm373_vm1, %v1639_v1  ;;  %v1647_v1 = vsel %vm1355_vm4, %v1642_v15, %v1646_v8  ;;  %v1652_v26 = vshll.u32 %v16101_v60, 16  ;;  %v16103_v15 = vld [vmem:[%s20305_s0 + $0x130] sm:$0xff]  }
 0x27a   :  { %14881 = vmatmul.mubr.msk.bf16.gmra.mrb[32].mxu1 %vm373_vm1, %v8080_v24  ;;  %14180 = vmatprep.mubr.msk.bf16.mxu0 %vm16321_vm0, %v20338_v29  ;;  %v1648_v24 = vshrl.u32 %v16099_v43, 16 }
 0x27b   :  { %14884 = vmatprep.mubr.msk.bf16.mxu1 %vm16321_vm0, %v20338_v29  ;;  %v1654_v43 = vrot.slane %v1652_v26, 1  ;;  %v8084_v26 = vsel %vm6791_vm5, %v8081_v3, %v8083_v22 }
 0x27c   :  { %v1650_v47 = vor.u32 %v1648_v24, %v1646_v8  ;;  %v16102_v8 = vld [vmem:[%s20305_s0 + $0x150] ss:$0 sps:$4 sm:$0xff]  }
 0x27d   :  { %v18130_v20 = vpop.f32.mrb[188].mxu1  ;;  %v8085_v3 = vrot.slane %v16102_v8, 2 }
 0x27e   :  { %20452 = vst [vmem:[#allocation143_spill] sm:$0xff] %v18130_v20  ;;  %v18132_v16 = vpop.f32.mrb[189].mxu1 }
 0x27f   :  { %20453 = vst [vmem:[#allocation144_spill] sm:$0xff] %v18132_v16  ;;  %v18135_v52 = vpop.f32.mrb[190].mxu1 }
 0x280   :  { %20454 = vst [vmem:[#allocation145_spill] sm:$0xff] %v18135_v52  ;;  %v18141_v35 = vpop.f32.mrb[191].mxu1 }
 0x281   :  { %20455 = vst [vmem:[#allocation146_spill] sm:$0xff] %v18141_v35  ;;  %14181 = vmatmul.mubr.msk.bf16.gmra.mrb[140].mxu0 %vm373_vm1, %v1647_v1  ;;  %v1655_v1 = vsel %vm1355_vm4, %v1650_v47, %v1654_v43  ;;  %v1660_v35 = vshll.u32 %v16103_v15, 16  ;;  %v16104_v47 = vld [vmem:[%s20305_s0 + $0x138] sm:$0xff]  }
 0x282   :  { %14885 = vmatmul.mubr.msk.bf16.gmra.mrb[36].mxu1 %vm373_vm1, %v8082_v4  ;;  %14184 = vmatprep.mubr.msk.bf16.mxu0 %vm16321_vm0, %v20338_v29  ;;  %v1656_v4 = vshrl.u32 %v16101_v60, 16 }
 0x283   :  { %14888 = vmatprep.mubr.msk.bf16.mxu1 %vm16321_vm0, %v20338_v29  ;;  %v1662_v60 = vrot.slane %v1660_v35, 1  ;;  %v8086_v35 = vsel %vm6791_vm5, %v8083_v22, %v8085_v3 }
 0x284   :  { %v1658_v6 = vor.u32 %v1656_v4, %v1654_v43 }
 0x285   :  { %v18152_v52 = vpop.f32.mrb[192].mxu1 }
 0x286   :  { %20456 = vst [vmem:[#allocation147_spill] sm:$0xff] %v18152_v52  ;;  %v18154_v20 = vpop.f32.mrb[193].mxu1 }
 0x287   :  { %20457 = vst [vmem:[#allocation148_spill] sm:$0xff] %v18154_v20  ;;  %v18157_v16 = vpop.f32.mrb[194].mxu1 }
 0x288   :  { %20458 = vst [vmem:[#allocation149_spill] sm:$0xff] %v18157_v16  ;;  %v18163_v24 = vpop.f32.mrb[195].mxu1 }
 0x289   :  { %20459 = vst [vmem:[#allocation150_spill] sm:$0xff] %v18163_v24  ;;  %14185 = vmatmul.mubr.msk.bf16.gmra.mrb[144].mxu0 %vm373_vm1, %v1655_v1  ;;  %v1663_v1 = vsel %vm1355_vm4, %v1658_v6, %v1662_v60  ;;  %v1668_v24 = vshll.u32 %v16104_v47, 16 }
 0x28a   :  { %14889 = vmatmul.mubr.msk.bf16.gmra.mrb[40].mxu1 %vm373_vm1, %v8084_v26  ;;  %14188 = vmatprep.mubr.msk.bf16.mxu0 %vm16321_vm0, %v20338_v29  ;;  %v1664_v26 = vshrl.u32 %v16103_v15, 16  ;;  %v16106_v15 = vld [vmem:[%s20305_s0 + $0x140] sm:$0xff]  }
 0x28b   :  { %14892 = vmatprep.mubr.msk.bf16.mxu1 %vm16321_vm0, %v20338_v29  ;;  %v1670_v8 = vrot.slane %v1668_v24, 1 }
 0x28c   :  { %v1666_v4 = vor.u32 %v1664_v26, %v1662_v60  ;;  %v16110_v26 = vld [vmem:[%s20305_s0 + $0x148] sm:$0xff]  }
 0x28d   :  { %v18174_v16 = vpop.f32.mrb[196].mxu1 }
 0x28e   :  { %20460 = vst [vmem:[#allocation151_spill] sm:$0xff] %v18174_v16  ;;  %v18176_v52 = vpop.f32.mrb[197].mxu1 }
 0x28f   :  { %20461 = vst [vmem:[#allocation152_spill] sm:$0xff] %v18176_v52  ;;  %v18179_v20 = vpop.f32.mrb[198].mxu1 }
 0x290   :  { %20462 = vst [vmem:[#allocation153_spill] sm:$0xff] %v18179_v20  ;;  %v18182_v43 = vpop.f32.mrb[199].mxu1  ;;  %v1672_v20 = vshrl.u32 %v16104_v47, 16 }
 0x291   :  { %20463 = vst [vmem:[#allocation154_spill] sm:$0xff] %v18182_v43  ;;  %14189 = vmatmul.mubr.msk.bf16.gmra.mrb[148].mxu0 %vm373_vm1, %v1663_v1  ;;  %v1671_v1 = vsel %vm1355_vm4, %v1666_v4, %v1670_v8 }
 0x292   :  { %14893 = vmatmul.mubr.msk.bf16.gmra.mrb[44].mxu1 %vm373_vm1, %v8086_v35  ;;  %14192 = vmatprep.mubr.msk.bf16.mxu0 %vm16321_vm0, %v20338_v29  ;;  %v1676_v35 = vshll.u32 %v16106_v15, 16  ;;  %v1674_v24 = vor.u32 %v1672_v20, %v1670_v8  ;;  %v1684_v20 = vshll.u32 %v16110_v26, 16 }
 0x293   :  { %14896 = vmatprep.mubr.msk.bf16.mxu1 %vm16321_vm0, %v20338_v29 }
 0x294   :  { %v1678_v60 = vrot.slane %v1676_v35, 1  ;;  %v16107_v35 = vld [vmem:[%s20307_s2 + $0xe0] sm:$0xff]  }
 0x295   :  { %v18193_v6 = vpop.f32.mrb[200].mxu1 }
 0x296   :  { %20464 = vst [vmem:[#allocation155_spill] sm:$0xff] %v18193_v6  ;;  %v18195_v22 = vpop.f32.mrb[201].mxu1 }
 0x297   :  { %20465 = vst [vmem:[#allocation156_spill] sm:$0xff] %v18195_v22  ;;  %v18198_v16 = vpop.f32.mrb[202].mxu1 }
 0x298   :  { %20466 = vst [vmem:[#allocation157_spill] sm:$0xff] %v18198_v16  ;;  %v18200_v43 = vpop.f32.mrb[203].mxu1  ;;  %v1680_v16 = vshrl.u32 %v16106_v15, 16  ;;  %v16113_v15 = vld [vmem:[%s20305_s0 + $0x150] ss:$0 sps:$4 sm:$0xff]  }
 0x299   :  { %20467 = vst [vmem:[#allocation158_spill] sm:$0xff] %v18200_v43  ;;  %14193 = vmatmul.mubr.msk.bf16.gmra.mrb[152].mxu0 %vm373_vm1, %v1671_v1  ;;  %v1679_v1 = vsel %vm1355_vm4, %v1674_v24, %v1678_v60  ;;  %v16109_v24 = vld [vmem:[%s20307_s2 + $0xe8] sm:$0xff]  }
 0x29a   :  { %14897 = vmatmul.mubr.msk.bf16.gmra.mrb[48].mxu1 %vm373_vm1, %v8085_v3  ;;  %14196 = vmatprep.mubr.msk.bf16.mxu0 %vm16321_vm0, %v20338_v29  ;;  %v16105_v3 = vld [vmem:[%s20306_s1 + $0x154] sm:$0xff]  }
 0x29b   :  { %14908 = vmatprep.mubr.msk.bf16.mxu1 %vm16321_vm0, %v20338_v29 }
 0x29d   :  { %v18211_v47 = vpop.f32.mrb[204].mxu1 }
 0x29e   :  { %20468 = vst [vmem:[#allocation159_spill] sm:$0xff] %v18211_v47  ;;  %v18213_v4 = vpop.f32.mrb[205].mxu1  ;;  %v1682_v47 = vor.u32 %v1680_v16, %v1678_v60  ;;  %v16108_v16 = vld [vmem:[%s20306_s1 + $0x15c] sm:$0xff]  }
 0x29f   :  { %20469 = vst [vmem:[#allocation160_spill] sm:$0xff] %v18213_v4  ;;  %v18219_v8 = vpop.f32.mrb[206].mxu1  ;;  %v1686_v4 = vrot.slane %v1684_v20, 1  ;;  %v1688_v20 = vshrl.u32 %v16110_v26, 16 }
 0x2a0   :  { %20470 = vst [vmem:[#allocation161_spill] sm:$0xff] %v18219_v8  ;;  %v18224_v6 = vpop.f32.mrb[207].mxu1 }
 0x2a1   :  { %20471 = vst [vmem:[#allocation162_spill] sm:$0xff] %v18224_v6  ;;  %14197 = vmatmul.mubr.msk.bf16.gmra.mrb[156].mxu0 %vm373_vm1, %v1679_v1  ;;  %v1687_v60 = vsel %vm1355_vm4, %v1682_v47, %v1686_v4  ;;  %v16112_v6 = vld [vmem:[%s20307_s2 + $0xf0] sm:$0xff]   ;;  %v1690_v26 = vor.u32 %v1688_v20, %v1686_v4  ;;  %v16111_v4 = vld [vmem:[%s20306_s1 + $0x164] ss:$0 sps:$4 sm:$0x33]  }
 0x2a2   :  { %14909 = vmatmul.mubr.msk.bf16.vlgmr.msra.gmra.mrb[52].mxu1 %vm373_vm1, %v16105_v3  ;;  %14200 = vmatprep.mubr.msk.bf16.mxu0 %vm16321_vm0, %v20338_v29 }
 0x2a3   :  { %14921 = vmatpush3.bf16.msra.mxu1 %v16107_v35  ;;  %14912 = vmatprep.mubr.msk.bf16.mxu1 %vm16321_vm0, %v20338_v29  ;;  %v1692_v35 = vshll.u32 %v16113_v15, 16 }
 0x2a4   :  { %14922 = vmatprep.subr.bf16.mxu1 %v20338_v29 }
 0x2a5   :  { %v18239_v3 = vpop.f32.mrb[208].mxu1  ;;  %v1694_v47 = vrot.slane %v1692_v35, 1 }
 0x2a6   :  { %20472 = vst [vmem:[#allocation163_spill] sm:$0xff] %v18239_v3  ;;  %v18241_v1 = vpop.f32.mrb[209].mxu1  ;;  %v16115_v3 = vld [vmem:[%s20305_s0 + $0x10] sm:$0xfc]  }
 0x2a7   :  { %20473 = vst [vmem:[#allocation164_spill] sm:$0xff] %v18241_v1  ;;  %v18247_v8 = vpop.f32.mrb[210].mxu1  ;;  %14923 = vmatpush3.bf16.msra.mxu1 %v16109_v24  ;;  %v16116_v1 = vld [vmem:[%s20305_s0 + $0x18] sm:$0xff]  }
 0x2a8   :  { %20474 = vst [vmem:[#allocation165_spill] sm:$0xff] %v18247_v8  ;;  %v18258_v43 = vpop.f32.mrb[211].mxu1  ;;  %14924 = vmatprep.subr.bf16.mxu1 %v20338_v29  ;;  %v16114_v24 = vld [vmem:[%s20307_s2 + $0xf8] sm:$0xff]   ;;  %v9229_v8 = vshrl.u32 %v16115_v3, 16  ;;  %v9237_v22 = vshrl.u32 %v16116_v1, 16  ;;  %v9240_v52 = vshll.u32 %v16116_v1, 16 }
 0x2a9   :  { %20475 = vst [vmem:[#allocation166_spill] sm:$0xff] %v18258_v43  ;;  %14201 = vmatmul.mubr.msk.bf16.gmra.mrb[160].mxu0 %vm373_vm1, %v1687_v60  ;;  %v9232_v43 = vshll.u32 %v16115_v3, 16  ;;  %v16118_v1 = vld [vmem:[%s20305_s0 + $0x20] sm:$0xff]  }
 0x2aa   :  { %14913 = vmatmul.mubr.msk.bf16.gmra.mrb[56].mxu1 %vm373_vm1, %v16108_v16  ;;  %14204 = vmatprep.mubr.msk.bf16.mxu0 %vm16321_vm0, %v20338_v29  ;;  %v9231_v35 = vrot.slane %v9229_v8, 2  ;;  %v9239_v3 = vrot.slane %v9237_v22, 2  ;;  %v9242_v13 = vrot.slane %v9240_v52, 3  ;;  %v9246_v22 = vshrl.u32 %v16118_v1, 16 }
 0x2ab   :  { %14916 = vmatprep.mubr.msk.bf16.mxu1 %vm16321_vm0, %v20338_v29  ;;  %14925 = vmatpush3.bf16.msra.mxu1 %v16112_v6  ;;  %v1695_v6 = vsel %vm1355_vm4, %v1690_v26, %v1694_v47  ;;  %v9234_v62 = vrot.slane %v9232_v43, 3  ;;  %v9249_v8 = vshll.u32 %v16118_v1, 16 }
 0x2ac   :  { %14926 = vmatprep.subr.bf16.mxu1 %v20338_v29  ;;  %v9243_v43 = vor.u32 %v9242_v13, %v9239_v3  ;;  %v16117_v13 = vld [vmem:[%s20307_s2 + $0x100] sm:$0xff]  }
 0x2ad   :  { %v18271_v16 = vpop.f32.mrb[212].mxu1  ;;  %v9235_v52 = vor.u32 %v9234_v62, %v9231_v35  ;;  %v9248_v35 = vrot.slane %v9246_v22, 2 }
 0x2ae   :  { %20476 = vst [vmem:[#allocation167_spill] sm:$0xff] %v18271_v16  ;;  %v18273_v60 = vpop.f32.mrb[213].mxu1 }
 0x2af   :  { %20477 = vst [vmem:[#allocation168_spill] sm:$0xff] %v18273_v60  ;;  %v18279_v20 = vpop.f32.mrb[214].mxu1  ;;  %14927 = vmatpush3.bf16.msra.mxu1 %v16114_v24  ;;  %v1696_v60 = vshrl.u32 %v16113_v15, 16  ;;  %v16119_v15 = vld [vmem:[%s20305_s0] sm:$0xfe]   ;;  %v9244_v62 = vsel %vm9227_vm6, %v9235_v52, %v9243_v43 }
 0x2b0   :  { %20478 = vst [vmem:[#allocation169_spill] sm:$0xff] %v18279_v20  ;;  %v18284_v16 = vpop.f32.mrb[215].mxu1  ;;  %15112 = vmatprep.subr.bf16.mxu1 %v20338_v29  ;;  %v2837_v1 = vrot.slane %v16119_v15, 1 }
 0x2b1   :  { %20479 = vst [vmem:[#allocation170_spill] sm:$0xff] %v18284_v16  ;;  %14205 = vmatmul.mubr.msk.bf16.gmra.mrb[164].mxu0 %vm373_vm1, %v1695_v6  ;;  %v1698_v24 = vor.u32 %v1696_v60, %v1694_v47  ;;  %v9251_v47 = vrot.slane %v9249_v8, 3  ;;  %v16121_v60 = vld [vmem:[%s20305_s0 + $0x28] sm:$0xff]  }
 0x2b2   :  { %14917 = vmatmul.mubr.msk.bf16.gmra.mrb[60].mxu1 %vm373_vm1, %v16111_v4  ;;  %14208 = vmatprep.mubr.msk.bf16.mxu0 %vm16321_vm0, %v20338_v29  ;;  %v16120_v4 = vld [vmem:[%s20305_s0 + $0x8] sm:$0xff]   ;;  %v9255_v8 = vshrl.u32 %v16121_v60, 16 }
 0x2b3   :  { %14928 = vmatprep.mubr.msk.bf16.mxu1 %vm16321_vm0, %v20338_v29  ;;  %v2838_v52 = vrot.slane %v16120_v4, 1  ;;  %v9252_v22 = vor.u32 %v9251_v47, %v9248_v35  ;;  %v16122_v4 = vld [vmem:[%s20305_s0 + $0x10] sm:$0xff]  }
 0x2b4   :  { %v9257_v47 = vrot.slane %v9255_v8, 2 }
 0x2b5   :  { %v18293_v26 = vpop.f32.mrb[216].mxu1  ;;  %v2839_v15 = vsel %vm2836_vm2, %v2837_v1, %v2838_v52  ;;  %v9253_v35 = vsel %vm9227_vm6, %v9243_v43, %v9252_v22  ;;  %v2840_v1 = vrot.slane %v16122_v4, 1 }
 0x2b6   :  { %20480 = vst [vmem:[#allocation171_spill] sm:$0xff] %v18293_v26  ;;  %v18295_v20 = vpop.f32.mrb[217].mxu1  ;;  %v16139_v26 = vld [vmem:[%s20307_s2 + $0x108] sm:$0xff]  }
 0x2b7   :  { %20481 = vst [vmem:[#allocation172_spill] sm:$0xff] %v18295_v20  ;;  %v18303_v6 = vpop.f32.mrb[218].mxu1 }
 0x2b8   :  { %20482 = vst [vmem:[#allocation173_spill] sm:$0xff] %v18303_v6  ;;  %v18312_v3 = vpop.f32.mrb[219].mxu1  ;;  %v9258_v6 = vshll.u32 %v16121_v60, 16 }
 0x2b9   :  { %20483 = vst [vmem:[#allocation174_spill] sm:$0xff] %v18312_v3  ;;  %14209 = vmatmul.mubr.msk.bf16.gmra.mrb[172].mxu0 %vm373_vm1, %v1698_v24  ;;  %v16123_v3 = vld [vmem:[%s20305_s0 + $0x30] sm:$0xff]  }
 0x2ba   :  { %14929 = vmatmul.mubr.msk.bf16.vlgmr.msra.gmra.mrb[64].mxu1 %vm373_vm1, %v9244_v62  ;;  %14232 = vmatprep.mubr.msk.bf16.mxu0 %vm16321_vm0, %v20338_v29  ;;  %v9260_v60 = vrot.slane %v9258_v6, 3  ;;  %v9264_v6 = vshrl.u32 %v16123_v3, 16 }
 0x2bb   :  { %15113 = vmatpush3.bf16.msra.mxu1 %v16117_v13  ;;  %14932 = vmatprep.mubr.msk.bf16.mxu1 %vm16321_vm0, %v20338_v29 }
 0x2bc   :  { %15114 = vmatprep.subr.bf16.mxu1 %v20338_v29  ;;  %v9261_v43 = vor.u32 %v9260_v60, %v9257_v47  ;;  %v9266_v47 = vrot.slane %v9264_v6, 2  ;;  %v16125_v60 = vld [vmem:[%s20305_s0 + $0x38] sm:$0xff]  }
 0x2bd   :  { %v18324_v24 = vpop.f32.mrb[220].mxu1  ;;  %v9276_v6 = vshll.u32 %v16125_v60, 16 }
 0x2be   :  { %20484 = vst [vmem:[#allocation175_spill] sm:$0xff] %v18324_v24  ;;  %v18326_v62 = vpop.f32.mrb[221].mxu1 }
 0x2bf   :  { %20485 = vst [vmem:[#allocation176_spill] sm:$0xff] %v18326_v62  ;;  %v18332_v13 = vpop.f32.mrb[222].mxu1  ;;  %15115 = vmatpush3.bf16.msra.mxu1 %v16139_v26  ;;  %v9267_v26 = vshll.u32 %v16123_v3, 16 }
 0x2c0   :  { %20486 = vst [vmem:[#allocation177_spill] sm:$0xff] %v18332_v13  ;;  %v18338_v24 = vpop.f32.mrb[223].mxu1  ;;  %15116 = vmatprep.subr.bf16.mxu1 %v20338_v29 }
 0x2c1   :  { %20487 = vst [vmem:[#allocation178_spill] sm:$0xff] %v18338_v24  ;;  %14233 = vmatmul.mubr.msk.bf16.vlgmr.msra.gmra.mrb[0].mxu0 %vm373_vm1, %v2839_v15  ;;  %v2841_v15 = vsel %vm2836_vm2, %v2838_v52, %v2840_v1  ;;  %v9269_v3 = vrot.slane %v9267_v26, 3 }
 0x2c2   :  { %14933 = vmatmul.mubr.msk.bf16.gmra.mrb[68].mxu1 %vm373_vm1, %v9253_v35  ;;  %14729 = vmatpush3.bf16.msra.mxu0 %v17962_v18  ;;  %v16124_v18 = vld [vmem:[%s20305_s0 + $0x18] sm:$0xff]   ;;  %v9262_v35 = vsel %vm9227_vm6, %v9252_v22, %v9261_v43  ;;  %v9273_v22 = vshrl.u32 %v16125_v60, 16  ;;  %v9278_v60 = vrot.slane %v9276_v6, 3 }
 0x2c3   :  { %14936 = vmatprep.mubr.msk.bf16.mxu1 %vm16321_vm0, %v20338_v29  ;;  %14236 = vmatprep.mubr.msk.bf16.mxu0 %vm16321_vm0, %v20338_v29  ;;  %v9270_v52 = vor.u32 %v9269_v3, %v9266_v47 }
 0x2c4   :  { %14730 = vmatprep.subr.bf16.mxu0 %v20338_v29  ;;  %v9275_v3 = vrot.slane %v9273_v22, 2 }
 0x2c5   :  { %v18349_v8 = vpop.f32.mrb[224].mxu1  ;;  %v9271_v47 = vsel %vm9227_vm6, %v9261_v43, %v9270_v52 }
 0x2c6   :  { %20488 = vst [vmem:[#allocation179_spill] sm:$0xff] %v18349_v8  ;;  %v18351_v13 = vpop.f32.mrb[225].mxu1  ;;  %14731 = vmatpush3.bf16.msra.mxu0 %v17977_v41  ;;  %v2842_v41 = vrot.slane %v16124_v18, 1  ;;  %v16126_v18 = vld [vmem:[%s20305_s0 + $0x20] sm:$0xff]   ;;  %v9279_v43 = vor.u32 %v9278_v60, %v9275_v3  ;;  %v16129_v3 = vld [vmem:[%s20305_s0 + $0x48] sm:$0xff]  }
 0x2c7   :  { %20489 = vst [vmem:[#allocation180_spill] sm:$0xff] %v18351_v13  ;;  %v18358_v4 = vpop.f32.mrb[226].mxu1  ;;  %14732 = vmatprep.subr.bf16.mxu0 %v20338_v29 }
 0x2c8   :  { %20490 = vst [vmem:[#allocation181_spill] sm:$0xff] %v18358_v4  ;;  %v18365_v8 = vpop.f32.mrb[227].mxu1 }
 0x2c9   :  { %20491 = vst [vmem:[#allocation182_spill] sm:$0xff] %v18365_v8  ;;  %14237 = vmatmul.mubr.msk.bf16.gmra.mrb[4].mxu0 %vm373_vm1, %v2841_v15  ;;  %v2843_v15 = vsel %vm2836_vm2, %v2840_v1, %v2842_v41  ;;  %v2844_v1 = vrot.slane %v16126_v18, 1  ;;  %v9280_v18 = vsel %vm9227_vm6, %v9270_v52, %v9279_v43 }
 0x2ca   :  { %14937 = vmatmul.mubr.msk.bf16.gmra.mrb[72].mxu1 %vm373_vm1, %v9262_v35  ;;  %14240 = vmatprep.mubr.msk.bf16.mxu0 %vm16321_vm0, %v20338_v29 }
 0x2cb   :  { %14940 = vmatprep.mubr.msk.bf16.mxu1 %vm16321_vm0, %v20338_v29  ;;  %14733 = vmatpush3.bf16.msra.mxu0 %v17993_v12  ;;  %v16127_v12 = vld [vmem:[%s20305_s0 + $0x40] sm:$0xff]  }
 0x2cc   :  { %14734 = vmatprep.subr.bf16.mxu0 %v20338_v29  ;;  %v9282_v22 = vshrl.u32 %v16127_v12, 16  ;;  %v9285_v6 = vshll.u32 %v16127_v12, 16  ;;  %v9291_v12 = vshrl.u32 %v16129_v3, 16 }
 0x2cd   :  { %v18375_v26 = vpop.f32.mrb[228].mxu1 }
 0x2ce   :  { %20492 = vst [vmem:[#allocation183_spill] sm:$0xff] %v18375_v26  ;;  %v18377_v4 = vpop.f32.mrb[229].mxu1  ;;  %v9287_v8 = vrot.slane %v9285_v6, 3 }
 0x2cf   :  { %20493 = vst [vmem:[#allocation184_spill] sm:$0xff] %v18377_v4  ;;  %v18383_v35 = vpop.f32.mrb[230].mxu1  ;;  %14735 = vmatpush3.bf16.msra.mxu0 %v18016_v63  ;;  %v9284_v4 = vrot.slane %v9282_v22, 2  ;;  %v9294_v22 = vshll.u32 %v16129_v3, 16 }
 0x2d0   :  { %20494 = vst [vmem:[#allocation185_spill] sm:$0xff] %v18383_v35  ;;  %v18390_v26 = vpop.f32.mrb[231].mxu1  ;;  %15092 = vmatprep.subr.bf16.mxu0 %v20338_v29 }
 0x2d1   :  { %20495 = vst [vmem:[#allocation186_spill] sm:$0xff] %v18390_v26  ;;  %14241 = vmatmul.mubr.msk.bf16.gmra.mrb[8].mxu0 %vm373_vm1, %v2843_v15  ;;  %v2845_v26 = vsel %vm2836_vm2, %v2842_v41, %v2844_v1  ;;  %v16128_v15 = vld [vmem:[%s20305_s0 + $0x28] sm:$0xff]   ;;  %v9288_v52 = vor.u32 %v9287_v8, %v9284_v4  ;;  %v16131_v8 = vld [vmem:[%s20305_s0 + $0x50] sm:$0xff]  }
 0x2d2   :  { %14941 = vmatmul.mubr.msk.bf16.gmra.mrb[76].mxu1 %vm373_vm1, %v9271_v47  ;;  %14244 = vmatprep.mubr.msk.bf16.mxu0 %vm16321_vm0, %v20338_v29  ;;  %v2846_v41 = vrot.slane %v16128_v15, 1 }
 0x2d3   :  { %14944 = vmatprep.mubr.msk.bf16.mxu1 %vm16321_vm0, %v20338_v29  ;;  %v9289_v15 = vsel %vm9227_vm6, %v9279_v43, %v9288_v52  ;;  %v16161_v43 = vld [vmem:[%s20307_s2 + $0x110] sm:$0xff]  }
 0x2d4   :  { %15117 = vmatpush3.bf16.msra.mxu1 %v16161_v43 }
 0x2d5   :  { %v18399_v35 = vpop.f32.mrb[232].mxu1  ;;  %15118 = vmatprep.subr.bf16.mxu1 %v20338_v29 }
 0x2d6   :  { %20496 = vst [vmem:[#allocation187_spill] sm:$0xff] %v18399_v35  ;;  %v18401_v63 = vpop.f32.mrb[233].mxu1  ;;  %v2847_v35 = vsel %vm2836_vm2, %v2844_v1, %v2846_v41 }
 0x2d7   :  { %20497 = vst [vmem:[#allocation188_spill] sm:$0xff] %v18401_v63  ;;  %v18407_v47 = vpop.f32.mrb[234].mxu1  ;;  %v9296_v63 = vrot.slane %v9294_v22, 3  ;;  %v9303_v22 = vshll.u32 %v16131_v8, 16 }
 0x2d8   :  { %20498 = vst [vmem:[#allocation189_spill] sm:$0xff] %v18407_v47  ;;  %v18413_v60 = vpop.f32.mrb[235].mxu1 }
 0x2d9   :  { %20499 = vst [vmem:[#allocation190_spill] sm:$0xff] %v18413_v60  ;;  %14245 = vmatmul.mubr.msk.bf16.gmra.mrb[12].mxu0 %vm373_vm1, %v2845_v26  ;;  %v16130_v26 = vld [vmem:[%s20305_s0 + $0x30] sm:$0xff]   ;;  %v9293_v60 = vrot.slane %v9291_v12, 2  ;;  %v9300_v12 = vshrl.u32 %v16131_v8, 16  ;;  %v16133_v8 = vld [vmem:[%s20305_s0 + $0x58] sm:$0xff]  }
 0x2da   :  { %14945 = vmatmul.mubr.msk.bf16.gmra.mrb[80].mxu1 %vm373_vm1, %v9280_v18  ;;  %14248 = vmatprep.mubr.msk.bf16.mxu0 %vm16321_vm0, %v20338_v29  ;;  %v2848_v1 = vrot.slane %v16130_v26, 1  ;;  %v16132_v26 = vld [vmem:[%s20305_s0 + $0x38] sm:$0xff]  }
 0x2db   :  { %14948 = vmatprep.mubr.msk.bf16.mxu1 %vm16321_vm0, %v20338_v29  ;;  %v9297_v3 = vor.u32 %v9296_v63, %v9293_v60  ;;  %v9302_v63 = vrot.slane %v9300_v12, 2  ;;  %v9305_v60 = vrot.slane %v9303_v22, 3  ;;  %v9309_v12 = vshrl.u32 %v16133_v8, 16 }
 0x2dc   :  { %v9312_v22 = vshll.u32 %v16133_v8, 16 }
 0x2dd   :  { %v18421_v6 = vpop.f32.mrb[236].mxu1 }
 0x2de   :  { %20500 = vst [vmem:[#allocation191_spill] sm:$0xff] %v18421_v6  ;;  %v18423_v47 = vpop.f32.mrb[237].mxu1 }
 0x2df   :  { %20501 = vst [vmem:[#allocation192_spill] sm:$0xff] %v18423_v47  ;;  %v18429_v18 = vpop.f32.mrb[238].mxu1  ;;  %v9314_v47 = vrot.slane %v9312_v22, 3 }
 0x2e0   :  { %20502 = vst [vmem:[#allocation193_spill] sm:$0xff] %v18429_v18  ;;  %v18435_v4 = vpop.f32.mrb[239].mxu1 }
 0x2e1   :  { %20503 = vst [vmem:[#allocation194_spill] sm:$0xff] %v18435_v4  ;;  %14249 = vmatmul.mubr.msk.bf16.gmra.mrb[16].mxu0 %vm373_vm1, %v2847_v35  ;;  %v9298_v4 = vsel %vm9227_vm6, %v9288_v52, %v9297_v3  ;;  %v9306_v52 = vor.u32 %v9305_v60, %v9302_v63  ;;  %v16135_v63 = vld [vmem:[%s20305_s0 + $0x60] sm:$0xff]  }
 0x2e2   :  { %14949 = vmatmul.mubr.msk.bf16.gmra.mrb[84].mxu1 %vm373_vm1, %v9289_v15  ;;  %14252 = vmatprep.mubr.msk.bf16.mxu0 %vm16321_vm0, %v20338_v29  ;;  %v2849_v15 = vsel %vm2836_vm2, %v2846_v41, %v2848_v1  ;;  %v2850_v41 = vrot.slane %v16132_v26, 1  ;;  %v9318_v8 = vshrl.u32 %v16135_v63, 16 }
 0x2e3   :  { %14952 = vmatprep.mubr.msk.bf16.mxu1 %vm16321_vm0, %v20338_v29  ;;  %v9307_v26 = vsel %vm9227_vm6, %v9297_v3, %v9306_v52 }
 0x2e5   :  { %v18446_v18 = vpop.f32.mrb[240].mxu1 }
 0x2e6   :  { %20504 = vst [vmem:[#allocation195_spill] sm:$0xff] %v18446_v18  ;;  %v18449_v35 = vpop.f32.mrb[241].mxu1 }
 0x2e7   :  { %20505 = vst [vmem:[#allocation196_spill] sm:$0xff] %v18449_v35  ;;  %v18455_v6 = vpop.f32.mrb[242].mxu1  ;;  %v9311_v35 = vrot.slane %v9309_v12, 2  ;;  %v9321_v12 = vshll.u32 %v16135_v63, 16 }
 0x2e8   :  { %20506 = vst [vmem:[#allocation197_spill] sm:$0xff] %v18455_v6  ;;  %v18461_v43 = vpop.f32.mrb[243].mxu1 }
 0x2e9   :  { %20507 = vst [vmem:[#allocation198_spill] sm:$0xff] %v18461_v43  ;;  %14253 = vmatmul.mubr.msk.bf16.gmra.mrb[20].mxu0 %vm373_vm1, %v2849_v15  ;;  %v2851_v43 = vsel %vm2836_vm2, %v2848_v1, %v2850_v41  ;;  %v9315_v3 = vor.u32 %v9314_v47, %v9311_v35  ;;  %v16137_v47 = vld [vmem:[%s20305_s0 + $0x68] sm:$0xff]  }
 0x2ea   :  { %14953 = vmatmul.mubr.msk.bf16.gmra.mrb[88].mxu1 %vm373_vm1, %v9298_v4  ;;  %14256 = vmatprep.mubr.msk.bf16.mxu0 %vm16321_vm0, %v20338_v29  ;;  %v16134_v4 = vld [vmem:[%s20305_s0 + $0x40] sm:$0xff]   ;;  %v9327_v63 = vshrl.u32 %v16137_v47, 16 }
 0x2eb   :  { %14956 = vmatprep.mubr.msk.bf16.mxu1 %vm16321_vm0, %v20338_v29  ;;  %v2852_v1 = vrot.slane %v16134_v4, 1  ;;  %v9316_v4 = vsel %vm9227_vm6, %v9306_v52, %v9315_v3 }
 0x2ec   :  { %v9329_v62 = vrot.slane %v9327_v63, 2 }
 0x2ed   :  { %v18469_v6 = vpop.f32.mrb[244].mxu1 }
 0x2ee   :  { %20508 = vst [vmem:[#allocation199_spill] sm:$0xff] %v18469_v6  ;;  %v18471_v18 = vpop.f32.mrb[245].mxu1  ;;  %v2853_v6 = vsel %vm2836_vm2, %v2850_v41, %v2852_v1 }
 0x2ef   :  { %20509 = vst [vmem:[#allocation200_spill] sm:$0xff] %v18471_v18  ;;  %v18477_v15 = vpop.f32.mrb[246].mxu1  ;;  %v9323_v18 = vrot.slane %v9321_v12, 3 }
 0x2f0   :  { %20510 = vst [vmem:[#allocation201_spill] sm:$0xff] %v18477_v15  ;;  %v18483_v60 = vpop.f32.mrb[247].mxu1 }
 0x2f1   :  { %20511 = vst [vmem:[#allocation202_spill] sm:$0xff] %v18483_v60  ;;  %14257 = vmatmul.mubr.msk.bf16.gmra.mrb[24].mxu0 %vm373_vm1, %v2851_v43  ;;  %v16136_v43 = vld [vmem:[%s20305_s0 + $0x48] sm:$0xff]   ;;  %v9320_v60 = vrot.slane %v9318_v8, 2  ;;  %v9330_v8 = vshll.u32 %v16137_v47, 16 }
 0x2f2   :  { %14957 = vmatmul.mubr.msk.bf16.gmra.mrb[92].mxu1 %vm373_vm1, %v9307_v26  ;;  %14260 = vmatprep.mubr.msk.bf16.mxu0 %vm16321_vm0, %v20338_v29  ;;  %v2854_v41 = vrot.slane %v16136_v43, 1 }
 0x2f3   :  { %14960 = vmatprep.mubr.msk.bf16.mxu1 %vm16321_vm0, %v20338_v29  ;;  %v9324_v52 = vor.u32 %v9323_v18, %v9320_v60  ;;  %v9332_v20 = vrot.slane %v9330_v8, 3  ;;  %v16140_v18 = vld [vmem:[%s20305_s0 + $0x70] sm:$0xff]  }
 0x2f4   :  { %v2855_v24 = vsel %vm2836_vm2, %v2852_v1, %v2854_v41  ;;  %v9336_v47 = vshrl.u32 %v16140_v18, 16  ;;  %v9339_v63 = vshll.u32 %v16140_v18, 16 }
 0x2f5   :  { %v18491_v22 = vpop.f32.mrb[248].mxu1  ;;  %v9325_v43 = vsel %vm9227_vm6, %v9315_v3, %v9324_v52  ;;  %v9333_v3 = vor.u32 %v9332_v20, %v9329_v62  ;;  %v16142_v20 = vld [vmem:[%s20305_s0 + $0x78] sm:$0xff]  }
 0x2f6   :  { %v18493_v15 = vpop.f32.mrb[249].mxu1  ;;  %v9345_v18 = vshrl.u32 %v16142_v20, 16 }
 0x2f7   :  { %v18499_v26 = vpop.f32.mrb[250].mxu1 }
 0x2f8   :  { %20512 = vst [vmem:[#allocation203_spill] sm:$0xff] %v18499_v26  ;;  %v18505_v35 = vpop.f32.mrb[251].mxu1 }
 0x2f9   :  { %14261 = vmatmul.mubr.msk.bf16.gmra.mrb[28].mxu0 %vm373_vm1, %v2853_v6  ;;  %v16138_v6 = vld [vmem:[%s20305_s0 + $0x50] sm:$0xff]  }
 0x2fa   :  { %14961 = vmatmul.mubr.msk.bf16.gmra.mrb[96].mxu1 %vm373_vm1, %v9316_v4  ;;  %14264 = vmatprep.mubr.msk.bf16.mxu0 %vm16321_vm0, %v20338_v29  ;;  %v2856_v1 = vrot.slane %v16138_v6, 1  ;;  %v9334_v6 = vsel %vm9227_vm6, %v9324_v52, %v9333_v3 }
 0x2fb   :  { %14964 = vmatprep.mubr.msk.bf16.mxu1 %vm16321_vm0, %v20338_v29 }
 0x2fd   :  { %v18513_v12 = vpop.f32.mrb[252].mxu1 }
 0x2fe   :  { %20513 = vst [vmem:[#allocation204_spill] sm:$0xff] %v18513_v12  ;;  %v18515_v13 = vpop.f32.mrb[253].mxu1  ;;  %v9338_v12 = vrot.slane %v9336_v47, 2  ;;  %v9348_v47 = vshll.u32 %v16142_v20, 16 }
 0x2ff   :  { %20514 = vst [vmem:[#allocation205_spill] sm:$0xff] %v18515_v13  ;;  %v18521_v4 = vpop.f32.mrb[254].mxu1 }
 0x300   :  { %20515 = vst [vmem:[#allocation206_spill] sm:$0xff] %v18521_v4  ;;  %v18527_v60 = vpop.f32.mrb[255].mxu1  ;;  %v2857_v4 = vsel %vm2836_vm2, %v2854_v41, %v2856_v1 }
 0x301   :  { %20516 = vst [vmem:[#allocation207_spill] sm:$0xff] %v18527_v60  ;;  %14265 = vmatmul.mubr.msk.bf16.gmra.mrb[32].mxu0 %vm373_vm1, %v2855_v24  ;;  %v16141_v24 = vld [vmem:[%s20305_s0 + $0x58] sm:$0xff]   ;;  %v9341_v60 = vrot.slane %v9339_v63, 3 }
 0x302   :  { %14965 = vmatmul.mubr.msk.bf16.gmra.mrb[100].mxu1 %vm373_vm1, %v9325_v43  ;;  %14268 = vmatprep.mubr.msk.bf16.mxu0 %vm16321_vm0, %v20338_v29  ;;  %v2858_v41 = vrot.slane %v16141_v24, 1 }
 0x303   :  { %14968 = vmatprep.mubr.msk.bf16.mxu1 %vm16321_vm0, %v20338_v29  ;;  %v9342_v52 = vor.u32 %v9341_v60, %v9338_v12  ;;  %v16144_v12 = vld [vmem:[%s20305_s0 + $0x80] sm:$0xff]  }
 0x304   :  { %v9354_v20 = vshrl.u32 %v16144_v12, 16 }
 0x305   :  { %v18535_v8 = vpop.f32.mrb[0].mxu1  ;;  %v9343_v24 = vsel %vm9227_vm6, %v9333_v3, %v9342_v52 }
 0x306   :  { %20517 = vst [vmem:[#allocation208_spill] sm:$0xff] %v18535_v8  ;;  %v18537_v16 = vpop.f32.mrb[1].mxu1  ;;  %v2859_v8 = vsel %vm2836_vm2, %v2856_v1, %v2858_v41 }
 0x307   :  { %20518 = vst [vmem:[#allocation209_spill] sm:$0xff] %v18537_v16  ;;  %v18543_v43 = vpop.f32.mrb[2].mxu1  ;;  %v9350_v16 = vrot.slane %v9348_v47, 3 }
 0x308   :  { %20519 = vst [vmem:[#allocation210_spill] sm:$0xff] %v18543_v43  ;;  %v18549_v62 = vpop.f32.mrb[3].mxu1 }
 0x309   :  { %20520 = vst [vmem:[#allocation211_spill] sm:$0xff] %v18549_v62  ;;  %14269 = vmatmul.mubr.msk.bf16.gmra.mrb[36].mxu0 %vm373_vm1, %v2857_v4  ;;  %v16143_v4 = vld [vmem:[%s20305_s0 + $0x60] sm:$0xff]   ;;  %v9347_v62 = vrot.slane %v9345_v18, 2  ;;  %v9357_v18 = vshll.u32 %v16144_v12, 16 }
 0x30a   :  { %14969 = vmatmul.mubr.msk.bf16.gmra.mrb[104].mxu1 %vm373_vm1, %v9334_v6  ;;  %14272 = vmatprep.mubr.msk.bf16.mxu0 %vm16321_vm0, %v20338_v29  ;;  %v2860_v1 = vrot.slane %v16143_v4, 1  ;;  %v9356_v4 = vrot.slane %v9354_v20, 2 }
 0x30b   :  { %14972 = vmatprep.mubr.msk.bf16.mxu1 %vm16321_vm0, %v20338_v29  ;;  %v9351_v3 = vor.u32 %v9350_v16, %v9347_v62  ;;  %v16146_v16 = vld [vmem:[%s20305_s0 + $0x88] sm:$0xff]  }
 0x30c   :  { %v9363_v12 = vshrl.u32 %v16146_v16, 16  ;;  %v9366_v20 = vshll.u32 %v16146_v16, 16 }
 0x30d   :  { %v18557_v63 = vpop.f32.mrb[4].mxu1 }
 0x30e   :  { %20521 = vst [vmem:[#allocation212_spill] sm:$0xff] %v18557_v63  ;;  %v18559_v43 = vpop.f32.mrb[5].mxu1  ;;  %v2861_v63 = vsel %vm2836_vm2, %v2858_v41, %v2860_v1 }
 0x30f   :  { %20522 = vst [vmem:[#allocation213_spill] sm:$0xff] %v18559_v43  ;;  %v18565_v6 = vpop.f32.mrb[6].mxu1  ;;  %v9359_v43 = vrot.slane %v9357_v18, 3 }
 0x310   :  { %20523 = vst [vmem:[#allocation214_spill] sm:$0xff] %v18565_v6  ;;  %v18571_v60 = vpop.f32.mrb[7].mxu1 }
 0x311   :  { %20524 = vst [vmem:[#allocation215_spill] sm:$0xff] %v18571_v60  ;;  %14273 = vmatmul.mubr.msk.bf16.gmra.mrb[40].mxu0 %vm373_vm1, %v2859_v8  ;;  %v16145_v8 = vld [vmem:[%s20305_s0 + $0x68] sm:$0xff]   ;;  %v9352_v60 = vsel %vm9227_vm6, %v9342_v52, %v9351_v3  ;;  %v9360_v52 = vor.u32 %v9359_v43, %v9356_v4  ;;  %v16148_v43 = vld [vmem:[%s20305_s0 + $0x90] sm:$0xff]  }
 0x312   :  { %14973 = vmatmul.mubr.msk.bf16.gmra.mrb[108].mxu1 %vm373_vm1, %v9343_v24  ;;  %14276 = vmatprep.mubr.msk.bf16.mxu0 %vm16321_vm0, %v20338_v29  ;;  %v2862_v41 = vrot.slane %v16145_v8, 1  ;;  %v9365_v8 = vrot.slane %v9363_v12, 2  ;;  %v9372_v16 = vshrl.u32 %v16148_v43, 16  ;;  %v9375_v12 = vshll.u32 %v16148_v43, 16 }
 0x313   :  { %14976 = vmatprep.mubr.msk.bf16.mxu1 %vm16321_vm0, %v20338_v29 }
 0x315   :  { %v18579_v47 = vpop.f32.mrb[8].mxu1 }
 0x316   :  { %20525 = vst [vmem:[#allocation216_spill] sm:$0xff] %v18579_v47  ;;  %v18581_v6 = vpop.f32.mrb[9].mxu1  ;;  %v2863_v47 = vsel %vm2836_vm2, %v2860_v1, %v2862_v41 }
 0x317   :  { %20526 = vst [vmem:[#allocation217_spill] sm:$0xff] %v18581_v6  ;;  %v14715_v24 = vpop.f32.mrb[10].mxu1  ;;  %v9368_v6 = vrot.slane %v9366_v20, 3 }
 0x318   :  { %v18591_v62 = vpop.f32.mrb[11].mxu1 }
 0x319   :  { %20527 = vst [vmem:[#allocation218_spill] sm:$0xff] %v18591_v62  ;;  %14277 = vmatmul.mubr.msk.bf16.gmra.mrb[44].mxu0 %vm373_vm1, %v2861_v63  ;;  %v16147_v63 = vld [vmem:[%s20305_s0 + $0x70] sm:$0xff]   ;;  %v9361_v62 = vsel %vm9227_vm6, %v9351_v3, %v9360_v52  ;;  %v9369_v3 = vor.u32 %v9368_v6, %v9365_v8 }
 0x31a   :  { %14977 = vmatmul.mubr.msk.bf16.gmra.mrb[112].mxu1 %vm373_vm1, %v9352_v60  ;;  %14280 = vmatprep.mubr.msk.bf16.mxu0 %vm16321_vm0, %v20338_v29  ;;  %v2864_v1 = vrot.slane %v16147_v63, 1  ;;  %v16150_v63 = vld [vmem:[%s20305_s0 + $0x98] sm:$0xff]  }
 0x31b   :  { %14980 = vmatprep.mubr.msk.bf16.mxu1 %vm16321_vm0, %v20338_v29  ;;  %v9381_v8 = vshrl.u32 %v16150_v63, 16 }
 0x31c   :  { %v2865_v20 = vsel %vm2836_vm2, %v2862_v41, %v2864_v1 }
 0x31d   :  { %v18599_v18 = vpop.f32.mrb[12].mxu1 }
 0x31e   :  { %20528 = vst [vmem:[#allocation219_spill] sm:$0xff] %v18599_v18  ;;  %v18601_v24 = vpop.f32.mrb[13].mxu1 }
 0x31f   :  { %20529 = vst [vmem:[#allocation220_spill] sm:$0xff] %v18601_v24  ;;  %v14727_v60 = vpop.f32.mrb[14].mxu1 }
 0x320   :  { %v18611_v4 = vpop.f32.mrb[15].mxu1  ;;  %v16149_v60 = vld [vmem:[%s20305_s0 + $0x78] sm:$0xff]  }
 0x321   :  { %20530 = vst [vmem:[#allocation221_spill] sm:$0xff] %v18611_v4  ;;  %14281 = vmatmul.mubr.msk.bf16.gmra.mrb[48].mxu0 %vm373_vm1, %v2863_v47  ;;  %v9370_v47 = vsel %vm9227_vm6, %v9360_v52, %v9369_v3  ;;  %v9374_v4 = vrot.slane %v9372_v16, 2  ;;  %v2866_v6 = vrot.slane %v16149_v60, 1  ;;  %v9384_v52 = vshll.u32 %v16150_v63, 16 }
 0x322   :  { %14981 = vmatmul.mubr.msk.bf16.gmra.mrb[116].mxu1 %vm373_vm1, %v9361_v62  ;;  %14284 = vmatprep.mubr.msk.bf16.mxu0 %vm16321_vm0, %v20338_v29  ;;  %v9377_v62 = vrot.slane %v9375_v12, 3  ;;  %v9383_v60 = vrot.slane %v9381_v8, 2 }
 0x323   :  { %14984 = vmatprep.mubr.msk.bf16.mxu1 %vm16321_vm0, %v20338_v29  ;;  %v2867_v12 = vsel %vm2836_vm2, %v2864_v1, %v2866_v6  ;;  %v9386_v24 = vrot.slane %v9384_v52, 3  ;;  %v16182_v52 = vld [vmem:[%s20307_s2 + $0x118] sm:$0xff]  }
 0x324   :  { %v9378_v41 = vor.u32 %v9377_v62, %v9374_v4  ;;  %v16152_v4 = vld [vmem:[%s20305_s0 + $0xa0] sm:$0xff]   ;;  %15119 = vmatpush3.bf16.msra.mxu1 %v16182_v52 }
 0x325   :  { %v9387_v63 = vor.u32 %v9386_v24, %v9383_v60  ;;  %v9393_v8 = vshll.u32 %v16152_v4, 16 }
 0x326   :  { %v9379_v18 = vsel %vm9227_vm6, %v9369_v3, %v9378_v41  ;;  %v9390_v3 = vshrl.u32 %v16152_v4, 16 }
 0x327   :  { %v9388_v24 = vsel %vm9227_vm6, %v9378_v41, %v9387_v63  ;;  %v9395_v4 = vrot.slane %v9393_v8, 3 }
 0x328   :  { %v9392_v60 = vrot.slane %v9390_v3, 2 }
 0x329   :  { %14285 = vmatmul.mubr.msk.bf16.gmra.mrb[52].mxu0 %vm373_vm1, %v2865_v20  ;;  %v16151_v20 = vld [vmem:[%s20305_s0 + $0x80] sm:$0xff]  }
 0x32a   :  { %14985 = vmatmul.mubr.msk.bf16.gmra.mrb[120].mxu1 %vm373_vm1, %v9370_v47  ;;  %14288 = vmatprep.mubr.msk.bf16.mxu0 %vm16321_vm0, %v20338_v29  ;;  %v2868_v1 = vrot.slane %v16151_v20, 1  ;;  %v16153_v20 = vld [vmem:[%s20305_s0 + $0x88] sm:$0xff]   ;;  %v9396_v52 = vor.u32 %v9395_v4, %v9392_v60  ;;  %v16156_v60 = vld [vmem:[%s20305_s0 + $0xb0] sm:$0xff]  }
 0x32b   :  { %14988 = vmatprep.mubr.msk.bf16.mxu1 %vm16321_vm0, %v20338_v29 }
 0x32d   :  { %v18633_v43 = vpop.f32.mrb[16].mxu1 }
 0x32e   :  { %20531 = vst [vmem:[#allocation222_spill] sm:$0xff] %v18633_v43  ;;  %v14866_v16 = vpop.f32.mrb[17].mxu1 }
 0x32f   :  { %v18639_v47 = vpop.f32.mrb[18].mxu1 }
 0x330   :  { %20532 = vst [vmem:[#allocation223_spill] sm:$0xff] %v18639_v47  ;;  %v14867_v62 = vpop.f32.mrb[19].mxu1  ;;  %v16154_v47 = vld [vmem:[%s20305_s0 + $0xa8] sm:$0xff]  }
 0x331   :  { %14289 = vmatmul.mubr.msk.bf16.gmra.mrb[56].mxu0 %vm373_vm1, %v2867_v12  ;;  %v9399_v41 = vshrl.u32 %v16154_v47, 16  ;;  %v9402_v3 = vshll.u32 %v16154_v47, 16 }
 0x332   :  { %14989 = vmatmul.mubr.msk.bf16.gmra.mrb[124].mxu1 %vm373_vm1, %v9379_v18  ;;  %14292 = vmatprep.mubr.msk.bf16.mxu0 %vm16321_vm0, %v20338_v29  ;;  %v2869_v18 = vsel %vm2836_vm2, %v2866_v6, %v2868_v1  ;;  %v2870_v6 = vrot.slane %v16153_v20, 1 }
 0x333   :  { %14992 = vmatprep.mubr.msk.bf16.mxu1 %vm16321_vm0, %v20338_v29  ;;  %v9401_v20 = vrot.slane %v9399_v41, 2  ;;  %v9411_v41 = vshll.u32 %v16156_v60, 16 }
 0x335   :  { %v18654_v16 = vpop.f32.mrb[20].mxu1 }
 0x336   :  { %20533 = vst [vmem:[#allocation224_spill] sm:$0xff] %v18654_v16  ;;  %v14870_v12 = vpop.f32.mrb[21].mxu1  ;;  %v9404_v16 = vrot.slane %v9402_v3, 3 }
 0x337   :  { %v18660_v62 = vpop.f32.mrb[22].mxu1 }
 0x338   :  { %20534 = vst [vmem:[#allocation225_spill] sm:$0xff] %v18660_v62  ;;  %v14871_v43 = vpop.f32.mrb[23].mxu1  ;;  %v2871_v62 = vsel %vm2836_vm2, %v2868_v1, %v2870_v6  ;;  %v9405_v4 = vor.u32 %v9404_v16, %v9401_v20  ;;  %v16158_v16 = vld [vmem:[%s20305_s0 + $0xb8] sm:$0xff]  }
 0x339   :  { %14293 = vmatmul.mubr.msk.bf16.gmra.mrb[60].mxu0 %vm373_vm1, %v2869_v18  ;;  %v16155_v43 = vld [vmem:[%s20305_s0 + $0x90] sm:$0xff]  }
 0x33a   :  { %14993 = vmatmul.mubr.msk.bf16.gmra.mrb[128].mxu1 %vm373_vm1, %v9388_v24  ;;  %14296 = vmatprep.mubr.msk.bf16.mxu0 %vm16321_vm0, %v20338_v29  ;;  %v9397_v24 = vsel %vm9227_vm6, %v9387_v63, %v9396_v52  ;;  %v2872_v1 = vrot.slane %v16155_v43, 1  ;;  %v9408_v63 = vshrl.u32 %v16156_v60, 16 }
 0x33b   :  { %14996 = vmatprep.mubr.msk.bf16.mxu1 %vm16321_vm0, %v20338_v29 }
 0x33c   :  { %v9410_v43 = vrot.slane %v9408_v63, 2  ;;  %v9420_v63 = vshll.u32 %v16158_v16, 16 }
 0x33d   :  { %v18672_v8 = vpop.f32.mrb[24].mxu1 }
 0x33e   :  { %20535 = vst [vmem:[#allocation226_spill] sm:$0xff] %v18672_v8  ;;  %v14874_v12 = vpop.f32.mrb[25].mxu1  ;;  %v9413_v8 = vrot.slane %v9411_v41, 3 }
 0x33f   :  { %v18678_v18 = vpop.f32.mrb[26].mxu1 }
 0x340   :  { %20536 = vst [vmem:[#allocation227_spill] sm:$0xff] %v18678_v18  ;;  %v14875_v47 = vpop.f32.mrb[27].mxu1  ;;  %v2873_v18 = vsel %vm2836_vm2, %v2870_v6, %v2872_v1  ;;  %v9414_v60 = vor.u32 %v9413_v8, %v9410_v43  ;;  %v16160_v8 = vld [vmem:[%s20305_s0 + $0xc0] sm:$0xff]  }
 0x341   :  { %14297 = vmatmul.mubr.msk.bf16.gmra.mrb[64].mxu0 %vm373_vm1, %v2871_v62  ;;  %v16157_v62 = vld [vmem:[%s20305_s0 + $0x98] sm:$0xff]   ;;  %v9406_v47 = vsel %vm9227_vm6, %v9396_v52, %v9405_v4  ;;  %v9417_v52 = vshrl.u32 %v16158_v16, 16 }
 0x342   :  { %14997 = vmatmul.mubr.msk.bf16.gmra.mrb[132].mxu1 %vm373_vm1, %v9397_v24  ;;  %14300 = vmatprep.mubr.msk.bf16.mxu0 %vm16321_vm0, %v20338_v29  ;;  %v2874_v6 = vrot.slane %v16157_v62, 1 }
 0x343   :  { %15000 = vmatprep.mubr.msk.bf16.mxu1 %vm16321_vm0, %v20338_v29  ;;  %v9419_v62 = vrot.slane %v9417_v52, 2  ;;  %v9429_v52 = vshll.u32 %v16160_v8, 16 }
 0x345   :  { %v18690_v3 = vpop.f32.mrb[28].mxu1 }
 0x346   :  { %20537 = vst [vmem:[#allocation228_spill] sm:$0xff] %v18690_v3  ;;  %v14878_v12 = vpop.f32.mrb[29].mxu1  ;;  %v9422_v3 = vrot.slane %v9420_v63, 3 }
 0x347   :  { %v18696_v24 = vpop.f32.mrb[30].mxu1 }
 0x348   :  { %20538 = vst [vmem:[#allocation229_spill] sm:$0xff] %v18696_v24  ;;  %v14879_v20 = vpop.f32.mrb[31].mxu1  ;;  %v2875_v24 = vsel %vm2836_vm2, %v2872_v1, %v2874_v6  ;;  %v9423_v16 = vor.u32 %v9422_v3, %v9419_v62  ;;  %v16163_v3 = vld [vmem:[%s20305_s0 + $0xc8] sm:$0xff]  }
 0x349   :  { %14301 = vmatmul.mubr.msk.bf16.gmra.mrb[68].mxu0 %vm373_vm1, %v2873_v18  ;;  %v16159_v18 = vld [vmem:[%s20305_s0 + $0xa0] sm:$0xff]   ;;  %v9415_v20 = vsel %vm9227_vm6, %v9405_v4, %v9414_v60  ;;  %v9426_v4 = vshrl.u32 %v16160_v8, 16 }
 0x34a   :  { %15001 = vmatmul.mubr.msk.bf16.gmra.mrb[136].mxu1 %vm373_vm1, %v9406_v47  ;;  %14304 = vmatprep.mubr.msk.bf16.mxu0 %vm16321_vm0, %v20338_v29  ;;  %v2876_v1 = vrot.slane %v16159_v18, 1 }
 0x34b   :  { %15004 = vmatprep.mubr.msk.bf16.mxu1 %vm16321_vm0, %v20338_v29  ;;  %v9428_v18 = vrot.slane %v9426_v4, 2  ;;  %v9438_v4 = vshll.u32 %v16163_v3, 16 }
 0x34d   :  { %v18708_v41 = vpop.f32.mrb[32].mxu1 }
 0x34e   :  { %20539 = vst [vmem:[#allocation230_spill] sm:$0xff] %v18708_v41  ;;  %v14882_v12 = vpop.f32.mrb[33].mxu1  ;;  %v9431_v41 = vrot.slane %v9429_v52, 3 }
 0x34f   :  { %v18714_v47 = vpop.f32.mrb[34].mxu1 }
 0x350   :  { %20540 = vst [vmem:[#allocation231_spill] sm:$0xff] %v18714_v47  ;;  %v14883_v43 = vpop.f32.mrb[35].mxu1  ;;  %v2877_v47 = vsel %vm2836_vm2, %v2874_v6, %v2876_v1  ;;  %v9432_v8 = vor.u32 %v9431_v41, %v9428_v18  ;;  %v16165_v41 = vld [vmem:[%s20305_s0 + $0xd0] sm:$0xff]  }
 0x351   :  { %14305 = vmatmul.mubr.msk.bf16.gmra.mrb[72].mxu0 %vm373_vm1, %v2875_v24  ;;  %v16162_v24 = vld [vmem:[%s20305_s0 + $0xa8] sm:$0xff]   ;;  %v9424_v43 = vsel %vm9227_vm6, %v9414_v60, %v9423_v16  ;;  %v9435_v60 = vshrl.u32 %v16163_v3, 16 }
 0x352   :  { %15005 = vmatmul.mubr.msk.bf16.gmra.mrb[140].mxu1 %vm373_vm1, %v9415_v20  ;;  %14308 = vmatprep.mubr.msk.bf16.mxu0 %vm16321_vm0, %v20338_v29  ;;  %v2878_v6 = vrot.slane %v16162_v24, 1 }
 0x353   :  { %15008 = vmatprep.mubr.msk.bf16.mxu1 %vm16321_vm0, %v20338_v29  ;;  %v9437_v24 = vrot.slane %v9435_v60, 2  ;;  %v9447_v60 = vshll.u32 %v16165_v41, 16 }
 0x355   :  { %v18726_v63 = vpop.f32.mrb[36].mxu1 }
 0x356   :  { %20541 = vst [vmem:[#allocation232_spill] sm:$0xff] %v18726_v63  ;;  %v14886_v12 = vpop.f32.mrb[37].mxu1  ;;  %v9440_v63 = vrot.slane %v9438_v4, 3 }
 0x357   :  { %v18732_v20 = vpop.f32.mrb[38].mxu1 }
 0x358   :  { %20542 = vst [vmem:[#allocation233_spill] sm:$0xff] %v18732_v20  ;;  %v14887_v62 = vpop.f32.mrb[39].mxu1  ;;  %v2879_v20 = vsel %vm2836_vm2, %v2876_v1, %v2878_v6  ;;  %v9441_v3 = vor.u32 %v9440_v63, %v9437_v24  ;;  %v16167_v63 = vld [vmem:[%s20305_s0 + $0xd8] sm:$0xff]  }
 0x359   :  { %14309 = vmatmul.mubr.msk.bf16.gmra.mrb[76].mxu0 %vm373_vm1, %v2877_v47  ;;  %v16164_v47 = vld [vmem:[%s20305_s0 + $0xb0] sm:$0xff]   ;;  %v9433_v62 = vsel %vm9227_vm6, %v9423_v16, %v9432_v8  ;;  %v9444_v16 = vshrl.u32 %v16165_v41, 16 }
 0x35a   :  { %15009 = vmatmul.mubr.msk.bf16.gmra.mrb[144].mxu1 %vm373_vm1, %v9424_v43  ;;  %14312 = vmatprep.mubr.msk.bf16.mxu0 %vm16321_vm0, %v20338_v29  ;;  %v2880_v1 = vrot.slane %v16164_v47, 1 }
 0x35b   :  { %15012 = vmatprep.mubr.msk.bf16.mxu1 %vm16321_vm0, %v20338_v29  ;;  %v9446_v47 = vrot.slane %v9444_v16, 2  ;;  %v9456_v16 = vshll.u32 %v16167_v63, 16 }
 0x35d   :  { %v18744_v52 = vpop.f32.mrb[40].mxu1 }
 0x35e   :  { %20543 = vst [vmem:[#allocation234_spill] sm:$0xff] %v18744_v52  ;;  %v14890_v12 = vpop.f32.mrb[41].mxu1  ;;  %v9449_v52 = vrot.slane %v9447_v60, 3 }
 0x35f   :  { %v18750_v43 = vpop.f32.mrb[42].mxu1 }
 0x360   :  { %20544 = vst [vmem:[#allocation235_spill] sm:$0xff] %v18750_v43  ;;  %v14891_v18 = vpop.f32.mrb[43].mxu1  ;;  %v2881_v43 = vsel %vm2836_vm2, %v2878_v6, %v2880_v1  ;;  %v9450_v41 = vor.u32 %v9449_v52, %v9446_v47  ;;  %v16169_v52 = vld [vmem:[%s20305_s0 + $0xe0] sm:$0xff]  }
 0x361   :  { %14313 = vmatmul.mubr.msk.bf16.gmra.mrb[80].mxu0 %vm373_vm1, %v2879_v20  ;;  %v16166_v20 = vld [vmem:[%s20305_s0 + $0xb8] sm:$0xff]   ;;  %v9442_v18 = vsel %vm9227_vm6, %v9432_v8, %v9441_v3  ;;  %v9453_v8 = vshrl.u32 %v16167_v63, 16 }
 0x362   :  { %15013 = vmatmul.mubr.msk.bf16.gmra.mrb[148].mxu1 %vm373_vm1, %v9433_v62  ;;  %14316 = vmatprep.mubr.msk.bf16.mxu0 %vm16321_vm0, %v20338_v29  ;;  %v2882_v6 = vrot.slane %v16166_v20, 1  ;;  %v9458_v20 = vrot.slane %v9456_v16, 3 }
 0x363   :  { %15016 = vmatprep.mubr.msk.bf16.mxu1 %vm16321_vm0, %v20338_v29 }
 0x365   :  { %v18762_v4 = vpop.f32.mrb[44].mxu1 }
 0x366   :  { %20545 = vst [vmem:[#allocation236_spill] sm:$0xff] %v18762_v4  ;;  %v14894_v12 = vpop.f32.mrb[45].mxu1  ;;  %v9455_v4 = vrot.slane %v9453_v8, 2  ;;  %v9465_v8 = vshll.u32 %v16169_v52, 16 }
 0x367   :  { %v18768_v62 = vpop.f32.mrb[46].mxu1 }
 0x368   :  { %20546 = vst [vmem:[#allocation237_spill] sm:$0xff] %v18768_v62  ;;  %v14895_v24 = vpop.f32.mrb[47].mxu1  ;;  %v2883_v62 = vsel %vm2836_vm2, %v2880_v1, %v2882_v6  ;;  %v9459_v63 = vor.u32 %v9458_v20, %v9455_v4  ;;  %v16171_v4 = vld [vmem:[%s20305_s0 + $0xe8] sm:$0xff]  }
 0x369   :  { %14317 = vmatmul.mubr.msk.bf16.gmra.mrb[84].mxu0 %vm373_vm1, %v2881_v43  ;;  %v16168_v43 = vld [vmem:[%s20305_s0 + $0xc0] sm:$0xff]   ;;  %v9451_v24 = vsel %vm9227_vm6, %v9441_v3, %v9450_v41  ;;  %v9462_v3 = vshrl.u32 %v16169_v52, 16 }
 0x36a   :  { %15017 = vmatmul.mubr.msk.bf16.gmra.mrb[152].mxu1 %vm373_vm1, %v9442_v18  ;;  %14320 = vmatprep.mubr.msk.bf16.mxu0 %vm16321_vm0, %v20338_v29  ;;  %v2884_v1 = vrot.slane %v16168_v43, 1 }
 0x36b   :  { %15020 = vmatprep.mubr.msk.bf16.mxu1 %vm16321_vm0, %v20338_v29  ;;  %v9464_v43 = vrot.slane %v9462_v3, 2  ;;  %v9474_v3 = vshll.u32 %v16171_v4, 16 }
 0x36d   :  { %v18780_v60 = vpop.f32.mrb[48].mxu1 }
 0x36e   :  { %20547 = vst [vmem:[#allocation238_spill] sm:$0xff] %v18780_v60  ;;  %v14898_v12 = vpop.f32.mrb[49].mxu1  ;;  %v9467_v60 = vrot.slane %v9465_v8, 3 }
 0x36f   :  { %v8591_v18 = vpop.f32.mrb[50].mxu1 }
 0x370   :  { %v14899_v47 = vpop.f32.mrb[51].mxu1  ;;  %v2885_v18 = vsel %vm2836_vm2, %v2882_v6, %v2884_v1  ;;  %v9468_v52 = vor.u32 %v9467_v60, %v9464_v43  ;;  %v16173_v60 = vld [vmem:[%s20305_s0 + $0xf0] sm:$0xff]  }
 0x371   :  { %14321 = vmatmul.mubr.msk.bf16.gmra.mrb[88].mxu0 %vm373_vm1, %v2883_v62  ;;  %v16170_v62 = vld [vmem:[%s20305_s0 + $0xc8] sm:$0xff]   ;;  %v9460_v47 = vsel %vm9227_vm6, %v9450_v41, %v9459_v63  ;;  %v9471_v41 = vshrl.u32 %v16171_v4, 16 }
 0x372   :  { %15021 = vmatmul.mubr.msk.bf16.gmra.mrb[156].mxu1 %vm373_vm1, %v9451_v24  ;;  %14324 = vmatprep.mubr.msk.bf16.mxu0 %vm16321_vm0, %v20338_v29  ;;  %v2886_v6 = vrot.slane %v16170_v62, 1 }
 0x373   :  { %15024 = vmatprep.mubr.msk.bf16.mxu1 %vm16321_vm0, %v20338_v29  ;;  %v9473_v62 = vrot.slane %v9471_v41, 2  ;;  %v9483_v41 = vshll.u32 %v16173_v60, 16 }
 0x375   :  { %v18796_v16 = vpop.f32.mrb[52].mxu1 }
 0x376   :  { %20548 = vst [vmem:[#allocation239_spill] sm:$0xff] %v18796_v16  ;;  %v14910_v12 = vpop.f32.mrb[53].mxu1  ;;  %v9476_v16 = vrot.slane %v9474_v3, 3 }
 0x377   :  { %v18802_v24 = vpop.f32.mrb[54].mxu1 }
 0x378   :  { %20549 = vst [vmem:[#allocation240_spill] sm:$0xff] %v18802_v24  ;;  %v14911_v20 = vpop.f32.mrb[55].mxu1  ;;  %v2887_v24 = vsel %vm2836_vm2, %v2884_v1, %v2886_v6  ;;  %v9477_v4 = vor.u32 %v9476_v16, %v9473_v62  ;;  %v9485_v16 = vrot.slane %v9483_v41, 3 }
 0x379   :  { %14325 = vmatmul.mubr.msk.bf16.gmra.mrb[92].mxu0 %vm373_vm1, %v2885_v18  ;;  %v16172_v18 = vld [vmem:[%s20305_s0 + $0xd0] sm:$0xff]   ;;  %v9469_v20 = vsel %vm9227_vm6, %v9459_v63, %v9468_v52  ;;  %v9480_v63 = vshrl.u32 %v16173_v60, 16 }
 0x37a   :  { %15025 = vmatmul.mubr.msk.bf16.gmra.mrb[160].mxu1 %vm373_vm1, %v9460_v47  ;;  %14328 = vmatprep.mubr.msk.bf16.mxu0 %vm16321_vm0, %v20338_v29  ;;  %v2888_v1 = vrot.slane %v16172_v18, 1 }
 0x37b   :  { %15028 = vmatprep.mubr.msk.bf16.mxu1 %vm16321_vm0, %v20338_v29 }
 0x37d   :  { %v18814_v8 = vpop.f32.mrb[56].mxu1 }
 0x37e   :  { %20550 = vst [vmem:[#allocation241_spill] sm:$0xff] %v18814_v8  ;;  %v14914_v12 = vpop.f32.mrb[57].mxu1  ;;  %v9482_v8 = vrot.slane %v9480_v63, 2 }
 0x37f   :  { %v18820_v47 = vpop.f32.mrb[58].mxu1 }
 0x380   :  { %20551 = vst [vmem:[#allocation242_spill] sm:$0xff] %v18820_v47  ;;  %v14915_v43 = vpop.f32.mrb[59].mxu1  ;;  %v2889_v47 = vsel %vm2836_vm2, %v2886_v6, %v2888_v1 }
 0x381   :  { %14329 = vmatmul.mubr.msk.bf16.gmra.mrb[96].mxu0 %vm373_vm1, %v2887_v24  ;;  %v16174_v24 = vld [vmem:[%s20305_s0 + $0xd8] sm:$0xff]   ;;  %v9478_v43 = vsel %vm9227_vm6, %v9468_v52, %v9477_v4 }
 0x382   :  { %15029 = vmatmul.mubr.msk.bf16.gmra.mrb[164].mxu1 %vm373_vm1, %v9469_v20  ;;  %14332 = vmatprep.mubr.msk.bf16.mxu0 %vm16321_vm0, %v20338_v29  ;;  %v16175_v20 = vld [vmem:[%s20305_s0 + $0xf8] sm:$0xff]   ;;  %v2890_v6 = vrot.slane %v16174_v24, 1  ;;  %v16176_v24 = vld [vmem:[%s20305_s0 + $0xe0] sm:$0xff]  }
 0x383   :  { %15032 = vmatprep.mubr.msk.bf16.mxu1 %vm16321_vm0, %v20338_v29  ;;  %v9489_v60 = vshrl.u32 %v16175_v20, 16 }
 0x385   :  { %v18832_v3 = vpop.f32.mrb[60].mxu1 }
 0x386   :  { %20552 = vst [vmem:[#allocation243_spill] sm:$0xff] %v18832_v3  ;;  %v14918_v12 = vpop.f32.mrb[61].mxu1  ;;  %v9486_v3 = vor.u32 %v9485_v16, %v9482_v8 }
 0x387   :  { %v8841_v18 = vpop.f32.mrb[62].mxu1  ;;  %v9492_v12 = vshll.u32 %v16175_v20, 16 }
 0x388   :  { %v14919_v62 = vpop.f32.mrb[63].mxu1  ;;  %v1056_v18 = vld [vmem:[#allocation2 + $0x2a0] sm:$0x7f]  ;;  %v9487_v8 = vsel %vm9227_vm6, %v9477_v4, %v9486_v3 }
 0x389   :  { %14333 = vmatmul.mubr.msk.bf16.gmra.mrb[100].mxu0 %vm373_vm1, %v2889_v47  ;;  %v16177_v47 = vld [vmem:[%s20305_s0 + $0x100] sm:$0xff]   ;;  %v9491_v62 = vrot.slane %v9489_v60, 2  ;;  %v9494_v26 = vrot.slane %v9492_v12, 3 }
 0x38a   :  { %15033 = vmatmul.mubr.msk.bf16.gmra.mrb[168].mxu1 %vm373_vm1, %v9478_v43  ;;  %14336 = vmatprep.mubr.msk.bf16.mxu0 %vm16321_vm0, %v20338_v29  ;;  %v2891_v43 = vsel %vm2836_vm2, %v2888_v1, %v2890_v6  ;;  %v2892_v1 = vrot.slane %v16176_v24, 1  ;;  %v9501_v60 = vshll.u32 %v16177_v47, 16  ;;  %v16178_v24 = vld [vmem:[%s20305_s0 + $0xe8] sm:$0xff]  }
 0x38b   :  { %15036 = vmatprep.mubr.msk.bf16.mxu1 %vm16321_vm0, %v20338_v29  ;;  %v9495_v16 = vor.u32 %v9494_v26, %v9491_v62 }
 0x38c   :  { %v2222_v13 = vpop.f32.mrb[172].mxu0  ;;  %v2893_v62 = vsel %vm2836_vm2, %v2890_v6, %v2892_v1 }
 0x38d   :  { %v2312_v52 = vadd.f32 %v2222_v13, %v1056_v18  ;;  %v14210_v63 = vpop.f32.mrb[173].mxu0  ;;  %v9498_v13 = vshrl.u32 %v16177_v47, 16  ;;  %v9496_v26 = vsel %vm9227_vm6, %v9486_v3, %v9495_v16  ;;  %v16179_v47 = vld [vmem:[%s20305_s0 + $0x108] sm:$0xff]   ;;  %v9503_v3 = vrot.slane %v9501_v60, 3 }
 0x38e   :  { %v2225_v41 = vpop.f32.mrb[174].mxu0 }
 0x38f   :  { %2397 = vst [vmem:[#allocation2 + $0x2a0] sm:$0x7f] %v2312_v52  ;;  %v14211_v20 = vpop.f32.mrb[175].mxu0  ;;  %v9500_v63 = vrot.slane %v9498_v13, 2 }
 0x391   :  { %14337 = vmatmul.mubr.msk.bf16.gmra.mrb[104].mxu0 %vm373_vm1, %v2891_v43 }
 0x392   :  { %15037 = vmatmul.mubr.msk.bf16.gmra.mrb[172].mxu1 %vm373_vm1, %v9487_v8  ;;  %14340 = vmatprep.mubr.msk.bf16.mxu0 %vm16321_vm0, %v20338_v29 }
 0x393   :  { %15040 = vmatprep.mubr.msk.bf16.mxu1 %vm16321_vm0, %v20338_v29 }
 0x394   :  { %v3109_v12 = vpop.f32.mrb[0].mxu0 }
 0x395   :  { %v18862_v18 = vpop.f32.mrb[68].mxu1  ;;  %v4651_v4 = vadd.f32 %v16939_v34, %v3109_v12  ;;  %v14234_v52 = vpop.f32.mrb[1].mxu0 }
 0x396   :  { %v3621_v41 = vld [vmem:[#allocation2 + $0x2a6] sm:$0x3]  ;;  %v14934_v43 = vpop.f32.mrb[69].mxu1  ;;  %v3112_v20 = vpop.f32.mrb[2].mxu0 }
 0x397   :  { %v3666_v8 = vadd.f32 %v16893_v55, %v3621_v41  ;;  %v6169_v34 = vadd.f32 %v17536_v2, %v4651_v4  ;;  %v18875_v13 = vpop.f32.mrb[70].mxu1  ;;  %v4652_v12 = vadd.f32 %v16947_v42, %v3112_v20  ;;  %v14235_v52 = vpop.f32.mrb[3].mxu0  ;;  %v2894_v55 = vrot.slane %v16178_v24, 1  ;;  %v16180_v24 = vld [vmem:[%s20305_s0 + $0xf0] sm:$0xff]  }
 0x398   :  { %v14935_v43 = vpop.f32.mrb[71].mxu1  ;;  %v9507_v2 = vshrl.u32 %v16179_v47, 16  ;;  %v9510_v4 = vshll.u32 %v16179_v47, 16  ;;  %v9504_v42 = vor.u32 %v9503_v3, %v9500_v63 }
 0x399   :  { %3667 = vst [vmem:[#allocation2 + $0x2a6] sm:$0x3] %v3666_v8  ;;  %6252 = vst [vmem:[#allocation2] sm:$0xff] %v6169_v34  ;;  %v6170_v6 = vadd.f32 %v17545_v45, %v4652_v12  ;;  %14341 = vmatmul.mubr.msk.bf16.gmra.mrb[108].mxu0 %vm373_vm1, %v2893_v62  ;;  %v2895_v62 = vsel %vm2836_vm2, %v2892_v1, %v2894_v55 }
 0x39a   :  { %15041 = vmatmul.mubr.msk.bf16.gmra.mrb[176].mxu1 %vm373_vm1, %v9496_v26  ;;  %14344 = vmatprep.mubr.msk.bf16.mxu0 %vm16321_vm0, %v20338_v29  ;;  %v9509_v8 = vrot.slane %v9507_v2, 2  ;;  %v9512_v26 = vrot.slane %v9510_v4, 3  ;;  %v9505_v12 = vsel %vm9227_vm6, %v9495_v16, %v9504_v42 }
 0x39b   :  { %6253 = vst [vmem:[#allocation2 + $0x8] sm:$0xff] %v6170_v6  ;;  %15044 = vmatprep.mubr.msk.bf16.mxu1 %vm16321_vm0, %v20338_v29 }
 0x39c   :  { %v3117_v60 = vpop.f32.mrb[4].mxu0 }
 0x39d   :  { %v4653_v41 = vadd.f32 %v16937_v32, %v3117_v60  ;;  %v14238_v20 = vpop.f32.mrb[5].mxu0  ;;  %v16181_v32 = vld [vmem:[%s20305_s0 + $0x110] sm:$0xff]  }
 0x39e   :  { %v3120_v45 = vpop.f32.mrb[6].mxu0  ;;  %v9516_v16 = vshrl.u32 %v16181_v32, 16  ;;  %v9519_v43 = vshll.u32 %v16181_v32, 16 }
 0x39f   :  { %v6171_v47 = vadd.f32 %v17534_v61, %v4653_v41  ;;  %v4654_v34 = vadd.f32 %v16941_v38, %v3120_v45  ;;  %v14239_v63 = vpop.f32.mrb[7].mxu0  ;;  %v9513_v61 = vor.u32 %v9512_v26, %v9509_v8  ;;  %v2896_v38 = vrot.slane %v16180_v24, 1  ;;  %v16183_v45 = vld [vmem:[%s20305_s0 + $0xf8] sm:$0xff]  }
 0x3a0   :  { %v4819_v52 = vld [vmem:[#allocation2 + $0x2a6] sm:$0x3] }
 0x3a1   :  { %v4887_v1 = vadd.f32 %v17492_v17, %v4819_v52  ;;  %6254 = vst [vmem:[#allocation2 + $0x10] sm:$0xff] %v6171_v47  ;;  %v6172_v3 = vadd.f32 %v17539_v37, %v4654_v34  ;;  %14345 = vmatmul.mubr.msk.bf16.gmra.mrb[112].mxu0 %vm373_vm1, %v2895_v62  ;;  %v9514_v41 = vsel %vm9227_vm6, %v9504_v42, %v9513_v61  ;;  %v16184_v62 = vld [vmem:[%s20305_s0 + $0x118] sm:$0xff]   ;;  %v9518_v47 = vrot.slane %v9516_v16, 2 }
 0x3a2   :  { %15045 = vmatmul.mubr.msk.bf16.gmra.mrb[180].mxu1 %vm373_vm1, %v9505_v12  ;;  %14348 = vmatprep.mubr.msk.bf16.mxu0 %vm16321_vm0, %v20338_v29  ;;  %v2897_v20 = vsel %vm2836_vm2, %v2894_v55, %v2896_v38  ;;  %v9521_v34 = vrot.slane %v9519_v43, 3  ;;  %v2898_v12 = vrot.slane %v16183_v45, 1  ;;  %v9528_v63 = vshll.u32 %v16184_v62, 16 }
 0x3a3   :  { %4890 = vst [vmem:[#allocation2 + $0x2a6] sm:$0x3] %v4887_v1  ;;  %6255 = vst [vmem:[#allocation2 + $0x18] sm:$0xff] %v6172_v3  ;;  %15048 = vmatprep.mubr.msk.bf16.mxu1 %vm16321_vm0, %v20338_v29 }
 0x3a4   :  { %v3125_v17 = vpop.f32.mrb[8].mxu0  ;;  %v2899_v3 = vsel %vm2836_vm2, %v2896_v38, %v2898_v12  ;;  %v9530_v43 = vrot.slane %v9528_v63, 3 }
 0x3a5   :  { %v18904_v6 = vpop.f32.mrb[76].mxu1  ;;  %v4655_v37 = vadd.f32 %v16960_v50, %v3125_v17  ;;  %v14242_v2 = vpop.f32.mrb[9].mxu0  ;;  %v16185_v17 = vld [vmem:[%s20305_s0 + $0x100] sm:$0xff]  }
 0x3a6   :  { %v14942_v4 = vpop.f32.mrb[77].mxu1  ;;  %v3128_v60 = vpop.f32.mrb[10].mxu0 }
 0x3a7   :  { %v6173_v8 = vadd.f32 %v17561_v57, %v4655_v37  ;;  %v18916_v26 = vpop.f32.mrb[78].mxu1  ;;  %v4656_v50 = vadd.f32 %v16971_v58, %v3128_v60  ;;  %v14243_v24 = vpop.f32.mrb[11].mxu0  ;;  %v9525_v57 = vshrl.u32 %v16184_v62, 16  ;;  %v9522_v58 = vor.u32 %v9521_v34, %v9518_v47  ;;  %v16187_v34 = vld [vmem:[%s20305_s0 + $0x108] sm:$0xff]  }
 0x3a8   :  { %v14943_v42 = vpop.f32.mrb[79].mxu1 }
 0x3a9   :  { %6256 = vst [vmem:[#allocation2 + $0x20] sm:$0xff] %v6173_v8  ;;  %v6174_v55 = vadd.f32 %v17570_v54, %v4656_v50  ;;  %14349 = vmatmul.mubr.msk.bf16.gmra.mrb[116].mxu0 %vm373_vm1, %v2897_v20  ;;  %v9527_v16 = vrot.slane %v9525_v57, 2  ;;  %v9523_v4 = vsel %vm9227_vm6, %v9513_v61, %v9522_v58  ;;  %v16188_v42 = vld [vmem:[%s20305_s0 + $0x128] sm:$0xff]  }
 0x3aa   :  { %15049 = vmatmul.mubr.msk.bf16.gmra.mrb[184].mxu1 %vm373_vm1, %v9514_v41  ;;  %14352 = vmatprep.mubr.msk.bf16.mxu0 %vm16321_vm0, %v20338_v29 }
 0x3ab   :  { %6257 = vst [vmem:[#allocation2 + $0x28] sm:$0xff] %v6174_v55  ;;  %15052 = vmatprep.mubr.msk.bf16.mxu1 %vm16321_vm0, %v20338_v29  ;;  %v9531_v41 = vor.u32 %v9530_v43, %v9527_v16 }
 0x3ac   :  { %v3133_v32 = vpop.f32.mrb[12].mxu0 }
 0x3ad   :  { %v4657_v52 = vadd.f32 %v16958_v48, %v3133_v32  ;;  %v14246_v1 = vpop.f32.mrb[13].mxu0  ;;  %v16186_v48 = vld [vmem:[%s20305_s0 + $0x120] sm:$0xff]   ;;  %v9532_v24 = vsel %vm9227_vm6, %v9522_v58, %v9531_v41 }
 0x3ae   :  { %v3136_v54 = vpop.f32.mrb[14].mxu0  ;;  %v9537_v61 = vshll.u32 %v16186_v48, 16  ;;  %v2902_v1 = vrot.slane %v16187_v34, 1  ;;  %v16191_v34 = vld [vmem:[%s20305_s0 + $0x118] sm:$0xff]  }
 0x3af   :  { %v6175_v37 = vadd.f32 %v17559_v19, %v4657_v52  ;;  %v4658_v2 = vadd.f32 %v16962_v51, %v3136_v54  ;;  %v14247_v60 = vpop.f32.mrb[15].mxu0  ;;  %v2900_v19 = vrot.slane %v16185_v17, 1  ;;  %v9534_v51 = vshrl.u32 %v16186_v48, 16 }
 0x3b0   :  { %v9539_v52 = vrot.slane %v9537_v61, 3  ;;  %v9546_v54 = vshll.u32 %v16188_v42, 16 }
 0x3b1   :  { %6258 = vst [vmem:[#allocation2 + $0x30] sm:$0xff] %v6175_v37  ;;  %v6176_v38 = vadd.f32 %v17564_v27, %v4658_v2  ;;  %14353 = vmatmul.mubr.msk.bf16.gmra.mrb[120].mxu0 %vm373_vm1, %v2899_v3  ;;  %v2901_v47 = vsel %vm2836_vm2, %v2898_v12, %v2900_v19  ;;  %v9536_v32 = vrot.slane %v9534_v51, 2  ;;  %v2903_v17 = vsel %vm2836_vm2, %v2900_v19, %v2902_v1 }
 0x3b2   :  { %15053 = vmatmul.mubr.msk.bf16.gmra.mrb[188].mxu1 %vm373_vm1, %v9523_v4  ;;  %14356 = vmatprep.mubr.msk.bf16.mxu0 %vm16321_vm0, %v20338_v29  ;;  %v9548_v2 = vrot.slane %v9546_v54, 3  ;;  %v16189_v4 = vld [vmem:[%s20305_s0 + $0x110] sm:$0xff]  }
 0x3b3   :  { %6259 = vst [vmem:[#allocation2 + $0x38] sm:$0xff] %v6176_v38  ;;  %15056 = vmatprep.mubr.msk.bf16.mxu1 %vm16321_vm0, %v20338_v29 }
 0x3b4   :  { %v3141_v20 = vpop.f32.mrb[16].mxu0 }
 0x3b5   :  { %v18944_v45 = vpop.f32.mrb[84].mxu1  ;;  %v4659_v27 = vadd.f32 %v16987_v9, %v3141_v20  ;;  %v14250_v62 = vpop.f32.mrb[17].mxu0 }
 0x3b6   :  { %v14950_v8 = vpop.f32.mrb[85].mxu1  ;;  %v3144_v50 = vpop.f32.mrb[18].mxu0 }
 0x3b7   :  { %v6177_v55 = vadd.f32 %v17586_v44, %v4659_v27  ;;  %v18956_v57 = vpop.f32.mrb[86].mxu1  ;;  %v4660_v9 = vadd.f32 %v16995_v14, %v3144_v50  ;;  %v14251_v63 = vpop.f32.mrb[19].mxu0  ;;  %v9543_v44 = vshrl.u32 %v16188_v42, 16  ;;  %v9540_v14 = vor.u32 %v9539_v52, %v9536_v32  ;;  %v16192_v42 = vld [vmem:[%s20305_s0 + $0x138] sm:$0xff]  }
 0x3b8   :  { %v14951_v58 = vpop.f32.mrb[87].mxu1 }
 0x3b9   :  { %6260 = vst [vmem:[#allocation2 + $0x40] sm:$0xff] %v6177_v55  ;;  %v6178_v12 = vadd.f32 %v17595_v10, %v4660_v9  ;;  %14357 = vmatmul.mubr.msk.bf16.gmra.mrb[124].mxu0 %vm373_vm1, %v2901_v47  ;;  %v9545_v37 = vrot.slane %v9543_v44, 2  ;;  %v9541_v38 = vsel %vm9227_vm6, %v9531_v41, %v9540_v14  ;;  %v9564_v44 = vshll.u32 %v16192_v42, 16 }
 0x3ba   :  { %15057 = vmatmul.mubr.msk.bf16.gmra.mrb[192].mxu1 %vm373_vm1, %v9532_v24  ;;  %14360 = vmatprep.mubr.msk.bf16.mxu0 %vm16321_vm0, %v20338_v29 }
 0x3bb   :  { %6261 = vst [vmem:[#allocation2 + $0x48] sm:$0xff] %v6178_v12  ;;  %15060 = vmatprep.mubr.msk.bf16.mxu1 %vm16321_vm0, %v20338_v29  ;;  %v9549_v61 = vor.u32 %v9548_v2, %v9545_v37 }
 0x3bc   :  { %v3149_v3 = vpop.f32.mrb[20].mxu0 }
 0x3bd   :  { %v4661_v16 = vadd.f32 %v16982_v7, %v3149_v3  ;;  %v14254_v43 = vpop.f32.mrb[21].mxu0  ;;  %v16190_v7 = vld [vmem:[%s20305_s0 + $0x130] sm:$0xff]   ;;  %v9550_v24 = vsel %vm9227_vm6, %v9540_v14, %v9549_v61 }
 0x3be   :  { %v3152_v10 = vpop.f32.mrb[22].mxu0  ;;  %v9555_v41 = vshll.u32 %v16190_v7, 16 }
 0x3bf   :  { %v6179_v60 = vadd.f32 %v17584_v5, %v4661_v16  ;;  %v4662_v48 = vadd.f32 %v16989_v11, %v3152_v10  ;;  %v14255_v51 = vpop.f32.mrb[23].mxu0  ;;  %v2904_v5 = vrot.slane %v16189_v4, 1  ;;  %v9552_v11 = vshrl.u32 %v16190_v7, 16 }
 0x3c0   :  { %v9557_v52 = vrot.slane %v9555_v41, 3  ;;  %v9566_v10 = vrot.slane %v9564_v44, 3  ;;  %v16197_v44 = vld [vmem:[%s20305_s0 + $0x130] sm:$0xff]  }
 0x3c1   :  { %6262 = vst [vmem:[#allocation2 + $0x50] sm:$0xff] %v6179_v60  ;;  %v6180_v19 = vadd.f32 %v17589_v30, %v4662_v48  ;;  %14361 = vmatmul.mubr.msk.bf16.gmra.mrb[128].mxu0 %vm373_vm1, %v2903_v17  ;;  %v2905_v47 = vsel %vm2836_vm2, %v2902_v1, %v2904_v5  ;;  %v9554_v32 = vrot.slane %v9552_v11, 2  ;;  %v2906_v1 = vrot.slane %v16191_v34, 1  ;;  %v16193_v17 = vld [vmem:[%s20305_s0 + $0x120] sm:$0xff]  }
 0x3c2   :  { %15061 = vmatmul.mubr.msk.bf16.gmra.mrb[196].mxu1 %vm373_vm1, %v9541_v38  ;;  %14364 = vmatprep.mubr.msk.bf16.mxu0 %vm16321_vm0, %v20338_v29 }
 0x3c3   :  { %6263 = vst [vmem:[#allocation2 + $0x58] sm:$0xff] %v6180_v19  ;;  %15064 = vmatprep.mubr.msk.bf16.mxu1 %vm16321_vm0, %v20338_v29  ;;  %v2907_v16 = vsel %vm2836_vm2, %v2904_v5, %v2906_v1 }
 0x3c4   :  { %v3157_v20 = vpop.f32.mrb[24].mxu0 }
 0x3c5   :  { %v18984_v27 = vpop.f32.mrb[92].mxu1  ;;  %v4663_v30 = vadd.f32 %v17014_v28, %v3157_v20  ;;  %v14258_v62 = vpop.f32.mrb[25].mxu0 }
 0x3c6   :  { %v14958_v8 = vpop.f32.mrb[93].mxu1  ;;  %v3160_v50 = vpop.f32.mrb[26].mxu0  ;;  %v16196_v62 = vld [vmem:[%s20305_s0 + $0x148] sm:$0xff]  }
 0x3c7   :  { %v6181_v55 = vadd.f32 %v17611_v23, %v4663_v30  ;;  %v18996_v9 = vpop.f32.mrb[94].mxu1  ;;  %v4664_v28 = vadd.f32 %v17019_v39, %v3160_v50  ;;  %v14259_v63 = vpop.f32.mrb[27].mxu0  ;;  %v9561_v23 = vshrl.u32 %v16192_v42, 16  ;;  %v9558_v39 = vor.u32 %v9557_v52, %v9554_v32  ;;  %v16195_v30 = vld [vmem:[%s20305_s0 + $0x128] sm:$0xff]  }
 0x3c8   :  { %v14959_v58 = vpop.f32.mrb[95].mxu1  ;;  %v9582_v63 = vshll.u32 %v16196_v62, 16 }
 0x3c9   :  { %6264 = vst [vmem:[#allocation2 + $0x60] sm:$0xff] %v6181_v55  ;;  %v6182_v12 = vadd.f32 %v17620_v46, %v4664_v28  ;;  %14365 = vmatmul.mubr.msk.bf16.gmra.mrb[132].mxu0 %vm373_vm1, %v2905_v47  ;;  %v9563_v43 = vrot.slane %v9561_v23, 2  ;;  %v9559_v4 = vsel %vm9227_vm6, %v9549_v61, %v9558_v39  ;;  %v2910_v28 = vrot.slane %v16195_v30, 1 }
 0x3ca   :  { %15065 = vmatmul.mubr.msk.bf16.gmra.mrb[200].mxu1 %vm373_vm1, %v9550_v24  ;;  %14368 = vmatprep.mubr.msk.bf16.mxu0 %vm16321_vm0, %v20338_v29  ;;  %v9584_v23 = vrot.slane %v9582_v63, 3  ;;  %v16200_v63 = vld [vmem:[%s20305_s0 + $0x140] sm:$0xff]  }
 0x3cb   :  { %6265 = vst [vmem:[#allocation2 + $0x68] sm:$0xff] %v6182_v12  ;;  %15068 = vmatprep.mubr.msk.bf16.mxu1 %vm16321_vm0, %v20338_v29  ;;  %v9567_v38 = vor.u32 %v9566_v10, %v9563_v43 }
 0x3cc   :  { %v3165_v54 = vpop.f32.mrb[28].mxu0 }
 0x3cd   :  { %v4665_v14 = vadd.f32 %v17006_v25, %v3165_v54  ;;  %v14262_v3 = vpop.f32.mrb[29].mxu0  ;;  %v16194_v25 = vld [vmem:[%s20305_s0 + $0x140] sm:$0xff]   ;;  %v9568_v41 = vsel %vm9227_vm6, %v9558_v39, %v9567_v38 }
 0x3ce   :  { %v3168_v46 = vpop.f32.mrb[30].mxu0  ;;  %v9573_v51 = vshll.u32 %v16194_v25, 16 }
 0x3cf   :  { %v6183_v37 = vadd.f32 %v17609_v40, %v4665_v14  ;;  %v4666_v2 = vadd.f32 %v17017_v31, %v3168_v46  ;;  %v14263_v60 = vpop.f32.mrb[31].mxu0  ;;  %v2908_v40 = vrot.slane %v16193_v17, 1  ;;  %v9570_v31 = vshrl.u32 %v16194_v25, 16  ;;  %v20553_v46 = vld [vmem:[#allocation71_spill] sm:$0xff] }
 0x3d0   :  { %v9575_v34 = vrot.slane %v9573_v51, 3  ;;  %v20555_v51 = vld [vmem:[#allocation73_spill] sm:$0xff] }
 0x3d1   :  { %6266 = vst [vmem:[#allocation2 + $0x70] sm:$0xff] %v6183_v37  ;;  %v6184_v48 = vadd.f32 %v17614_v33, %v4666_v2  ;;  %14369 = vmatmul.mubr.msk.bf16.gmra.mrb[136].mxu0 %vm373_vm1, %v2907_v16  ;;  %v2909_v20 = vsel %vm2836_vm2, %v2906_v1, %v2908_v40  ;;  %v9572_v47 = vrot.slane %v9570_v31, 2  ;;  %v2911_v12 = vsel %vm2836_vm2, %v2908_v40, %v2910_v28  ;;  %v20554_v2 = vld [vmem:[#allocation7_spill] sm:$0xff]  ;;  %v16199_v31 = vld [vmem:[%s20305_s0 + $0x138] sm:$0xff]  }
 0x3d2   :  { %15069 = vmatmul.mubr.msk.bf16.gmra.mrb[204].mxu1 %vm373_vm1, %v9559_v4  ;;  %14372 = vmatprep.mubr.msk.bf16.mxu0 %vm16321_vm0, %v20338_v29 }
 0x3d3   :  { %6267 = vst [vmem:[#allocation2 + $0x78] sm:$0xff] %v6184_v48  ;;  %15072 = vmatprep.mubr.msk.bf16.mxu1 %vm16321_vm0, %v20338_v29 }
 0x3d4   :  { %v3173_v7 = vpop.f32.mrb[32].mxu0 }
 0x3d5   :  { %v19024_v19 = vpop.f32.mrb[100].mxu1  ;;  %v4667_v33 = vadd.f32 %v17038_v56, %v3173_v7  ;;  %v14266_v61 = vpop.f32.mrb[33].mxu0 }
 0x3d6   :  { %v14966_v5 = vpop.f32.mrb[101].mxu1  ;;  %v3176_v11 = vpop.f32.mrb[34].mxu0  ;;  %v20556_v61 = vld [vmem:[#allocation9_spill] sm:$0xff] }
 0x3d7   :  { %v6185_v8 = vadd.f32 %v17636_v53, %v4667_v33  ;;  %v19036_v50 = vpop.f32.mrb[102].mxu1  ;;  %v4668_v56 = vadd.f32 %v17043_v0, %v3176_v11  ;;  %v14267_v24 = vpop.f32.mrb[35].mxu0  ;;  %v9579_v53 = vshrl.u32 %v16196_v62, 16  ;;  %v9576_v0 = vor.u32 %v9575_v34, %v9572_v47  ;;  %v20557_v62 = vld [vmem:[#allocation75_spill] sm:$0xff]  ;;  %v20558_v34 = vld [vmem:[#allocation6_spill] sm:$0xff] }
 0x3d8   :  { %v14967_v42 = vpop.f32.mrb[103].mxu1 }
 0x3d9   :  { %6268 = vst [vmem:[#allocation2 + $0x80] sm:$0xff] %v6185_v8  ;;  %v6186_v55 = vadd.f32 %v17645_v36, %v4668_v56  ;;  %14373 = vmatmul.mubr.msk.bf16.gmra.mrb[140].mxu0 %vm373_vm1, %v2909_v20  ;;  %v9581_v1 = vrot.slane %v9579_v53, 2  ;;  %v9577_v14 = vsel %vm9227_vm6, %v9567_v38, %v9576_v0  ;;  %v2914_v56 = vrot.slane %v16199_v31, 1 }
 0x3da   :  { %15073 = vmatmul.mubr.msk.bf16.gmra.mrb[208].mxu1 %vm373_vm1, %v9568_v41  ;;  %14376 = vmatprep.mubr.msk.bf16.mxu0 %vm16321_vm0, %v20338_v29 }
 0x3db   :  { %6269 = vst [vmem:[#allocation2 + $0x88] sm:$0xff] %v6186_v55  ;;  %15076 = vmatprep.mubr.msk.bf16.mxu1 %vm16321_vm0, %v20338_v29  ;;  %v9585_v43 = vor.u32 %v9584_v23, %v9581_v1  ;;  %v20561_v1 = vld [vmem:[#allocation74_spill] sm:$0xff] }
 0x3dc   :  { %v3181_v32 = vpop.f32.mrb[36].mxu0 }
 0x3dd   :  { %v4669_v52 = vadd.f32 %v17030_v49, %v3181_v32  ;;  %v14270_v58 = vpop.f32.mrb[37].mxu0  ;;  %v16198_v49 = vld [vmem:[%s20305_s0 + $0x150] ss:$0 sps:$4 sm:$0xff]   ;;  %v9586_v38 = vsel %vm9227_vm6, %v9576_v0, %v9585_v43 }
 0x3de   :  { %v3184_v36 = vpop.f32.mrb[38].mxu0  ;;  %v9591_v10 = vshll.u32 %v16198_v49, 16  ;;  %v20559_v0 = vld [vmem:[#allocation72_spill] sm:$0xff] }
 0x3df   :  { %v6187_v39 = vadd.f32 %v17634_v21, %v4669_v52  ;;  %v4670_v54 = vadd.f32 %v17040_v59, %v3184_v36  ;;  %v14271_v3 = vpop.f32.mrb[39].mxu0  ;;  %v2912_v21 = vrot.slane %v16197_v44, 1  ;;  %v9588_v59 = vshrl.u32 %v16198_v49, 16  ;;  %v20560_v52 = vld [vmem:[#allocation8_spill] sm:$0xff] }
 0x3e0   :  { %v9593_v20 = vrot.slane %v9591_v10, 3  ;;  %v2916_v44 = vrot.slane %v16200_v63, 1 }
 0x3e1   :  { %6270 = vst [vmem:[#allocation2 + $0x90] sm:$0xff] %v6187_v39  ;;  %v6188_v16 = vadd.f32 %v20553_v46, %v4670_v54  ;;  %14377 = vmatmul.mubr.msk.bf16.gmra.mrb[144].mxu0 %vm373_vm1, %v2911_v12  ;;  %v2913_v40 = vsel %vm2836_vm2, %v2910_v28, %v2912_v21  ;;  %v9590_v41 = vrot.slane %v9588_v59, 2  ;;  %v2915_v53 = vsel %vm2836_vm2, %v2912_v21, %v2914_v56  ;;  %v16203_v21 = vld [vmem:[%s20305_s0 + $0x148] sm:$0xff]   ;;  %v20563_v59 = vld [vmem:[#allocation77_spill] sm:$0xff] }
 0x3e2   :  { %15077 = vmatmul.mubr.msk.bf16.gmra.mrb[212].mxu1 %vm373_vm1, %v9577_v14  ;;  %14380 = vmatprep.mubr.msk.bf16.mxu0 %vm16321_vm0, %v20338_v29  ;;  %v20562_v14 = vld [vmem:[#allocation11_spill] sm:$0xff] }
 0x3e3   :  { %6271 = vst [vmem:[#allocation2 + $0x98] sm:$0xff] %v6188_v16  ;;  %15080 = vmatprep.mubr.msk.bf16.mxu1 %vm16321_vm0, %v20338_v29  ;;  %v9594_v24 = vor.u32 %v9593_v20, %v9590_v41 }
 0x3e4   :  { %v3189_v17 = vpop.f32.mrb[40].mxu0 }
 0x3e5   :  { %v19064_v37 = vpop.f32.mrb[108].mxu1  ;;  %v4671_v4 = vadd.f32 %v20554_v2, %v3189_v17  ;;  %v14274_v60 = vpop.f32.mrb[41].mxu0  ;;  %v9595_v36 = vsel %vm9227_vm6, %v9585_v43, %v9594_v24  ;;  %v2917_v43 = vsel %vm2836_vm2, %v2914_v56, %v2916_v44  ;;  %v20564_v2 = vld [vmem:[#allocation13_spill] sm:$0xff]  ;;  %v20567_v56 = vld [vmem:[#allocation76_spill] sm:$0xff] }
 0x3e6   :  { %v14974_v25 = vpop.f32.mrb[109].mxu1  ;;  %v3192_v48 = vpop.f32.mrb[42].mxu0 }
 0x3e7   :  { %v6189_v7 = vadd.f32 %v20555_v51, %v4671_v4  ;;  %v19073_v33 = vpop.f32.mrb[110].mxu1  ;;  %v4672_v5 = vadd.f32 %v20556_v61, %v3192_v48  ;;  %v14275_v11 = vpop.f32.mrb[43].mxu0  ;;  %v16201_v25 = vld [vmem:[%s20305_s0 + $0x10] sm:$0xf8]   ;;  %v16202_v48 = vld [vmem:[%s20305_s0 + $0x18] sm:$0xff]   ;;  %v2918_v51 = vrot.slane %v16203_v21, 1 }
 0x3e8   :  { %v14975_v30 = vpop.f32.mrb[111].mxu1  ;;  %v10738_v61 = vrot.slane %v16202_v48, 3  ;;  %v20566_v11 = vld [vmem:[#allocation10_spill] sm:$0xff] }
 0x3e9   :  { %6272 = vst [vmem:[#allocation2 + $0xa0] sm:$0xff] %v6189_v7  ;;  %v6190_v8 = vadd.f32 %v20557_v62, %v4672_v5  ;;  %14381 = vmatmul.mubr.msk.bf16.gmra.mrb[148].mxu0 %vm373_vm1, %v2913_v40  ;;  %v20565_v40 = vld [vmem:[#allocation79_spill] sm:$0xff]  ;;  %v10737_v7 = vrot.slane %v16201_v25, 3  ;;  %v2919_v62 = vsel %vm2836_vm2, %v2916_v44, %v2918_v51  ;;  %v20574_v48 = vld [vmem:[#allocation14_spill] sm:$0xff] }
 0x3ea   :  { %15081 = vmatmul.mubr.msk.bf16.gmra.mrb[216].mxu1 %vm373_vm1, %v9586_v38  ;;  %14384 = vmatprep.mubr.msk.bf16.mxu0 %vm16321_vm0, %v20338_v29 }
 0x3eb   :  { %6273 = vst [vmem:[#allocation2 + $0xa8] sm:$0xff] %v6190_v8  ;;  %15084 = vmatprep.mubr.msk.bf16.mxu1 %vm16321_vm0, %v20338_v29  ;;  %v16205_v8 = vld [vmem:[%s20305_s0 + $0x150] ss:$0 sps:$4 sm:$0xff]  }
 0x3ec   :  { %v3197_v47 = vpop.f32.mrb[44].mxu0 }
 0x3ed   :  { %v4673_v42 = vadd.f32 %v20558_v34, %v3197_v47  ;;  %v14278_v55 = vpop.f32.mrb[45].mxu0  ;;  %v20568_v47 = vld [vmem:[#allocation12_spill] sm:$0xff] }
 0x3ee   :  { %v3200_v28 = vpop.f32.mrb[46].mxu0 }
 0x3ef   :  { %v6191_v32 = vadd.f32 %v20559_v0, %v4673_v42  ;;  %v4674_v58 = vadd.f32 %v20560_v52, %v3200_v28  ;;  %v14279_v12 = vpop.f32.mrb[47].mxu0  ;;  %v10739_v42 = vsel %vm10736_vm7, %v10737_v7, %v10738_v61  ;;  %v16204_v28 = vld [vmem:[%s20305_s0 + $0x20] sm:$0xff]   ;;  %v2920_v0 = vrot.slane %v16205_v8, 1  ;;  %v16209_v7 = vld [vmem:[%s20305_s0 + $0x18] sm:$0xff]  }
 0x3f0   :  { %v20577_v8 = vld [vmem:[#allocation82_spill] sm:$0xff] }
 0x3f1   :  { %6274 = vst [vmem:[#allocation2 + $0xb0] sm:$0xff] %v6191_v32  ;;  %v6192_v23 = vadd.f32 %v20561_v1, %v4674_v58  ;;  %14385 = vmatmul.mubr.msk.bf16.gmra.mrb[152].mxu0 %vm373_vm1, %v2915_v53  ;;  %v20569_v53 = vld [vmem:[#allocation78_spill] sm:$0xff]  ;;  %v10740_v32 = vrot.slane %v16204_v28, 3  ;;  %v20578_v28 = vld [vmem:[#allocation19_spill] sm:$0xff] }
 0x3f2   :  { %15085 = vmatmul.mubr.msk.bf16.gmra.mrb[220].mxu1 %vm373_vm1, %v9595_v36  ;;  %14388 = vmatprep.mubr.msk.bf16.mxu0 %vm16321_vm0, %v20338_v29  ;;  %v20570_v36 = vld [vmem:[#allocation15_spill] sm:$0xff] }
 0x3f3   :  { %6275 = vst [vmem:[#allocation2 + $0xb8] sm:$0xff] %v6192_v23  ;;  %15088 = vmatprep.mubr.msk.bf16.mxu1 %vm16321_vm0, %v20338_v29 }
 0x3f4   :  { %v3205_v39 = vpop.f32.mrb[48].mxu0 }
 0x3f5   :  { %v19098_v54 = vpop.f32.mrb[116].mxu1  ;;  %v4675_v3 = vadd.f32 %v20562_v14, %v3205_v39  ;;  %v14282_v49 = vpop.f32.mrb[49].mxu0  ;;  %v2921_v39 = vsel %vm2836_vm2, %v2918_v51, %v2920_v0  ;;  %v20571_v14 = vld [vmem:[#allocation81_spill] sm:$0xff] }
 0x3f6   :  { %v14982_v46 = vpop.f32.mrb[117].mxu1  ;;  %v3208_v16 = vpop.f32.mrb[50].mxu0  ;;  %v16208_v51 = vld [vmem:[%s20305_s0 + $0x10] sm:$0xfc]  }
 0x3f7   :  { %v6193_v10 = vadd.f32 %v20563_v59, %v4675_v3  ;;  %v19106_v17 = vpop.f32.mrb[118].mxu1  ;;  %v4676_v4 = vadd.f32 %v20564_v2, %v3208_v16  ;;  %v14283_v60 = vpop.f32.mrb[51].mxu0  ;;  %v20572_v46 = vld [vmem:[#allocation17_spill] sm:$0xff]  ;;  %v16206_v59 = vld [vmem:[%s20305_s0 + $0x28] sm:$0xff]  }
 0x3f8   :  { %v14983_v38 = vpop.f32.mrb[119].mxu1  ;;  %v20573_v2 = vld [vmem:[#allocation83_spill] sm:$0xff]  ;;  %v10742_v60 = vrot.slane %v16206_v59, 3 }
 0x3f9   :  { %6276 = vst [vmem:[#allocation2 + $0xc0] sm:$0xff] %v6193_v10  ;;  %v6194_v31 = vadd.f32 %v20565_v40, %v4676_v4  ;;  %14389 = vmatmul.mubr.msk.bf16.gmra.mrb[156].mxu0 %vm373_vm1, %v2917_v43  ;;  %v10741_v43 = vsel %vm10736_vm7, %v10738_v61, %v10740_v32  ;;  %v20575_v61 = vld [vmem:[#allocation80_spill] sm:$0xff]  ;;  %v16288_v59 = vld [vmem:[%s20307_s2 + $0xe0] sm:$0xff]  }
 0x3fa   :  { %15089 = vmatmul.mubr.msk.bf16.gmra.mrb[224].mxu1 %vm373_vm1, %v9594_v24  ;;  %14392 = vmatprep.mubr.msk.bf16.mxu0 %vm16321_vm0, %v20338_v29 }
 0x3fb   :  { %6277 = vst [vmem:[#allocation2 + $0xc8] sm:$0xff] %v6194_v31  ;;  %15120 = vmatprep.mubr.msk.bf16.mxu1 %vm16321_vm0, %v20338_v29 }
 0x3fc   :  { %v3213_v5 = vpop.f32.mrb[52].mxu0 }
 0x3fd   :  { %v4677_v41 = vadd.f32 %v20566_v11, %v3213_v5  ;;  %v14286_v20 = vpop.f32.mrb[53].mxu0  ;;  %v20576_v11 = vld [vmem:[#allocation16_spill] sm:$0xff] }
 0x3fe   :  { %v3216_v30 = vpop.f32.mrb[54].mxu0  ;;  %v10743_v20 = vsel %vm10736_vm7, %v10740_v32, %v10742_v60 }
 0x3ff   :  { %v6195_v24 = vadd.f32 %v20567_v56, %v4677_v41  ;;  %v4678_v34 = vadd.f32 %v20568_v47, %v3216_v30  ;;  %v14287_v55 = vpop.f32.mrb[55].mxu0  ;;  %v8007_v47 = vrot.slane %v16209_v7, 2  ;;  %v20583_v7 = vld [vmem:[#allocation84_spill] sm:$0xff] }
 0x401   :  { %6278 = vst [vmem:[#allocation2 + $0xd0] sm:$0xff] %v6195_v24  ;;  %v6196_v63 = vadd.f32 %v20569_v53, %v4678_v34  ;;  %14393 = vmatmul.mubr.msk.bf16.gmra.mrb[160].mxu0 %vm373_vm1, %v2919_v62  ;;  %v16207_v62 = vld [vmem:[%s20305_s0 + $0x30] sm:$0xff]   ;;  %v8006_v24 = vrot.slane %v16208_v51, 2  ;;  %v16289_v51 = vld [vmem:[%s20307_s2 + $0xe8] sm:$0xff]  }
 0x402   :  { %15121 = vmatmul.mubr.msk.bf16.vlgmr.msra.gmra.mrb[64].mxu1 %vm373_vm1, %v10739_v42  ;;  %14396 = vmatprep.mubr.msk.bf16.mxu0 %vm16321_vm0, %v20338_v29  ;;  %v10744_v34 = vrot.slane %v16207_v62, 3  ;;  %v20585_v62 = vld [vmem:[#allocation86_spill] sm:$0xff] }
 0x403   :  { %6279 = vst [vmem:[#allocation2 + $0xd8] sm:$0xff] %v6196_v63  ;;  %15124 = vmatprep.mubr.msk.bf16.mxu1 %vm16321_vm0, %v20338_v29 }
 0x404   :  { %v3221_v52 = vpop.f32.mrb[56].mxu0 }
 0x405   :  { %v19140_v58 = vpop.f32.mrb[124].mxu1  ;;  %v4679_v12 = vadd.f32 %v20570_v36, %v3221_v52  ;;  %v14290_v1 = vpop.f32.mrb[57].mxu0  ;;  %v8008_v52 = vsel %vm6791_vm5, %v8006_v24, %v8007_v47  ;;  %v16211_v36 = vld [vmem:[%s20305_s0 + $0x20] sm:$0xff]  }
 0x406   :  { %v14990_v23 = vpop.f32.mrb[125].mxu1  ;;  %v3224_v44 = vpop.f32.mrb[58].mxu0 }
 0x407   :  { %v6197_v3 = vadd.f32 %v20571_v14, %v4679_v12  ;;  %v19145_v49 = vpop.f32.mrb[126].mxu1  ;;  %v4680_v16 = vadd.f32 %v20572_v46, %v3224_v44  ;;  %v14291_v21 = vpop.f32.mrb[59].mxu0  ;;  %v20579_v12 = vld [vmem:[#allocation85_spill] sm:$0xff]  ;;  %v10745_v14 = vsel %vm10736_vm7, %v10742_v60, %v10744_v34  ;;  %v20582_v60 = vld [vmem:[#allocation18_spill] sm:$0xff] }
 0x408   :  { %v14991_v10 = vpop.f32.mrb[127].mxu1  ;;  %v20580_v44 = vld [vmem:[#allocation21_spill] sm:$0xff] }
 0x409   :  { %6280 = vst [vmem:[#allocation2 + $0xe0] sm:$0xff] %v6197_v3  ;;  %v6198_v4 = vadd.f32 %v20573_v2, %v4680_v16  ;;  %14397 = vmatmul.mubr.msk.bf16.gmra.mrb[164].mxu0 %vm373_vm1, %v2921_v39  ;;  %v16210_v46 = vld [vmem:[%s20305_s0 + $0x38] sm:$0xff]   ;;  %v8009_v10 = vrot.slane %v16211_v36, 2  ;;  %v16215_v36 = vld [vmem:[%s20305_s0 + $0x30] sm:$0xff]  }
 0x40a   :  { %15125 = vmatmul.mubr.msk.bf16.gmra.mrb[228].mxu1 %vm373_vm1, %v10741_v43  ;;  %14400 = vmatprep.mubr.msk.bf16.mxu0 %vm16321_vm0, %v20338_v29  ;;  %v20581_v43 = vld [vmem:[#allocation87_spill] sm:$0xff]  ;;  %v10746_v2 = vrot.slane %v16210_v46, 3 }
 0x40b   :  { %6281 = vst [vmem:[#allocation2 + $0xe8] sm:$0xff] %v6198_v4  ;;  %15128 = vmatprep.mubr.msk.bf16.mxu1 %vm16321_vm0, %v20338_v29 }
 0x40c   :  { %v3229_v25 = vpop.f32.mrb[60].mxu0 }
 0x40d   :  { %v4681_v38 = vadd.f32 %v20574_v48, %v3229_v25  ;;  %v14294_v40 = vpop.f32.mrb[61].mxu0 }
 0x40e   :  { %v3232_v31 = vpop.f32.mrb[62].mxu0  ;;  %v8010_v40 = vsel %vm6791_vm5, %v8007_v47, %v8009_v10  ;;  %v16290_v47 = vld [vmem:[%s20307_s2 + $0xf0] sm:$0xff]  }
 0x40f   :  { %v6199_v5 = vadd.f32 %v20575_v61, %v4681_v38  ;;  %v4682_v41 = vadd.f32 %v20576_v11, %v3232_v31  ;;  %v14295_v30 = vpop.f32.mrb[63].mxu0  ;;  %v16213_v31 = vld [vmem:[%s20305_s0 + $0x28] sm:$0xff]  }
 0x410   :  { %v16212_v30 = vld [vmem:[%s20305_s0 + $0x40] sm:$0xff]  }
 0x411   :  { %6282 = vst [vmem:[#allocation2 + $0xf0] sm:$0xff] %v6199_v5  ;;  %v6200_v56 = vadd.f32 %v20577_v8, %v4682_v41  ;;  %14401 = vmatmul.mubr.msk.bf16.gmra.mrb[176].mxu0 %vm373_vm1, %v2920_v0  ;;  %v20584_v5 = vld [vmem:[#allocation20_spill] sm:$0xff]  ;;  %v10747_v41 = vsel %vm10736_vm7, %v10744_v34, %v10746_v2  ;;  %v10748_v24 = vrot.slane %v16212_v30, 3 }
 0x412   :  { %15129 = vmatmul.mubr.msk.bf16.gmra.mrb[72].mxu1 %vm373_vm1, %v10743_v20  ;;  %14736 = vmatprep.mubr.msk.bf16.mxu0 %vm16321_vm0, %v20338_v29  ;;  %v16216_v30 = vld [vmem:[%s20305_s0 + $0x50] sm:$0xff]  }
 0x413   :  { %6283 = vst [vmem:[#allocation2 + $0xf8] sm:$0xff] %v6200_v56  ;;  %15132 = vmatprep.mubr.msk.bf16.mxu1 %vm16321_vm0, %v20338_v29  ;;  %v8011_v56 = vrot.slane %v16213_v31, 2 }
 0x414   :  { %v3237_v42 = vpop.f32.mrb[64].mxu0 }
 0x415   :  { %v19179_v55 = vpop.f32.mrb[132].mxu1  ;;  %v4683_v53 = vadd.f32 %v20578_v28, %v3237_v42  ;;  %v14298_v63 = vpop.f32.mrb[65].mxu0  ;;  %v20586_v28 = vld [vmem:[#allocation23_spill] sm:$0xff] }
 0x416   :  { %v14998_v32 = vpop.f32.mrb[133].mxu1  ;;  %v3240_v0 = vpop.f32.mrb[66].mxu0 }
 0x417   :  { %v6201_v1 = vadd.f32 %v20579_v12, %v4683_v53  ;;  %v19187_v23 = vpop.f32.mrb[134].mxu1  ;;  %v4684_v39 = vadd.f32 %v20580_v44, %v3240_v0  ;;  %v14299_v3 = vpop.f32.mrb[67].mxu0  ;;  %v20587_v12 = vld [vmem:[#allocation89_spill] sm:$0xff] }
 0x418   :  { %v14999_v16 = vpop.f32.mrb[135].mxu1  ;;  %v10749_v3 = vsel %vm10736_vm7, %v10746_v2, %v10748_v24  ;;  %v8013_v2 = vrot.slane %v16215_v36, 2  ;;  %v16219_v36 = vld [vmem:[%s20305_s0 + $0x40] sm:$0xff]  }
 0x419   :  { %6284 = vst [vmem:[#allocation2 + $0x100] sm:$0xff] %v6201_v1  ;;  %v6202_v21 = vadd.f32 %v20581_v43, %v4684_v39  ;;  %14737 = vmatmul.mubr.msk.bf16.vlgmr.msra.gmra.mrb[180].mxu0 %vm373_vm1, %v8008_v52  ;;  %v8012_v52 = vsel %vm6791_vm5, %v8009_v10, %v8011_v56  ;;  %v20588_v39 = vld [vmem:[#allocation25_spill] sm:$0xff]  ;;  %v16214_v16 = vld [vmem:[%s20305_s0 + $0x48] sm:$0xff]  }
 0x41a   :  { %15133 = vmatmul.mubr.msk.bf16.gmra.mrb[232].mxu1 %vm373_vm1, %v10745_v14  ;;  %15093 = vmatpush3.bf16.msra.mxu0 %v16288_v59  ;;  %v16291_v43 = vld [vmem:[%s20307_s2 + $0xf8] sm:$0xff]   ;;  %v20589_v59 = vld [vmem:[#allocation91_spill] sm:$0xff]  ;;  %v8014_v31 = vsel %vm6791_vm5, %v8011_v56, %v8013_v2 }
 0x41b   :  { %6285 = vst [vmem:[#allocation2 + $0x108] sm:$0xff] %v6202_v21  ;;  %15136 = vmatprep.mubr.msk.bf16.mxu1 %vm16321_vm0, %v20338_v29  ;;  %14740 = vmatprep.mubr.msk.bf16.mxu0 %vm16321_vm0, %v20338_v29 }
 0x41c   :  { %v3245_v4 = vpop.f32.mrb[68].mxu0  ;;  %15094 = vmatprep.subr.bf16.mxu0 %v20338_v29 }
 0x41d   :  { %v4685_v25 = vadd.f32 %v20582_v60, %v3245_v4  ;;  %v14302_v48 = vpop.f32.mrb[69].mxu0  ;;  %v10750_v4 = vrot.slane %v16214_v16, 3 }
 0x41e   :  { %v3248_v38 = vpop.f32.mrb[70].mxu0  ;;  %15095 = vmatpush3.bf16.msra.mxu0 %v16289_v51  ;;  %v16217_v51 = vld [vmem:[%s20305_s0 + $0x38] sm:$0xff]  }
 0x41f   :  { %v6203_v61 = vadd.f32 %v20583_v7, %v4685_v25  ;;  %v4686_v11 = vadd.f32 %v20584_v5, %v3248_v38  ;;  %v14303_v20 = vpop.f32.mrb[71].mxu0  ;;  %15096 = vmatprep.subr.bf16.mxu0 %v20338_v29  ;;  %v20590_v25 = vld [vmem:[#allocation22_spill] sm:$0xff]  ;;  %v20591_v7 = vld [vmem:[#allocation88_spill] sm:$0xff]  ;;  %v8015_v56 = vrot.slane %v16217_v51, 2 }
 0x420   :  { %v20592_v5 = vld [vmem:[#allocation24_spill] sm:$0xff] }
 0x421   :  { %6286 = vst [vmem:[#allocation2 + $0x110] sm:$0xff] %v6203_v61  ;;  %v6204_v8 = vadd.f32 %v20585_v62, %v4686_v11  ;;  %14741 = vmatmul.mubr.msk.bf16.gmra.mrb[184].mxu0 %vm373_vm1, %v8010_v40  ;;  %v20593_v62 = vld [vmem:[#allocation90_spill] sm:$0xff]  ;;  %v16221_v51 = vld [vmem:[%s20305_s0 + $0x48] sm:$0xff]  }
 0x422   :  { %15137 = vmatmul.mubr.msk.bf16.gmra.mrb[80].mxu1 %vm373_vm1, %v10747_v41  ;;  %14744 = vmatprep.mubr.msk.bf16.mxu0 %vm16321_vm0, %v20338_v29  ;;  %v10751_v41 = vsel %vm10736_vm7, %v10748_v24, %v10750_v4  ;;  %v10752_v24 = vrot.slane %v16216_v30, 3  ;;  %v16220_v30 = vld [vmem:[%s20305_s0 + $0x60] sm:$0xff]  }
 0x423   :  { %6287 = vst [vmem:[#allocation2 + $0x118] sm:$0xff] %v6204_v8  ;;  %15140 = vmatprep.mubr.msk.bf16.mxu1 %vm16321_vm0, %v20338_v29  ;;  %15097 = vmatpush3.bf16.msra.mxu0 %v16290_v47 }
 0x424   :  { %v3253_v34 = vpop.f32.mrb[72].mxu0  ;;  %15098 = vmatprep.subr.bf16.mxu0 %v20338_v29 }
 0x425   :  { %v19231_v42 = vpop.f32.mrb[140].mxu1  ;;  %v4687_v53 = vadd.f32 %v20586_v28, %v3253_v34  ;;  %v14306_v63 = vpop.f32.mrb[73].mxu0  ;;  %v20594_v28 = vld [vmem:[#allocation27_spill] sm:$0xff] }
 0x426   :  { %v15006_v32 = vpop.f32.mrb[141].mxu1  ;;  %v3256_v0 = vpop.f32.mrb[74].mxu0 }
 0x427   :  { %v6205_v1 = vadd.f32 %v20587_v12, %v4687_v53  ;;  %v19239_v44 = vpop.f32.mrb[142].mxu1  ;;  %v4688_v14 = vadd.f32 %v20588_v39, %v3256_v0  ;;  %v14307_v46 = vpop.f32.mrb[75].mxu0  ;;  %15099 = vmatpush3.bf16.msra.mxu0 %v16291_v43  ;;  %v20595_v12 = vld [vmem:[#allocation93_spill] sm:$0xff] }
 0x428   :  { %v15007_v21 = vpop.f32.mrb[143].mxu1  ;;  %15284 = vmatprep.subr.bf16.mxu0 %v20338_v29  ;;  %v10753_v46 = vsel %vm10736_vm7, %v10750_v4, %v10752_v24  ;;  %v16218_v43 = vld [vmem:[%s20305_s0 + $0x58] sm:$0xff]  }
 0x429   :  { %6288 = vst [vmem:[#allocation2 + $0x120] sm:$0xff] %v6205_v1  ;;  %v6206_v10 = vadd.f32 %v20589_v59, %v4688_v14  ;;  %14745 = vmatmul.mubr.msk.bf16.gmra.mrb[188].mxu0 %vm373_vm1, %v8012_v52  ;;  %v8016_v52 = vsel %vm6791_vm5, %v8013_v2, %v8015_v56  ;;  %v20596_v14 = vld [vmem:[#allocation29_spill] sm:$0xff]  ;;  %v20597_v59 = vld [vmem:[#allocation95_spill] sm:$0xff]  ;;  %v8017_v2 = vrot.slane %v16219_v36, 2  ;;  %v10754_v4 = vrot.slane %v16218_v43, 3 }
 0x42a   :  { %15141 = vmatmul.mubr.msk.bf16.gmra.mrb[236].mxu1 %vm373_vm1, %v10749_v3  ;;  %14748 = vmatprep.mubr.msk.bf16.mxu0 %vm16321_vm0, %v20338_v29 }
 0x42b   :  { %6289 = vst [vmem:[#allocation2 + $0x128] sm:$0xff] %v6206_v10  ;;  %15144 = vmatprep.mubr.msk.bf16.mxu1 %vm16321_vm0, %v20338_v29 }
 0x42c   :  { %v3261_v60 = vpop.f32.mrb[76].mxu0 }
 0x42d   :  { %v4689_v48 = vadd.f32 %v20590_v25, %v3261_v60  ;;  %v14310_v38 = vpop.f32.mrb[77].mxu0  ;;  %v20598_v25 = vld [vmem:[#allocation26_spill] sm:$0xff] }
 0x42e   :  { %v3264_v40 = vpop.f32.mrb[78].mxu0 }
 0x42f   :  { %v6207_v61 = vadd.f32 %v20591_v7, %v4689_v48  ;;  %v4690_v11 = vadd.f32 %v20592_v5, %v3264_v40  ;;  %v14311_v20 = vpop.f32.mrb[79].mxu0  ;;  %v20599_v7 = vld [vmem:[#allocation92_spill] sm:$0xff] }
 0x430   :  { %v20600_v5 = vld [vmem:[#allocation28_spill] sm:$0xff] }
 0x431   :  { %6290 = vst [vmem:[#allocation2 + $0x130] sm:$0xff] %v6207_v61  ;;  %v6208_v8 = vadd.f32 %v20593_v62, %v4690_v11  ;;  %14749 = vmatmul.mubr.msk.bf16.gmra.mrb[192].mxu0 %vm373_vm1, %v8014_v31  ;;  %v8018_v31 = vsel %vm6791_vm5, %v8015_v56, %v8017_v2  ;;  %v20601_v62 = vld [vmem:[#allocation94_spill] sm:$0xff]  ;;  %v8019_v56 = vrot.slane %v16221_v51, 2 }
 0x432   :  { %15145 = vmatmul.mubr.msk.bf16.gmra.mrb[88].mxu1 %vm373_vm1, %v10751_v41  ;;  %14752 = vmatprep.mubr.msk.bf16.mxu0 %vm16321_vm0, %v20338_v29  ;;  %v10755_v41 = vsel %vm10736_vm7, %v10752_v24, %v10754_v4  ;;  %v10756_v24 = vrot.slane %v16220_v30, 3 }
 0x433   :  { %6291 = vst [vmem:[#allocation2 + $0x138] sm:$0xff] %v6208_v8  ;;  %15148 = vmatprep.mubr.msk.bf16.mxu1 %vm16321_vm0, %v20338_v29  ;;  %v8020_v36 = vsel %vm6791_vm5, %v8017_v2, %v8019_v56  ;;  %v20605_v2 = vld [vmem:[#allocation99_spill] sm:$0xff] }
 0x434   :  { %v3269_v47 = vpop.f32.mrb[80].mxu0  ;;  %v10757_v43 = vsel %vm10736_vm7, %v10754_v4, %v10756_v24 }
 0x435   :  { %v19275_v34 = vpop.f32.mrb[148].mxu1  ;;  %v4691_v53 = vadd.f32 %v20594_v28, %v3269_v47  ;;  %v14314_v63 = vpop.f32.mrb[81].mxu0 }
 0x436   :  { %v15014_v32 = vpop.f32.mrb[149].mxu1  ;;  %v3272_v0 = vpop.f32.mrb[82].mxu0 }
 0x437   :  { %v6209_v1 = vadd.f32 %v20595_v12, %v4691_v53  ;;  %v19283_v39 = vpop.f32.mrb[150].mxu1  ;;  %v4692_v3 = vadd.f32 %v20596_v14, %v3272_v0  ;;  %v14315_v16 = vpop.f32.mrb[83].mxu0  ;;  %v20602_v53 = vld [vmem:[#allocation31_spill] sm:$0xff]  ;;  %v16223_v12 = vld [vmem:[%s20305_s0 + $0x50] sm:$0xff]  }
 0x438   :  { %v15015_v21 = vpop.f32.mrb[151].mxu1 }
 0x439   :  { %6292 = vst [vmem:[#allocation2 + $0x140] sm:$0xff] %v6209_v1  ;;  %v6210_v10 = vadd.f32 %v20597_v59, %v4692_v3  ;;  %14753 = vmatmul.mubr.msk.bf16.gmra.mrb[196].mxu0 %vm373_vm1, %v8016_v52  ;;  %v20603_v1 = vld [vmem:[#allocation97_spill] sm:$0xff]  ;;  %v16222_v59 = vld [vmem:[%s20305_s0 + $0x68] sm:$0xff]  }
 0x43a   :  { %15149 = vmatmul.mubr.msk.bf16.gmra.mrb[240].mxu1 %vm373_vm1, %v10753_v46  ;;  %14756 = vmatprep.mubr.msk.bf16.mxu0 %vm16321_vm0, %v20338_v29  ;;  %v20604_v46 = vld [vmem:[#allocation33_spill] sm:$0xff]  ;;  %v10758_v4 = vrot.slane %v16222_v59, 3 }
 0x43b   :  { %6293 = vst [vmem:[#allocation2 + $0x148] sm:$0xff] %v6210_v10  ;;  %15152 = vmatprep.mubr.msk.bf16.mxu1 %vm16321_vm0, %v20338_v29  ;;  %v20612_v59 = vld [vmem:[#allocation37_spill] sm:$0xff] }
 0x43c   :  { %v3277_v60 = vpop.f32.mrb[84].mxu0  ;;  %v10759_v30 = vsel %vm10736_vm7, %v10756_v24, %v10758_v4 }
 0x43d   :  { %v4693_v48 = vadd.f32 %v20598_v25, %v3277_v60  ;;  %v14318_v38 = vpop.f32.mrb[85].mxu0  ;;  %v8021_v25 = vrot.slane %v16223_v12, 2 }
 0x43e   :  { %v3280_v40 = vpop.f32.mrb[86].mxu0  ;;  %v20606_v38 = vld [vmem:[#allocation30_spill] sm:$0xff] }
 0x43f   :  { %v6211_v61 = vadd.f32 %v20599_v7, %v4693_v48  ;;  %v4694_v11 = vadd.f32 %v20600_v5, %v3280_v40  ;;  %v14319_v20 = vpop.f32.mrb[87].mxu0  ;;  %v8022_v7 = vsel %vm6791_vm5, %v8019_v56, %v8021_v25  ;;  %v20607_v5 = vld [vmem:[#allocation96_spill] sm:$0xff] }
 0x441   :  { %6294 = vst [vmem:[#allocation2 + $0x150] sm:$0xff] %v6211_v61  ;;  %v6212_v8 = vadd.f32 %v20601_v62, %v4694_v11  ;;  %14757 = vmatmul.mubr.msk.bf16.gmra.mrb[200].mxu0 %vm373_vm1, %v8018_v31  ;;  %v16225_v61 = vld [vmem:[%s20305_s0 + $0x58] sm:$0xff]  }
 0x442   :  { %15153 = vmatmul.mubr.msk.bf16.gmra.mrb[96].mxu1 %vm373_vm1, %v10755_v41  ;;  %14760 = vmatprep.mubr.msk.bf16.mxu0 %vm16321_vm0, %v20338_v29  ;;  %v20608_v41 = vld [vmem:[#allocation32_spill] sm:$0xff]  ;;  %v8023_v56 = vrot.slane %v16225_v61, 2 }
 0x443   :  { %6295 = vst [vmem:[#allocation2 + $0x158] sm:$0xff] %v6212_v8  ;;  %15156 = vmatprep.mubr.msk.bf16.mxu1 %vm16321_vm0, %v20338_v29  ;;  %v16224_v8 = vld [vmem:[%s20305_s0 + $0x70] sm:$0xff]  }
 0x444   :  { %v3285_v47 = vpop.f32.mrb[88].mxu0  ;;  %v10760_v24 = vrot.slane %v16224_v8, 3  ;;  %v20616_v8 = vld [vmem:[#allocation36_spill] sm:$0xff] }
 0x445   :  { %v19315_v28 = vpop.f32.mrb[156].mxu1  ;;  %v4695_v63 = vadd.f32 %v20602_v53, %v3285_v47  ;;  %v14322_v32 = vpop.f32.mrb[89].mxu0  ;;  %v20609_v47 = vld [vmem:[#allocation98_spill] sm:$0xff] }
 0x446   :  { %v15022_v0 = vpop.f32.mrb[157].mxu1  ;;  %v3288_v52 = vpop.f32.mrb[90].mxu0 }
 0x447   :  { %v6213_v14 = vadd.f32 %v20603_v1, %v4695_v63  ;;  %v19323_v3 = vpop.f32.mrb[158].mxu1  ;;  %v4696_v16 = vadd.f32 %v20604_v46, %v3288_v52  ;;  %v14323_v21 = vpop.f32.mrb[91].mxu0  ;;  %v20610_v0 = vld [vmem:[#allocation35_spill] sm:$0xff] }
 0x448   :  { %v15023_v10 = vpop.f32.mrb[159].mxu1  ;;  %v16227_v46 = vld [vmem:[%s20305_s0 + $0x60] sm:$0xff]  }
 0x449   :  { %6296 = vst [vmem:[#allocation2 + $0x160] sm:$0xff] %v6213_v14  ;;  %v6214_v60 = vadd.f32 %v20605_v2, %v4696_v16  ;;  %14761 = vmatmul.mubr.msk.bf16.gmra.mrb[204].mxu0 %vm373_vm1, %v8020_v36  ;;  %v8024_v14 = vsel %vm6791_vm5, %v8021_v25, %v8023_v56  ;;  %v20611_v16 = vld [vmem:[#allocation101_spill] sm:$0xff]  ;;  %v10761_v2 = vsel %vm10736_vm7, %v10758_v4, %v10760_v24  ;;  %v20613_v25 = vld [vmem:[#allocation103_spill] sm:$0xff] }
 0x44a   :  { %15157 = vmatmul.mubr.msk.bf16.gmra.mrb[244].mxu1 %vm373_vm1, %v10757_v43  ;;  %14764 = vmatprep.mubr.msk.bf16.mxu0 %vm16321_vm0, %v20338_v29 }
 0x44b   :  { %6297 = vst [vmem:[#allocation2 + $0x168] sm:$0xff] %v6214_v60  ;;  %15160 = vmatprep.mubr.msk.bf16.mxu1 %vm16321_vm0, %v20338_v29 }
 0x44c   :  { %v3293_v48 = vpop.f32.mrb[92].mxu0 }
 0x44d   :  { %v4697_v40 = vadd.f32 %v20606_v38, %v3293_v48  ;;  %v14326_v31 = vpop.f32.mrb[93].mxu0  ;;  %v16226_v48 = vld [vmem:[%s20305_s0 + $0x78] sm:$0xff]  }
 0x44e   :  { %v3296_v51 = vpop.f32.mrb[94].mxu0  ;;  %v8025_v31 = vrot.slane %v16227_v46, 2  ;;  %v10762_v4 = vrot.slane %v16226_v48, 3 }
 0x44f   :  { %v6215_v11 = vadd.f32 %v20607_v5, %v4697_v40  ;;  %v4698_v20 = vadd.f32 %v20608_v41, %v3296_v51  ;;  %v14327_v62 = vpop.f32.mrb[95].mxu0 }
 0x450   :  { %v8026_v41 = vsel %vm6791_vm5, %v8023_v56, %v8025_v31 }
 0x451   :  { %6298 = vst [vmem:[#allocation2 + $0x170] sm:$0xff] %v6215_v11  ;;  %v6216_v53 = vadd.f32 %v20609_v47, %v4698_v20  ;;  %14765 = vmatmul.mubr.msk.bf16.gmra.mrb[208].mxu0 %vm373_vm1, %v8022_v7  ;;  %v20614_v7 = vld [vmem:[#allocation34_spill] sm:$0xff]  ;;  %v16229_v20 = vld [vmem:[%s20305_s0 + $0x68] sm:$0xff]  }
 0x452   :  { %15161 = vmatmul.mubr.msk.bf16.gmra.mrb[104].mxu1 %vm373_vm1, %v10759_v30  ;;  %14768 = vmatprep.mubr.msk.bf16.mxu0 %vm16321_vm0, %v20338_v29  ;;  %v20615_v30 = vld [vmem:[#allocation100_spill] sm:$0xff]  ;;  %v8027_v56 = vrot.slane %v16229_v20, 2 }
 0x453   :  { %6299 = vst [vmem:[#allocation2 + $0x178] sm:$0xff] %v6216_v53  ;;  %15164 = vmatprep.mubr.msk.bf16.mxu1 %vm16321_vm0, %v20338_v29  ;;  %v10763_v53 = vsel %vm10736_vm7, %v10760_v24, %v10762_v4 }
 0x454   :  { %v3301_v63 = vpop.f32.mrb[96].mxu0 }
 0x455   :  { %v19355_v32 = vpop.f32.mrb[164].mxu1  ;;  %v4699_v52 = vadd.f32 %v20610_v0, %v3301_v63  ;;  %v14330_v36 = vpop.f32.mrb[97].mxu0  ;;  %v16228_v0 = vld [vmem:[%s20305_s0 + $0x80] sm:$0xff]  }
 0x456   :  { %v15030_v12 = vpop.f32.mrb[165].mxu1  ;;  %v3304_v1 = vpop.f32.mrb[98].mxu0  ;;  %v10764_v24 = vrot.slane %v16228_v0, 3  ;;  %v20623_v0 = vld [vmem:[#allocation104_spill] sm:$0xff] }
 0x457   :  { %v6217_v43 = vadd.f32 %v20611_v16, %v4699_v52  ;;  %v19363_v21 = vpop.f32.mrb[166].mxu1  ;;  %v4700_v10 = vadd.f32 %v20612_v59, %v3304_v1  ;;  %v14331_v60 = vpop.f32.mrb[99].mxu0  ;;  %v20617_v52 = vld [vmem:[#allocation102_spill] sm:$0xff] }
 0x458   :  { %v15031_v38 = vpop.f32.mrb[167].mxu1  ;;  %v20619_v60 = vld [vmem:[#allocation105_spill] sm:$0xff] }
 0x459   :  { %6300 = vst [vmem:[#allocation2 + $0x180] sm:$0xff] %v6217_v43  ;;  %v6218_v40 = vadd.f32 %v20613_v25, %v4700_v10  ;;  %14769 = vmatmul.mubr.msk.bf16.gmra.mrb[212].mxu0 %vm373_vm1, %v8024_v14  ;;  %v20618_v14 = vld [vmem:[#allocation39_spill] sm:$0xff]  ;;  %v8028_v10 = vsel %vm6791_vm5, %v8025_v31, %v8027_v56  ;;  %v20620_v25 = vld [vmem:[#allocation41_spill] sm:$0xff] }
 0x45a   :  { %15165 = vmatmul.mubr.msk.bf16.gmra.mrb[248].mxu1 %vm373_vm1, %v10761_v2  ;;  %14772 = vmatprep.mubr.msk.bf16.mxu0 %vm16321_vm0, %v20338_v29  ;;  %v16231_v2 = vld [vmem:[%s20305_s0 + $0x70] sm:$0xff]   ;;  %v20621_v31 = vld [vmem:[#allocation107_spill] sm:$0xff] }
 0x45b   :  { %6301 = vst [vmem:[#allocation2 + $0x188] sm:$0xff] %v6218_v40  ;;  %15168 = vmatprep.mubr.msk.bf16.mxu1 %vm16321_vm0, %v20338_v29 }
 0x45c   :  { %v3309_v51 = vpop.f32.mrb[100].mxu0 }
 0x45d   :  { %v4701_v61 = vadd.f32 %v20614_v7, %v3309_v51  ;;  %v14334_v5 = vpop.f32.mrb[101].mxu0  ;;  %v10765_v51 = vsel %vm10736_vm7, %v10762_v4, %v10764_v24 }
 0x45e   :  { %v3312_v11 = vpop.f32.mrb[102].mxu0 }
 0x45f   :  { %v6219_v62 = vadd.f32 %v20615_v30, %v4701_v61  ;;  %v4702_v47 = vadd.f32 %v20616_v8, %v3312_v11  ;;  %v14335_v63 = vpop.f32.mrb[103].mxu0  ;;  %v16230_v61 = vld [vmem:[%s20305_s0 + $0x88] sm:$0xff]   ;;  %v20622_v30 = vld [vmem:[#allocation38_spill] sm:$0xff] }
 0x460   :  { %v10766_v4 = vrot.slane %v16230_v61, 3  ;;  %v16233_v63 = vld [vmem:[%s20305_s0 + $0x78] sm:$0xff]   ;;  %v16235_v61 = vld [vmem:[%s20305_s0 + $0x80] sm:$0xff]  }
 0x461   :  { %6302 = vst [vmem:[#allocation2 + $0x190] sm:$0xff] %v6219_v62  ;;  %v6220_v36 = vadd.f32 %v20617_v52, %v4702_v47  ;;  %14773 = vmatmul.mubr.msk.bf16.gmra.mrb[216].mxu0 %vm373_vm1, %v8026_v41  ;;  %v8029_v41 = vrot.slane %v16231_v2, 2 }
 0x462   :  { %15169 = vmatmul.mubr.msk.bf16.gmra.mrb[112].mxu1 %vm373_vm1, %v10763_v53  ;;  %14776 = vmatprep.mubr.msk.bf16.mxu0 %vm16321_vm0, %v20338_v29 }
 0x463   :  { %6303 = vst [vmem:[#allocation2 + $0x198] sm:$0xff] %v6220_v36  ;;  %15172 = vmatprep.mubr.msk.bf16.mxu1 %vm16321_vm0, %v20338_v29  ;;  %v8030_v53 = vsel %vm6791_vm5, %v8027_v56, %v8029_v41  ;;  %v20624_v36 = vld [vmem:[#allocation40_spill] sm:$0xff]  ;;  %v8031_v56 = vrot.slane %v16233_v63, 2 }
 0x464   :  { %v3317_v12 = vpop.f32.mrb[104].mxu0 }
 0x465   :  { %v19395_v1 = vpop.f32.mrb[172].mxu1  ;;  %v4703_v46 = vadd.f32 %v20618_v14, %v3317_v12  ;;  %v14338_v16 = vpop.f32.mrb[105].mxu0  ;;  %v10767_v14 = vsel %vm10736_vm7, %v10764_v24, %v10766_v4 }
 0x466   :  { %v15038_v43 = vpop.f32.mrb[173].mxu1  ;;  %v3320_v59 = vpop.f32.mrb[106].mxu0  ;;  %v16232_v16 = vld [vmem:[%s20305_s0 + $0x90] sm:$0xff]  }
 0x467   :  { %v6221_v48 = vadd.f32 %v20619_v60, %v4703_v46  ;;  %v19403_v38 = vpop.f32.mrb[174].mxu1  ;;  %v4704_v40 = vadd.f32 %v20620_v25, %v3320_v59  ;;  %v14339_v7 = vpop.f32.mrb[107].mxu0  ;;  %v20625_v43 = vld [vmem:[#allocation106_spill] sm:$0xff]  ;;  %v10768_v24 = vrot.slane %v16232_v16, 3  ;;  %v20626_v60 = vld [vmem:[#allocation43_spill] sm:$0xff] }
 0x468   :  { %v15039_v5 = vpop.f32.mrb[175].mxu1  ;;  %v8032_v7 = vsel %vm6791_vm5, %v8029_v41, %v8031_v56  ;;  %v20629_v41 = vld [vmem:[#allocation111_spill] sm:$0xff] }
 0x469   :  { %6304 = vst [vmem:[#allocation2 + $0x1a0] sm:$0xff] %v6221_v48  ;;  %v6222_v11 = vadd.f32 %v20621_v31, %v4704_v40  ;;  %14777 = vmatmul.mubr.msk.bf16.gmra.mrb[220].mxu0 %vm373_vm1, %v8028_v10  ;;  %v20627_v5 = vld [vmem:[#allocation109_spill] sm:$0xff] }
 0x46a   :  { %15173 = vmatmul.mubr.msk.bf16.gmra.mrb[252].mxu1 %vm373_vm1, %v10765_v51  ;;  %14780 = vmatprep.mubr.msk.bf16.mxu0 %vm16321_vm0, %v20338_v29 }
 0x46b   :  { %6305 = vst [vmem:[#allocation2 + $0x1a8] sm:$0xff] %v6222_v11  ;;  %15176 = vmatprep.mubr.msk.bf16.mxu1 %vm16321_vm0, %v20338_v29 }
 0x46c   :  { %v3325_v20 = vpop.f32.mrb[108].mxu0 }
 0x46d   :  { %v4705_v62 = vadd.f32 %v20622_v30, %v3325_v20  ;;  %v14342_v8 = vpop.f32.mrb[109].mxu0  ;;  %v20628_v20 = vld [vmem:[#allocation45_spill] sm:$0xff] }
 0x46e   :  { %v3328_v47 = vpop.f32.mrb[110].mxu0 }
 0x46f   :  { %v6223_v52 = vadd.f32 %v20623_v0, %v4705_v62  ;;  %v4706_v12 = vadd.f32 %v20624_v36, %v3328_v47  ;;  %v14343_v46 = vpop.f32.mrb[111].mxu0  ;;  %v10769_v62 = vsel %vm10736_vm7, %v10766_v4, %v10768_v24  ;;  %v16234_v47 = vld [vmem:[%s20305_s0 + $0x98] sm:$0xff]   ;;  %v8033_v0 = vrot.slane %v16235_v61, 2 }
 0x470   :  { %v10770_v4 = vrot.slane %v16234_v47, 3  ;;  %v20630_v36 = vld [vmem:[#allocation42_spill] sm:$0xff] }
 0x471   :  { %6306 = vst [vmem:[#allocation2 + $0x1b0] sm:$0xff] %v6223_v52  ;;  %v6224_v59 = vadd.f32 %v20625_v43, %v4706_v12  ;;  %14781 = vmatmul.mubr.msk.bf16.gmra.mrb[224].mxu0 %vm373_vm1, %v8030_v53  ;;  %v8034_v16 = vsel %vm6791_vm5, %v8031_v56, %v8033_v0  ;;  %v16237_v43 = vld [vmem:[%s20305_s0 + $0x88] sm:$0xff]  }
 0x472   :  { %15177 = vmatmul.mubr.msk.bf16.gmra.mrb[120].mxu1 %vm373_vm1, %v10767_v14  ;;  %14784 = vmatprep.mubr.msk.bf16.mxu0 %vm16321_vm0, %v20338_v29  ;;  %v8035_v56 = vrot.slane %v16237_v43, 2  ;;  %v16238_v43 = vld [vmem:[%s20305_s0 + $0xa8] sm:$0xff]  }
 0x473   :  { %6307 = vst [vmem:[#allocation2 + $0x1b8] sm:$0xff] %v6224_v59  ;;  %15180 = vmatprep.mubr.msk.bf16.mxu1 %vm16321_vm0, %v20338_v29  ;;  %v20631_v59 = vld [vmem:[#allocation108_spill] sm:$0xff] }
 0x474   :  { %v3333_v10 = vpop.f32.mrb[112].mxu0 }
 0x475   :  { %v19435_v2 = vpop.f32.mrb[180].mxu1  ;;  %v4707_v48 = vadd.f32 %v20626_v60, %v3333_v10  ;;  %v14346_v25 = vpop.f32.mrb[113].mxu0  ;;  %v20632_v60 = vld [vmem:[#allocation44_spill] sm:$0xff] }
 0x476   :  { %v15046_v40 = vpop.f32.mrb[181].mxu1  ;;  %v3336_v51 = vpop.f32.mrb[114].mxu0  ;;  %v10771_v25 = vsel %vm10736_vm7, %v10768_v24, %v10770_v4 }
 0x477   :  { %v6225_v31 = vadd.f32 %v20627_v5, %v4707_v48  ;;  %v19443_v11 = vpop.f32.mrb[182].mxu1  ;;  %v4708_v30 = vadd.f32 %v20628_v20, %v3336_v51  ;;  %v14347_v8 = vpop.f32.mrb[115].mxu0  ;;  %v16236_v51 = vld [vmem:[%s20305_s0 + $0xa0] sm:$0xff]  }
 0x478   :  { %v15047_v53 = vpop.f32.mrb[183].mxu1  ;;  %v10772_v24 = vrot.slane %v16236_v51, 3  ;;  %v20635_v20 = vld [vmem:[#allocation47_spill] sm:$0xff] }
 0x479   :  { %6308 = vst [vmem:[#allocation2 + $0x1c0] sm:$0xff] %v6225_v31  ;;  %v6226_v63 = vadd.f32 %v20629_v41, %v4708_v30  ;;  %14785 = vmatmul.mubr.msk.bf16.gmra.mrb[228].mxu0 %vm373_vm1, %v8032_v7  ;;  %v20633_v7 = vld [vmem:[#allocation110_spill] sm:$0xff]  ;;  %v8036_v53 = vsel %vm6791_vm5, %v8033_v0, %v8035_v56  ;;  %v16239_v41 = vld [vmem:[%s20305_s0 + $0x90] sm:$0xff]   ;;  %v20639_v0 = vld [vmem:[#allocation115_spill] sm:$0xff] }
 0x47a   :  { %15181 = vmatmul.mubr.msk.bf16.gmra.mrb[0].mxu1 %vm373_vm1, %v10769_v62  ;;  %14788 = vmatprep.mubr.msk.bf16.mxu0 %vm16321_vm0, %v20338_v29 }
 0x47b   :  { %6309 = vst [vmem:[#allocation2 + $0x1c8] sm:$0xff] %v6226_v63  ;;  %15184 = vmatprep.mubr.msk.bf16.mxu1 %vm16321_vm0, %v20338_v29  ;;  %v20636_v63 = vld [vmem:[#allocation113_spill] sm:$0xff] }
 0x47c   :  { %v3341_v52 = vpop.f32.mrb[116].mxu0 }
 0x47d   :  { %v4709_v12 = vadd.f32 %v20630_v36, %v3341_v52  ;;  %v14350_v14 = vpop.f32.mrb[117].mxu0 }
 0x47e   :  { %v3344_v46 = vpop.f32.mrb[118].mxu0 }
 0x47f   :  { %v6227_v10 = vadd.f32 %v20631_v59, %v4709_v12  ;;  %v4710_v48 = vadd.f32 %v20632_v60, %v3344_v46  ;;  %v14351_v40 = vpop.f32.mrb[119].mxu0  ;;  %v20638_v12 = vld [vmem:[#allocation49_spill] sm:$0xff]  ;;  %v10773_v46 = vsel %vm10736_vm7, %v10770_v4, %v10772_v24  ;;  %v8037_v60 = vrot.slane %v16239_v41, 2 }
 0x480   :  { %v10774_v4 = vrot.slane %v16238_v43, 3  ;;  %v16240_v41 = vld [vmem:[%s20305_s0 + $0xb0] sm:$0xff]  }
 0x481   :  { %6310 = vst [vmem:[#allocation2 + $0x1d0] sm:$0xff] %v6227_v10  ;;  %v6228_v61 = vadd.f32 %v20633_v7, %v4710_v48  ;;  %14789 = vmatmul.mubr.msk.bf16.gmra.mrb[232].mxu0 %vm373_vm1, %v8034_v16 }
 0x482   :  { %15185 = vmatmul.mubr.msk.bf16.gmra.mrb[128].mxu1 %vm373_vm1, %v10771_v25  ;;  %14792 = vmatprep.mubr.msk.bf16.mxu0 %vm16321_vm0, %v20338_v29  ;;  %v20640_v25 = vld [vmem:[#allocation46_spill] sm:$0xff] }
 0x483   :  { %6311 = vst [vmem:[#allocation2 + $0x1d8] sm:$0xff] %v6228_v61  ;;  %15188 = vmatprep.mubr.msk.bf16.mxu1 %vm16321_vm0, %v20338_v29  ;;  %v8038_v61 = vsel %vm6791_vm5, %v8035_v56, %v8037_v60 }
 0x484   :  { %v3349_v5 = vpop.f32.mrb[120].mxu0 }
 0x485   :  { %v19475_v31 = vpop.f32.mrb[188].mxu1  ;;  %v4711_v30 = vadd.f32 %v20635_v20, %v3349_v5  ;;  %v14354_v62 = vpop.f32.mrb[121].mxu0  ;;  %v16241_v5 = vld [vmem:[%s20305_s0 + $0x98] sm:$0xff]   ;;  %v20641_v20 = vld [vmem:[#allocation112_spill] sm:$0xff] }
 0x486   :  { %20634 = vst [vmem:[#allocation71_spill] sm:$0xff] %v19475_v31  ;;  %v15054_v8 = vpop.f32.mrb[189].mxu1  ;;  %v3352_v47 = vpop.f32.mrb[122].mxu0  ;;  %v20642_v62 = vld [vmem:[#allocation48_spill] sm:$0xff]  ;;  %v8039_v56 = vrot.slane %v16241_v5, 2 }
 0x487   :  { %v6229_v52 = vadd.f32 %v20636_v63, %v4711_v30  ;;  %v19483_v36 = vpop.f32.mrb[190].mxu1  ;;  %v4712_v14 = vadd.f32 %v20638_v12, %v3352_v47  ;;  %v14355_v16 = vpop.f32.mrb[123].mxu0  ;;  %v10775_v47 = vsel %vm10736_vm7, %v10772_v24, %v10774_v4  ;;  %v20643_v63 = vld [vmem:[#allocation114_spill] sm:$0xff]  ;;  %v10776_v24 = vrot.slane %v16240_v41, 3 }
 0x488   :  { %20637 = vst [vmem:[#allocation7_spill] sm:$0xff] %v19483_v36  ;;  %v15055_v59 = vpop.f32.mrb[191].mxu1  ;;  %v6419_v36 = vld [vmem:[#allocation2 + $0x10] sm:$0xff] }
 0x489   :  { %6312 = vst [vmem:[#allocation2 + $0x1e0] sm:$0xff] %v6229_v52  ;;  %v6230_v10 = vadd.f32 %v20639_v0, %v4712_v14  ;;  %14793 = vmatmul.mubr.msk.bf16.gmra.mrb[236].mxu0 %vm373_vm1, %v8036_v53  ;;  %v10777_v5 = vsel %vm10736_vm7, %v10774_v4, %v10776_v24 }
 0x48a   :  { %15189 = vmatmul.mubr.msk.bf16.gmra.mrb[4].mxu1 %vm373_vm1, %v10773_v46  ;;  %14796 = vmatprep.mubr.msk.bf16.mxu0 %vm16321_vm0, %v20338_v29  ;;  %v20644_v46 = vld [vmem:[#allocation51_spill] sm:$0xff] }
 0x48b   :  { %6313 = vst [vmem:[#allocation2 + $0x1e8] sm:$0xff] %v6230_v10  ;;  %15192 = vmatprep.mubr.msk.bf16.mxu1 %vm16321_vm0, %v20338_v29  ;;  %v8040_v10 = vsel %vm6791_vm5, %v8037_v60, %v8039_v56 }
 0x48c   :  { %v3357_v48 = vpop.f32.mrb[124].mxu0 }
 0x48d   :  { %v4713_v40 = vadd.f32 %v20640_v25, %v3357_v48  ;;  %v14358_v51 = vpop.f32.mrb[125].mxu0  ;;  %v16243_v48 = vld [vmem:[%s20305_s0 + $0xa0] sm:$0xff]   ;;  %v20645_v25 = vld [vmem:[#allocation117_spill] sm:$0xff] }
 0x48e   :  { %v3360_v7 = vpop.f32.mrb[126].mxu0 }
 0x48f   :  { %v6231_v30 = vadd.f32 %v20641_v20, %v4713_v40  ;;  %v4714_v8 = vadd.f32 %v20642_v62, %v3360_v7  ;;  %v14359_v53 = vpop.f32.mrb[127].mxu0  ;;  %v20646_v7 = vld [vmem:[#allocation53_spill] sm:$0xff] }
 0x490   :  { %v8041_v53 = vrot.slane %v16243_v48, 2 }
 0x491   :  { %6314 = vst [vmem:[#allocation2 + $0x1f0] sm:$0xff] %v6231_v30  ;;  %v6232_v52 = vadd.f32 %v20643_v63, %v4714_v8  ;;  %14797 = vmatmul.mubr.msk.bf16.gmra.mrb[240].mxu0 %vm373_vm1, %v8038_v61  ;;  %v16242_v30 = vld [vmem:[%s20305_s0 + $0xb8] sm:$0xff]   ;;  %v20647_v8 = vld [vmem:[#allocation119_spill] sm:$0xff] }
 0x492   :  { %15193 = vmatmul.mubr.msk.bf16.gmra.mrb[136].mxu1 %vm373_vm1, %v10775_v47  ;;  %14800 = vmatprep.mubr.msk.bf16.mxu0 %vm16321_vm0, %v20338_v29  ;;  %v10778_v41 = vrot.slane %v16242_v30, 3 }
 0x493   :  { %6315 = vst [vmem:[#allocation2 + $0x1f8] sm:$0xff] %v6232_v52  ;;  %15196 = vmatprep.mubr.msk.bf16.mxu1 %vm16321_vm0, %v20338_v29 }
 0x494   :  { %v3365_v12 = vpop.f32.mrb[128].mxu0  ;;  %v10779_v48 = vsel %vm10736_vm7, %v10776_v24, %v10778_v41 }
 0x495   :  { %v19515_v14 = vpop.f32.mrb[196].mxu1  ;;  %v4715_v16 = vadd.f32 %v20644_v46, %v3365_v12  ;;  %v14362_v43 = vpop.f32.mrb[129].mxu0 }
 0x496   :  { %v15062_v59 = vpop.f32.mrb[197].mxu1  ;;  %v3368_v0 = vpop.f32.mrb[130].mxu0  ;;  %v16245_v43 = vld [vmem:[%s20305_s0 + $0xa8] sm:$0xff]  }
 0x497   :  { %v6233_v40 = vadd.f32 %v20645_v25, %v4715_v16  ;;  %v19523_v51 = vpop.f32.mrb[198].mxu1  ;;  %v4716_v61 = vadd.f32 %v20646_v7, %v3368_v0  ;;  %v14363_v20 = vpop.f32.mrb[131].mxu0  ;;  %v8042_v16 = vsel %vm6791_vm5, %v8039_v56, %v8041_v53  ;;  %v20649_v59 = vld [vmem:[#allocation116_spill] sm:$0xff]  ;;  %v8043_v56 = vrot.slane %v16245_v43, 2  ;;  %v20655_v43 = vld [vmem:[#allocation57_spill] sm:$0xff] }
 0x498   :  { %v15063_v62 = vpop.f32.mrb[199].mxu1  ;;  %v20652_v20 = vld [vmem:[#allocation203_spill] sm:$0xff] }
 0x499   :  { %v7457_v60 = vadd.f32 %v18493_v15, %v6233_v40  ;;  %v6234_v47 = vadd.f32 %v20647_v8, %v4716_v61  ;;  %14801 = vmatmul.mubr.msk.bf16.gmra.mrb[244].mxu0 %vm373_vm1, %v8040_v10  ;;  %v20648_v15 = vld [vmem:[#allocation50_spill] sm:$0xff]  ;;  %v20650_v10 = vld [vmem:[#allocation52_spill] sm:$0xff] }
 0x49a   :  { %15197 = vmatmul.mubr.msk.bf16.gmra.mrb[8].mxu1 %vm373_vm1, %v10777_v5  ;;  %14804 = vmatprep.mubr.msk.bf16.mxu0 %vm16321_vm0, %v20338_v29  ;;  %v16244_v40 = vld [vmem:[%s20305_s0 + $0xc0] sm:$0xff]  }
 0x49b   :  { %7540 = vst [vmem:[#allocation2 + $0x200] sm:$0xff] %v7457_v60  ;;  %v7458_v4 = vadd.f32 %v18505_v35, %v6234_v47  ;;  %15200 = vmatprep.mubr.msk.bf16.mxu1 %vm16321_vm0, %v20338_v29  ;;  %v20651_v61 = vld [vmem:[#allocation118_spill] sm:$0xff]  ;;  %v10780_v30 = vrot.slane %v16244_v40, 3  ;;  %v20653_v60 = vld [vmem:[#allocation55_spill] sm:$0xff] }
 0x49c   :  { %v3373_v63 = vpop.f32.mrb[132].mxu0 }
 0x49d   :  { %7541 = vst [vmem:[#allocation2 + $0x208] sm:$0xff] %v7458_v4  ;;  %v4717_v52 = vadd.f32 %v20648_v15, %v3373_v63  ;;  %v14366_v12 = vpop.f32.mrb[133].mxu0  ;;  %v16246_v15 = vld [vmem:[%s20305_s0 + $0xb0] sm:$0xff]  }
 0x49e   :  { %v3376_v46 = vpop.f32.mrb[134].mxu0  ;;  %v20654_v12 = vld [vmem:[#allocation121_spill] sm:$0xff] }
 0x49f   :  { %v6235_v0 = vadd.f32 %v20649_v59, %v4717_v52  ;;  %v4718_v35 = vadd.f32 %v20650_v10, %v3376_v46  ;;  %v14367_v25 = vpop.f32.mrb[135].mxu0  ;;  %v8044_v52 = vsel %vm6791_vm5, %v8041_v53, %v8043_v56  ;;  %v8045_v53 = vrot.slane %v16246_v15, 2 }
 0x4a0   :  { %v20656_v25 = vld [vmem:[#allocation205_spill] sm:$0xff] }
 0x4a1   :  { %v7459_v7 = vadd.f32 %v18491_v22, %v6235_v0  ;;  %v6236_v5 = vadd.f32 %v20651_v61, %v4718_v35  ;;  %14805 = vmatmul.mubr.msk.bf16.gmra.mrb[248].mxu0 %vm373_vm1, %v8042_v16  ;;  %v10781_v0 = vsel %vm10736_vm7, %v10778_v41, %v10780_v30  ;;  %v16247_v35 = vld [vmem:[%s20305_s0 + $0xc8] sm:$0xff]  }
 0x4a2   :  { %15201 = vmatmul.mubr.msk.bf16.gmra.mrb[144].mxu1 %vm373_vm1, %v10779_v48  ;;  %14808 = vmatprep.mubr.msk.bf16.mxu0 %vm16321_vm0, %v20338_v29  ;;  %v20658_v41 = vld [vmem:[#allocation207_spill] sm:$0xff] }
 0x4a3   :  { %7542 = vst [vmem:[#allocation2 + $0x210] sm:$0xff] %v7459_v7  ;;  %v7460_v24 = vadd.f32 %v20652_v20, %v6236_v5  ;;  %15204 = vmatprep.mubr.msk.bf16.mxu1 %vm16321_vm0, %v20338_v29  ;;  %v20657_v7 = vld [vmem:[#allocation123_spill] sm:$0xff] }
 0x4a4   :  { %v3381_v62 = vpop.f32.mrb[136].mxu0 }
 0x4a5   :  { %7543 = vst [vmem:[#allocation2 + $0x218] sm:$0xff] %v7460_v24  ;;  %v19559_v22 = vpop.f32.mrb[204].mxu1  ;;  %v4719_v8 = vadd.f32 %v20653_v60, %v3381_v62  ;;  %v14370_v47 = vpop.f32.mrb[137].mxu0  ;;  %v10782_v24 = vrot.slane %v16247_v35, 3  ;;  %v20659_v62 = vld [vmem:[#allocation224_spill] sm:$0xff] }
 0x4a6   :  { %v15070_v4 = vpop.f32.mrb[205].mxu1  ;;  %v3384_v63 = vpop.f32.mrb[138].mxu0 }
 0x4a7   :  { %v6237_v46 = vadd.f32 %v20654_v12, %v4719_v8  ;;  %v19567_v16 = vpop.f32.mrb[206].mxu1  ;;  %v4720_v59 = vadd.f32 %v20655_v43, %v3384_v63  ;;  %v14371_v10 = vpop.f32.mrb[139].mxu0  ;;  %v20660_v4 = vld [vmem:[#allocation54_spill] sm:$0xff]  ;;  %v20661_v12 = vld [vmem:[#allocation225_spill] sm:$0xff]  ;;  %v8046_v43 = vsel %vm6791_vm5, %v8043_v56, %v8045_v53  ;;  %v20664_v56 = vld [vmem:[#allocation204_spill] sm:$0xff] }
 0x4a8   :  { %v15071_v48 = vpop.f32.mrb[207].mxu1  ;;  %v20662_v10 = vld [vmem:[#allocation120_spill] sm:$0xff] }
 0x4a9   :  { %v7461_v40 = vadd.f32 %v20656_v25, %v6237_v46  ;;  %v6238_v61 = vadd.f32 %v20657_v7, %v4720_v59  ;;  %14809 = vmatmul.mubr.msk.bf16.gmra.mrb[252].mxu0 %vm373_vm1, %v8044_v52  ;;  %v20663_v48 = vld [vmem:[#allocation56_spill] sm:$0xff] }
 0x4aa   :  { %15205 = vmatmul.mubr.msk.bf16.gmra.mrb[12].mxu1 %vm373_vm1, %v10781_v0  ;;  %14812 = vmatprep.mubr.msk.bf16.mxu0 %vm16321_vm0, %v20338_v29  ;;  %v7707_v5 = vld [vmem:[#allocation2 + $0x210] sm:$0xff]  ;;  %v16249_v0 = vld [vmem:[%s20305_s0 + $0xb8] sm:$0xff]  }
 0x4ab   :  { %7544 = vst [vmem:[#allocation2 + $0x220] sm:$0xff] %v7461_v40  ;;  %v7462_v20 = vadd.f32 %v20658_v41, %v6238_v61  ;;  %15208 = vmatprep.mubr.msk.bf16.mxu1 %vm16321_vm0, %v20338_v29  ;;  %v8660_v60 = vadd.f32 %v20659_v62, %v7707_v5  ;;  %v10783_v40 = vsel %vm10736_vm7, %v10780_v30, %v10782_v24  ;;  %v20665_v41 = vld [vmem:[#allocation122_spill] sm:$0xff]  ;;  %v8047_v30 = vrot.slane %v16249_v0, 2  ;;  %v20668_v0 = vld [vmem:[#allocation125_spill] sm:$0xff] }
 0x4ac   :  { %v3389_v8 = vpop.f32.mrb[140].mxu0  ;;  %v7708_v47 = vld [vmem:[#allocation2 + $0x218] sm:$0xff] }
 0x4ad   :  { %7545 = vst [vmem:[#allocation2 + $0x228] sm:$0xff] %v7462_v20  ;;  %v4721_v63 = vadd.f32 %v20660_v4, %v3389_v8  ;;  %v14374_v52 = vpop.f32.mrb[141].mxu0  ;;  %v19586_v15 = vadd.f32 %v19515_v14, %v8660_v60  ;;  %v8661_v46 = vadd.f32 %v20661_v12, %v7708_v47  ;;  %v16248_v14 = vld [vmem:[%s20305_s0 + $0xd0] sm:$0xff]   ;;  %v20666_v62 = vld [vmem:[#allocation206_spill] sm:$0xff]  ;;  %v20667_v4 = vld [vmem:[#allocation59_spill] sm:$0xff] }
 0x4ae   :  { %v3392_v59 = vpop.f32.mrb[142].mxu0 }
 0x4af   :  { %v6239_v35 = vadd.f32 %v20662_v10, %v4721_v63  ;;  %v4722_v25 = vadd.f32 %v20663_v48, %v3392_v59  ;;  %v14375_v7 = vpop.f32.mrb[143].mxu0  ;;  %v19600_v61 = vadd.f32 %v19523_v51, %v8661_v46  ;;  %v10784_v51 = vrot.slane %v16248_v14, 3  ;;  %v16251_v59 = vld [vmem:[%s20305_s0 + $0xc0] sm:$0xff]   ;;  %v20669_v48 = vld [vmem:[#allocation61_spill] sm:$0xff] }
 0x4b0   :  { %v16250_v14 = vld [vmem:[%s20305_s0 + $0xd8] sm:$0xff]  }
 0x4b1   :  { %v7463_v5 = vadd.f32 %v20664_v56, %v6239_v35  ;;  %v6240_v20 = vadd.f32 %v20665_v41, %v4722_v25  ;;  %14813 = vmatmul.mubr.msk.bf16.gmra.mrb[168].mxu0 %vm373_vm1, %v8046_v43  ;;  %v8048_v43 = vsel %vm6791_vm5, %v8045_v53, %v8047_v30  ;;  %v20671_v41 = vld [vmem:[#allocation128_spill] sm:$0xff] }
 0x4b2   :  { %15209 = vmatmul.mubr.msk.bf16.gmra.mrb[152].mxu1 %vm373_vm1, %v10783_v40  ;;  %14816 = vmatprep.mubr.msk.bf16.mxu0 %vm16321_vm0, %v20338_v29  ;;  %v10785_v40 = vsel %vm10736_vm7, %v10782_v24, %v10784_v51  ;;  %v20672_v24 = vld [vmem:[#allocation211_spill] sm:$0xff] }
 0x4b3   :  { %7546 = vst [vmem:[#allocation2 + $0x230] sm:$0xff] %v7463_v5  ;;  %v7464_v60 = vadd.f32 %v20666_v62, %v6240_v20  ;;  %15212 = vmatprep.mubr.msk.bf16.mxu1 %vm16321_vm0, %v20338_v29  ;;  %v20670_v5 = vld [vmem:[#allocation209_spill] sm:$0xff]  ;;  %v8049_v62 = vrot.slane %v16251_v59, 2 }
 0x4b4   :  { %v3397_v8 = vpop.f32.mrb[144].mxu0  ;;  %v20676_v59 = vld [vmem:[#allocation229_spill] sm:$0xff] }
 0x4b5   :  { %7547 = vst [vmem:[#allocation2 + $0x238] sm:$0xff] %v7464_v60  ;;  %v19611_v47 = vpop.f32.mrb[212].mxu1  ;;  %v4723_v63 = vadd.f32 %v20667_v4, %v3397_v8  ;;  %v14378_v52 = vpop.f32.mrb[145].mxu0  ;;  %v10786_v4 = vrot.slane %v16250_v14, 3  ;;  %v16253_v14 = vld [vmem:[%s20305_s0 + $0xc8] sm:$0xff]  }
 0x4b6   :  { %v15078_v12 = vpop.f32.mrb[213].mxu1  ;;  %v3400_v46 = vpop.f32.mrb[146].mxu0 }
 0x4b7   :  { %v6241_v10 = vadd.f32 %v20668_v0, %v4723_v63  ;;  %v19619_v35 = vpop.f32.mrb[214].mxu1  ;;  %v4724_v25 = vadd.f32 %v20669_v48, %v3400_v46  ;;  %v14379_v7 = vpop.f32.mrb[147].mxu0  ;;  %v20673_v63 = vld [vmem:[#allocation228_spill] sm:$0xff] }
 0x4b8   :  { %v15079_v56 = vpop.f32.mrb[215].mxu1  ;;  %v8050_v7 = vsel %vm6791_vm5, %v8047_v30, %v8049_v62 }
 0x4b9   :  { %v7465_v53 = vadd.f32 %v20670_v5, %v6241_v10  ;;  %v6242_v20 = vadd.f32 %v20671_v41, %v4724_v25  ;;  %14817 = vmatmul.mubr.msk.bf16.gmra.mrb[172].mxu0 %vm373_vm1, %v8048_v43  ;;  %v20674_v43 = vld [vmem:[#allocation58_spill] sm:$0xff]  ;;  %v20677_v56 = vld [vmem:[#allocation124_spill] sm:$0xff] }
 0x4ba   :  { %15213 = vmatmul.mubr.msk.bf16.gmra.mrb[16].mxu1 %vm373_vm1, %v10785_v40  ;;  %14820 = vmatprep.mubr.msk.bf16.mxu0 %vm16321_vm0, %v20338_v29  ;;  %v7711_v60 = vld [vmem:[#allocation2 + $0x230] sm:$0xff] }
 0x4bb   :  { %7548 = vst [vmem:[#allocation2 + $0x240] sm:$0xff] %v7465_v53  ;;  %v7466_v8 = vadd.f32 %v20672_v24, %v6242_v20  ;;  %15216 = vmatprep.mubr.msk.bf16.mxu1 %vm16321_vm0, %v20338_v29  ;;  %v8664_v52 = vadd.f32 %v20673_v63, %v7711_v60  ;;  %v20678_v53 = vld [vmem:[#allocation60_spill] sm:$0xff]  ;;  %v10787_v20 = vsel %vm10736_vm7, %v10784_v51, %v10786_v4  ;;  %v20681_v63 = vld [vmem:[#allocation126_spill] sm:$0xff]  ;;  %v8051_v51 = vrot.slane %v16253_v14, 2 }
 0x4bc   :  { %v3405_v12 = vpop.f32.mrb[148].mxu0  ;;  %v7712_v46 = vld [vmem:[#allocation2 + $0x238] sm:$0xff]  ;;  %v16255_v14 = vld [vmem:[%s20305_s0 + $0xd0] sm:$0xff]  }
 0x4bd   :  { %7549 = vst [vmem:[#allocation2 + $0x248] sm:$0xff] %v7466_v8  ;;  %v4725_v0 = vadd.f32 %v20674_v43, %v3405_v12  ;;  %v14382_v10 = vpop.f32.mrb[149].mxu0  ;;  %v19638_v48 = vadd.f32 %v19559_v22, %v8664_v52  ;;  %v8665_v25 = vadd.f32 %v20676_v59, %v7712_v46  ;;  %v16252_v22 = vld [vmem:[%s20305_s0 + $0xe0] sm:$0xff]   ;;  %v20680_v8 = vld [vmem:[#allocation208_spill] sm:$0xff] }
 0x4be   :  { %v3408_v40 = vpop.f32.mrb[150].mxu0  ;;  %v20682_v12 = vld [vmem:[#allocation210_spill] sm:$0xff]  ;;  %v20683_v10 = vld [vmem:[#allocation63_spill] sm:$0xff] }
 0x4bf   :  { %20675 = vst [vmem:[#allocation73_spill] sm:$0xff] %v19638_v48  ;;  %v6243_v5 = vadd.f32 %v20677_v56, %v4725_v0  ;;  %v4726_v41 = vadd.f32 %v20678_v53, %v3408_v40  ;;  %v14383_v60 = vpop.f32.mrb[151].mxu0  ;;  %v19652_v24 = vadd.f32 %v19567_v16, %v8665_v25  ;;  %v10788_v16 = vrot.slane %v16252_v22, 3 }
 0x4c0   :  { %v8052_v56 = vsel %vm6791_vm5, %v8049_v62, %v8051_v51 }
 0x4c1   :  { %20679 = vst [vmem:[#allocation9_spill] sm:$0xff] %v19652_v24  ;;  %v7467_v30 = vadd.f32 %v20680_v8, %v6243_v5  ;;  %v6244_v52 = vadd.f32 %v20681_v63, %v4726_v41  ;;  %14821 = vmatmul.mubr.msk.bf16.gmra.mrb[0].mxu0 %vm373_vm1, %v8050_v7  ;;  %v20684_v5 = vld [vmem:[#allocation130_spill] sm:$0xff]  ;;  %v10789_v22 = vsel %vm10736_vm7, %v10786_v4, %v10788_v16  ;;  %v20688_v4 = vld [vmem:[#allocation215_spill] sm:$0xff] }
 0x4c2   :  { %15217 = vmatmul.mubr.msk.bf16.gmra.mrb[160].mxu1 %vm373_vm1, %v10787_v20  ;;  %14824 = vmatprep.mubr.msk.bf16.mxu0 %vm16321_vm0, %v20338_v29  ;;  %v20685_v20 = vld [vmem:[#allocation65_spill] sm:$0xff] }
 0x4c3   :  { %7550 = vst [vmem:[#allocation2 + $0x250] sm:$0xff] %v7467_v30  ;;  %v7468_v46 = vadd.f32 %v20682_v12, %v6244_v52  ;;  %15220 = vmatprep.mubr.msk.bf16.mxu1 %vm16321_vm0, %v20338_v29  ;;  %v16254_v30 = vld [vmem:[%s20305_s0 + $0xe8] sm:$0xff]   ;;  %v20686_v52 = vld [vmem:[#allocation213_spill] sm:$0xff] }
 0x4c4   :  { %v3413_v43 = vpop.f32.mrb[152].mxu0  ;;  %v20687_v12 = vld [vmem:[#allocation132_spill] sm:$0xff] }
 0x4c5   :  { %7551 = vst [vmem:[#allocation2 + $0x258] sm:$0xff] %v7468_v46  ;;  %v19663_v0 = vpop.f32.mrb[220].mxu1  ;;  %v4727_v59 = vadd.f32 %v20683_v10, %v3413_v43  ;;  %v14386_v25 = vpop.f32.mrb[153].mxu0  ;;  %v8053_v43 = vrot.slane %v16255_v14, 2 }
 0x4c6   :  { %v15086_v40 = vpop.f32.mrb[221].mxu1  ;;  %v3416_v7 = vpop.f32.mrb[154].mxu0  ;;  %v10790_v25 = vrot.slane %v16254_v30, 3  ;;  %v16257_v30 = vld [vmem:[%s20305_s0 + $0xd8] sm:$0xff]  }
 0x4c7   :  { %v6245_v53 = vadd.f32 %v20684_v5, %v4727_v59  ;;  %v19671_v41 = vpop.f32.mrb[222].mxu1  ;;  %v4728_v60 = vadd.f32 %v20685_v20, %v3416_v7  ;;  %v14387_v8 = vpop.f32.mrb[155].mxu0  ;;  %v20689_v40 = vld [vmem:[#allocation232_spill] sm:$0xff]  ;;  %v20690_v20 = vld [vmem:[#allocation62_spill] sm:$0xff] }
 0x4c8   :  { %v15087_v63 = vpop.f32.mrb[223].mxu1  ;;  %v20692_v8 = vld [vmem:[#allocation233_spill] sm:$0xff] }
 0x4c9   :  { %v7469_v62 = vadd.f32 %v20686_v52, %v6245_v53  ;;  %v6246_v46 = vadd.f32 %v20687_v12, %v4728_v60  ;;  %14825 = vmatmul.mubr.msk.bf16.gmra.mrb[4].mxu0 %vm373_vm1, %v8052_v56  ;;  %v8054_v12 = vsel %vm6791_vm5, %v8051_v51, %v8053_v43 }
 0x4ca   :  { %15221 = vmatmul.mubr.msk.bf16.gmra.mrb[20].mxu1 %vm373_vm1, %v10789_v22  ;;  %14828 = vmatprep.mubr.msk.bf16.mxu0 %vm16321_vm0, %v20338_v29  ;;  %v7715_v10 = vld [vmem:[#allocation2 + $0x250] sm:$0xff] }
 0x4cb   :  { %7552 = vst [vmem:[#allocation2 + $0x260] sm:$0xff] %v7469_v62  ;;  %v7470_v59 = vadd.f32 %v20688_v4, %v6246_v46  ;;  %15224 = vmatprep.mubr.msk.bf16.mxu1 %vm16321_vm0, %v20338_v29  ;;  %v8668_v7 = vadd.f32 %v20689_v40, %v7715_v10  ;;  %v20693_v46 = vld [vmem:[#allocation129_spill] sm:$0xff] }
 0x4cc   :  { %v3421_v5 = vpop.f32.mrb[156].mxu0  ;;  %v7716_v53 = vld [vmem:[#allocation2 + $0x258] sm:$0xff] }
 0x4cd   :  { %7553 = vst [vmem:[#allocation2 + $0x268] sm:$0xff] %v7470_v59  ;;  %v19688_v56 = vpop.f32.mrb[224].mxu1  ;;  %v4729_v60 = vadd.f32 %v20690_v20, %v3421_v5  ;;  %v14390_v22 = vpop.f32.mrb[157].mxu0  ;;  %v19692_v14 = vadd.f32 %v19611_v47, %v8668_v7  ;;  %v8669_v63 = vadd.f32 %v20692_v8, %v7716_v53  ;;  %v20694_v59 = vld [vmem:[#allocation64_spill] sm:$0xff]  ;;  %v10791_v5 = vsel %vm10736_vm7, %v10788_v16, %v10790_v25  ;;  %v20697_v8 = vld [vmem:[#allocation131_spill] sm:$0xff] }
 0x4ce   :  { %v15090_v52 = vpop.f32.mrb[225].mxu1  ;;  %v3424_v62 = vpop.f32.mrb[158].mxu0  ;;  %v16256_v47 = vld [vmem:[%s20305_s0 + $0xf0] sm:$0xff]   ;;  %v8055_v16 = vrot.slane %v16257_v30, 2  ;;  %v16259_v30 = vld [vmem:[%s20305_s0 + $0xe0] sm:$0xff]  }
 0x4cf   :  { %20691 = vst [vmem:[#allocation75_spill] sm:$0xff] %v19692_v14  ;;  %v6247_v10 = vadd.f32 %v20693_v46, %v4729_v60  ;;  %v10100_v4 = vpop.f32.mrb[226].mxu1  ;;  %v4730_v40 = vadd.f32 %v20694_v59, %v3424_v62  ;;  %v14391_v20 = vpop.f32.mrb[159].mxu0  ;;  %v19706_v7 = vadd.f32 %v19619_v35, %v8669_v63  ;;  %v20696_v53 = vld [vmem:[#allocation212_spill] sm:$0xff]  ;;  %v20698_v60 = vld [vmem:[#allocation214_spill] sm:$0xff]  ;;  %v10792_v35 = vrot.slane %v16256_v47, 3 }
 0x4d0   :  { %v15091_v51 = vpop.f32.mrb[227].mxu1  ;;  %v20701_v47 = vld [vmem:[#allocation68_spill] sm:$0xff] }
 0x4d1   :  { %20695 = vst [vmem:[#allocation6_spill] sm:$0xff] %v19706_v7  ;;  %v7471_v22 = vadd.f32 %v20696_v53, %v6247_v10  ;;  %v6248_v52 = vadd.f32 %v20697_v8, %v4730_v40  ;;  %14829 = vmatmul.mubr.msk.bf16.gmra.mrb[8].mxu0 %vm373_vm1, %v8054_v12  ;;  %v20699_v10 = vld [vmem:[#allocation67_spill] sm:$0xff]  ;;  %v20700_v51 = vld [vmem:[#allocation134_spill] sm:$0xff]  ;;  %v10793_v8 = vsel %vm10736_vm7, %v10790_v25, %v10792_v35 }
 0x4d2   :  { %15225 = vmatmul.mubr.msk.bf16.gmra.mrb[168].mxu1 %vm373_vm1, %v10791_v5  ;;  %14832 = vmatprep.mubr.msk.bf16.mxu0 %vm16321_vm0, %v20338_v29  ;;  %v8056_v5 = vsel %vm6791_vm5, %v8053_v43, %v8055_v16  ;;  %v20702_v43 = vld [vmem:[#allocation217_spill] sm:$0xff] }
 0x4d3   :  { %7554 = vst [vmem:[#allocation2 + $0x270] sm:$0xff] %v7471_v22  ;;  %v7472_v62 = vadd.f32 %v20698_v60, %v6248_v52  ;;  %15228 = vmatprep.mubr.msk.bf16.mxu1 %vm16321_vm0, %v20338_v29  ;;  %v19732_v60 = vld [vmem:[%s20305_s0 + $0xf8] sm:$0xff]  }
 0x4d4   :  { %v3429_v63 = vpop.f32.mrb[160].mxu0 }
 0x4d5   :  { %7555 = vst [vmem:[#allocation2 + $0x278] sm:$0xff] %v7472_v62  ;;  %v19717_v46 = vpop.f32.mrb[64].mxu1  ;;  %v4731_v4 = vadd.f32 %v20699_v10, %v3429_v63  ;;  %v14394_v12 = vpop.f32.mrb[161].mxu0  ;;  %v20703_v10 = vld [vmem:[#allocation135_spill] sm:$0xff] }
 0x4d6   :  { %v15122_v59 = vpop.f32.mrb[65].mxu1  ;;  %v3432_v40 = vpop.f32.mrb[162].mxu0 }
 0x4d7   :  { %v19724_v20 = vpop.f32.mrb[66].mxu1  ;;  %v6249_v53 = vadd.f32 %v20700_v51, %v4731_v4  ;;  %v4732_v22 = vadd.f32 %v20701_v47, %v3432_v40  ;;  %v14395_v52 = vpop.f32.mrb[163].mxu0  ;;  %v8057_v4 = vrot.slane %v16259_v30, 2  ;;  %v20704_v59 = vld [vmem:[#allocation218_spill] sm:$0xff]  ;;  %v10794_v51 = vrot.slane %v19732_v60, 3  ;;  %v19755_v60 = vld [vmem:[%s20305_s0 + $0xe8] sm:$0xff]  }
 0x4d8   :  { %v15123_v62 = vpop.f32.mrb[67].mxu1 }
 0x4d9   :  { %v7473_v63 = vadd.f32 %v20702_v43, %v6249_v53  ;;  %v6250_v12 = vadd.f32 %v20703_v10, %v4732_v22  ;;  %14833 = vmatmul.mubr.msk.bf16.gmra.mrb[12].mxu0 %vm373_vm1, %v8056_v5  ;;  %v20705_v53 = vld [vmem:[#allocation236_spill] sm:$0xff]  ;;  %v20707_v62 = vld [vmem:[#allocation237_spill] sm:$0xff] }
 0x4da   :  { %15229 = vmatmul.mubr.msk.bf16.gmra.mrb[24].mxu1 %vm373_vm1, %v10793_v8  ;;  %14836 = vmatprep.mubr.msk.bf16.mxu0 %vm16321_vm0, %v20338_v29  ;;  %v7719_v25 = vld [vmem:[#allocation2 + $0x270] sm:$0xff] }
 0x4db   :  { %7556 = vst [vmem:[#allocation2 + $0x280] sm:$0xff] %v7473_v63  ;;  %v7474_v40 = vadd.f32 %v20704_v59, %v6250_v12  ;;  %15232 = vmatprep.mubr.msk.bf16.mxu1 %vm16321_vm0, %v20338_v29  ;;  %v8672_v47 = vadd.f32 %v20705_v53, %v7719_v25  ;;  %v8058_v12 = vsel %vm6791_vm5, %v8055_v16, %v8057_v4 }
 0x4dc   :  { %v3437_v22 = vpop.f32.mrb[164].mxu0  ;;  %v7720_v52 = vld [vmem:[#allocation2 + $0x278] sm:$0xff]  ;;  %v10795_v59 = vsel %vm10736_vm7, %v10792_v35, %v10794_v51 }
 0x4dd   :  { %7557 = vst [vmem:[#allocation2 + $0x288] sm:$0xff] %v7474_v40  ;;  %v19745_v5 = vpop.f32.mrb[228].mxu1  ;;  %3618 = vst [vmem:[#allocation2 + $0x290] sm:$0xff] %v3437_v22  ;;  %v14398_v8 = vpop.f32.mrb[165].mxu0  ;;  %v19748_v30 = vadd.f32 %v19663_v0, %v8672_v47  ;;  %v8673_v43 = vadd.f32 %v20707_v62, %v7720_v52  ;;  %v16260_v0 = vld [vmem:[%s20305_s0 + $0x100] sm:$0xff]   ;;  %v8059_v22 = vrot.slane %v19755_v60, 2 }
 0x4de   :  { %v15126_v63 = vpop.f32.mrb[229].mxu1  ;;  %v3440_v10 = vpop.f32.mrb[166].mxu0  ;;  %v20709_v35 = vld [vmem:[#allocation238_spill] sm:$0xff]  ;;  %v10796_v8 = vrot.slane %v16260_v0, 3  ;;  %v19782_v0 = vld [vmem:[%s20305_s0 + $0x108] sm:$0xff]  }
 0x4df   :  { %20706 = vst [vmem:[#allocation72_spill] sm:$0xff] %v19748_v30  ;;  %v19757_v25 = vpop.f32.mrb[230].mxu1  ;;  %3619 = vst [vmem:[#allocation2 + $0x298] sm:$0xff] %v3440_v10  ;;  %v14399_v40 = vpop.f32.mrb[167].mxu0  ;;  %v19764_v53 = vadd.f32 %v19671_v41, %v8673_v43  ;;  %v2537_v62 = vld [vmem:[#allocation2 + $0x2a0] sm:$0x3f] }
 0x4e0   :  { %v15127_v47 = vpop.f32.mrb[231].mxu1  ;;  %v20710_v10 = vld [vmem:[#allocation239_spill] sm:$0xff]  ;;  %v20711_v40 = vld [vmem:[#allocation66_spill] sm:$0xff] }
 0x4e1   :  { %20708 = vst [vmem:[#allocation8_spill] sm:$0xff] %v19764_v53  ;;  %14837 = vmatmul.mubr.msk.bf16.gmra.mrb[16].mxu0 %vm373_vm1, %v8058_v12 }
 0x4e2   :  { %v7721_v16 = vld [vmem:[#allocation2 + $0x280] sm:$0xf]  ;;  %15233 = vmatmul.mubr.msk.bf16.gmra.mrb[176].mxu1 %vm373_vm1, %v10795_v59  ;;  %14840 = vmatprep.mubr.msk.bf16.mxu0 %vm16321_vm0, %v20338_v29 }
 0x4e3   :  { %v8674_v52 = vadd.f32 %v20709_v35, %v7721_v16  ;;  %15236 = vmatprep.mubr.msk.bf16.mxu1 %vm16321_vm0, %v20338_v29  ;;  %v8060_v35 = vsel %vm6791_vm5, %v8057_v4, %v8059_v22 }
 0x4e4   :  { %v8756_v41 = vld [vmem:[#allocation2 + $0x284] sm:$0xff]  ;;  %v3758_v43 = vld [vmem:[#allocation2 + $0x290] sm:$0x3f]  ;;  %v3445_v63 = vpop.f32.mrb[176].mxu0 }
 0x4e5   :  { %8755 = vst [vmem:[#allocation2 + $0x280] sm:$0xf] %v8674_v52  ;;  %v8844_v12 = vadd.f32 %v20710_v10, %v8756_v41  ;;  %v4733_v59 = vadd.f32 %v20711_v40, %v3758_v43  ;;  %v19776_v47 = vpop.f32.mrb[72].mxu1  ;;  %v3535_v53 = vadd.f32 %v3445_v63, %v2537_v62  ;;  %v14402_v30 = vpop.f32.mrb[177].mxu0  ;;  %v19787_v52 = vld [vmem:[%s20305_s0 + $0xf0] sm:$0xff]   ;;  %v6417_v63 = vld [vmem:[#allocation2] sm:$0xff] }
 0x4e6   :  { %v4817_v60 = vld [vmem:[#allocation2 + $0x296] sm:$0xff]  ;;  %v15130_v7 = vpop.f32.mrb[73].mxu1  ;;  %v3448_v16 = vpop.f32.mrb[178].mxu0  ;;  %v6418_v10 = vld [vmem:[#allocation2 + $0x8] sm:$0xff]  ;;  %v10798_v40 = vrot.slane %v19782_v0, 3 }
 0x4e7   :  { %8849 = vst [vmem:[#allocation2 + $0x284] sm:$0xff] %v8844_v12  ;;  %4816 = vst [vmem:[#allocation2 + $0x290] sm:$0x3f] %v4733_v59  ;;  %v20712_v41 = vld [vmem:[#allocation69_spill] sm:$0xff]  ;;  %v19790_v30 = vpop.f32.mrb[74].mxu1  ;;  %v10797_v7 = vsel %vm10736_vm7, %v10794_v51, %v10796_v8  ;;  %v14403_v4 = vpop.f32.mrb[179].mxu0 }
 0x4e8   :  { %v4885_v62 = vadd.f32 %v20712_v41, %v4817_v60  ;;  %3620 = vst [vmem:[#allocation2 + $0x2a0] sm:$0x3f] %v3535_v53  ;;  %v15131_v43 = vpop.f32.mrb[75].mxu1  ;;  %v8061_v12 = vrot.slane %v19787_v52, 2  ;;  %v20713_v59 = vld [vmem:[#allocation140_spill] sm:$0xff]  ;;  %v10799_v52 = vsel %vm10736_vm7, %v10796_v8, %v10798_v40 }
 0x4e9   :  { %14841 = vmatmul.mubr.msk.bf16.gmra.mrb[20].mxu0 %vm373_vm1, %v8060_v35  ;;  %v7393_v53 = vadd.f32 %v20713_v59, %v6417_v63  ;;  %v19811_v59 = vld [vmem:[%s20305_s0 + $0xf8] sm:$0xff]  }
 0x4ea   :  { %4888 = vst [vmem:[#allocation2 + $0x296] sm:$0xff] %v4885_v62  ;;  %15237 = vmatmul.mubr.msk.bf16.gmra.mrb[28].mxu1 %vm373_vm1, %v10797_v7  ;;  %14844 = vmatprep.mubr.msk.bf16.mxu0 %vm16321_vm0, %v20338_v29  ;;  %v20714_v7 = vld [vmem:[#allocation142_spill] sm:$0xff]  ;;  %v8062_v63 = vsel %vm6791_vm5, %v8059_v22, %v8061_v12  ;;  %v19821_v22 = vld [vmem:[%s20305_s0 + $0x110] sm:$0xff]  }
 0x4eb   :  { %15240 = vmatprep.mubr.msk.bf16.mxu1 %vm16321_vm0, %v20338_v29  ;;  %v7394_v0 = vadd.f32 %v20714_v7, %v6418_v10 }
 0x4ec   :  { %v8942_v51 = vld [vmem:[#allocation2 + $0x280] sm:$0x7]  ;;  %v8268_v60 = vpop.f32.mrb[180].mxu0 }
 0x4ed   :  { %v10183_v16 = vadd.f32 %v19688_v56, %v8942_v51  ;;  %v19803_v35 = vpop.f32.mrb[232].mxu1  ;;  %v8594_v41 = vadd.f32 %v8268_v60, %v7393_v53  ;;  %v14738_v62 = vpop.f32.mrb[181].mxu0  ;;  %v20715_v56 = vld [vmem:[#allocation133_spill] sm:$0xff]  ;;  %v20716_v53 = vld [vmem:[#allocation70_spill] sm:$0xff] }
 0x4ee   :  { %v4981_v4 = vld [vmem:[#allocation2 + $0x290] sm:$0x1f]  ;;  %v15134_v14 = vpop.f32.mrb[233].mxu1  ;;  %v8271_v24 = vpop.f32.mrb[182].mxu0 }
 0x4ef   :  { %v4818_v43 = vld [vmem:[#allocation2 + $0x29e] sm:$0xff]  ;;  %10264 = vst [vmem:[#allocation2 + $0x280] sm:$0x7] %v10183_v16  ;;  %v6251_v51 = vadd.f32 %v20715_v56, %v4981_v4  ;;  %v15314_v10 = vadd.f32 %v19717_v46, %v8594_v41  ;;  %v19816_v62 = vpop.f32.mrb[234].mxu1  ;;  %v8595_v14 = vadd.f32 %v8271_v24, %v7394_v0  ;;  %v14739_v7 = vpop.f32.mrb[183].mxu0  ;;  %v20717_v16 = vld [vmem:[#allocation137_spill] sm:$0xff] }
 0x4f0   :  { %v4886_v60 = vadd.f32 %v20716_v53, %v4818_v43  ;;  %v15135_v48 = vpop.f32.mrb[235].mxu1  ;;  %v6420_v24 = vld [vmem:[#allocation2 + $0x18] sm:$0xff]  ;;  %v8063_v46 = vrot.slane %v19811_v59, 2  ;;  %v20718_v41 = vld [vmem:[#allocation139_spill] sm:$0xff] }
 0x4f1   :  { %v6335_v8 = vld [vmem:[#allocation2 + $0x295] sm:$0xff]  ;;  %6334 = vst [vmem:[#allocation2 + $0x290] sm:$0x1f] %v6251_v51  ;;  %11406 = vst [vmem:[#allocation2] sm:$0xff] %v15314_v10  ;;  %v15317_v4 = vadd.f32 %v19724_v20, %v8595_v14  ;;  %14845 = vmatmul.mubr.msk.bf16.gmra.mrb[24].mxu0 %vm373_vm1, %v8062_v63  ;;  %v7395_v0 = vadd.f32 %v20718_v41, %v6419_v36  ;;  %v10800_v20 = vrot.slane %v19821_v22, 3  ;;  %v19841_v36 = vld [vmem:[%s20305_s0 + $0x100] sm:$0xff]  }
 0x4f2   :  { %v6403_v31 = vadd.f32 %v20717_v16, %v6335_v8  ;;  %4889 = vst [vmem:[#allocation2 + $0x29e] sm:$0xff] %v4886_v60  ;;  %15241 = vmatmul.mubr.msk.bf16.gmra.mrb[184].mxu1 %vm373_vm1, %v10799_v52  ;;  %14848 = vmatprep.mubr.msk.bf16.mxu0 %vm16321_vm0, %v20338_v29  ;;  %v20719_v51 = vld [vmem:[#allocation141_spill] sm:$0xff]  ;;  %v6421_v16 = vld [vmem:[#allocation2 + $0x20] sm:$0xff] }
 0x4f3   :  { %11407 = vst [vmem:[#allocation2 + $0x8] sm:$0xff] %v15317_v4  ;;  %v13141_v48 = vpack.c.bf16 %v15317_v4, %v15314_v10  ;;  %15244 = vmatprep.mubr.msk.bf16.mxu1 %vm16321_vm0, %v20338_v29  ;;  %v7396_v53 = vadd.f32 %v20719_v51, %v6420_v24  ;;  %v10801_v22 = vsel %vm10736_vm7, %v10798_v40, %v10800_v20  ;;  %v19850_v4 = vld [vmem:[%s20305_s0 + $0x118] sm:$0xff]  }
 0x4f4   :  { %6406 = vst [vmem:[#allocation2 + $0x295] sm:$0xff] %v6403_v31  ;;  %v8276_v43 = vpop.f32.mrb[184].mxu0  ;;  %v8064_v31 = vsel %vm6791_vm5, %v8061_v12, %v8063_v46 }
 0x4f5   :  { %13142 = vst [vmem:[#allocation3] sm:$0xff] %v13141_v48   ;;  %v19834_v63 = vpop.f32.mrb[80].mxu1  ;;  %v8596_v52 = vadd.f32 %v8276_v43, %v7395_v0  ;;  %v14742_v56 = vpop.f32.mrb[185].mxu0  ;;  %v20720_v0 = vld [vmem:[#allocation216_spill] sm:$0xff] }
 0x4f6   :  { %v15138_v60 = vpop.f32.mrb[81].mxu1  ;;  %v8279_v59 = vpop.f32.mrb[186].mxu0  ;;  %v20721_v56 = vld [vmem:[#allocation138_spill] sm:$0xff] }
 0x4f7   :  { %v19843_v10 = vpop.f32.mrb[82].mxu1  ;;  %v10105_v14 = vadd.f32 %v18862_v18, %v8596_v52  ;;  %v8597_v7 = vadd.f32 %v8279_v59, %v7396_v53  ;;  %v14743_v8 = vpop.f32.mrb[187].mxu0  ;;  %v20722_v60 = vld [vmem:[#allocation136_spill] sm:$0xff] }
 0x4f8   :  { %v6499_v12 = vld [vmem:[#allocation2 + $0x290] sm:$0xf]  ;;  %v15139_v41 = vpop.f32.mrb[83].mxu1  ;;  %v6422_v59 = vld [vmem:[#allocation2 + $0x28] sm:$0xff]  ;;  %v20313_v8 = vrot.slane %v19841_v36, 2 }
 0x4f9   :  { %v6336_v24 = vld [vmem:[#allocation2 + $0x29d] sm:$0xff]  ;;  %v6337_v48 = vld [vmem:[#allocation2 + $0x2a5] sm:$0x7]  ;;  %v7475_v43 = vadd.f32 %v20720_v0, %v6499_v12  ;;  %v11327_v52 = vadd.f32 %v19745_v5, %v10105_v14  ;;  %14849 = vmatmul.mubr.msk.bf16.gmra.mrb[28].mxu0 %vm373_vm1, %v8064_v31  ;;  %v10106_v53 = vadd.f32 %v18875_v13, %v8597_v7  ;;  %v20723_v12 = vld [vmem:[#allocation220_spill] sm:$0xff]  ;;  %v10802_v13 = vrot.slane %v19850_v4, 3 }
 0x4fa   :  { %v6404_v51 = vadd.f32 %v20721_v56, %v6336_v24  ;;  %v6405_v18 = vadd.f32 %v20722_v60, %v6337_v48  ;;  %15245 = vmatmul.mubr.msk.bf16.gmra.mrb[32].mxu1 %vm373_vm1, %v10801_v22  ;;  %14852 = vmatprep.mubr.msk.bf16.mxu0 %vm16321_vm0, %v20338_v29  ;;  %v20724_v5 = vld [vmem:[#allocation144_spill] sm:$0xff]  ;;  %v20725_v0 = vld [vmem:[#allocation146_spill] sm:$0xff] }
 0x4fb   :  { %v7559_v40 = vld [vmem:[#allocation2 + $0x294] sm:$0xff]  ;;  %7558 = vst [vmem:[#allocation2 + $0x290] sm:$0xf] %v7475_v43  ;;  %11408 = vst [vmem:[#allocation2 + $0x10] sm:$0xff] %v11327_v52  ;;  %v7397_v14 = vadd.f32 %v20724_v5, %v6421_v16  ;;  %15248 = vmatprep.mubr.msk.bf16.mxu1 %vm16321_vm0, %v20338_v29  ;;  %v11328_v31 = vadd.f32 %v19757_v25, %v10106_v53  ;;  %v7398_v43 = vadd.f32 %v20725_v0, %v6422_v59  ;;  %v19877_v25 = vld [vmem:[%s20305_s0 + $0x120] sm:$0xff]  }
 0x4fc   :  { %v7627_v24 = vadd.f32 %v20723_v12, %v7559_v40  ;;  %6407 = vst [vmem:[#allocation2 + $0x29d] sm:$0xff] %v6404_v51  ;;  %6408 = vst [vmem:[#allocation2 + $0x2a5] sm:$0x7] %v6405_v18  ;;  %v8284_v7 = vpop.f32.mrb[188].mxu0  ;;  %v8066_v16 = vsel %vm6791_vm5, %v8063_v46, %v20313_v8  ;;  %v19882_v4 = vld [vmem:[%s20305_s0 + $0x108] sm:$0xff]   ;;  %v10803_v53 = vsel %vm10736_vm7, %v10800_v20, %v10802_v13  ;;  %v6423_v12 = vld [vmem:[#allocation2 + $0x30] sm:$0xff] }
 0x4fd   :  { %v19868_v22 = vpop.f32.mrb[236].mxu1  ;;  %v8598_v48 = vadd.f32 %v8284_v7, %v7397_v14  ;;  %v14746_v41 = vpop.f32.mrb[189].mxu0  ;;  %11409 = vst [vmem:[#allocation2 + $0x18] sm:$0xff] %v11328_v31  ;;  %v13146_v56 = vpack.c.bf16 %v11328_v31, %v11327_v52  ;;  %v6424_v5 = vld [vmem:[#allocation2 + $0x38] sm:$0xff]  ;;  %v20726_v31 = vld [vmem:[#allocation143_spill] sm:$0xff]  ;;  %v8067_v20 = vrot.slane %v19882_v4, 2 }
 0x4fe   :  { %7630 = vst [vmem:[#allocation2 + $0x294] sm:$0xff] %v7627_v24  ;;  %v15142_v51 = vpop.f32.mrb[237].mxu1  ;;  %v8287_v60 = vpop.f32.mrb[190].mxu0  ;;  %v20727_v0 = vld [vmem:[#allocation219_spill] sm:$0xff] }
 0x4ff   :  { %v15320_v18 = vadd.f32 %v19776_v47, %v8598_v48  ;;  %v19885_v40 = vpop.f32.mrb[238].mxu1  ;;  %v8599_v52 = vadd.f32 %v8287_v60, %v7398_v43  ;;  %v14747_v59 = vpop.f32.mrb[191].mxu0  ;;  %13348 = vst [vmem:[#allocation3 + $0x8] sm:$0xff] %v13146_v56   ;;  %v7399_v47 = vadd.f32 %v20726_v31, %v6423_v12  ;;  %v20728_v56 = vld [vmem:[#allocation240_spill] sm:$0xff]  ;;  %v20729_v60 = vld [vmem:[#allocation221_spill] sm:$0xff] }
 0x500   :  { %v15143_v46 = vpop.f32.mrb[239].mxu1 }
 0x501   :  { %11410 = vst [vmem:[#allocation2 + $0x20] sm:$0xff] %v15320_v18  ;;  %v15323_v24 = vadd.f32 %v19790_v30, %v8599_v52  ;;  %14853 = vmatmul.mubr.msk.bf16.gmra.mrb[32].mxu0 %vm373_vm1, %v8066_v16  ;;  %v20730_v46 = vld [vmem:[#allocation145_spill] sm:$0xff] }
 0x502   :  { %15249 = vmatmul.mubr.msk.bf16.gmra.mrb[192].mxu1 %vm373_vm1, %v10803_v53  ;;  %14856 = vmatprep.mubr.msk.bf16.mxu0 %vm16321_vm0, %v20338_v29  ;;  %v8757_v48 = vld [vmem:[#allocation2 + $0x28c] sm:$0xff]  ;;  %v7400_v31 = vadd.f32 %v20730_v46, %v6424_v5 }
 0x503   :  { %v7561_v14 = vld [vmem:[#allocation2 + $0x2a4] sm:$0xf]  ;;  %v7560_v41 = vld [vmem:[#allocation2 + $0x29c] sm:$0xff]  ;;  %11411 = vst [vmem:[#allocation2 + $0x28] sm:$0xff] %v15323_v24  ;;  %v13151_v30 = vpack.c.bf16 %v15323_v24, %v15320_v18  ;;  %15252 = vmatprep.mubr.msk.bf16.mxu1 %vm16321_vm0, %v20338_v29  ;;  %v8845_v51 = vadd.f32 %v20728_v56, %v8757_v48  ;;  %v20733_v48 = vrot.slane %v19841_v36, 2 }
 0x504   :  { %v7629_v43 = vadd.f32 %v20727_v0, %v7561_v14  ;;  %v7628_v16 = vadd.f32 %v20729_v60, %v7560_v41  ;;  %v8292_v52 = vpop.f32.mrb[192].mxu0  ;;  %v20731_v14 = vld [vmem:[#allocation241_spill] sm:$0xff]  ;;  %v20732_v24 = vld [vmem:[#allocation242_spill] sm:$0xff]  ;;  %v19918_v60 = vld [vmem:[%s20305_s0 + $0x128] sm:$0xff]  }
 0x505   :  { %v8758_v53 = vld [vmem:[#allocation2 + $0x294] sm:$0xff]  ;;  %13349 = vst [vmem:[#allocation3 + $0x10] sm:$0xff] %v13151_v30   ;;  %v19901_v59 = vpop.f32.mrb[88].mxu1  ;;  %v8600_v4 = vadd.f32 %v8292_v52, %v7399_v47  ;;  %v14750_v12 = vpop.f32.mrb[193].mxu0  ;;  %8850 = vst [vmem:[#allocation2 + $0x28c] sm:$0xff] %v8845_v51  ;;  %v8068_v41 = vsel %vm6791_vm5, %v20733_v48, %v8067_v20  ;;  %v20734_v47 = vrot.slane %v19877_v25, 3 }
 0x506   :  { %7632 = vst [vmem:[#allocation2 + $0x2a4] sm:$0xf] %v7629_v43  ;;  %v8846_v18 = vadd.f32 %v20731_v14, %v8758_v53  ;;  %v8847_v0 = vadd.f32 %v20732_v24, %v7628_v16  ;;  %v15146_v7 = vpop.f32.mrb[89].mxu1  ;;  %v8295_v8 = vpop.f32.mrb[194].mxu0 }
 0x507   :  { %v19909_v56 = vpop.f32.mrb[90].mxu1  ;;  %v10109_v43 = vadd.f32 %v18904_v6, %v8600_v4  ;;  %v8601_v30 = vadd.f32 %v8295_v8, %v7400_v31  ;;  %v10805_v5 = vsel %vm10736_vm7, %v10802_v13, %v20734_v47  ;;  %v14751_v51 = vpop.f32.mrb[195].mxu0  ;;  %v6425_v7 = vld [vmem:[#allocation2 + $0x40] sm:$0xff]  ;;  %v6426_v6 = vld [vmem:[#allocation2 + $0x48] sm:$0xff] }
 0x508   :  { %8851 = vst [vmem:[#allocation2 + $0x294] sm:$0xff] %v8846_v18  ;;  %8852 = vst [vmem:[#allocation2 + $0x29c] sm:$0xff] %v8847_v0  ;;  %v15147_v36 = vpop.f32.mrb[91].mxu1  ;;  %v20735_v13 = vld [vmem:[#allocation148_spill] sm:$0xff]  ;;  %v20736_v18 = vld [vmem:[#allocation150_spill] sm:$0xff] }
 0x509   :  { %v11331_v16 = vadd.f32 %v19803_v35, %v10109_v43  ;;  %v10110_v52 = vadd.f32 %v18916_v26, %v8601_v30  ;;  %14857 = vmatmul.mubr.msk.bf16.gmra.mrb[36].mxu0 %vm373_vm1, %v8068_v41  ;;  %v7401_v53 = vadd.f32 %v20735_v13, %v6425_v7  ;;  %v10806_v35 = vrot.slane %v19918_v60, 3  ;;  %v20737_v0 = vld [vmem:[#allocation243_spill] sm:$0xff] }
 0x50a   :  { %15253 = vmatmul.mubr.msk.bf16.gmra.mrb[36].mxu1 %vm373_vm1, %v10805_v5  ;;  %14860 = vmatprep.mubr.msk.bf16.mxu0 %vm16321_vm0, %v20338_v29  ;;  %v7402_v24 = vadd.f32 %v20736_v18, %v6426_v6  ;;  %v20738_v43 = vld [vmem:[#allocation127_spill] sm:$0xff]  ;;  %v20740_v36 = vrot.slane %v19877_v25, 3 }
 0x50b   :  { %11412 = vst [vmem:[#allocation2 + $0x30] sm:$0xff] %v11331_v16  ;;  %v11332_v8 = vadd.f32 %v19816_v62, %v10110_v52  ;;  %15256 = vmatprep.mubr.msk.bf16.mxu1 %vm16321_vm0, %v20338_v29  ;;  %v20739_v30 = vrot.slane %v20738_v43, 2  ;;  %v19947_v52 = vld [vmem:[%s20305_s0 + $0x130] sm:$0xff]   ;;  %v20741_v13 = vld [vmem:[#allocation147_spill] sm:$0xff] }
 0x50c   :  { %v8300_v4 = vpop.f32.mrb[196].mxu0  ;;  %v10807_v7 = vsel %vm10736_vm7, %v20740_v36, %v10806_v35  ;;  %v6429_v36 = vld [vmem:[#allocation2 + $0x60] sm:$0xff] }
 0x50d   :  { %v8760_v26 = vld [vmem:[#allocation2 + $0x2a4] sm:$0xf]  ;;  %11413 = vst [vmem:[#allocation2 + $0x38] sm:$0xff] %v11332_v8  ;;  %v13156_v12 = vpack.c.bf16 %v11332_v8, %v11331_v16  ;;  %v19931_v46 = vpop.f32.mrb[240].mxu1  ;;  %v8602_v31 = vadd.f32 %v8300_v4, %v7401_v53  ;;  %v14754_v14 = vpop.f32.mrb[197].mxu0  ;;  %v8070_v47 = vsel %vm6791_vm5, %v8067_v20, %v20739_v30  ;;  %v6427_v8 = vld [vmem:[#allocation2 + $0x50] sm:$0xff] }
 0x50e   :  { %v8848_v48 = vadd.f32 %v20737_v0, %v8760_v26  ;;  %v15150_v62 = vpop.f32.mrb[241].mxu1  ;;  %v8303_v41 = vpop.f32.mrb[198].mxu0  ;;  %v7403_v53 = vadd.f32 %v20741_v13, %v6427_v8  ;;  %v10808_v4 = vrot.slane %v19947_v52, 3  ;;  %v20742_v14 = vld [vmem:[#allocation149_spill] sm:$0xff] }
 0x50f   :  { %13350 = vst [vmem:[#allocation3 + $0x18] sm:$0xff] %v13156_v12   ;;  %v15326_v5 = vadd.f32 %v19834_v63, %v8602_v31  ;;  %v19939_v51 = vpop.f32.mrb[242].mxu1  ;;  %v8603_v60 = vadd.f32 %v8303_v41, %v7402_v24  ;;  %v14755_v16 = vpop.f32.mrb[199].mxu0  ;;  %v6428_v63 = vld [vmem:[#allocation2 + $0x58] sm:$0xff] }
 0x510   :  { %8853 = vst [vmem:[#allocation2 + $0x2a4] sm:$0xf] %v8848_v48  ;;  %v15151_v6 = vpop.f32.mrb[243].mxu1  ;;  %v7404_v18 = vadd.f32 %v20742_v14, %v6428_v63  ;;  %v16272_v24 = vld [vmem:[%s20306_s1 + $0x154] sm:$0xff]   ;;  %v10809_v30 = vsel %vm10736_vm7, %v10806_v35, %v10808_v4  ;;  %v6430_v35 = vld [vmem:[#allocation2 + $0x68] sm:$0xff] }
 0x511   :  { %11414 = vst [vmem:[#allocation2 + $0x40] sm:$0xff] %v15326_v5  ;;  %v15329_v20 = vadd.f32 %v19843_v10, %v8603_v60  ;;  %14861 = vmatmul.mubr.msk.bf16.gmra.mrb[40].mxu0 %vm373_vm1, %v8070_v47  ;;  %v20743_v6 = vld [vmem:[#allocation152_spill] sm:$0xff] }
 0x512   :  { %15257 = vmatmul.mubr.msk.bf16.gmra.mrb[200].mxu1 %vm373_vm1, %v10807_v7  ;;  %15100 = vmatprep.mubr.msk.bf16.mxu0 %vm16321_vm0, %v20338_v29  ;;  %v7405_v8 = vadd.f32 %v20743_v6, %v6429_v36  ;;  %v16293_v14 = vld [vmem:[%s20307_s2 + $0x108] sm:$0xff]   ;;  %v20746_v6 = vld [vmem:[#allocation153_spill] sm:$0xff] }
 0x513   :  { %11415 = vst [vmem:[#allocation2 + $0x48] sm:$0xff] %v15329_v20  ;;  %v13161_v25 = vpack.c.bf16 %v15329_v20, %v15326_v5  ;;  %15260 = vmatprep.mubr.msk.bf16.mxu1 %vm16321_vm0, %v20338_v29  ;;  %v19971_v5 = vld [vmem:[%s20305_s0 + $0x138] sm:$0xff]   ;;  %v20745_v36 = vld [vmem:[#allocation151_spill] sm:$0xff] }
 0x514   :  { %v8308_v26 = vpop.f32.mrb[200].mxu0 }
 0x515   :  { %13351 = vst [vmem:[#allocation3 + $0x20] sm:$0xff] %v13161_v25   ;;  %v19958_v10 = vpop.f32.mrb[96].mxu1  ;;  %v8604_v12 = vadd.f32 %v8308_v26, %v7403_v53  ;;  %v14758_v31 = vpop.f32.mrb[201].mxu0  ;;  %v16274_v26 = vld [vmem:[%s20306_s1 + $0x15c] sm:$0xff]  }
 0x516   :  { %v15154_v0 = vpop.f32.mrb[97].mxu1  ;;  %v8311_v48 = vpop.f32.mrb[202].mxu0 }
 0x517   :  { %v19964_v62 = vpop.f32.mrb[98].mxu1  ;;  %v10113_v41 = vadd.f32 %v18944_v45, %v8604_v12  ;;  %v8605_v43 = vadd.f32 %v8311_v48, %v7404_v18  ;;  %v14759_v47 = vpop.f32.mrb[203].mxu0  ;;  %v16292_v45 = vld [vmem:[%s20307_s2 + $0x100] sm:$0xff]  }
 0x518   :  { %v15155_v60 = vpop.f32.mrb[99].mxu1  ;;  %v6431_v47 = vld [vmem:[#allocation2 + $0x70] sm:$0xff] }
 0x519   :  { %v11335_v7 = vadd.f32 %v19868_v22, %v10113_v41  ;;  %v10114_v16 = vadd.f32 %v18956_v57, %v8605_v43  ;;  %15101 = vmatmul.mubr.msk.bf16.vlgmr.msra.gmra.mrb[44].mxu0 %vm373_vm1, %v16272_v24  ;;  %v10810_v57 = vrot.slane %v19971_v5, 3  ;;  %v20005_v43 = vld [vmem:[%s20305_s0 + $0x140] sm:$0xff]  }
 0x51a   :  { %15261 = vmatmul.mubr.msk.bf16.gmra.mrb[40].mxu1 %vm373_vm1, %v10809_v30  ;;  %15285 = vmatpush3.bf16.msra.mxu0 %v16292_v45 }
 0x51b   :  { %11416 = vst [vmem:[#allocation2 + $0x50] sm:$0xff] %v11335_v7  ;;  %v11336_v52 = vadd.f32 %v19885_v40, %v10114_v16  ;;  %15264 = vmatprep.mubr.msk.bf16.mxu1 %vm16321_vm0, %v20338_v29  ;;  %15286 = vmatprep.subr.bf16.mxu0 %v20338_v29  ;;  %v20744_v40 = vld [vmem:[#allocation154_spill] sm:$0xff]  ;;  %v10811_v48 = vsel %vm10736_vm7, %v10808_v4, %v10810_v57  ;;  %v16294_v4 = vld [vmem:[%s20307_s2 + $0x110] sm:$0xff]   ;;  %v10812_v16 = vrot.slane %v20005_v43, 3  ;;  %v6434_v43 = vld [vmem:[#allocation2 + $0x88] sm:$0xff] }
 0x51c   :  { %v8316_v22 = vpop.f32.mrb[204].mxu0  ;;  %15104 = vmatprep.mubr.msk.bf16.mxu0 %vm16321_vm0, %v20338_v29  ;;  %v7406_v53 = vadd.f32 %v20744_v40, %v6430_v35 }
 0x51d   :  { %11417 = vst [vmem:[#allocation2 + $0x58] sm:$0xff] %v11336_v52  ;;  %v13166_v20 = vpack.c.bf16 %v11336_v52, %v11335_v7  ;;  %v19988_v63 = vpop.f32.mrb[244].mxu1  ;;  %v8606_v25 = vadd.f32 %v8316_v22, %v7405_v8  ;;  %v14762_v13 = vpop.f32.mrb[205].mxu0  ;;  %v7407_v7 = vadd.f32 %v20745_v36, %v6431_v47  ;;  %v16276_v22 = vld [vmem:[%s20306_s1 + $0x164] ss:$0 sps:$4 sm:$0x77]  }
 0x51e   :  { %v15158_v12 = vpop.f32.mrb[245].mxu1  ;;  %v8319_v31 = vpop.f32.mrb[206].mxu0  ;;  %15287 = vmatpush3.bf16.msra.mxu0 %v16293_v14  ;;  %v16295_v13 = vld [vmem:[%s20307_s2 + $0x118] sm:$0xff]   ;;  %v16277_v14 = vld [vmem:[%s20305_s0 + $0x148] sm:$0xff]  }
 0x51f   :  { %13352 = vst [vmem:[#allocation3 + $0x28] sm:$0xff] %v13166_v20   ;;  %v15332_v18 = vadd.f32 %v19901_v59, %v8606_v25  ;;  %v19998_v24 = vpop.f32.mrb[246].mxu1  ;;  %v8607_v0 = vadd.f32 %v8319_v31, %v7406_v53  ;;  %v14763_v41 = vpop.f32.mrb[207].mxu0  ;;  %15288 = vmatprep.subr.bf16.mxu0 %v20338_v29  ;;  %v6432_v59 = vld [vmem:[#allocation2 + $0x78] sm:$0xff]  ;;  %v10813_v12 = vsel %vm10736_vm7, %v10810_v57, %v10812_v16  ;;  %v20747_v57 = vld [vmem:[#allocation156_spill] sm:$0xff]  ;;  %v10814_v47 = vrot.slane %v16277_v14, 3 }
 0x520   :  { %v15159_v30 = vpop.f32.mrb[247].mxu1  ;;  %v7408_v8 = vadd.f32 %v20746_v6, %v6432_v59 }
 0x521   :  { %11418 = vst [vmem:[#allocation2 + $0x60] sm:$0xff] %v15332_v18  ;;  %v15335_v5 = vadd.f32 %v19909_v56, %v8607_v0  ;;  %15105 = vmatmul.mubr.msk.bf16.gmra.mrb[48].mxu0 %vm373_vm1, %v16274_v26  ;;  %v6433_v0 = vld [vmem:[#allocation2 + $0x80] sm:$0xff] }
 0x522   :  { %15265 = vmatmul.mubr.msk.bf16.gmra.mrb[208].mxu1 %vm373_vm1, %v10811_v48  ;;  %15289 = vmatpush3.bf16.msra.mxu0 %v16294_v4  ;;  %v7409_v30 = vadd.f32 %v20747_v57, %v6433_v0 }
 0x523   :  { %11419 = vst [vmem:[#allocation2 + $0x68] sm:$0xff] %v15335_v5  ;;  %v13171_v60 = vpack.c.bf16 %v15335_v5, %v15332_v18  ;;  %15268 = vmatprep.mubr.msk.bf16.mxu1 %vm16321_vm0, %v20338_v29  ;;  %15108 = vmatprep.mubr.msk.bf16.mxu0 %vm16321_vm0, %v20338_v29 }
 0x524   :  { %v8324_v56 = vpop.f32.mrb[208].mxu0  ;;  %15290 = vmatprep.subr.bf16.mxu0 %v20338_v29 }
 0x525   :  { %13353 = vst [vmem:[#allocation3 + $0x30] sm:$0xff] %v13171_v60   ;;  %v20020_v45 = vpop.f32.mrb[104].mxu1  ;;  %v8608_v35 = vadd.f32 %v8324_v56, %v7407_v7  ;;  %v14766_v52 = vpop.f32.mrb[209].mxu0  ;;  %v20748_v60 = vld [vmem:[#allocation158_spill] sm:$0xff]  ;;  %v16278_v7 = vld [vmem:[%s20306_s1 + $0x154] sm:$0xff]  }
 0x526   :  { %v15162_v20 = vpop.f32.mrb[105].mxu1  ;;  %v8327_v25 = vpop.f32.mrb[210].mxu0  ;;  %15291 = vmatpush3.bf16.msra.mxu0 %v16295_v13  ;;  %v7410_v36 = vadd.f32 %v20748_v60, %v6434_v43  ;;  %v6435_v13 = vld [vmem:[#allocation2 + $0x90] sm:$0xff]  ;;  %v16280_v43 = vld [vmem:[%s20306_s1 + $0x15c] sm:$0xff]  }
 0x527   :  { %v20029_v40 = vpop.f32.mrb[106].mxu1  ;;  %v10117_v53 = vadd.f32 %v18984_v27, %v8608_v35  ;;  %v8609_v26 = vadd.f32 %v8327_v25, %v7408_v8  ;;  %v14767_v31 = vpop.f32.mrb[211].mxu0  ;;  %v10815_v8 = vsel %vm10736_vm7, %v10812_v16, %v10814_v47  ;;  %v16279_v20 = vld [vmem:[%s20305_s0 + $0x150] ss:$0 sps:$4 sm:$0xff]  }
 0x528   :  { %v15163_v18 = vpop.f32.mrb[107].mxu1  ;;  %v10816_v31 = vrot.slane %v16279_v20, 3  ;;  %v20752_v20 = vld [vmem:[#allocation162_spill] sm:$0xff] }
 0x529   :  { %v11339_v48 = vadd.f32 %v19931_v46, %v10117_v53  ;;  %v10118_v41 = vadd.f32 %v18996_v9, %v8609_v26  ;;  %15109 = vmatmul.mubr.msk.bf16.gmra.mrb[52].mxu0 %vm373_vm1, %v16276_v22  ;;  %v20749_v26 = vld [vmem:[#allocation155_spill] sm:$0xff] }
 0x52a   :  { %15269 = vmatmul.mubr.msk.bf16.gmra.mrb[44].mxu1 %vm373_vm1, %v10813_v12  ;;  %15292 = vmatprep.mubr.msk.bf16.mxu0 %vm16321_vm0, %v20338_v29  ;;  %v7411_v12 = vadd.f32 %v20749_v26, %v6435_v13  ;;  %v16281_v13 = vld [vmem:[%s20306_s1 + $0x164] ss:$0 sps:$4 sm:$0x77]   ;;  %s16322_s1 = smov [#allocation3]  }
 0x52b   :  { %11420 = vst [vmem:[#allocation2 + $0x70] sm:$0xff] %v11339_v48  ;;  %v11340_v27 = vadd.f32 %v19939_v51, %v10118_v41  ;;  %15272 = vmatprep.mubr.msk.bf16.mxu1 %vm16321_vm0, %v20338_v29  ;;  %s12101_s9 = sshll.u32 %s16322_s1, 4  ;;  %s12102_s9 = int_to_ptr.vmem [resolvable:$true] %s12101_s9 }
 0x52c   :  { %v8332_v46 = vpop.f32.mrb[212].mxu0  ;;  %s16296_s10 = scalar_lea.vmem %s12102_s9, 5440  ;;  %p16301_p1 = scmp.lt.s32.totalorder %s12102_s9, %s12102_s9 }
 0x52d   :  { %11421 = vst [vmem:[#allocation2 + $0x78] sm:$0xff] %v11340_v27  ;;  %v13176_v9 = vpack.c.bf16 %v11340_v27, %v11339_v48  ;;  %v20046_v5 = vpop.f32.mrb[248].mxu1  ;;  %v8610_v59 = vadd.f32 %v8332_v46, %v7409_v30  ;;  %v14770_v4 = vpop.f32.mrb[213].mxu0  ;;  %v20750_v48 = vld [vmem:[#allocation157_spill] sm:$0xff]  ;;  %p16297_p0 = scmp.ne.s32.totalorder %s12102_s9, %s16296_s10  ;;  %p16302_p2 = scmp.lt.s32.totalorder %s16296_s10, %s16296_s10 }
 0x52e   :  { %v15166_v51 = vpop.f32.mrb[249].mxu1  ;;  %v8335_v56 = vpop.f32.mrb[214].mxu0 }
 0x52f   :  { %13354 = vst [vmem:[#allocation3 + $0x38] sm:$0xff] %v13176_v9   ;;  %v15338_v35 = vadd.f32 %v19958_v10, %v8610_v59  ;;  %v20053_v52 = vpop.f32.mrb[250].mxu1  ;;  %v8611_v6 = vadd.f32 %v8335_v56, %v7410_v36  ;;  %v14771_v22 = vpop.f32.mrb[215].mxu0  ;;  %v6436_v10 = vld [vmem:[#allocation2 + $0x98] sm:$0xff]  ;;  %v10817_v59 = vsel %vm10736_vm7, %v10814_v47, %v10816_v31  ;;  %v6437_v36 = vld [vmem:[#allocation2 + $0xa0] sm:$0xff]  ;;  %v6438_v56 = vld [vmem:[#allocation2 + $0xa8] sm:$0xff]  ;;  %p16303_p3 = por %p16302_p2, %p16301_p1 }
 0x530   :  { %v15167_v25 = vpop.f32.mrb[251].mxu1  ;;  %v7412_v41 = vadd.f32 %v20750_v48, %v6436_v10 }
 0x531   :  { %11422 = vst [vmem:[#allocation2 + $0x80] sm:$0xff] %v15338_v35  ;;  %v15341_v53 = vadd.f32 %v19964_v62, %v8611_v6  ;;  %15293 = vmatmul.mubr.msk.bf16.vlgmr.msra.gmra.mrb[56].mxu0 %vm373_vm1, %v16278_v7  ;;  %v7414_v25 = vadd.f32 %v20752_v20, %v6438_v56  ;;  %v6441_v56 = vld [vmem:[#allocation2 + $0xc0] sm:$0xff]  ;;  %p16304_p4 = pnand %p16303_p3, %p16297_p0 }
 0x532   :  { %15273 = vmatmul.mubr.msk.bf16.gmra.mrb[216].mxu1 %vm373_vm1, %v10815_v8  ;;  %15296 = vmatprep.mubr.msk.bf16.mxu0 %vm16321_vm0, %v20338_v29 }
 0x533   :  { %11423 = vst [vmem:[#allocation2 + $0x88] sm:$0xff] %v15341_v53  ;;  %v13181_v16 = vpack.c.bf16 %v15341_v53, %v15338_v35  ;;  %15276 = vmatprep.mubr.msk.bf16.mxu1 %vm16321_vm0, %v20338_v29  ;;  %v20751_v35 = vld [vmem:[#allocation160_spill] sm:$0xff] }
 0x534   :  { %v8340_v14 = vpop.f32.mrb[216].mxu0  ;;  %v7413_v47 = vadd.f32 %v20751_v35, %v6437_v36 }
 0x535   :  { %13355 = vst [vmem:[#allocation3 + $0x40] sm:$0xff] %v13181_v16   ;;  %v20067_v18 = vpop.f32.mrb[112].mxu1  ;;  %v8612_v62 = vadd.f32 %v8340_v14, %v7411_v12  ;;  %v14774_v0 = vpop.f32.mrb[217].mxu0  ;;  %v6439_v14 = vld [vmem:[#allocation2 + $0xb0] sm:$0xff] }
 0x536   :  { %v15170_v27 = vpop.f32.mrb[113].mxu1  ;;  %v8343_v57 = vpop.f32.mrb[218].mxu0  ;;  %v6440_v0 = vld [vmem:[#allocation2 + $0xb8] sm:$0xff] }
 0x537   :  { %v20073_v30 = vpop.f32.mrb[114].mxu1  ;;  %v10121_v46 = vadd.f32 %v19024_v19, %v8612_v62  ;;  %v8613_v9 = vadd.f32 %v8343_v57, %v7412_v41  ;;  %v14775_v4 = vpop.f32.mrb[219].mxu0  ;;  %v20753_v41 = vld [vmem:[#allocation159_spill] sm:$0xff] }
 0x538   :  { %v15171_v60 = vpop.f32.mrb[115].mxu1 }
 0x539   :  { %v11343_v7 = vadd.f32 %v19988_v63, %v10121_v46  ;;  %v10122_v51 = vadd.f32 %v19036_v50, %v8613_v9  ;;  %15297 = vmatmul.mubr.msk.bf16.gmra.mrb[60].mxu0 %vm373_vm1, %v16280_v43  ;;  %v7415_v43 = vadd.f32 %v20753_v41, %v6439_v14  ;;  %v20754_v9 = vld [vmem:[#allocation161_spill] sm:$0xff]  ;;  %v20757_v41 = vld [vmem:[#allocation163_spill] sm:$0xff] }
 0x53a   :  { %15277 = vmatmul.mubr.msk.bf16.gmra.mrb[48].mxu1 %vm373_vm1, %v10817_v59  ;;  %15300 = vmatprep.mubr.msk.bf16.mxu0 %vm16321_vm0, %v20338_v29  ;;  %v7416_v59 = vadd.f32 %v20754_v9, %v6440_v0  ;;  %v6443_v14 = vld [vmem:[#allocation2 + $0xd0] sm:$0xff]  ;;  %v6444_v0 = vld [vmem:[#allocation2 + $0xd8] sm:$0xff] }
 0x53b   :  { %11424 = vst [vmem:[#allocation2 + $0x90] sm:$0xff] %v11343_v7  ;;  %v11344_v19 = vadd.f32 %v19998_v24, %v10122_v51  ;;  %15280 = vmatprep.mubr.msk.bf16.mxu1 %vm16321_vm0, %v20338_v29  ;;  %v20758_v9 = vld [vmem:[#allocation165_spill] sm:$0xff] }
 0x53c   :  { %v8348_v6 = vpop.f32.mrb[220].mxu0 }
 0x53d   :  { %11425 = vst [vmem:[#allocation2 + $0x98] sm:$0xff] %v11344_v19  ;;  %v13186_v63 = vpack.c.bf16 %v11344_v19, %v11343_v7  ;;  %v20087_v50 = vpop.f32.mrb[252].mxu1  ;;  %v8614_v8 = vadd.f32 %v8348_v6, %v7413_v47  ;;  %v14778_v22 = vpop.f32.mrb[221].mxu0  ;;  %v6442_v47 = vld [vmem:[#allocation2 + $0xc8] sm:$0xff] }
 0x53e   :  { %v15174_v53 = vpop.f32.mrb[253].mxu1  ;;  %v8351_v24 = vpop.f32.mrb[222].mxu0 }
 0x53f   :  { %13356 = vst [vmem:[#allocation3 + $0x48] sm:$0xff] %v13186_v63   ;;  %v15344_v10 = vadd.f32 %v20020_v45, %v8614_v8  ;;  %v20094_v16 = vpop.f32.mrb[254].mxu1  ;;  %v8615_v29 = vadd.f32 %v8351_v24, %v7414_v25  ;;  %v14779_v26 = vpop.f32.mrb[223].mxu0  ;;  %v20755_v63 = vld [vmem:[#allocation164_spill] sm:$0xff]  ;;  %v20756_v53 = vld [vmem:[#allocation166_spill] sm:$0xff] }
 0x540   :  { %v15175_v12 = vpop.f32.mrb[255].mxu1  ;;  %v7417_v8 = vadd.f32 %v20755_v63, %v6441_v56  ;;  %v7418_v24 = vadd.f32 %v20756_v53, %v6442_v47  ;;  %v6445_v56 = vld [vmem:[#allocation2 + $0xe0] sm:$0xff]  ;;  %v6446_v47 = vld [vmem:[#allocation2 + $0xe8] sm:$0xff] }
 0x541   :  { %11426 = vst [vmem:[#allocation2 + $0xa0] sm:$0xff] %v15344_v10  ;;  %v15347_v62 = vadd.f32 %v20029_v40, %v8615_v29  ;;  %15301 = vmatmul.mubr.msk.bf16.gmra.mrb[64].mxu0 %vm373_vm1, %v16281_v13  ;;  %v20759_v63 = vld [vmem:[#allocation168_spill] sm:$0xff]  ;;  %v20760_v53 = vld [vmem:[#allocation170_spill] sm:$0xff] }
 0x542   :  { %15281 = vmatmul.mubr.msk.bf16.gmra.mrb[52].mxu1 %vm373_vm1, %v10816_v31 }
 0x543   :  { %11427 = vst [vmem:[#allocation2 + $0xa8] sm:$0xff] %v15347_v62  ;;  %v13191_v48 = vpack.c.bf16 %v15347_v62, %v15344_v10 }
 0x544   :  { %v8356_v27 = vpop.f32.mrb[224].mxu0 }
 0x545   :  { %13357 = vst [vmem:[#allocation3 + $0x50] sm:$0xff] %v13191_v48   ;;  %v20100_v45 = vpop.f32.mrb[120].mxu1  ;;  %v8616_v57 = vadd.f32 %v8356_v27, %v7415_v43  ;;  %v14782_v46 = vpop.f32.mrb[225].mxu0  ;;  %v7419_v43 = vadd.f32 %v20757_v41, %v6443_v14  ;;  %v6448_v14 = vld [vmem:[#allocation2 + $0xf8] sm:$0xff] }
 0x546   :  { %v15178_v4 = vpop.f32.mrb[121].mxu1  ;;  %v8359_v60 = vpop.f32.mrb[226].mxu0 }
 0x547   :  { %v20103_v40 = vpop.f32.mrb[122].mxu1  ;;  %v10125_v36 = vadd.f32 %v19064_v37, %v8616_v57  ;;  %v8617_v31 = vadd.f32 %v8359_v60, %v7416_v59  ;;  %v14783_v7 = vpop.f32.mrb[227].mxu0  ;;  %v7420_v59 = vadd.f32 %v20758_v9, %v6444_v0  ;;  %v20761_v0 = vld [vmem:[#allocation167_spill] sm:$0xff] }
 0x548   :  { %v15179_v51 = vpop.f32.mrb[123].mxu1 }
 0x549   :  { %v11347_v19 = vadd.f32 %v20046_v5, %v10125_v36  ;;  %v10126_v35 = vadd.f32 %v19073_v33, %v8617_v31 }
 0x54b   :  { %11428 = vst [vmem:[#allocation2 + $0xb0] sm:$0xff] %v11347_v19  ;;  %v11348_v6 = vadd.f32 %v20053_v52, %v10126_v35 }
 0x54c   :  { %v8364_v22 = vpop.f32.mrb[228].mxu0 }
 0x54d   :  { %11429 = vst [vmem:[#allocation2 + $0xb8] sm:$0xff] %v11348_v6  ;;  %v13196_v20 = vpack.c.bf16 %v11348_v6, %v11347_v19  ;;  %v20110_v25 = vpop.f32.mrb[0].mxu1  ;;  %v8618_v37 = vadd.f32 %v8364_v22, %v7417_v8  ;;  %v14786_v13 = vpop.f32.mrb[229].mxu0  ;;  %v7421_v8 = vadd.f32 %v20759_v63, %v6445_v56 }
 0x54e   :  { %v15182_v10 = vpop.f32.mrb[1].mxu1  ;;  %v8367_v29 = vpop.f32.mrb[230].mxu0 }
 0x54f   :  { %13358 = vst [vmem:[#allocation3 + $0x58] sm:$0xff] %v13196_v20   ;;  %v15350_v33 = vadd.f32 %v20067_v18, %v8618_v37  ;;  %v20114_v5 = vpop.f32.mrb[2].mxu1  ;;  %v8619_v26 = vadd.f32 %v8367_v29, %v7418_v24  ;;  %v14787_v52 = vpop.f32.mrb[231].mxu0  ;;  %v7422_v24 = vadd.f32 %v20760_v53, %v6446_v47  ;;  %v20763_v47 = vld [vmem:[#allocation172_spill] sm:$0xff] }
 0x550   :  { %v15183_v12 = vpop.f32.mrb[3].mxu1  ;;  %v6447_v52 = vld [vmem:[#allocation2 + $0xf0] sm:$0xff] }
 0x551   :  { %11430 = vst [vmem:[#allocation2 + $0xc0] sm:$0xff] %v15350_v33  ;;  %v15353_v62 = vadd.f32 %v20073_v30, %v8619_v26 }
 0x553   :  { %11431 = vst [vmem:[#allocation2 + $0xc8] sm:$0xff] %v15353_v62  ;;  %v13201_v48 = vpack.c.bf16 %v15353_v62, %v15350_v33 }
 0x554   :  { %v8372_v27 = vpop.f32.mrb[232].mxu0 }
 0x555   :  { %13359 = vst [vmem:[#allocation3 + $0x60] sm:$0xff] %v13201_v48   ;;  %v20118_v57 = vpop.f32.mrb[128].mxu1  ;;  %v8620_v46 = vadd.f32 %v8372_v27, %v7419_v43  ;;  %v14790_v18 = vpop.f32.mrb[233].mxu0  ;;  %v7423_v48 = vadd.f32 %v20761_v0, %v6447_v52  ;;  %v20765_v52 = vld [vmem:[#allocation171_spill] sm:$0xff] }
 0x556   :  { %v15186_v4 = vpop.f32.mrb[129].mxu1  ;;  %v8375_v60 = vpop.f32.mrb[234].mxu0 }
 0x557   :  { %v20121_v36 = vpop.f32.mrb[130].mxu1  ;;  %v10129_v31 = vadd.f32 %v19098_v54, %v8620_v46  ;;  %v8621_v30 = vadd.f32 %v8375_v60, %v7420_v59  ;;  %v14791_v7 = vpop.f32.mrb[235].mxu0  ;;  %v20762_v46 = vld [vmem:[#allocation169_spill] sm:$0xff] }
 0x558   :  { %v15187_v51 = vpop.f32.mrb[131].mxu1  ;;  %v7424_v18 = vadd.f32 %v20762_v46, %v6448_v14  ;;  %v6449_v7 = vld [vmem:[#allocation2 + $0x100] sm:$0xff] }
 0x559   :  { %v11351_v19 = vadd.f32 %v20087_v50, %v10129_v31  ;;  %v10130_v35 = vadd.f32 %v19106_v17, %v8621_v30 }
 0x55b   :  { %11432 = vst [vmem:[#allocation2 + $0xd0] sm:$0xff] %v11351_v19  ;;  %v11352_v6 = vadd.f32 %v20094_v16, %v10130_v35 }
 0x55c   :  { %v8380_v22 = vpop.f32.mrb[236].mxu0 }
 0x55d   :  { %11433 = vst [vmem:[#allocation2 + $0xd8] sm:$0xff] %v11352_v6  ;;  %v13206_v20 = vpack.c.bf16 %v11352_v6, %v11351_v19  ;;  %v20128_v37 = vpop.f32.mrb[4].mxu1  ;;  %v8622_v54 = vadd.f32 %v8380_v22, %v7421_v8  ;;  %v14794_v13 = vpop.f32.mrb[237].mxu0  ;;  %v6450_v19 = vld [vmem:[#allocation2 + $0x108] sm:$0xff]  ;;  %v7425_v6 = vadd.f32 %v20763_v47, %v6449_v7 }
 0x55e   :  { %v15190_v10 = vpop.f32.mrb[5].mxu1  ;;  %v8383_v29 = vpop.f32.mrb[238].mxu0 }
 0x55f   :  { %13360 = vst [vmem:[#allocation3 + $0x68] sm:$0xff] %v13206_v20   ;;  %v15356_v17 = vadd.f32 %v20100_v45, %v8622_v54  ;;  %v20132_v50 = vpop.f32.mrb[6].mxu1  ;;  %v8623_v33 = vadd.f32 %v8383_v29, %v7422_v24  ;;  %v14795_v16 = vpop.f32.mrb[239].mxu0  ;;  %v20764_v54 = vld [vmem:[#allocation174_spill] sm:$0xff] }
 0x560   :  { %v15191_v26 = vpop.f32.mrb[7].mxu1  ;;  %v7426_v13 = vadd.f32 %v20764_v54, %v6450_v19  ;;  %v6452_v16 = vld [vmem:[#allocation2 + $0x118] sm:$0xff] }
 0x561   :  { %11434 = vst [vmem:[#allocation2 + $0xe0] sm:$0xff] %v15356_v17  ;;  %v15359_v12 = vadd.f32 %v20103_v40, %v8623_v33 }
 0x563   :  { %11435 = vst [vmem:[#allocation2 + $0xe8] sm:$0xff] %v15359_v12  ;;  %v13211_v62 = vpack.c.bf16 %v15359_v12, %v15356_v17  ;;  %v6451_v17 = vld [vmem:[#allocation2 + $0x110] sm:$0xff] }
 0x564   :  { %v8388_v41 = vpop.f32.mrb[240].mxu0  ;;  %v7427_v12 = vadd.f32 %v20765_v52, %v6451_v17 }
 0x565   :  { %13361 = vst [vmem:[#allocation3 + $0x70] sm:$0xff] %v13211_v62   ;;  %v20136_v43 = vpop.f32.mrb[136].mxu1  ;;  %v8624_v27 = vadd.f32 %v8388_v41, %v7423_v48  ;;  %v14798_v45 = vpop.f32.mrb[241].mxu0  ;;  %v20766_v48 = vld [vmem:[#allocation173_spill] sm:$0xff] }
 0x566   :  { %v15194_v9 = vpop.f32.mrb[137].mxu1  ;;  %v8391_v59 = vpop.f32.mrb[242].mxu0  ;;  %v7428_v41 = vadd.f32 %v20766_v48, %v6452_v16 }
 0x567   :  { %v20139_v4 = vpop.f32.mrb[138].mxu1  ;;  %v10133_v60 = vadd.f32 %v19140_v58, %v8624_v27  ;;  %v8625_v40 = vadd.f32 %v8391_v59, %v7424_v18  ;;  %v14799_v31 = vpop.f32.mrb[243].mxu0 }
 0x568   :  { %v15195_v30 = vpop.f32.mrb[139].mxu1 }
 0x569   :  { %v11355_v51 = vadd.f32 %v20110_v25, %v10133_v60  ;;  %v10134_v56 = vadd.f32 %v19145_v49, %v8625_v40  ;;  %v6453_v60 = vld [vmem:[#allocation2 + $0x120] sm:$0xff]  ;;  %v6454_v30 = vld [vmem:[#allocation2 + $0x128] sm:$0xff] }
 0x56b   :  { %11436 = vst [vmem:[#allocation2 + $0xf0] sm:$0xff] %v11355_v51  ;;  %v11356_v35 = vadd.f32 %v20114_v5, %v10134_v56 }
 0x56c   :  { %v8396_v63 = vpop.f32.mrb[244].mxu0 }
 0x56d   :  { %11437 = vst [vmem:[#allocation2 + $0xf8] sm:$0xff] %v11356_v35  ;;  %v13216_v8 = vpack.c.bf16 %v11356_v35, %v11355_v51  ;;  %v20146_v22 = vpop.f32.mrb[8].mxu1  ;;  %v8626_v58 = vadd.f32 %v8396_v63, %v7425_v6  ;;  %v14802_v20 = vpop.f32.mrb[245].mxu0  ;;  %v20767_v51 = vld [vmem:[#allocation176_spill] sm:$0xff]  ;;  %v20768_v63 = vld [vmem:[#allocation178_spill] sm:$0xff] }
 0x56e   :  { %v15198_v53 = vpop.f32.mrb[9].mxu1  ;;  %v8399_v24 = vpop.f32.mrb[246].mxu0  ;;  %v7429_v56 = vadd.f32 %v20767_v51, %v6453_v60  ;;  %v20772_v51 = vld [vmem:[#allocation182_spill] sm:$0xff] }
 0x56f   :  { %13362 = vst [vmem:[#allocation3 + $0x78] sm:$0xff] %v13216_v8   ;;  %v15362_v49 = vadd.f32 %v20118_v57, %v8626_v58  ;;  %v20150_v25 = vpop.f32.mrb[10].mxu1  ;;  %v8627_v10 = vadd.f32 %v8399_v24, %v7426_v13  ;;  %v14803_v5 = vpop.f32.mrb[247].mxu0  ;;  %v7430_v8 = vadd.f32 %v20768_v63, %v6454_v30  ;;  %v6455_v53 = vld [vmem:[#allocation2 + $0x130] sm:$0xff] }
 0x570   :  { %v15199_v29 = vpop.f32.mrb[11].mxu1  ;;  %v20769_v5 = vld [vmem:[#allocation175_spill] sm:$0xff]  ;;  %v6459_v63 = vld [vmem:[#allocation2 + $0x150] sm:$0xff] }
 0x571   :  { %11438 = vst [vmem:[#allocation2 + $0x100] sm:$0xff] %v15362_v49  ;;  %v15365_v33 = vadd.f32 %v20121_v36, %v8627_v10  ;;  %v7431_v29 = vadd.f32 %v20769_v5, %v6455_v53 }
 0x573   :  { %11439 = vst [vmem:[#allocation2 + $0x108] sm:$0xff] %v15365_v33  ;;  %v13221_v26 = vpack.c.bf16 %v15365_v33, %v15362_v49  ;;  %v6456_v49 = vld [vmem:[#allocation2 + $0x138] sm:$0xff] }
 0x574   :  { %v8404_v14 = vpop.f32.mrb[248].mxu0 }
 0x575   :  { %13363 = vst [vmem:[#allocation3 + $0x80] sm:$0xff] %v13221_v26   ;;  %v20154_v62 = vpop.f32.mrb[144].mxu1  ;;  %v8628_v0 = vadd.f32 %v8404_v14, %v7427_v12  ;;  %v14806_v57 = vpop.f32.mrb[249].mxu0  ;;  %v20770_v26 = vld [vmem:[#allocation177_spill] sm:$0xff] }
 0x576   :  { %v15202_v27 = vpop.f32.mrb[145].mxu1  ;;  %v8407_v45 = vpop.f32.mrb[250].mxu0  ;;  %v7432_v52 = vadd.f32 %v20770_v26, %v6456_v49  ;;  %v6461_v26 = vld [vmem:[#allocation2 + $0x160] sm:$0xff] }
 0x577   :  { %v20157_v46 = vpop.f32.mrb[146].mxu1  ;;  %v10137_v18 = vadd.f32 %v19179_v55, %v8628_v0  ;;  %v8629_v36 = vadd.f32 %v8407_v45, %v7428_v41  ;;  %v14807_v9 = vpop.f32.mrb[251].mxu0  ;;  %v6457_v27 = vld [vmem:[#allocation2 + $0x140] sm:$0xff] }
 0x578   :  { %v15203_v59 = vpop.f32.mrb[147].mxu1 }
 0x579   :  { %v11359_v40 = vadd.f32 %v20128_v37, %v10137_v18  ;;  %v10138_v31 = vadd.f32 %v19187_v23, %v8629_v36  ;;  %v6458_v36 = vld [vmem:[#allocation2 + $0x148] sm:$0xff] }
 0x57a   :  { %v20771_v59 = vld [vmem:[#allocation180_spill] sm:$0xff] }
 0x57b   :  { %11440 = vst [vmem:[#allocation2 + $0x110] sm:$0xff] %v11359_v40  ;;  %v11360_v7 = vadd.f32 %v20132_v50, %v10138_v31  ;;  %v7433_v60 = vadd.f32 %v20771_v59, %v6457_v27 }
 0x57c   :  { %v8412_v19 = vpop.f32.mrb[252].mxu0 }
 0x57d   :  { %11441 = vst [vmem:[#allocation2 + $0x118] sm:$0xff] %v11360_v7  ;;  %v13226_v35 = vpack.c.bf16 %v11360_v7, %v11359_v40  ;;  %v20164_v47 = vpop.f32.mrb[12].mxu1  ;;  %v8630_v55 = vadd.f32 %v8412_v19, %v7429_v56  ;;  %v14810_v6 = vpop.f32.mrb[253].mxu0  ;;  %v7434_v56 = vadd.f32 %v20772_v51, %v6458_v36  ;;  %v20776_v36 = vld [vmem:[#allocation186_spill] sm:$0xff] }
 0x57e   :  { %v15206_v58 = vpop.f32.mrb[13].mxu1  ;;  %v8415_v20 = vpop.f32.mrb[254].mxu0  ;;  %v6464_v51 = vld [vmem:[#allocation2 + $0x178] sm:$0xff] }
 0x57f   :  { %13364 = vst [vmem:[#allocation3 + $0x88] sm:$0xff] %v13226_v35   ;;  %v15368_v23 = vadd.f32 %v20136_v43, %v8630_v55  ;;  %v20168_v37 = vpop.f32.mrb[14].mxu1  ;;  %v8631_v54 = vadd.f32 %v8415_v20, %v7430_v8  ;;  %v14811_v50 = vpop.f32.mrb[255].mxu0  ;;  %v6460_v58 = vld [vmem:[#allocation2 + $0x158] sm:$0xff] }
 0x580   :  { %v15207_v13 = vpop.f32.mrb[15].mxu1 }
 0x581   :  { %11442 = vst [vmem:[#allocation2 + $0x120] sm:$0xff] %v15368_v23  ;;  %v15371_v24 = vadd.f32 %v20139_v4, %v8631_v54 }
 0x583   :  { %11443 = vst [vmem:[#allocation2 + $0x128] sm:$0xff] %v15371_v24  ;;  %v13231_v10 = vpack.c.bf16 %v15371_v24, %v15368_v23  ;;  %v20773_v23 = vld [vmem:[#allocation179_spill] sm:$0xff]  ;;  %v20774_v24 = vld [vmem:[#allocation181_spill] sm:$0xff] }
 0x584   :  { %v8420_v17 = vpop.f32.mrb[168].mxu0  ;;  %v7435_v54 = vadd.f32 %v20773_v23, %v6459_v63  ;;  %v7436_v49 = vadd.f32 %v20774_v24, %v6460_v58 }
 0x585   :  { %13365 = vst [vmem:[#allocation3 + $0x90] sm:$0xff] %v13231_v10   ;;  %v20172_v33 = vpop.f32.mrb[152].mxu1  ;;  %v8632_v16 = vadd.f32 %v8420_v17, %v7431_v29  ;;  %v14814_v43 = vpop.f32.mrb[169].mxu0 }
 0x586   :  { %v15210_v12 = vpop.f32.mrb[153].mxu1  ;;  %v8423_v14 = vpop.f32.mrb[170].mxu0 }
 0x587   :  { %v20175_v0 = vpop.f32.mrb[154].mxu1  ;;  %v10141_v57 = vadd.f32 %v19231_v42, %v8632_v16  ;;  %v8633_v4 = vadd.f32 %v8423_v14, %v7432_v52  ;;  %v14815_v48 = vpop.f32.mrb[171].mxu0  ;;  %v6462_v14 = vld [vmem:[#allocation2 + $0x168] sm:$0xff] }
 0x588   :  { %v15211_v41 = vpop.f32.mrb[155].mxu1 }
 0x589   :  { %v11363_v45 = vadd.f32 %v20146_v22, %v10141_v57  ;;  %v10142_v18 = vadd.f32 %v19239_v44, %v8633_v4  ;;  %v20775_v4 = vld [vmem:[#allocation184_spill] sm:$0xff] }
 0x58a   :  { %v7437_v48 = vadd.f32 %v20775_v4, %v6461_v26 }
 0x58b   :  { %11444 = vst [vmem:[#allocation2 + $0x130] sm:$0xff] %v11363_v45  ;;  %v11364_v9 = vadd.f32 %v20150_v25, %v10142_v18 }
 0x58c   :  { %v8428_v40 = vpop.f32.mrb[172].mxu0 }
 0x58d   :  { %11445 = vst [vmem:[#allocation2 + $0x138] sm:$0xff] %v11364_v9  ;;  %v13236_v31 = vpack.c.bf16 %v11364_v9, %v11363_v45  ;;  %v20182_v30 = vpop.f32.mrb[16].mxu1  ;;  %v8634_v42 = vadd.f32 %v8428_v40, %v7433_v60  ;;  %v14818_v7 = vpop.f32.mrb[173].mxu0  ;;  %v7438_v9 = vadd.f32 %v20776_v36, %v6462_v14  ;;  %v20781_v36 = vld [vmem:[#allocation187_spill] sm:$0xff] }
 0x58e   :  { %v15214_v19 = vpop.f32.mrb[17].mxu1  ;;  %v8431_v35 = vpop.f32.mrb[174].mxu0 }
 0x58f   :  { %13366 = vst [vmem:[#allocation3 + $0x98] sm:$0xff] %v13236_v31   ;;  %v15374_v44 = vadd.f32 %v20154_v62, %v8634_v42  ;;  %v20186_v22 = vpop.f32.mrb[18].mxu1  ;;  %v8635_v55 = vadd.f32 %v8431_v35, %v7434_v56  ;;  %v14819_v25 = vpop.f32.mrb[175].mxu0  ;;  %v6463_v42 = vld [vmem:[#allocation2 + $0x170] sm:$0xff]  ;;  %v20777_v19 = vld [vmem:[#allocation183_spill] sm:$0xff] }
 0x590   :  { %v15215_v6 = vpop.f32.mrb[19].mxu1  ;;  %v7439_v35 = vadd.f32 %v20777_v19, %v6463_v42 }
 0x591   :  { %11446 = vst [vmem:[#allocation2 + $0x140] sm:$0xff] %v15374_v44  ;;  %v15377_v8 = vadd.f32 %v20157_v46, %v8635_v55  ;;  %v20778_v6 = vld [vmem:[#allocation185_spill] sm:$0xff] }
 0x592   :  { %v7440_v63 = vadd.f32 %v20778_v6, %v6464_v51 }
 0x593   :  { %11447 = vst [vmem:[#allocation2 + $0x148] sm:$0xff] %v15377_v8  ;;  %v13241_v20 = vpack.c.bf16 %v15377_v8, %v15374_v44 }
 0x594   :  { %v8436_v50 = vpop.f32.mrb[0].mxu0 }
 0x595   :  { %13367 = vst [vmem:[#allocation3 + $0xa0] sm:$0xff] %v13241_v20   ;;  %v20190_v13 = vpop.f32.mrb[160].mxu1  ;;  %v8636_v53 = vadd.f32 %v8436_v50, %v7435_v54  ;;  %v14822_v62 = vpop.f32.mrb[1].mxu0 }
 0x596   :  { %v15218_v10 = vpop.f32.mrb[161].mxu1  ;;  %v8439_v5 = vpop.f32.mrb[2].mxu0 }
 0x597   :  { %v20193_v29 = vpop.f32.mrb[162].mxu1  ;;  %v10145_v17 = vadd.f32 %v19275_v34, %v8636_v53  ;;  %v8637_v46 = vadd.f32 %v8439_v5, %v7436_v49  ;;  %v14823_v16 = vpop.f32.mrb[3].mxu0  ;;  %v6465_v53 = vld [vmem:[#allocation2 + $0x180] sm:$0xff]  ;;  %v6466_v49 = vld [vmem:[#allocation2 + $0x188] sm:$0xff] }
 0x598   :  { %v15219_v43 = vpop.f32.mrb[163].mxu1  ;;  %v20779_v5 = vld [vmem:[#allocation188_spill] sm:$0xff] }
 0x599   :  { %v11367_v52 = vadd.f32 %v20164_v47, %v10145_v17  ;;  %v10146_v12 = vadd.f32 %v19283_v39, %v8637_v46  ;;  %v7441_v17 = vadd.f32 %v20779_v5, %v6465_v53  ;;  %v6471_v5 = vld [vmem:[#allocation2 + $0x1b0] sm:$0xff] }
 0x59b   :  { %11448 = vst [vmem:[#allocation2 + $0x150] sm:$0xff] %v11367_v52  ;;  %v11368_v57 = vadd.f32 %v20168_v37, %v10146_v12 }
 0x59c   :  { %v8444_v41 = vpop.f32.mrb[4].mxu0 }
 0x59d   :  { %11449 = vst [vmem:[#allocation2 + $0x158] sm:$0xff] %v11368_v57  ;;  %v13246_v27 = vpack.c.bf16 %v11368_v57, %v11367_v52  ;;  %v20200_v45 = vpop.f32.mrb[20].mxu1  ;;  %v8638_v34 = vadd.f32 %v8444_v41, %v7437_v48  ;;  %v14826_v18 = vpop.f32.mrb[5].mxu0  ;;  %v20780_v52 = vld [vmem:[#allocation190_spill] sm:$0xff]  ;;  %v6467_v41 = vld [vmem:[#allocation2 + $0x190] sm:$0xff] }
 0x59e   :  { %v15222_v59 = vpop.f32.mrb[21].mxu1  ;;  %v8447_v60 = vpop.f32.mrb[6].mxu0  ;;  %v7442_v12 = vadd.f32 %v20780_v52, %v6466_v49 }
 0x59f   :  { %13368 = vst [vmem:[#allocation3 + $0xa8] sm:$0xff] %v13246_v27   ;;  %v15380_v39 = vadd.f32 %v20172_v33, %v8638_v34  ;;  %v20204_v47 = vpop.f32.mrb[22].mxu1  ;;  %v8639_v40 = vadd.f32 %v8447_v60, %v7438_v9  ;;  %v14827_v37 = vpop.f32.mrb[7].mxu0  ;;  %v6468_v34 = vld [vmem:[#allocation2 + $0x198] sm:$0xff]  ;;  %v7443_v9 = vadd.f32 %v20781_v36, %v6467_v41 }
 0x5a0   :  { %v15223_v31 = vpop.f32.mrb[23].mxu1 }
 0x5a1   :  { %11450 = vst [vmem:[#allocation2 + $0x160] sm:$0xff] %v15380_v39  ;;  %v15383_v7 = vadd.f32 %v20175_v0, %v8639_v40  ;;  %v20782_v40 = vld [vmem:[#allocation189_spill] sm:$0xff] }
 0x5a2   :  { %v7444_v37 = vadd.f32 %v20782_v40, %v6468_v34 }
 0x5a3   :  { %11451 = vst [vmem:[#allocation2 + $0x168] sm:$0xff] %v15383_v7  ;;  %v13251_v56 = vpack.c.bf16 %v15383_v7, %v15380_v39 }
 0x5a4   :  { %v8452_v44 = vpop.f32.mrb[8].mxu0 }
 0x5a5   :  { %13369 = vst [vmem:[#allocation3 + $0xb0] sm:$0xff] %v13251_v56   ;;  %v20208_v55 = vpop.f32.mrb[168].mxu1  ;;  %v8640_v25 = vadd.f32 %v8452_v44, %v7439_v35  ;;  %v14830_v33 = vpop.f32.mrb[9].mxu0  ;;  %v6469_v35 = vld [vmem:[#allocation2 + $0x1a0] sm:$0xff] }
 0x5a6   :  { %v15226_v8 = vpop.f32.mrb[169].mxu1  ;;  %v8455_v58 = vpop.f32.mrb[10].mxu0  ;;  %v6470_v33 = vld [vmem:[#allocation2 + $0x1a8] sm:$0xff] }
 0x5a7   :  { %v20211_v20 = vpop.f32.mrb[170].mxu1  ;;  %v10149_v23 = vadd.f32 %v19315_v28, %v8640_v25  ;;  %v8641_v0 = vadd.f32 %v8455_v58, %v7440_v63  ;;  %v14831_v54 = vpop.f32.mrb[11].mxu0  ;;  %v20783_v63 = vld [vmem:[#allocation192_spill] sm:$0xff] }
 0x5a8   :  { %v15227_v50 = vpop.f32.mrb[171].mxu1  ;;  %v7445_v8 = vadd.f32 %v20783_v63, %v6469_v35  ;;  %v7705_v63 = vld [vmem:[#allocation2 + $0x200] sm:$0xff] }
 0x5a9   :  { %v11371_v62 = vadd.f32 %v20182_v30, %v10149_v23  ;;  %v10150_v24 = vadd.f32 %v19323_v3, %v8641_v0  ;;  %v20784_v50 = vld [vmem:[#allocation194_spill] sm:$0xff] }
 0x5aa   :  { %v7446_v53 = vadd.f32 %v20784_v50, %v6470_v33  ;;  %v6475_v33 = vld [vmem:[#allocation2 + $0x1d0] sm:$0xff]  ;;  %v20790_v50 = vld [vmem:[#allocation222_spill] sm:$0xff] }
 0x5ab   :  { %11452 = vst [vmem:[#allocation2 + $0x170] sm:$0xff] %v11371_v62  ;;  %v11372_v10 = vadd.f32 %v20186_v22, %v10150_v24 }
 0x5ac   :  { %v8460_v46 = vpop.f32.mrb[12].mxu0 }
 0x5ad   :  { %11453 = vst [vmem:[#allocation2 + $0x178] sm:$0xff] %v11372_v10  ;;  %v13256_v16 = vpack.c.bf16 %v11372_v10, %v11371_v62  ;;  %v20218_v43 = vpop.f32.mrb[24].mxu1  ;;  %v8642_v28 = vadd.f32 %v8460_v46, %v7441_v17  ;;  %v14834_v26 = vpop.f32.mrb[13].mxu0  ;;  %v6472_v46 = vld [vmem:[#allocation2 + $0x1b8] sm:$0xff] }
 0x5ae   :  { %v15230_v14 = vpop.f32.mrb[25].mxu1  ;;  %v8463_v57 = vpop.f32.mrb[14].mxu0 }
 0x5af   :  { %13370 = vst [vmem:[#allocation3 + $0xb8] sm:$0xff] %v13256_v16   ;;  %v15386_v3 = vadd.f32 %v20190_v13, %v8642_v28  ;;  %v20222_v30 = vpop.f32.mrb[26].mxu1  ;;  %v8643_v4 = vadd.f32 %v8463_v57, %v7442_v12  ;;  %v14835_v22 = vpop.f32.mrb[15].mxu0  ;;  %v20785_v28 = vld [vmem:[#allocation191_spill] sm:$0xff]  ;;  %v20786_v57 = vld [vmem:[#allocation193_spill] sm:$0xff] }
 0x5b0   :  { %v15231_v48 = vpop.f32.mrb[27].mxu1  ;;  %v7447_v26 = vadd.f32 %v20785_v28, %v6471_v5 }
 0x5b1   :  { %11454 = vst [vmem:[#allocation2 + $0x180] sm:$0xff] %v15386_v3  ;;  %v15389_v27 = vadd.f32 %v20193_v29, %v8643_v4 }
 0x5b3   :  { %11455 = vst [vmem:[#allocation2 + $0x188] sm:$0xff] %v15389_v27  ;;  %v13261_v18 = vpack.c.bf16 %v15389_v27, %v15386_v3  ;;  %v7448_v3 = vadd.f32 %v20786_v57, %v6472_v46  ;;  %v6477_v57 = vld [vmem:[#allocation2 + $0x1e0] sm:$0xff] }
 0x5b4   :  { %v8468_v59 = vpop.f32.mrb[16].mxu0 }
 0x5b5   :  { %13371 = vst [vmem:[#allocation3 + $0xc0] sm:$0xff] %v13261_v18   ;;  %v20226_v60 = vpop.f32.mrb[176].mxu1  ;;  %v8644_v39 = vadd.f32 %v8468_v59, %v7443_v9  ;;  %v14838_v13 = vpop.f32.mrb[17].mxu0  ;;  %v6473_v18 = vld [vmem:[#allocation2 + $0x1c0] sm:$0xff]  ;;  %v6474_v59 = vld [vmem:[#allocation2 + $0x1c8] sm:$0xff] }
 0x5b6   :  { %v15234_v31 = vpop.f32.mrb[177].mxu1  ;;  %v8471_v42 = vpop.f32.mrb[18].mxu0  ;;  %v20787_v13 = vld [vmem:[#allocation196_spill] sm:$0xff] }
 0x5b7   :  { %v20229_v7 = vpop.f32.mrb[178].mxu1  ;;  %v10153_v51 = vadd.f32 %v19355_v32, %v8644_v39  ;;  %v8645_v29 = vadd.f32 %v8471_v42, %v7444_v37  ;;  %v14839_v56 = vpop.f32.mrb[19].mxu0  ;;  %v7449_v40 = vadd.f32 %v20787_v13, %v6473_v18 }
 0x5b8   :  { %v15235_v19 = vpop.f32.mrb[179].mxu1 }
 0x5b9   :  { %v11375_v44 = vadd.f32 %v20200_v45, %v10153_v51  ;;  %v10154_v25 = vadd.f32 %v19363_v21, %v8645_v29  ;;  %v20788_v29 = vld [vmem:[#allocation198_spill] sm:$0xff] }
 0x5ba   :  { %v7450_v56 = vadd.f32 %v20788_v29, %v6474_v59 }
 0x5bb   :  { %11456 = vst [vmem:[#allocation2 + $0x190] sm:$0xff] %v11375_v44  ;;  %v11376_v6 = vadd.f32 %v20204_v47, %v10154_v25 }
 0x5bc   :  { %v8476_v58 = vpop.f32.mrb[20].mxu0 }
 0x5bd   :  { %11457 = vst [vmem:[#allocation2 + $0x198] sm:$0xff] %v11376_v6  ;;  %v13266_v23 = vpack.c.bf16 %v11376_v6, %v11375_v44  ;;  %v20236_v0 = vpop.f32.mrb[28].mxu1  ;;  %v8646_v32 = vadd.f32 %v8476_v58, %v7445_v8  ;;  %v14842_v54 = vpop.f32.mrb[21].mxu0  ;;  %v6476_v8 = vld [vmem:[#allocation2 + $0x1d8] sm:$0xff] }
 0x5be   :  { %v15238_v62 = vpop.f32.mrb[29].mxu1  ;;  %v8479_v24 = vpop.f32.mrb[22].mxu0 }
 0x5bf   :  { %13372 = vst [vmem:[#allocation3 + $0xc8] sm:$0xff] %v13266_v23   ;;  %v15392_v21 = vadd.f32 %v20208_v55, %v8646_v32  ;;  %v20240_v45 = vpop.f32.mrb[30].mxu1  ;;  %v8647_v49 = vadd.f32 %v8479_v24, %v7446_v53  ;;  %v14843_v47 = vpop.f32.mrb[23].mxu0  ;;  %v7706_v23 = vld [vmem:[#allocation2 + $0x208] sm:$0xff]  ;;  %v8658_v53 = vadd.f32 %v20790_v50, %v7705_v63 }
 0x5c0   :  { %v15239_v10 = vpop.f32.mrb[31].mxu1  ;;  %v20789_v32 = vld [vmem:[#allocation195_spill] sm:$0xff] }
 0x5c1   :  { %11458 = vst [vmem:[#allocation2 + $0x1a0] sm:$0xff] %v15392_v21  ;;  %v15395_v17 = vadd.f32 %v20211_v20, %v8647_v49  ;;  %v7451_v54 = vadd.f32 %v20789_v32, %v6475_v33  ;;  %v20791_v49 = vld [vmem:[#allocation197_spill] sm:$0xff]  ;;  %v20798_v50 = vld [vmem:[#allocation227_spill] sm:$0xff] }
 0x5c2   :  { %v7452_v47 = vadd.f32 %v20791_v49, %v6476_v8 }
 0x5c3   :  { %11459 = vst [vmem:[#allocation2 + $0x1a8] sm:$0xff] %v15395_v17  ;;  %v13271_v16 = vpack.c.bf16 %v15395_v17, %v15392_v21  ;;  %v20792_v17 = vld [vmem:[#allocation223_spill] sm:$0xff] }
 0x5c4   :  { %v8484_v52 = vpop.f32.mrb[24].mxu0 }
 0x5c5   :  { %13373 = vst [vmem:[#allocation3 + $0xd0] sm:$0xff] %v13271_v16   ;;  %v20244_v12 = vpop.f32.mrb[184].mxu1  ;;  %v8648_v14 = vadd.f32 %v8484_v52, %v7447_v26  ;;  %v14846_v55 = vpop.f32.mrb[25].mxu0 }
 0x5c6   :  { %v15242_v4 = vpop.f32.mrb[185].mxu1  ;;  %v8487_v22 = vpop.f32.mrb[26].mxu0 }
 0x5c7   :  { %v20247_v48 = vpop.f32.mrb[186].mxu1  ;;  %v10157_v41 = vadd.f32 %v19395_v1, %v8648_v14  ;;  %v8649_v20 = vadd.f32 %v8487_v22, %v7448_v3  ;;  %v14847_v27 = vpop.f32.mrb[27].mxu0 }
 0x5c8   :  { %v15243_v34 = vpop.f32.mrb[187].mxu1  ;;  %v20793_v27 = vld [vmem:[#allocation200_spill] sm:$0xff] }
 0x5c9   :  { %v11379_v36 = vadd.f32 %v20218_v43, %v10157_v41  ;;  %v10158_v9 = vadd.f32 %v19403_v38, %v8649_v20  ;;  %v6478_v41 = vld [vmem:[#allocation2 + $0x1e8] sm:$0xff]  ;;  %v7453_v34 = vadd.f32 %v20793_v27, %v6477_v57 }
 0x5cb   :  { %11460 = vst [vmem:[#allocation2 + $0x1b0] sm:$0xff] %v11379_v36  ;;  %v11380_v39 = vadd.f32 %v20222_v30, %v10158_v9 }
 0x5cc   :  { %v8492_v37 = vpop.f32.mrb[28].mxu0 }
 0x5cd   :  { %11461 = vst [vmem:[#allocation2 + $0x1b8] sm:$0xff] %v11380_v39  ;;  %v13276_v31 = vpack.c.bf16 %v11380_v39, %v11379_v36  ;;  %v20254_v42 = vpop.f32.mrb[32].mxu1  ;;  %v8650_v1 = vadd.f32 %v8492_v37, %v7449_v40  ;;  %v14850_v51 = vpop.f32.mrb[29].mxu0  ;;  %v20794_v39 = vld [vmem:[#allocation202_spill] sm:$0xff] }
 0x5ce   :  { %v15246_v19 = vpop.f32.mrb[33].mxu1  ;;  %v8495_v35 = vpop.f32.mrb[30].mxu0  ;;  %v7454_v13 = vadd.f32 %v20794_v39, %v6478_v41  ;;  %v7714_v39 = vld [vmem:[#allocation2 + $0x248] sm:$0xff] }
 0x5cf   :  { %13374 = vst [vmem:[#allocation3 + $0xd8] sm:$0xff] %v13276_v31   ;;  %v15398_v38 = vadd.f32 %v20226_v60, %v8650_v1  ;;  %v20258_v43 = vpop.f32.mrb[34].mxu1  ;;  %v8651_v44 = vadd.f32 %v8495_v35, %v7450_v56  ;;  %v14851_v30 = vpop.f32.mrb[31].mxu0  ;;  %v6479_v56 = vld [vmem:[#allocation2 + $0x1f0] sm:$0xff]  ;;  %v7709_v35 = vld [vmem:[#allocation2 + $0x220] sm:$0xff] }
 0x5d0   :  { %v15247_v25 = vpop.f32.mrb[35].mxu1  ;;  %v7710_v30 = vld [vmem:[#allocation2 + $0x228] sm:$0xff] }
 0x5d1   :  { %11462 = vst [vmem:[#allocation2 + $0x1c0] sm:$0xff] %v15398_v38  ;;  %v15401_v6 = vadd.f32 %v20229_v7, %v8651_v44  ;;  %v8659_v7 = vadd.f32 %v20792_v17, %v7706_v23  ;;  %v20795_v25 = vld [vmem:[#allocation199_spill] sm:$0xff]  ;;  %v20797_v23 = vld [vmem:[#allocation201_spill] sm:$0xff] }
 0x5d2   :  { %v7455_v33 = vadd.f32 %v20795_v25, %v6479_v56 }
 0x5d3   :  { %11463 = vst [vmem:[#allocation2 + $0x1c8] sm:$0xff] %v15401_v6  ;;  %v13281_v58 = vpack.c.bf16 %v15401_v6, %v15398_v38 }
 0x5d4   :  { %v8500_v62 = vpop.f32.mrb[32].mxu0 }
 0x5d5   :  { %13375 = vst [vmem:[#allocation3 + $0xe0] sm:$0xff] %v13281_v58   ;;  %v11255_v60 = vpop.f32.mrb[192].mxu1  ;;  %v8652_v24 = vadd.f32 %v8500_v62, %v7451_v54  ;;  %v14854_v21 = vpop.f32.mrb[33].mxu0 }
 0x5d6   :  { %v15410_v10 = vadd.f32 %v11255_v60, %v8658_v53  ;;  %v15250_v5 = vpop.f32.mrb[193].mxu1  ;;  %v8503_v46 = vpop.f32.mrb[34].mxu0  ;;  %v8663_v53 = vadd.f32 %v20798_v50, %v7710_v30 }
 0x5d7   :  { %v11258_v16 = vpop.f32.mrb[194].mxu1  ;;  %v10161_v28 = vadd.f32 %v19435_v2, %v8652_v24  ;;  %v8653_v26 = vadd.f32 %v8503_v46, %v7452_v47  ;;  %v14855_v52 = vpop.f32.mrb[35].mxu0  ;;  %v20799_v24 = vld [vmem:[#allocation71_spill] sm:$0xff] }
 0x5d8   :  { %11470 = vst [vmem:[#allocation2 + $0x200] sm:$0xff] %v15410_v10  ;;  %v15413_v14 = vadd.f32 %v11258_v16, %v8659_v7  ;;  %v15251_v55 = vpop.f32.mrb[195].mxu1  ;;  %v20800_v7 = vld [vmem:[#allocation7_spill] sm:$0xff] }
 0x5d9   :  { %v11383_v3 = vadd.f32 %v20236_v0, %v10161_v28  ;;  %v10162_v4 = vadd.f32 %v19443_v11, %v8653_v26  ;;  %v10265_v26 = vld [vmem:[#allocation2 + $0x283] sm:$0xff] }
 0x5da   :  { %11471 = vst [vmem:[#allocation2 + $0x208] sm:$0xff] %v15413_v14  ;;  %v13301_v22 = vpack.c.bf16 %v15413_v14, %v15410_v10 }
 0x5db   :  { %11464 = vst [vmem:[#allocation2 + $0x1d0] sm:$0xff] %v11383_v3  ;;  %v11384_v20 = vadd.f32 %v20240_v45, %v10162_v4  ;;  %v20801_v4 = vld [vmem:[#allocation73_spill] sm:$0xff] }
 0x5dc   :  { %13379 = vst [vmem:[#allocation3 + $0x100] sm:$0xff] %v13301_v22   ;;  %v8508_v2 = vpop.f32.mrb[36].mxu0 }
 0x5dd   :  { %11465 = vst [vmem:[#allocation2 + $0x1d8] sm:$0xff] %v11384_v20  ;;  %v13286_v18 = vpack.c.bf16 %v11384_v20, %v11383_v3  ;;  %v11263_v36 = vpop.f32.mrb[36].mxu1  ;;  %v8654_v9 = vadd.f32 %v8508_v2, %v7453_v34  ;;  %v14858_v59 = vpop.f32.mrb[37].mxu0  ;;  %v10266_v20 = vld [vmem:[#allocation2 + $0x28b] sm:$0xff] }
 0x5de   :  { %v11391_v0 = vadd.f32 %v11263_v36, %v19586_v15  ;;  %v15254_v11 = vpop.f32.mrb[37].mxu1  ;;  %v8511_v40 = vpop.f32.mrb[38].mxu0  ;;  %v6480_v15 = vld [vmem:[#allocation2 + $0x1f8] sm:$0xff] }
 0x5df   :  { %13376 = vst [vmem:[#allocation3 + $0xe8] sm:$0xff] %v13286_v18   ;;  %v11266_v37 = vpop.f32.mrb[38].mxu1  ;;  %v15404_v31 = vadd.f32 %v20244_v12, %v8654_v9  ;;  %v8655_v45 = vadd.f32 %v8511_v40, %v7454_v13  ;;  %v14859_v1 = vpop.f32.mrb[39].mxu0  ;;  %v20796_v12 = vld [vmem:[#allocation226_spill] sm:$0xff]  ;;  %v7456_v32 = vadd.f32 %v20797_v23, %v6480_v15  ;;  %v10267_v11 = vld [vmem:[#allocation2 + $0x293] sm:$0xff] }
 0x5e0   :  { %11472 = vst [vmem:[#allocation2 + $0x210] sm:$0xff] %v11391_v0  ;;  %v11392_v51 = vadd.f32 %v11266_v37, %v19600_v61  ;;  %v15255_v29 = vpop.f32.mrb[39].mxu1  ;;  %v8662_v6 = vadd.f32 %v20796_v12, %v7709_v35  ;;  %v7713_v9 = vld [vmem:[#allocation2 + $0x240] sm:$0xff] }
 0x5e1   :  { %11466 = vst [vmem:[#allocation2 + $0x1e0] sm:$0xff] %v15404_v31  ;;  %v15407_v19 = vadd.f32 %v20247_v48, %v8655_v45  ;;  %v20803_v13 = vld [vmem:[#allocation230_spill] sm:$0xff]  ;;  %v20804_v29 = vld [vmem:[#allocation231_spill] sm:$0xff] }
 0x5e2   :  { %11473 = vst [vmem:[#allocation2 + $0x218] sm:$0xff] %v11392_v51  ;;  %v13306_v38 = vpack.c.bf16 %v11392_v51, %v11391_v0  ;;  %v8666_v0 = vadd.f32 %v20803_v13, %v7713_v9  ;;  %v8667_v56 = vadd.f32 %v20804_v29, %v7714_v39  ;;  %v10269_v12 = vld [vmem:[#allocation2 + $0x2a3] sm:$0x1f] }
 0x5e3   :  { %11467 = vst [vmem:[#allocation2 + $0x1e8] sm:$0xff] %v15407_v19  ;;  %v13291_v44 = vpack.c.bf16 %v15407_v19, %v15404_v31  ;;  %v10268_v19 = vld [vmem:[#allocation2 + $0x29b] sm:$0xff] }
 0x5e4   :  { %13380 = vst [vmem:[#allocation3 + $0x108] sm:$0xff] %v13306_v38   ;;  %v8516_v63 = vpop.f32.mrb[40].mxu0 }
 0x5e5   :  { %13377 = vst [vmem:[#allocation3 + $0xf0] sm:$0xff] %v13291_v44   ;;  %v11271_v61 = vpop.f32.mrb[200].mxu1  ;;  %v8656_v8 = vadd.f32 %v8516_v63, %v7455_v33  ;;  %v14862_v58 = vpop.f32.mrb[41].mxu0 }
 0x5e6   :  { %v15416_v48 = vadd.f32 %v11271_v61, %v8662_v6  ;;  %v15258_v54 = vpop.f32.mrb[201].mxu1  ;;  %v8519_v62 = vpop.f32.mrb[42].mxu0  ;;  %v20805_v58 = vld [vmem:[#allocation75_spill] sm:$0xff] }
 0x5e7   :  { %v11274_v60 = vpop.f32.mrb[202].mxu1  ;;  %v10165_v21 = vadd.f32 %v20799_v24, %v8656_v8  ;;  %v8657_v49 = vadd.f32 %v8519_v62, %v7456_v32  ;;  %v14863_v47 = vpop.f32.mrb[43].mxu0  ;;  %v7717_v24 = vld [vmem:[#allocation2 + $0x260] sm:$0xff] }
 0x5e8   :  { %11474 = vst [vmem:[#allocation2 + $0x220] sm:$0xff] %v15416_v48  ;;  %v15419_v10 = vadd.f32 %v11274_v60, %v8663_v53  ;;  %v15259_v5 = vpop.f32.mrb[203].mxu1  ;;  %v20806_v53 = vld [vmem:[#allocation6_spill] sm:$0xff] }
 0x5e9   :  { %v11387_v17 = vadd.f32 %v20254_v42, %v10165_v21  ;;  %v10166_v46 = vadd.f32 %v20800_v7, %v8657_v49  ;;  %v7718_v49 = vld [vmem:[#allocation2 + $0x268] sm:$0xff]  ;;  %v20807_v47 = vld [vmem:[#allocation234_spill] sm:$0xff] }
 0x5ea   :  { %11475 = vst [vmem:[#allocation2 + $0x228] sm:$0xff] %v15419_v10  ;;  %v13311_v16 = vpack.c.bf16 %v15419_v10, %v15416_v48  ;;  %v8670_v10 = vadd.f32 %v20807_v47, %v7717_v24 }
 0x5eb   :  { %11468 = vst [vmem:[#allocation2 + $0x1f0] sm:$0xff] %v11387_v17  ;;  %v11388_v28 = vadd.f32 %v20258_v43, %v10166_v46  ;;  %v20802_v43 = vld [vmem:[#allocation9_spill] sm:$0xff] }
 0x5ec   :  { %13381 = vst [vmem:[#allocation3 + $0x110] sm:$0xff] %v13311_v16   ;;  %v10331_v52 = vpop.f32.mrb[44].mxu0 }
 0x5ed   :  { %11469 = vst [vmem:[#allocation2 + $0x1f8] sm:$0xff] %v11388_v28  ;;  %v13296_v14 = vpack.c.bf16 %v11388_v28, %v11387_v17  ;;  %v11279_v55 = vpop.f32.mrb[40].mxu1  ;;  %v10353_v57 = vadd.f32 %v10331_v52, %v10265_v26  ;;  %v15102_v3 = vpop.f32.mrb[45].mxu0  ;;  %v20808_v52 = vld [vmem:[#allocation235_spill] sm:$0xff] }
 0x5ee   :  { %v11395_v22 = vadd.f32 %v11279_v55, %v20801_v4  ;;  %v15262_v41 = vpop.f32.mrb[41].mxu1  ;;  %v10334_v42 = vpop.f32.mrb[46].mxu0 }
 0x5ef   :  { %13378 = vst [vmem:[#allocation3 + $0xf8] sm:$0xff] %v13296_v14   ;;  %v11282_v27 = vpop.f32.mrb[42].mxu1  ;;  %10358 = vst [vmem:[#allocation2 + $0x283] sm:$0xff] %v10353_v57  ;;  %v10354_v34 = vadd.f32 %v10334_v42, %v10266_v20  ;;  %v15103_v2 = vpop.f32.mrb[47].mxu0  ;;  %v8671_v14 = vadd.f32 %v20808_v52, %v7718_v49 }
 0x5f0   :  { %11476 = vst [vmem:[#allocation2 + $0x230] sm:$0xff] %v11395_v22  ;;  %v11396_v18 = vadd.f32 %v11282_v27, %v20802_v43  ;;  %v15263_v36 = vpop.f32.mrb[43].mxu1 }
 0x5f1   :  { %10359 = vst [vmem:[#allocation2 + $0x28b] sm:$0xff] %v10354_v34  ;;  %v20809_v36 = vld [vmem:[#allocation72_spill] sm:$0xff] }
 0x5f2   :  { %11477 = vst [vmem:[#allocation2 + $0x238] sm:$0xff] %v11396_v18  ;;  %v13316_v59 = vpack.c.bf16 %v11396_v18, %v11395_v22 }
 0x5f4   :  { %13382 = vst [vmem:[#allocation3 + $0x118] sm:$0xff] %v13316_v59   ;;  %v10339_v40 = vpop.f32.mrb[48].mxu0 }
 0x5f5   :  { %v11287_v37 = vpop.f32.mrb[208].mxu1  ;;  %v10355_v31 = vadd.f32 %v10339_v40, %v10267_v11  ;;  %v15106_v45 = vpop.f32.mrb[49].mxu0 }
 0x5f6   :  { %v15422_v1 = vadd.f32 %v11287_v37, %v8666_v0  ;;  %v15266_v51 = vpop.f32.mrb[209].mxu1  ;;  %v10342_v35 = vpop.f32.mrb[50].mxu0  ;;  %v11487_v5 = vld [vmem:[#allocation2 + $0x282] sm:$0xff]  ;;  %v20810_v37 = vld [vmem:[#allocation8_spill] sm:$0xff] }
 0x5f7   :  { %v11290_v38 = vpop.f32.mrb[210].mxu1  ;;  %10360 = vst [vmem:[#allocation2 + $0x293] sm:$0xff] %v10355_v31  ;;  %v10356_v15 = vadd.f32 %v10342_v35, %v10268_v19  ;;  %v15107_v44 = vpop.f32.mrb[51].mxu0 }
 0x5f8   :  { %11478 = vst [vmem:[#allocation2 + $0x240] sm:$0xff] %v15422_v1  ;;  %v15425_v30 = vadd.f32 %v11290_v38, %v8667_v56  ;;  %v15267_v25 = vpop.f32.mrb[211].mxu1  ;;  %v11488_v55 = vld [vmem:[#allocation2 + $0x28a] sm:$0xff]  ;;  %v10451_v56 = vld [vmem:[#allocation2 + $0x280] sm:$0x3] }
 0x5f9   :  { %10361 = vst [vmem:[#allocation2 + $0x29b] sm:$0xff] %v10356_v15 }
 0x5fa   :  { %11479 = vst [vmem:[#allocation2 + $0x248] sm:$0xff] %v15425_v30  ;;  %v13321_v33 = vpack.c.bf16 %v15425_v30, %v15422_v1 }
 0x5fc   :  { %13383 = vst [vmem:[#allocation3 + $0x120] sm:$0xff] %v13321_v33   ;;  %v10347_v6 = vpop.f32.mrb[52].mxu0 }
 0x5fd   :  { %v11295_v63 = vpop.f32.mrb[44].mxu1  ;;  %v10357_v61 = vadd.f32 %v10347_v6, %v10269_v12  ;;  %v15110_v8 = vpop.f32.mrb[53].mxu0 }
 0x5fe   :  { %v11399_v23 = vadd.f32 %v11295_v63, %v20805_v58  ;;  %v15270_v32 = vpop.f32.mrb[45].mxu1  ;;  %v10350_v48 = vpop.f32.mrb[54].mxu0  ;;  %v11489_v27 = vld [vmem:[#allocation2 + $0x292] sm:$0xff] }
 0x5ff   :  { %v11298_v54 = vpop.f32.mrb[46].mxu1  ;;  %10362 = vst [vmem:[#allocation2 + $0x2a3] sm:$0x1f] %v10357_v61  ;;  %v15111_v50 = vpop.f32.mrb[55].mxu0 }
 0x600   :  { %11480 = vst [vmem:[#allocation2 + $0x250] sm:$0xff] %v11399_v23  ;;  %v11400_v62 = vadd.f32 %v11298_v54, %v20806_v53  ;;  %v15271_v60 = vpop.f32.mrb[47].mxu1  ;;  %v11490_v39 = vld [vmem:[#allocation2 + $0x29a] sm:$0xff] }
 0x602   :  { %11481 = vst [vmem:[#allocation2 + $0x258] sm:$0xff] %v11400_v62  ;;  %v13326_v21 = vpack.c.bf16 %v11400_v62, %v11399_v23 }
 0x604   :  { %13384 = vst [vmem:[#allocation3 + $0x128] sm:$0xff] %v13326_v21   ;;  %v11553_v17 = vpop.f32.mrb[56].mxu0 }
 0x605   :  { %v11303_v7 = vpop.f32.mrb[216].mxu1  ;;  %v11575_v46 = vadd.f32 %v11553_v17, %v11487_v5  ;;  %v15294_v16 = vpop.f32.mrb[57].mxu0 }
 0x606   :  { %v15428_v28 = vadd.f32 %v11303_v7, %v8670_v10  ;;  %v15274_v26 = vpop.f32.mrb[217].mxu1  ;;  %v11556_v57 = vpop.f32.mrb[58].mxu0  ;;  %v11491_v51 = vld [vmem:[#allocation2 + $0x2a2] sm:$0x3f] }
 0x607   :  { %v11306_v3 = vpop.f32.mrb[218].mxu1  ;;  %11580 = vst [vmem:[#allocation2 + $0x282] sm:$0xff] %v11575_v46  ;;  %v11576_v4 = vadd.f32 %v11556_v57, %v11488_v55  ;;  %v15295_v22 = vpop.f32.mrb[59].mxu0 }
 0x608   :  { %11482 = vst [vmem:[#allocation2 + $0x260] sm:$0xff] %v15428_v28  ;;  %v15431_v41 = vadd.f32 %v11306_v3, %v8671_v14  ;;  %v15275_v20 = vpop.f32.mrb[219].mxu1 }
 0x609   :  { %11581 = vst [vmem:[#allocation2 + $0x28a] sm:$0xff] %v11576_v4 }
 0x60a   :  { %11483 = vst [vmem:[#allocation2 + $0x268] sm:$0xff] %v15431_v41  ;;  %v13331_v42 = vpack.c.bf16 %v15431_v41, %v15428_v28 }
 0x60c   :  { %13385 = vst [vmem:[#allocation3 + $0x130] sm:$0xff] %v13331_v42   ;;  %v11561_v34 = vpop.f32.mrb[60].mxu0 }
 0x60d   :  { %v11311_v2 = vpop.f32.mrb[48].mxu1  ;;  %v11577_v43 = vadd.f32 %v11561_v34, %v11489_v27  ;;  %v15298_v18 = vpop.f32.mrb[61].mxu0 }
 0x60e   :  { %v11403_v9 = vadd.f32 %v11311_v2, %v20809_v36  ;;  %v15278_v59 = vpop.f32.mrb[49].mxu1  ;;  %v11564_v13 = vpop.f32.mrb[62].mxu0 }
 0x60f   :  { %v11314_v0 = vpop.f32.mrb[50].mxu1  ;;  %11582 = vst [vmem:[#allocation2 + $0x292] sm:$0xff] %v11577_v43  ;;  %v11578_v11 = vadd.f32 %v11564_v13, %v11490_v39  ;;  %v15299_v40 = vpop.f32.mrb[63].mxu0 }
 0x610   :  { %11484 = vst [vmem:[#allocation2 + $0x270] sm:$0xff] %v11403_v9  ;;  %v11404_v31 = vadd.f32 %v11314_v0, %v20810_v37  ;;  %v15279_v45 = vpop.f32.mrb[51].mxu1  ;;  %v11666_v23 = vld [vmem:[#allocation2 + $0x288] sm:$0xff] }
 0x611   :  { %11583 = vst [vmem:[#allocation2 + $0x29a] sm:$0xff] %v11578_v11 }
 0x612   :  { %11485 = vst [vmem:[#allocation2 + $0x278] sm:$0xff] %v11404_v31  ;;  %v13336_v1 = vpack.c.bf16 %v11404_v31, %v11403_v9 }
 0x614   :  { %13386 = vst [vmem:[#allocation3 + $0x138] sm:$0xff] %v13336_v1   ;;  %v11569_v29 = vpop.f32.mrb[64].mxu0 }
 0x615   :  { %v11319_v19 = vpop.f32.mrb[52].mxu1  ;;  %v11579_v35 = vadd.f32 %v11569_v29, %v11491_v51  ;;  %v15302_v38 = vpop.f32.mrb[65].mxu0 }
 0x616   :  { %v11405_v15 = vadd.f32 %v11319_v19, %v10451_v56  ;;  %v15282_v44 = vpop.f32.mrb[53].mxu1  ;;  %v11572_v30 = vpop.f32.mrb[66].mxu0  ;;  %v11667_v12 = vld [vmem:[#allocation2 + $0x290] sm:$0xff] }
 0x617   :  { %v11322_v25 = vpop.f32.mrb[54].mxu1  ;;  %11584 = vst [vmem:[#allocation2 + $0x2a2] sm:$0x3f] %v11579_v35  ;;  %v15303_v33 = vpop.f32.mrb[67].mxu0 }
 0x618   :  { %v11668_v6 = vld [vmem:[#allocation2 + $0x298] sm:$0xff]  ;;  %11486 = vst [vmem:[#allocation2 + $0x280] sm:$0x3] %v11405_v15  ;;  %v15283_v63 = vpop.f32.mrb[55].mxu1 }
 0x619   :  { %v13346_v61 = vpack.c.bf16 %v11668_v6, %v11667_v12 }
 0x61b   :  { %13388 = vst [vmem:[#allocation3 + $0x148] sm:$0xff] %v13346_v61  }
 0x61e   :  { %v11669_v8 = vld [vmem:[#allocation2 + $0x2a0] sm:$0xff] }
 0x61f   :  { %v11665_v58 = vld [vmem:[#allocation2 + $0x280] sm:$0xff]  ;;  %v13137_v32 = vpack.c.bf16 %v11669_v8, %v11669_v8 }
 0x620   :  { %v13341_v48 = vpack.c.bf16 %v11666_v23, %v11665_v58 }
 0x621   :  { %12095 = vst [vmem:[#allocation3 + $0x150] sm:$0xf] %v13137_v32 }
 0x622   :  { %13387 = vst [vmem:[#allocation3 + $0x140] sm:$0xff] %v13341_v48  }
 0x623   :  { %16307 = shalt.err (!%p16304_p4)
}
 0x624   :  { %s16308_s13 = scalar_lea.hbm %s20308_s3, 5440 }
 0x625   :  { %p16309_p5 = scmp.ne.s32.totalorder %s20308_s3, %s16308_s13  ;;  %p16312_p6 = scmp.lt.u32.totalorder %s16308_s13, %s20308_s3 }
 0x627   :  { %p16314_p7 = pnand %p16312_p6, %p16309_p5 }
 0x629   :  { %16317 = shalt.err (!%p16314_p7)
}
 0x62a   :  { %s16323_s18 = smov 64   ;;  %s16324_s19 = smov 4  }
 0x62b   :  { %12107 = dma.vmem_to_hbm [thread:$0]  %s12102_s9, 5440, %s20308_s3, [#allocation4], %s16323_s18, %s16323_s18, %s16324_s19  }
 0x62c   :  { %16318 = dma.done.wait [#allocation4], 5440  }
 0x62d   :  { %16319 = vsyncadd [#allocation4], 4294961856 }
 0x62e   :  { %12111 = vsyncpa [#allocation4], 1 }

</bundles_post_ra>
